<compile_context>
chip_gen: v7x
topology: tpu7x:2x2x1
jax: 0.10.0
libtpu: 0.0.40
codegen_flags: <defaults>
</compile_context>

<pallas_src>
import functools

import numpy as np
import jax
import jax.numpy as jnp
from jax import lax
from jax.experimental import pallas as pl
from jax.experimental.pallas import tpu as pltpu

VMEM_SPEC = pl.BlockSpec(memory_space=pltpu.MemorySpace.VMEM)


# --------------------------------------------------------------------------
# Kernel 1: fused conv1 + BN + ReLU + conv2 + BN + ReLU (NHWC, 3x3, pad=1)
# --------------------------------------------------------------------------
def _phasenet_conv_kernel(xpad_ref, w1_ref, s1_ref, t1_ref,
                          w2_ref, s2_ref, t2_ref,
                          o_ref,
                          patch1_ref, h1pad_ref, patch2_ref):
  # xpad:    (B, H+2, W+2, Cin)   zero-padded NHWC input
  # w1:      (9*Cin, C1)          3x3 taps folded into the contraction dim
  # w2:      (9*C1,  C2)
  # s*/t*:   (1, C)               folded BatchNorm scale / (shift + scale*bias)
  # o:       (B, H, W, C2)
  # patch1:  (B, H, W, 9*Cin)     conv1 im2col scratch
  # h1pad:   (B, H+2, W+2, C1)    conv1 activation, already zero-padded
  # patch2:  (B, H, W, 9*C1)      conv2 im2col scratch
  B, Hp, Wp, Cin = xpad_ref.shape
  H, W = Hp - 2, Wp - 2
  C1 = w1_ref.shape[1]

  # ---- conv1 im2col: one whole-slab copy per 3x3 tap (9 copies) -----------
  for dy in range(3):
    for dx in range(3):
      c0 = (dy * 3 + dx) * Cin
      patch1_ref[:, :, :, c0:c0 + Cin] = xpad_ref[:, dy:dy + H, dx:dx + W, :]

  # ---- conv1 matmul + folded-BN + ReLU, written straight into the padded
  #      activation buffer (halo for conv2, no separate re-pack pass) -------
  h1pad_ref[...] = jnp.zeros(h1pad_ref.shape, jnp.float32)
  for b in range(B):
    for i in range(H):
      h = jnp.dot(patch1_ref[b, i, :, :], w1_ref[...],
                  preferred_element_type=jnp.float32)
      h1pad_ref[b, i + 1, 1:W + 1, :] = jnp.maximum(
          h * s1_ref[...] + t1_ref[...], 0.0)

  # ---- conv2 im2col (9 slab copies) + matmul + epilogue --------------------
  for dy in range(3):
    for dx in range(3):
      c0 = (dy * 3 + dx) * C1
      patch2_ref[:, :, :, c0:c0 + C1] = h1pad_ref[:, dy:dy + H, dx:dx + W, :]

  for b in range(B):
    for i in range(H):
      h = jnp.dot(patch2_ref[b, i, :, :], w2_ref[...],
                  preferred_element_type=jnp.float32)
      o_ref[b, i, :, :] = jnp.maximum(h * s2_ref[...] + t2_ref[...], 0.0)


def phasenet_conv(x_pad, p1, p2):
  B, Hp, Wp, Cin = x_pad.shape
  H, W = Hp - 2, Wp - 2
  C1 = p1["w"].shape[1]
  C2 = p2["w"].shape[1]
  P = B * H * W
  flops = 2 * P * (9 * Cin * C1 + 9 * C1 * C2)
  bytes_accessed = 4 * (x_pad.size + p1["w"].size + p2["w"].size + P * C2)
  return pl.pallas_call(
      _phasenet_conv_kernel,
      out_shape=jax.ShapeDtypeStruct((B, H, W, C2), jnp.float32),
      in_specs=[VMEM_SPEC] * 7,
      out_specs=VMEM_SPEC,
      scratch_shapes=[
          pltpu.VMEM((B, H, W, 9 * Cin), jnp.float32),   # conv1 im2col
          pltpu.VMEM((B, Hp, Wp, C1), jnp.float32),      # padded conv1 act
          pltpu.VMEM((B, H, W, 9 * C1), jnp.float32),    # conv2 im2col
      ],
      cost_estimate=pl.CostEstimate(flops=flops, transcendentals=0,
                                    bytes_accessed=bytes_accessed),
  )(x_pad, p1["w"], p1["scale"], p1["shift"],
    p2["w"], p2["scale"], p2["shift"])


# --------------------------------------------------------------------------
# Kernel 2: fc1 + fc2 + Theta normalisation + effective channel + BeamNet + W
# --------------------------------------------------------------------------
def _phasenet_tail_kernel(feat_ref,
                          w_fc1, s_fc1, t_fc1,
                          w2re, w2im, sh2re, sh2im,
                          atop_ref, abot_ref,
                          w_b1, s_b1, t_b1,
                          w_b2, s_b2, t_b2,
                          w_b3, t_b3,
                          tre_ref, tim_ref, wflat_ref,
                          eff_ref,
                          *, K, norm_gain):
  B = feat_ref.shape[0]
  J = wflat_ref.shape[1]          # 2*M*K
  twoM = J // K

  # --- PhaseNet head: fc1 + folded BN + ReLU -------------------------------
  h = jnp.dot(feat_ref[...], w_fc1[...], preferred_element_type=jnp.float32)
  h = jnp.maximum(h * s_fc1[...] + t_fc1[...], 0.0)

  # --- fc2 split into (re, im) halves (split done at init) -----------------
  p_re = jnp.dot(h, w2re[...], preferred_element_type=jnp.float32) + sh2re[...]
  p_im = jnp.dot(h, w2im[...], preferred_element_type=jnp.float32) + sh2im[...]

  # --- Theta: F.normalize over each (re, im) pair, rsqrt on the EUP --------
  inv = jax.lax.rsqrt(jnp.maximum(p_re * p_re + p_im * p_im, 1e-24))
  tre_ref[...] = p_re * inv
  tim_ref[...] = p_im * inv

  # --- effective channel as per-batch matmuls on the MXU -------------------
  # eff[b, :] = theta_re[b] @ Atop[b] + theta_im[b] @ Abot[b]
  for b in range(B):
    eff_ref[b:b + 1, :] = (
        jnp.dot(tre_ref[b:b + 1, :], atop_ref[b],
                preferred_element_type=jnp.float32)
        + jnp.dot(tim_ref[b:b + 1, :], abot_ref[b],
                  preferred_element_type=jnp.float32))
  eff = eff_ref[...]

  # --- BeamNet --------------------------------------------------------------
  h = jnp.maximum(jnp.dot(eff, w_b1[...], preferred_element_type=jnp.float32)
                  * s_b1[...] + t_b1[...], 0.0)
  h = jnp.maximum(jnp.dot(h, w_b2[...], preferred_element_type=jnp.float32)
                  * s_b2[...] + t_b2[...], 0.0)
  w_raw = jnp.dot(h, w_b3[...], preferred_element_type=jnp.float32) + t_b3[...]

  # --- W row-normalisation (groups of K lanes) via indicator matmuls -------
  j_a = jax.lax.broadcasted_iota(jnp.int32, (J, twoM), 0)
  r_a = jax.lax.broadcasted_iota(jnp.int32, (J, twoM), 1)
  G = jnp.where((j_a >= r_a * K) & (j_a < (r_a + 1) * K), 1.0, 0.0)   # (J, 2M)
  r_b = jax.lax.broadcasted_iota(jnp.int32, (twoM, J), 0)
  j_b = jax.lax.broadcasted_iota(jnp.int32, (twoM, J), 1)
  GT = jnp.where((j_b >= r_b * K) & (j_b < (r_b + 1) * K), 1.0, 0.0)  # (2M, J)

  sumsq = jnp.dot(w_raw * w_raw, G, preferred_element_type=jnp.float32)
  inv_n = jax.lax.rsqrt(jnp.maximum(sumsq, 1e-24))
  inv_full = jnp.dot(inv_n, GT, preferred_element_type=jnp.float32)   # (B, J)
  wflat_ref[...] = w_raw * inv_full * norm_gain


def phasenet_tail(feat, a_top, a_bot, params, *, K, Pt):
  B, Fin = feat.shape
  N = params["fc2"]["w_re"].shape[1]
  F1 = params["fc1"]["w"].shape[1]
  J = params["b3"]["w"].shape[1]
  gain = float(np.sqrt(Pt) / K)
  flops = 2 * B * (Fin * F1 + F1 * 2 * N + 2 * N * J
                   + J * 100 + 100 * 100 + 100 * J + 2 * J * (J // K))
  bytes_accessed = 4 * (feat.size + a_top.size + a_bot.size
                        + params["fc1"]["w"].size + params["b1"]["w"].size
                        + params["b2"]["w"].size + params["b3"]["w"].size
                        + B * (2 * N + J))
  kernel = functools.partial(_phasenet_tail_kernel, K=K, norm_gain=gain)
  return pl.pallas_call(
      kernel,
      out_shape=(jax.ShapeDtypeStruct((B, N), jnp.float32),
                 jax.ShapeDtypeStruct((B, N), jnp.float32),
                 jax.ShapeDtypeStruct((B, J), jnp.float32)),
      in_specs=[VMEM_SPEC] * 18,
      out_specs=(VMEM_SPEC, VMEM_SPEC, VMEM_SPEC),
      scratch_shapes=[pltpu.VMEM((B, J), jnp.float32)],
      cost_estimate=pl.CostEstimate(flops=flops,
                                    transcendentals=B * (N + J // K),
                                    bytes_accessed=bytes_accessed),
  )(feat,
    params["fc1"]["w"], params["fc1"]["scale"], params["fc1"]["shift"],
    params["fc2"]["w_re"], params["fc2"]["w_im"],
    params["fc2"]["shift_re"], params["fc2"]["shift_im"],
    a_top, a_bot,
    params["b1"]["w"], params["b1"]["scale"], params["b1"]["shift"],
    params["b2"]["w"], params["b2"]["scale"], params["b2"]["shift"],
    params["b3"]["w"], params["b3"]["shift"])


# --------------------------------------------------------------------------
# Parameters (deterministic synthetic init, mirroring nn.Module shapes)
# --------------------------------------------------------------------------
def init_params(key, M, N, K):
  eps = 1e-5
  Hs, Ws = M, N + 1
  C1 = C2 = 64
  f32 = jnp.float32

  def fold(bias, with_bn):
    c = bias.shape[0]
    if with_bn:
      gamma = jnp.ones((c,), f32)
      beta = jnp.zeros((c,), f32)
      mean = jnp.zeros((c,), f32)
      var = jnp.ones((c,), f32)
      scale = gamma / jnp.sqrt(var + eps)
      shift = beta - mean * scale
    else:
      scale = jnp.ones((c,), f32)
      shift = jnp.zeros((c,), f32)
    shift = shift + scale * bias          # fold the conv/linear bias
    return scale.reshape(1, c), shift.reshape(1, c)

  ks = iter(jax.random.split(key, 16))

  def conv_p(cin, cout):
    # PyTorch Conv2d weight (Cout, Cin, 3, 3) -> single (9*Cin, Cout) matrix,
    # row index = (dy*3 + dx)*Cin + cin  (matches the in-kernel im2col layout)
    w = jax.random.normal(next(ks), (cout, cin, 3, 3), f32) / np.sqrt(9.0 * cin)
    b = jax.random.normal(next(ks), (cout,), f32) * 0.01
    w_mat = jnp.transpose(w, (2, 3, 1, 0)).reshape(9 * cin, cout)
    scale, shift = fold(b, True)
    return dict(w=w_mat, scale=scale, shift=shift)

  def lin_w(fin, fout):
    # PyTorch Linear weight is (Fout, Fin); store as (Fin, Fout)
    w = jax.random.normal(next(ks), (fout, fin), f32) / np.sqrt(fin)
    b = jax.random.normal(next(ks), (fout,), f32) * 0.01
    return jnp.transpose(w), b

  # fc1: permute rows from PyTorch's NCHW flatten order (c, i, j) to the
  # kernel's HWC order (i, j, c) so no activation transpose is needed.
  w_fc1, b_fc1 = lin_w(C2 * Hs * Ws, 4 * N)
  w_fc1 = (w_fc1.reshape(C2, Hs, Ws, 4 * N)
                .transpose(1, 2, 0, 3)
                .reshape(C2 * Hs * Ws, 4 * N))
  s_fc1, t_fc1 = fold(b_fc1, True)

  # fc2: split columns into the (re, im) halves used by the Theta step
  w_fc2, b_fc2 = lin_w(4 * N, 2 * N)
  _, t_fc2 = fold(b_fc2, False)
  fc2 = dict(w_re=w_fc2[:, :N], w_im=w_fc2[:, N:],
             shift_re=t_fc2[:, :N], shift_im=t_fc2[:, N:])

  w_b1, b_b1 = lin_w(2 * K * M, 100)
  s_b1, t_b1 = fold(b_b1, True)
  w_b2, b_b2 = lin_w(100, 100)
  s_b2, t_b2 = fold(b_b2, True)
  w_b3, b_b3 = lin_w(100, 2 * M * K)
  _, t_b3 = fold(b_b3, False)

  return dict(
      conv1=conv_p(2 * K, C1),
      conv2=conv_p(C1, C2),
      fc1=dict(w=w_fc1, scale=s_fc1, shift=t_fc1),
      fc2=fc2,
      b1=dict(w=w_b1, scale=s_b1, shift=t_b1),
      b2=dict(w=w_b2, scale=s_b2, shift=t_b2),
      b3=dict(w=w_b3, shift=t_b3),
  )


# --------------------------------------------------------------------------
# Full forward pass (mirrors DNN.forward)
# --------------------------------------------------------------------------
def dnn_forward(params, x, H, d, *, M, N, K, Pt):
  B = x.shape[0]

  # --- assemble PhaseNet input: cat(x, [Re(d); Im(d)]) along width ----------
  d_c = d.reshape(B, 1, K, -1)
  d_ri = jnp.concatenate([jnp.real(d_c), jnp.imag(d_c)], axis=1)   # (B,2,K,M)
  d_ri = d_ri.reshape(B, 2 * K, -1, 1)                             # (B,2K,M,1)
  xin = jnp.concatenate([x, d_ri], axis=3)                         # (B,2K,M,N+1)

  # NCHW -> NHWC, one zero-pad; both convs run fused inside a single kernel.
  x_nhwc = jnp.transpose(xin, (0, 2, 3, 1))
  x_pad = jnp.pad(x_nhwc, ((0, 0), (1, 1), (1, 1), (0, 0)))

  conv_out = phasenet_conv(x_pad, params["conv1"], params["conv2"])  # (B,H,W,64)

  # Flatten in (H, W, C) order; the matching NCHW permutation is folded into
  # fc1's weight rows at init, so no activation transpose is needed here.
  feat = conv_out.reshape(B, -1)

  # --- real-valued effective-channel operator built from H -----------------
  # eff[b, k*2M + m]     = Re(sum_n H[b,m,n,k] * theta[b,n])
  # eff[b, k*2M + M + m] = Im(sum_n H[b,m,n,k] * theta[b,n])
  Hr = jnp.transpose(jnp.real(H), (0, 2, 3, 1))    # (B, N, K, M)
  Hi = jnp.transpose(jnp.imag(H), (0, 2, 3, 1))
  a_top = jnp.concatenate([Hr[:, :, :, None, :], Hi[:, :, :, None, :]],
                          axis=3).reshape(B, N, 2 * K * M)
  a_bot = jnp.concatenate([-Hi[:, :, :, None, :], Hr[:, :, :, None, :]],
                          axis=3).reshape(B, N, 2 * K * M)

  tre, tim, w_flat = phasenet_tail(feat, a_top, a_bot, params, K=K, Pt=Pt)

  Theta = jnp.stack([tre, tim], axis=2)            # (B, N, 2)
  W = w_flat.reshape(B, 2 * M, K)
  return Theta, W


# --------------------------------------------------------------------------
# Pure-JAX reference (eval-mode BN, HIGHEST precision) for validation only
# --------------------------------------------------------------------------
def dnn_forward_ref(params, x, H, d, *, M, N, K, Pt):
  B = x.shape[0]
  hp = jax.lax.Precision.HIGHEST

  d_c = d.reshape(B, 1, K, -1)
  d_ri = jnp.concatenate([jnp.real(d_c), jnp.imag(d_c)], axis=1)
  d_ri = d_ri.reshape(B, 2 * K, -1, 1)
  xin = jnp.concatenate([x, d_ri], axis=3)                   # NCHW (B,2K,M,N+1)

  def conv_bn_relu(z, p, cin):
    cout = p["w"].shape[1]
    w4 = p["w"].reshape(3, 3, cin, cout).transpose(3, 2, 0, 1)   # OIHW
    y = lax.conv_general_dilated(z, w4, (1, 1), ((1, 1), (1, 1)),
                                 dimension_numbers=("NCHW", "OIHW", "NCHW"),
                                 precision=hp)
    return jnp.maximum(y * p["scale"].reshape(1, -1, 1, 1)
                       + p["shift"].reshape(1, -1, 1, 1), 0.0)

  h = conv_bn_relu(xin, params["conv1"], 2 * K)
  h = conv_bn_relu(h, params["conv2"], 64)
  feat = jnp.transpose(h, (0, 2, 3, 1)).reshape(B, -1)       # (i, j, c) order

  h = jnp.dot(feat, params["fc1"]["w"], precision=hp)
  h = jnp.maximum(h * params["fc1"]["scale"] + params["fc1"]["shift"], 0.0)
  p_re = jnp.dot(h, params["fc2"]["w_re"], precision=hp) + params["fc2"]["shift_re"]
  p_im = jnp.dot(h, params["fc2"]["w_im"], precision=hp) + params["fc2"]["shift_im"]
  nrm = jnp.maximum(jnp.sqrt(p_re * p_re + p_im * p_im), 1e-12)
  tre, tim = p_re / nrm, p_im / nrm
  Theta = jnp.stack([tre, tim], axis=2)

  phase_vec = jnp.concatenate([tre, tim], axis=1)            # (B, 2N)
  effs = []
  for k1 in range(K):
    A_tran = jnp.transpose(H[:, :, :, k1], (0, 2, 1))        # (B, N, M)
    A1 = jnp.concatenate([jnp.real(A_tran), jnp.imag(A_tran)], axis=2)
    A2 = jnp.concatenate([-jnp.imag(A_tran), jnp.real(A_tran)], axis=2)
    A = jnp.concatenate([A1, A2], axis=1)                    # (B, 2N, 2M)
    effs.append(jnp.einsum("bnm,bn->bm", A, phase_vec, precision=hp))
  eff = jnp.concatenate(effs, axis=1)                        # (B, 2MK)

  h = jnp.maximum(jnp.dot(eff, params["b1"]["w"], precision=hp)
                  * params["b1"]["scale"] + params["b1"]["shift"], 0.0)
  h = jnp.maximum(jnp.dot(h, params["b2"]["w"], precision=hp)
                  * params["b2"]["scale"] + params["b2"]["shift"], 0.0)
  w_raw = jnp.dot(h, params["b3"]["w"], precision=hp) + params["b3"]["shift"]
  Wm = w_raw.reshape(B, 2 * M, K)
  Wm = Wm / jnp.maximum(jnp.linalg.norm(Wm, axis=2, keepdims=True), 1e-12)
  return Theta, Wm * (np.sqrt(Pt) / K)


# --------------------------------------------------------------------------
if __name__ == "__main__":
  M, N, K, Pt = 4, 8, 4, 4.0
  B = 2

  key = jax.random.PRNGKey(0)
  kp, kx, kdr, kdi, khr, khi = jax.random.split(key, 6)

  params = init_params(kp, M, N, K)
  x = jax.random.normal(kx, (B, 2 * K, M, N), jnp.float32)
  d = (jax.random.normal(kdr, (B, K, M), jnp.float32)
       + 1j * jax.random.normal(kdi, (B, K, M), jnp.float32))
  H = (jax.random.normal(khr, (B, M, N, K), jnp.float32)
       + 1j * jax.random.normal(khi, (B, M, N, K), jnp.float32))

  fwd = jax.jit(functools.partial(dnn_forward, M=M, N=N, K=K, Pt=Pt))
  Theta, W = fwd(params, x, H, d)
  Theta = jax.block_until_ready(Theta)
  W = jax.block_until_ready(W)

  assert Theta.shape == (B, N, 2) and W.shape == (B, 2 * M, K)
  assert bool(jnp.all(jnp.isfinite(Theta))) and bool(jnp.all(jnp.isfinite(W)))
  # Theta pairs are unit-norm; W rows have norm sqrt(Pt)/K.
  assert bool(jnp.allclose(jnp.sum(Theta * Theta, axis=2), 1.0, atol=1e-4))
  assert bool(jnp.allclose(jnp.linalg.norm(W, axis=2),
                           np.sqrt(Pt) / K, atol=1e-4))

  # Cross-check the fused Pallas path against a pure-JAX reference.
  Theta_ref, W_ref = dnn_forward_ref(params, x, H, d, M=M, N=N, K=K, Pt=Pt)
  t_err = float(jnp.max(jnp.abs(Theta - Theta_ref)))
  w_err = float(jnp.max(jnp.abs(W - W_ref)))
  assert t_err < 2e-2 and w_err < 2e-2, (t_err, w_err)

  print("KERNEL_OK")
</pallas_src>

<mosaic_0001>
module attributes {stable_mosaic.version = 11 : i64} {
  func.func @_phasenet_conv_kernel(%arg0: memref<2x6x11x8xf32, #tpu.memory_space<vmem>>, %arg1: memref<72x64xf32, #tpu.memory_space<vmem>>, %arg2: memref<1x64xf32, #tpu.memory_space<vmem>>, %arg3: memref<1x64xf32, #tpu.memory_space<vmem>>, %arg4: memref<576x64xf32, #tpu.memory_space<vmem>>, %arg5: memref<1x64xf32, #tpu.memory_space<vmem>>, %arg6: memref<1x64xf32, #tpu.memory_space<vmem>>, %arg7: memref<2x4x9x64xf32, #tpu.memory_space<vmem>>, %arg8: memref<2x4x9x72xf32, #tpu.memory_space<vmem>>, %arg9: memref<2x6x11x64xf32, #tpu.memory_space<vmem>>, %arg10: memref<2x4x9x576xf32, #tpu.memory_space<vmem>>) attributes {dimension_semantics = [], scalar_prefetch = 0 : i64, scratch_operands = 3 : i64, tpu.core_type = #tpu.core_type<tc>} {
    %c0 = arith.constant 0 : index
    %c0_0 = arith.constant 0 : index
    %c0_1 = arith.constant 0 : index
    %c0_2 = arith.constant 0 : index
    %0 = vector.load %arg0[%c0, %c0_0, %c0_1, %c0_2] : memref<2x6x11x8xf32, #tpu.memory_space<vmem>>, vector<2x4x9x8xf32>
    %c0_3 = arith.constant 0 : index
    %c0_4 = arith.constant 0 : index
    %c0_5 = arith.constant 0 : index
    %c0_6 = arith.constant 0 : index
    %1 = vector.load %arg8[%c0_3, %c0_4, %c0_5, %c0_6] : memref<2x4x9x72xf32, #tpu.memory_space<vmem>>, vector<2x4x9x8xf32>
    tpu.vector_store %arg8[%c0_3, %c0_4, %c0_5, %c0_6], %0 {strides = array<i32>} : memref<2x4x9x72xf32, #tpu.memory_space<vmem>>, vector<2x4x9x8xf32>,
    %c0_7 = arith.constant 0 : index
    %c0_8 = arith.constant 0 : index
    %c1 = arith.constant 1 : index
    %c0_9 = arith.constant 0 : index
    %2 = vector.load %arg0[%c0_7, %c0_8, %c1, %c0_9] : memref<2x6x11x8xf32, #tpu.memory_space<vmem>>, vector<2x4x9x8xf32>
    %c0_10 = arith.constant 0 : index
    %c0_11 = arith.constant 0 : index
    %c0_12 = arith.constant 0 : index
    %c8 = arith.constant 8 : index
    %3 = vector.load %arg8[%c0_10, %c0_11, %c0_12, %c8] : memref<2x4x9x72xf32, #tpu.memory_space<vmem>>, vector<2x4x9x8xf32>
    tpu.vector_store %arg8[%c0_10, %c0_11, %c0_12, %c8], %2 {strides = array<i32>} : memref<2x4x9x72xf32, #tpu.memory_space<vmem>>, vector<2x4x9x8xf32>,
    %c0_13 = arith.constant 0 : index
    %c0_14 = arith.constant 0 : index
    %c2 = arith.constant 2 : index
    %c0_15 = arith.constant 0 : index
    %4 = vector.load %arg0[%c0_13, %c0_14, %c2, %c0_15] : memref<2x6x11x8xf32, #tpu.memory_space<vmem>>, vector<2x4x9x8xf32>
    %c0_16 = arith.constant 0 : index
    %c0_17 = arith.constant 0 : index
    %c0_18 = arith.constant 0 : index
    %c16 = arith.constant 16 : index
    %5 = vector.load %arg8[%c0_16, %c0_17, %c0_18, %c16] : memref<2x4x9x72xf32, #tpu.memory_space<vmem>>, vector<2x4x9x8xf32>
    tpu.vector_store %arg8[%c0_16, %c0_17, %c0_18, %c16], %4 {strides = array<i32>} : memref<2x4x9x72xf32, #tpu.memory_space<vmem>>, vector<2x4x9x8xf32>,
    %c0_19 = arith.constant 0 : index
    %c1_20 = arith.constant 1 : index
    %c0_21 = arith.constant 0 : index
    %c0_22 = arith.constant 0 : index
    %6 = vector.load %arg0[%c0_19, %c1_20, %c0_21, %c0_22] : memref<2x6x11x8xf32, #tpu.memory_space<vmem>>, vector<2x4x9x8xf32>
    %c0_23 = arith.constant 0 : index
    %c0_24 = arith.constant 0 : index
    %c0_25 = arith.constant 0 : index
    %c24 = arith.constant 24 : index
    %7 = vector.load %arg8[%c0_23, %c0_24, %c0_25, %c24] : memref<2x4x9x72xf32, #tpu.memory_space<vmem>>, vector<2x4x9x8xf32>
    tpu.vector_store %arg8[%c0_23, %c0_24, %c0_25, %c24], %6 {strides = array<i32>} : memref<2x4x9x72xf32, #tpu.memory_space<vmem>>, vector<2x4x9x8xf32>,
    %c0_26 = arith.constant 0 : index
    %c1_27 = arith.constant 1 : index
    %c1_28 = arith.constant 1 : index
    %c0_29 = arith.constant 0 : index
    %8 = vector.load %arg0[%c0_26, %c1_27, %c1_28, %c0_29] : memref<2x6x11x8xf32, #tpu.memory_space<vmem>>, vector<2x4x9x8xf32>
    %c0_30 = arith.constant 0 : index
    %c0_31 = arith.constant 0 : index
    %c0_32 = arith.constant 0 : index
    %c32 = arith.constant 32 : index
    %9 = vector.load %arg8[%c0_30, %c0_31, %c0_32, %c32] : memref<2x4x9x72xf32, #tpu.memory_space<vmem>>, vector<2x4x9x8xf32>
    tpu.vector_store %arg8[%c0_30, %c0_31, %c0_32, %c32], %8 {strides = array<i32>} : memref<2x4x9x72xf32, #tpu.memory_space<vmem>>, vector<2x4x9x8xf32>,
    %c0_33 = arith.constant 0 : index
    %c1_34 = arith.constant 1 : index
    %c2_35 = arith.constant 2 : index
    %c0_36 = arith.constant 0 : index
    %10 = vector.load %arg0[%c0_33, %c1_34, %c2_35, %c0_36] : memref<2x6x11x8xf32, #tpu.memory_space<vmem>>, vector<2x4x9x8xf32>
    %c0_37 = arith.constant 0 : index
    %c0_38 = arith.constant 0 : index
    %c0_39 = arith.constant 0 : index
    %c40 = arith.constant 40 : index
    %11 = vector.load %arg8[%c0_37, %c0_38, %c0_39, %c40] : memref<2x4x9x72xf32, #tpu.memory_space<vmem>>, vector<2x4x9x8xf32>
    tpu.vector_store %arg8[%c0_37, %c0_38, %c0_39, %c40], %10 {strides = array<i32>} : memref<2x4x9x72xf32, #tpu.memory_space<vmem>>, vector<2x4x9x8xf32>,
    %c0_40 = arith.constant 0 : index
    %c2_41 = arith.constant 2 : index
    %c0_42 = arith.constant 0 : index
    %c0_43 = arith.constant 0 : index
    %12 = vector.load %arg0[%c0_40, %c2_41, %c0_42, %c0_43] : memref<2x6x11x8xf32, #tpu.memory_space<vmem>>, vector<2x4x9x8xf32>
    %c0_44 = arith.constant 0 : index
    %c0_45 = arith.constant 0 : index
    %c0_46 = arith.constant 0 : index
    %c48 = arith.constant 48 : index
    %13 = vector.load %arg8[%c0_44, %c0_45, %c0_46, %c48] : memref<2x4x9x72xf32, #tpu.memory_space<vmem>>, vector<2x4x9x8xf32>
    tpu.vector_store %arg8[%c0_44, %c0_45, %c0_46, %c48], %12 {strides = array<i32>} : memref<2x4x9x72xf32, #tpu.memory_space<vmem>>, vector<2x4x9x8xf32>,
    %c0_47 = arith.constant 0 : index
    %c2_48 = arith.constant 2 : index
    %c1_49 = arith.constant 1 : index
    %c0_50 = arith.constant 0 : index
    %14 = vector.load %arg0[%c0_47, %c2_48, %c1_49, %c0_50] : memref<2x6x11x8xf32, #tpu.memory_space<vmem>>, vector<2x4x9x8xf32>
    %c0_51 = arith.constant 0 : index
    %c0_52 = arith.constant 0 : index
    %c0_53 = arith.constant 0 : index
    %c56 = arith.constant 56 : index
    %15 = vector.load %arg8[%c0_51, %c0_52, %c0_53, %c56] : memref<2x4x9x72xf32, #tpu.memory_space<vmem>>, vector<2x4x9x8xf32>
    tpu.vector_store %arg8[%c0_51, %c0_52, %c0_53, %c56], %14 {strides = array<i32>} : memref<2x4x9x72xf32, #tpu.memory_space<vmem>>, vector<2x4x9x8xf32>,
    %c0_54 = arith.constant 0 : index
    %c2_55 = arith.constant 2 : index
    %c2_56 = arith.constant 2 : index
    %c0_57 = arith.constant 0 : index
    %16 = vector.load %arg0[%c0_54, %c2_55, %c2_56, %c0_57] : memref<2x6x11x8xf32, #tpu.memory_space<vmem>>, vector<2x4x9x8xf32>
    %c0_58 = arith.constant 0 : index
    %c0_59 = arith.constant 0 : index
    %c0_60 = arith.constant 0 : index
    %c64 = arith.constant 64 : index
    %17 = vector.load %arg8[%c0_58, %c0_59, %c0_60, %c64] : memref<2x4x9x72xf32, #tpu.memory_space<vmem>>, vector<2x4x9x8xf32>
    tpu.vector_store %arg8[%c0_58, %c0_59, %c0_60, %c64], %16 {strides = array<i32>} : memref<2x4x9x72xf32, #tpu.memory_space<vmem>>, vector<2x4x9x8xf32>,
    %cst = arith.constant 0.000000e+00 : f32
    %18 = vector.broadcast %cst : f32 to vector<2x6x11x64xf32>
    %c0_61 = arith.constant 0 : index
    %c0_62 = arith.constant 0 : index
    %c0_63 = arith.constant 0 : index
    %c0_64 = arith.constant 0 : index
    %19 = vector.load %arg9[%c0_61, %c0_62, %c0_63, %c0_64] : memref<2x6x11x64xf32, #tpu.memory_space<vmem>>, vector<2x6x11x64xf32>
    tpu.vector_store %arg9[%c0_61, %c0_62, %c0_63, %c0_64], %18 {strides = array<i32>} : memref<2x6x11x64xf32, #tpu.memory_space<vmem>>, vector<2x6x11x64xf32>,
    %c0_65 = arith.constant 0 : index
    %c0_66 = arith.constant 0 : index
    %c0_67 = arith.constant 0 : index
    %c0_68 = arith.constant 0 : index
    %20 = vector.load %arg8[%c0_65, %c0_66, %c0_67, %c0_68] : memref<2x4x9x72xf32, #tpu.memory_space<vmem>>, vector<1x1x9x72xf32>
    %21 = vector.shape_cast %20 : vector<1x1x9x72xf32> to vector<9x72xf32>
    %c0_69 = arith.constant 0 : index
    %c0_70 = arith.constant 0 : index
    %22 = vector.load %arg1[%c0_69, %c0_70] : memref<72x64xf32, #tpu.memory_space<vmem>>, vector<72x64xf32>
    %cst_71 = arith.constant dense<0.000000e+00> : vector<9x64xf32>
    %23 = tpu.matmul %21, %22, %cst_71 {dimension_numbers = #tpu.dot_dimension_numbers<[1], [0], [0], [1], [0, 0, 1, 1], [], []>} : vector<9x72xf32>, vector<72x64xf32>, vector<9x64xf32> -> vector<9x64xf32>
    %c0_72 = arith.constant 0 : index
    %c0_73 = arith.constant 0 : index
    %24 = vector.load %arg2[%c0_72, %c0_73] : memref<1x64xf32, #tpu.memory_space<vmem>>, vector<1x64xf32>
    %25 = vector.broadcast %24 : vector<1x64xf32> to vector<9x64xf32>
    %26 = arith.mulf %23, %25 : vector<9x64xf32>
    %c0_74 = arith.constant 0 : index
    %c0_75 = arith.constant 0 : index
    %27 = vector.load %arg3[%c0_74, %c0_75] : memref<1x64xf32, #tpu.memory_space<vmem>>, vector<1x64xf32>
    %28 = vector.broadcast %27 : vector<1x64xf32> to vector<9x64xf32>
    %29 = arith.addf %26, %28 : vector<9x64xf32>
    %cst_76 = arith.constant 0.000000e+00 : f32
    %30 = vector.broadcast %cst_76 : f32 to vector<9x64xf32>
    %31 = arith.maximumf %29, %30 : vector<9x64xf32>
    %c0_77 = arith.constant 0 : index
    %c1_78 = arith.constant 1 : index
    %c1_79 = arith.constant 1 : index
    %c0_80 = arith.constant 0 : index
    %32 = vector.load %arg9[%c0_77, %c1_78, %c1_79, %c0_80] : memref<2x6x11x64xf32, #tpu.memory_space<vmem>>, vector<1x1x9x64xf32>
    %33 = vector.shape_cast %32 : vector<1x1x9x64xf32> to vector<9x64xf32>
    %34 = vector.shape_cast %31 : vector<9x64xf32> to vector<1x1x9x64xf32>
    tpu.vector_store %arg9[%c0_77, %c1_78, %c1_79, %c0_80], %34 {strides = array<i32>} : memref<2x6x11x64xf32, #tpu.memory_space<vmem>>, vector<1x1x9x64xf32>,
    %c0_81 = arith.constant 0 : index
    %c1_82 = arith.constant 1 : index
    %c0_83 = arith.constant 0 : index
    %c0_84 = arith.constant 0 : index
    %35 = vector.load %arg8[%c0_81, %c1_82, %c0_83, %c0_84] : memref<2x4x9x72xf32, #tpu.memory_space<vmem>>, vector<1x1x9x72xf32>
    %36 = vector.shape_cast %35 : vector<1x1x9x72xf32> to vector<9x72xf32>
    %c0_85 = arith.constant 0 : index
    %c0_86 = arith.constant 0 : index
    %37 = vector.load %arg1[%c0_85, %c0_86] : memref<72x64xf32, #tpu.memory_space<vmem>>, vector<72x64xf32>
    %cst_87 = arith.constant dense<0.000000e+00> : vector<9x64xf32>
    %38 = tpu.matmul %36, %37, %cst_87 {dimension_numbers = #tpu.dot_dimension_numbers<[1], [0], [0], [1], [0, 0, 1, 1], [], []>} : vector<9x72xf32>, vector<72x64xf32>, vector<9x64xf32> -> vector<9x64xf32>
    %c0_88 = arith.constant 0 : index
    %c0_89 = arith.constant 0 : index
    %39 = vector.load %arg2[%c0_88, %c0_89] : memref<1x64xf32, #tpu.memory_space<vmem>>, vector<1x64xf32>
    %40 = vector.broadcast %39 : vector<1x64xf32> to vector<9x64xf32>
    %41 = arith.mulf %38, %40 : vector<9x64xf32>
    %c0_90 = arith.constant 0 : index
    %c0_91 = arith.constant 0 : index
    %42 = vector.load %arg3[%c0_90, %c0_91] : memref<1x64xf32, #tpu.memory_space<vmem>>, vector<1x64xf32>
    %43 = vector.broadcast %42 : vector<1x64xf32> to vector<9x64xf32>
    %44 = arith.addf %41, %43 : vector<9x64xf32>
    %cst_92 = arith.constant 0.000000e+00 : f32
    %45 = vector.broadcast %cst_92 : f32 to vector<9x64xf32>
    %46 = arith.maximumf %44, %45 : vector<9x64xf32>
    %c0_93 = arith.constant 0 : index
    %c2_94 = arith.constant 2 : index
    %c1_95 = arith.constant 1 : index
    %c0_96 = arith.constant 0 : index
    %47 = vector.load %arg9[%c0_93, %c2_94, %c1_95, %c0_96] : memref<2x6x11x64xf32, #tpu.memory_space<vmem>>, vector<1x1x9x64xf32>
    %48 = vector.shape_cast %47 : vector<1x1x9x64xf32> to vector<9x64xf32>
    %49 = vector.shape_cast %46 : vector<9x64xf32> to vector<1x1x9x64xf32>
    tpu.vector_store %arg9[%c0_93, %c2_94, %c1_95, %c0_96], %49 {strides = array<i32>} : memref<2x6x11x64xf32, #tpu.memory_space<vmem>>, vector<1x1x9x64xf32>,
    %c0_97 = arith.constant 0 : index
    %c2_98 = arith.constant 2 : index
    %c0_99 = arith.constant 0 : index
    %c0_100 = arith.constant 0 : index
    %50 = vector.load %arg8[%c0_97, %c2_98, %c0_99, %c0_100] : memref<2x4x9x72xf32, #tpu.memory_space<vmem>>, vector<1x1x9x72xf32>
    %51 = vector.shape_cast %50 : vector<1x1x9x72xf32> to vector<9x72xf32>
    %c0_101 = arith.constant 0 : index
    %c0_102 = arith.constant 0 : index
    %52 = vector.load %arg1[%c0_101, %c0_102] : memref<72x64xf32, #tpu.memory_space<vmem>>, vector<72x64xf32>
    %cst_103 = arith.constant dense<0.000000e+00> : vector<9x64xf32>
    %53 = tpu.matmul %51, %52, %cst_103 {dimension_numbers = #tpu.dot_dimension_numbers<[1], [0], [0], [1], [0, 0, 1, 1], [], []>} : vector<9x72xf32>, vector<72x64xf32>, vector<9x64xf32> -> vector<9x64xf32>
    %c0_104 = arith.constant 0 : index
    %c0_105 = arith.constant 0 : index
    %54 = vector.load %arg2[%c0_104, %c0_105] : memref<1x64xf32, #tpu.memory_space<vmem>>, vector<1x64xf32>
    %55 = vector.broadcast %54 : vector<1x64xf32> to vector<9x64xf32>
    %56 = arith.mulf %53, %55 : vector<9x64xf32>
    %c0_106 = arith.constant 0 : index
    %c0_107 = arith.constant 0 : index
    %57 = vector.load %arg3[%c0_106, %c0_107] : memref<1x64xf32, #tpu.memory_space<vmem>>, vector<1x64xf32>
    %58 = vector.broadcast %57 : vector<1x64xf32> to vector<9x64xf32>
    %59 = arith.addf %56, %58 : vector<9x64xf32>
    %cst_108 = arith.constant 0.000000e+00 : f32
    %60 = vector.broadcast %cst_108 : f32 to vector<9x64xf32>
    %61 = arith.maximumf %59, %60 : vector<9x64xf32>
    %c0_109 = arith.constant 0 : index
    %c3 = arith.constant 3 : index
    %c1_110 = arith.constant 1 : index
    %c0_111 = arith.constant 0 : index
    %62 = vector.load %arg9[%c0_109, %c3, %c1_110, %c0_111] : memref<2x6x11x64xf32, #tpu.memory_space<vmem>>, vector<1x1x9x64xf32>
    %63 = vector.shape_cast %62 : vector<1x1x9x64xf32> to vector<9x64xf32>
    %64 = vector.shape_cast %61 : vector<9x64xf32> to vector<1x1x9x64xf32>
    tpu.vector_store %arg9[%c0_109, %c3, %c1_110, %c0_111], %64 {strides = array<i32>} : memref<2x6x11x64xf32, #tpu.memory_space<vmem>>, vector<1x1x9x64xf32>,
    %c0_112 = arith.constant 0 : index
    %c3_113 = arith.constant 3 : index
    %c0_114 = arith.constant 0 : index
    %c0_115 = arith.constant 0 : index
    %65 = vector.load %arg8[%c0_112, %c3_113, %c0_114, %c0_115] : memref<2x4x9x72xf32, #tpu.memory_space<vmem>>, vector<1x1x9x72xf32>
    %66 = vector.shape_cast %65 : vector<1x1x9x72xf32> to vector<9x72xf32>
    %c0_116 = arith.constant 0 : index
    %c0_117 = arith.constant 0 : index
    %67 = vector.load %arg1[%c0_116, %c0_117] : memref<72x64xf32, #tpu.memory_space<vmem>>, vector<72x64xf32>
    %cst_118 = arith.constant dense<0.000000e+00> : vector<9x64xf32>
    %68 = tpu.matmul %66, %67, %cst_118 {dimension_numbers = #tpu.dot_dimension_numbers<[1], [0], [0], [1], [0, 0, 1, 1], [], []>} : vector<9x72xf32>, vector<72x64xf32>, vector<9x64xf32> -> vector<9x64xf32>
    %c0_119 = arith.constant 0 : index
    %c0_120 = arith.constant 0 : index
    %69 = vector.load %arg2[%c0_119, %c0_120] : memref<1x64xf32, #tpu.memory_space<vmem>>, vector<1x64xf32>
    %70 = vector.broadcast %69 : vector<1x64xf32> to vector<9x64xf32>
    %71 = arith.mulf %68, %70 : vector<9x64xf32>
    %c0_121 = arith.constant 0 : index
    %c0_122 = arith.constant 0 : index
    %72 = vector.load %arg3[%c0_121, %c0_122] : memref<1x64xf32, #tpu.memory_space<vmem>>, vector<1x64xf32>
    %73 = vector.broadcast %72 : vector<1x64xf32> to vector<9x64xf32>
    %74 = arith.addf %71, %73 : vector<9x64xf32>
    %cst_123 = arith.constant 0.000000e+00 : f32
    %75 = vector.broadcast %cst_123 : f32 to vector<9x64xf32>
    %76 = arith.maximumf %74, %75 : vector<9x64xf32>
    %c0_124 = arith.constant 0 : index
    %c4 = arith.constant 4 : index
    %c1_125 = arith.constant 1 : index
    %c0_126 = arith.constant 0 : index
    %77 = vector.load %arg9[%c0_124, %c4, %c1_125, %c0_126] : memref<2x6x11x64xf32, #tpu.memory_space<vmem>>, vector<1x1x9x64xf32>
    %78 = vector.shape_cast %77 : vector<1x1x9x64xf32> to vector<9x64xf32>
    %79 = vector.shape_cast %76 : vector<9x64xf32> to vector<1x1x9x64xf32>
    tpu.vector_store %arg9[%c0_124, %c4, %c1_125, %c0_126], %79 {strides = array<i32>} : memref<2x6x11x64xf32, #tpu.memory_space<vmem>>, vector<1x1x9x64xf32>,
    %c1_127 = arith.constant 1 : index
    %c0_128 = arith.constant 0 : index
    %c0_129 = arith.constant 0 : index
    %c0_130 = arith.constant 0 : index
    %80 = vector.load %arg8[%c1_127, %c0_128, %c0_129, %c0_130] : memref<2x4x9x72xf32, #tpu.memory_space<vmem>>, vector<1x1x9x72xf32>
    %81 = vector.shape_cast %80 : vector<1x1x9x72xf32> to vector<9x72xf32>
    %c0_131 = arith.constant 0 : index
    %c0_132 = arith.constant 0 : index
    %82 = vector.load %arg1[%c0_131, %c0_132] : memref<72x64xf32, #tpu.memory_space<vmem>>, vector<72x64xf32>
    %cst_133 = arith.constant dense<0.000000e+00> : vector<9x64xf32>
    %83 = tpu.matmul %81, %82, %cst_133 {dimension_numbers = #tpu.dot_dimension_numbers<[1], [0], [0], [1], [0, 0, 1, 1], [], []>} : vector<9x72xf32>, vector<72x64xf32>, vector<9x64xf32> -> vector<9x64xf32>
    %c0_134 = arith.constant 0 : index
    %c0_135 = arith.constant 0 : index
    %84 = vector.load %arg2[%c0_134, %c0_135] : memref<1x64xf32, #tpu.memory_space<vmem>>, vector<1x64xf32>
    %85 = vector.broadcast %84 : vector<1x64xf32> to vector<9x64xf32>
    %86 = arith.mulf %83, %85 : vector<9x64xf32>
    %c0_136 = arith.constant 0 : index
    %c0_137 = arith.constant 0 : index
    %87 = vector.load %arg3[%c0_136, %c0_137] : memref<1x64xf32, #tpu.memory_space<vmem>>, vector<1x64xf32>
    %88 = vector.broadcast %87 : vector<1x64xf32> to vector<9x64xf32>
    %89 = arith.addf %86, %88 : vector<9x64xf32>
    %cst_138 = arith.constant 0.000000e+00 : f32
    %90 = vector.broadcast %cst_138 : f32 to vector<9x64xf32>
    %91 = arith.maximumf %89, %90 : vector<9x64xf32>
    %c1_139 = arith.constant 1 : index
    %c1_140 = arith.constant 1 : index
    %c1_141 = arith.constant 1 : index
    %c0_142 = arith.constant 0 : index
    %92 = vector.load %arg9[%c1_139, %c1_140, %c1_141, %c0_142] : memref<2x6x11x64xf32, #tpu.memory_space<vmem>>, vector<1x1x9x64xf32>
    %93 = vector.shape_cast %92 : vector<1x1x9x64xf32> to vector<9x64xf32>
    %94 = vector.shape_cast %91 : vector<9x64xf32> to vector<1x1x9x64xf32>
    tpu.vector_store %arg9[%c1_139, %c1_140, %c1_141, %c0_142], %94 {strides = array<i32>} : memref<2x6x11x64xf32, #tpu.memory_space<vmem>>, vector<1x1x9x64xf32>,
    %c1_143 = arith.constant 1 : index
    %c1_144 = arith.constant 1 : index
    %c0_145 = arith.constant 0 : index
    %c0_146 = arith.constant 0 : index
    %95 = vector.load %arg8[%c1_143, %c1_144, %c0_145, %c0_146] : memref<2x4x9x72xf32, #tpu.memory_space<vmem>>, vector<1x1x9x72xf32>
    %96 = vector.shape_cast %95 : vector<1x1x9x72xf32> to vector<9x72xf32>
    %c0_147 = arith.constant 0 : index
    %c0_148 = arith.constant 0 : index
    %97 = vector.load %arg1[%c0_147, %c0_148] : memref<72x64xf32, #tpu.memory_space<vmem>>, vector<72x64xf32>
    %cst_149 = arith.constant dense<0.000000e+00> : vector<9x64xf32>
    %98 = tpu.matmul %96, %97, %cst_149 {dimension_numbers = #tpu.dot_dimension_numbers<[1], [0], [0], [1], [0, 0, 1, 1], [], []>} : vector<9x72xf32>, vector<72x64xf32>, vector<9x64xf32> -> vector<9x64xf32>
    %c0_150 = arith.constant 0 : index
    %c0_151 = arith.constant 0 : index
    %99 = vector.load %arg2[%c0_150, %c0_151] : memref<1x64xf32, #tpu.memory_space<vmem>>, vector<1x64xf32>
    %100 = vector.broadcast %99 : vector<1x64xf32> to vector<9x64xf32>
    %101 = arith.mulf %98, %100 : vector<9x64xf32>
    %c0_152 = arith.constant 0 : index
    %c0_153 = arith.constant 0 : index
    %102 = vector.load %arg3[%c0_152, %c0_153] : memref<1x64xf32, #tpu.memory_space<vmem>>, vector<1x64xf32>
    %103 = vector.broadcast %102 : vector<1x64xf32> to vector<9x64xf32>
    %104 = arith.addf %101, %103 : vector<9x64xf32>
    %cst_154 = arith.constant 0.000000e+00 : f32
    %105 = vector.broadcast %cst_154 : f32 to vector<9x64xf32>
    %106 = arith.maximumf %104, %105 : vector<9x64xf32>
    %c1_155 = arith.constant 1 : index
    %c2_156 = arith.constant 2 : index
    %c1_157 = arith.constant 1 : index
    %c0_158 = arith.constant 0 : index
    %107 = vector.load %arg9[%c1_155, %c2_156, %c1_157, %c0_158] : memref<2x6x11x64xf32, #tpu.memory_space<vmem>>, vector<1x1x9x64xf32>
    %108 = vector.shape_cast %107 : vector<1x1x9x64xf32> to vector<9x64xf32>
    %109 = vector.shape_cast %106 : vector<9x64xf32> to vector<1x1x9x64xf32>
    tpu.vector_store %arg9[%c1_155, %c2_156, %c1_157, %c0_158], %109 {strides = array<i32>} : memref<2x6x11x64xf32, #tpu.memory_space<vmem>>, vector<1x1x9x64xf32>,
    %c1_159 = arith.constant 1 : index
    %c2_160 = arith.constant 2 : index
    %c0_161 = arith.constant 0 : index
    %c0_162 = arith.constant 0 : index
    %110 = vector.load %arg8[%c1_159, %c2_160, %c0_161, %c0_162] : memref<2x4x9x72xf32, #tpu.memory_space<vmem>>, vector<1x1x9x72xf32>
    %111 = vector.shape_cast %110 : vector<1x1x9x72xf32> to vector<9x72xf32>
    %c0_163 = arith.constant 0 : index
    %c0_164 = arith.constant 0 : index
    %112 = vector.load %arg1[%c0_163, %c0_164] : memref<72x64xf32, #tpu.memory_space<vmem>>, vector<72x64xf32>
    %cst_165 = arith.constant dense<0.000000e+00> : vector<9x64xf32>
    %113 = tpu.matmul %111, %112, %cst_165 {dimension_numbers = #tpu.dot_dimension_numbers<[1], [0], [0], [1], [0, 0, 1, 1], [], []>} : vector<9x72xf32>, vector<72x64xf32>, vector<9x64xf32> -> vector<9x64xf32>
    %c0_166 = arith.constant 0 : index
    %c0_167 = arith.constant 0 : index
    %114 = vector.load %arg2[%c0_166, %c0_167] : memref<1x64xf32, #tpu.memory_space<vmem>>, vector<1x64xf32>
    %115 = vector.broadcast %114 : vector<1x64xf32> to vector<9x64xf32>
    %116 = arith.mulf %113, %115 : vector<9x64xf32>
    %c0_168 = arith.constant 0 : index
    %c0_169 = arith.constant 0 : index
    %117 = vector.load %arg3[%c0_168, %c0_169] : memref<1x64xf32, #tpu.memory_space<vmem>>, vector<1x64xf32>
    %118 = vector.broadcast %117 : vector<1x64xf32> to vector<9x64xf32>
    %119 = arith.addf %116, %118 : vector<9x64xf32>
    %cst_170 = arith.constant 0.000000e+00 : f32
    %120 = vector.broadcast %cst_170 : f32 to vector<9x64xf32>
    %121 = arith.maximumf %119, %120 : vector<9x64xf32>
    %c1_171 = arith.constant 1 : index
    %c3_172 = arith.constant 3 : index
    %c1_173 = arith.constant 1 : index
    %c0_174 = arith.constant 0 : index
    %122 = vector.load %arg9[%c1_171, %c3_172, %c1_173, %c0_174] : memref<2x6x11x64xf32, #tpu.memory_space<vmem>>, vector<1x1x9x64xf32>
    %123 = vector.shape_cast %122 : vector<1x1x9x64xf32> to vector<9x64xf32>
    %124 = vector.shape_cast %121 : vector<9x64xf32> to vector<1x1x9x64xf32>
    tpu.vector_store %arg9[%c1_171, %c3_172, %c1_173, %c0_174], %124 {strides = array<i32>} : memref<2x6x11x64xf32, #tpu.memory_space<vmem>>, vector<1x1x9x64xf32>,
    %c1_175 = arith.constant 1 : index
    %c3_176 = arith.constant 3 : index
    %c0_177 = arith.constant 0 : index
    %c0_178 = arith.constant 0 : index
    %125 = vector.load %arg8[%c1_175, %c3_176, %c0_177, %c0_178] : memref<2x4x9x72xf32, #tpu.memory_space<vmem>>, vector<1x1x9x72xf32>
    %126 = vector.shape_cast %125 : vector<1x1x9x72xf32> to vector<9x72xf32>
    %c0_179 = arith.constant 0 : index
    %c0_180 = arith.constant 0 : index
    %127 = vector.load %arg1[%c0_179, %c0_180] : memref<72x64xf32, #tpu.memory_space<vmem>>, vector<72x64xf32>
    %cst_181 = arith.constant dense<0.000000e+00> : vector<9x64xf32>
    %128 = tpu.matmul %126, %127, %cst_181 {dimension_numbers = #tpu.dot_dimension_numbers<[1], [0], [0], [1], [0, 0, 1, 1], [], []>} : vector<9x72xf32>, vector<72x64xf32>, vector<9x64xf32> -> vector<9x64xf32>
    %c0_182 = arith.constant 0 : index
    %c0_183 = arith.constant 0 : index
    %129 = vector.load %arg2[%c0_182, %c0_183] : memref<1x64xf32, #tpu.memory_space<vmem>>, vector<1x64xf32>
    %130 = vector.broadcast %129 : vector<1x64xf32> to vector<9x64xf32>
    %131 = arith.mulf %128, %130 : vector<9x64xf32>
    %c0_184 = arith.constant 0 : index
    %c0_185 = arith.constant 0 : index
    %132 = vector.load %arg3[%c0_184, %c0_185] : memref<1x64xf32, #tpu.memory_space<vmem>>, vector<1x64xf32>
    %133 = vector.broadcast %132 : vector<1x64xf32> to vector<9x64xf32>
    %134 = arith.addf %131, %133 : vector<9x64xf32>
    %cst_186 = arith.constant 0.000000e+00 : f32
    %135 = vector.broadcast %cst_186 : f32 to vector<9x64xf32>
    %136 = arith.maximumf %134, %135 : vector<9x64xf32>
    %c1_187 = arith.constant 1 : index
    %c4_188 = arith.constant 4 : index
    %c1_189 = arith.constant 1 : index
    %c0_190 = arith.constant 0 : index
    %137 = vector.load %arg9[%c1_187, %c4_188, %c1_189, %c0_190] : memref<2x6x11x64xf32, #tpu.memory_space<vmem>>, vector<1x1x9x64xf32>
    %138 = vector.shape_cast %137 : vector<1x1x9x64xf32> to vector<9x64xf32>
    %139 = vector.shape_cast %136 : vector<9x64xf32> to vector<1x1x9x64xf32>
    tpu.vector_store %arg9[%c1_187, %c4_188, %c1_189, %c0_190], %139 {strides = array<i32>} : memref<2x6x11x64xf32, #tpu.memory_space<vmem>>, vector<1x1x9x64xf32>,
    %c0_191 = arith.constant 0 : index
    %c0_192 = arith.constant 0 : index
    %c0_193 = arith.constant 0 : index
    %c0_194 = arith.constant 0 : index
    %140 = vector.load %arg9[%c0_191, %c0_192, %c0_193, %c0_194] : memref<2x6x11x64xf32, #tpu.memory_space<vmem>>, vector<2x4x9x64xf32>
    %c0_195 = arith.constant 0 : index
    %c0_196 = arith.constant 0 : index
    %c0_197 = arith.constant 0 : index
    %c0_198 = arith.constant 0 : index
    %141 = vector.load %arg10[%c0_195, %c0_196, %c0_197, %c0_198] : memref<2x4x9x576xf32, #tpu.memory_space<vmem>>, vector<2x4x9x64xf32>
    tpu.vector_store %arg10[%c0_195, %c0_196, %c0_197, %c0_198], %140 {strides = array<i32>} : memref<2x4x9x576xf32, #tpu.memory_space<vmem>>, vector<2x4x9x64xf32>,
    %c0_199 = arith.constant 0 : index
    %c0_200 = arith.constant 0 : index
    %c1_201 = arith.constant 1 : index
    %c0_202 = arith.constant 0 : index
    %142 = vector.load %arg9[%c0_199, %c0_200, %c1_201, %c0_202] : memref<2x6x11x64xf32, #tpu.memory_space<vmem>>, vector<2x4x9x64xf32>
    %c0_203 = arith.constant 0 : index
    %c0_204 = arith.constant 0 : index
    %c0_205 = arith.constant 0 : index
    %c64_206 = arith.constant 64 : index
    %143 = vector.load %arg10[%c0_203, %c0_204, %c0_205, %c64_206] : memref<2x4x9x576xf32, #tpu.memory_space<vmem>>, vector<2x4x9x64xf32>
    tpu.vector_store %arg10[%c0_203, %c0_204, %c0_205, %c64_206], %142 {strides = array<i32>} : memref<2x4x9x576xf32, #tpu.memory_space<vmem>>, vector<2x4x9x64xf32>,
    %c0_207 = arith.constant 0 : index
    %c0_208 = arith.constant 0 : index
    %c2_209 = arith.constant 2 : index
    %c0_210 = arith.constant 0 : index
    %144 = vector.load %arg9[%c0_207, %c0_208, %c2_209, %c0_210] : memref<2x6x11x64xf32, #tpu.memory_space<vmem>>, vector<2x4x9x64xf32>
    %c0_211 = arith.constant 0 : index
    %c0_212 = arith.constant 0 : index
    %c0_213 = arith.constant 0 : index
    %c128 = arith.constant 128 : index
    %145 = vector.load %arg10[%c0_211, %c0_212, %c0_213, %c128] : memref<2x4x9x576xf32, #tpu.memory_space<vmem>>, vector<2x4x9x64xf32>
    tpu.vector_store %arg10[%c0_211, %c0_212, %c0_213, %c128], %144 {strides = array<i32>} : memref<2x4x9x576xf32, #tpu.memory_space<vmem>>, vector<2x4x9x64xf32>,
    %c0_214 = arith.constant 0 : index
    %c1_215 = arith.constant 1 : index
    %c0_216 = arith.constant 0 : index
    %c0_217 = arith.constant 0 : index
    %146 = vector.load %arg9[%c0_214, %c1_215, %c0_216, %c0_217] : memref<2x6x11x64xf32, #tpu.memory_space<vmem>>, vector<2x4x9x64xf32>
    %c0_218 = arith.constant 0 : index
    %c0_219 = arith.constant 0 : index
    %c0_220 = arith.constant 0 : index
    %c192 = arith.constant 192 : index
    %147 = vector.load %arg10[%c0_218, %c0_219, %c0_220, %c192] : memref<2x4x9x576xf32, #tpu.memory_space<vmem>>, vector<2x4x9x64xf32>
    tpu.vector_store %arg10[%c0_218, %c0_219, %c0_220, %c192], %146 {strides = array<i32>} : memref<2x4x9x576xf32, #tpu.memory_space<vmem>>, vector<2x4x9x64xf32>,
    %c0_221 = arith.constant 0 : index
    %c1_222 = arith.constant 1 : index
    %c1_223 = arith.constant 1 : index
    %c0_224 = arith.constant 0 : index
    %148 = vector.load %arg9[%c0_221, %c1_222, %c1_223, %c0_224] : memref<2x6x11x64xf32, #tpu.memory_space<vmem>>, vector<2x4x9x64xf32>
    %c0_225 = arith.constant 0 : index
    %c0_226 = arith.constant 0 : index
    %c0_227 = arith.constant 0 : index
    %c256 = arith.constant 256 : index
    %149 = vector.load %arg10[%c0_225, %c0_226, %c0_227, %c256] : memref<2x4x9x576xf32, #tpu.memory_space<vmem>>, vector<2x4x9x64xf32>
    tpu.vector_store %arg10[%c0_225, %c0_226, %c0_227, %c256], %148 {strides = array<i32>} : memref<2x4x9x576xf32, #tpu.memory_space<vmem>>, vector<2x4x9x64xf32>,
    %c0_228 = arith.constant 0 : index
    %c1_229 = arith.constant 1 : index
    %c2_230 = arith.constant 2 : index
    %c0_231 = arith.constant 0 : index
    %150 = vector.load %arg9[%c0_228, %c1_229, %c2_230, %c0_231] : memref<2x6x11x64xf32, #tpu.memory_space<vmem>>, vector<2x4x9x64xf32>
    %c0_232 = arith.constant 0 : index
    %c0_233 = arith.constant 0 : index
    %c0_234 = arith.constant 0 : index
    %c320 = arith.constant 320 : index
    %151 = vector.load %arg10[%c0_232, %c0_233, %c0_234, %c320] : memref<2x4x9x576xf32, #tpu.memory_space<vmem>>, vector<2x4x9x64xf32>
    tpu.vector_store %arg10[%c0_232, %c0_233, %c0_234, %c320], %150 {strides = array<i32>} : memref<2x4x9x576xf32, #tpu.memory_space<vmem>>, vector<2x4x9x64xf32>,
    %c0_235 = arith.constant 0 : index
    %c2_236 = arith.constant 2 : index
    %c0_237 = arith.constant 0 : index
    %c0_238 = arith.constant 0 : index
    %152 = vector.load %arg9[%c0_235, %c2_236, %c0_237, %c0_238] : memref<2x6x11x64xf32, #tpu.memory_space<vmem>>, vector<2x4x9x64xf32>
    %c0_239 = arith.constant 0 : index
    %c0_240 = arith.constant 0 : index
    %c0_241 = arith.constant 0 : index
    %c384 = arith.constant 384 : index
    %153 = vector.load %arg10[%c0_239, %c0_240, %c0_241, %c384] : memref<2x4x9x576xf32, #tpu.memory_space<vmem>>, vector<2x4x9x64xf32>
    tpu.vector_store %arg10[%c0_239, %c0_240, %c0_241, %c384], %152 {strides = array<i32>} : memref<2x4x9x576xf32, #tpu.memory_space<vmem>>, vector<2x4x9x64xf32>,
    %c0_242 = arith.constant 0 : index
    %c2_243 = arith.constant 2 : index
    %c1_244 = arith.constant 1 : index
    %c0_245 = arith.constant 0 : index
    %154 = vector.load %arg9[%c0_242, %c2_243, %c1_244, %c0_245] : memref<2x6x11x64xf32, #tpu.memory_space<vmem>>, vector<2x4x9x64xf32>
    %c0_246 = arith.constant 0 : index
    %c0_247 = arith.constant 0 : index
    %c0_248 = arith.constant 0 : index
    %c448 = arith.constant 448 : index
    %155 = vector.load %arg10[%c0_246, %c0_247, %c0_248, %c448] : memref<2x4x9x576xf32, #tpu.memory_space<vmem>>, vector<2x4x9x64xf32>
    tpu.vector_store %arg10[%c0_246, %c0_247, %c0_248, %c448], %154 {strides = array<i32>} : memref<2x4x9x576xf32, #tpu.memory_space<vmem>>, vector<2x4x9x64xf32>,
    %c0_249 = arith.constant 0 : index
    %c2_250 = arith.constant 2 : index
    %c2_251 = arith.constant 2 : index
    %c0_252 = arith.constant 0 : index
    %156 = vector.load %arg9[%c0_249, %c2_250, %c2_251, %c0_252] : memref<2x6x11x64xf32, #tpu.memory_space<vmem>>, vector<2x4x9x64xf32>
    %c0_253 = arith.constant 0 : index
    %c0_254 = arith.constant 0 : index
    %c0_255 = arith.constant 0 : index
    %c512 = arith.constant 512 : index
    %157 = vector.load %arg10[%c0_253, %c0_254, %c0_255, %c512] : memref<2x4x9x576xf32, #tpu.memory_space<vmem>>, vector<2x4x9x64xf32>
    tpu.vector_store %arg10[%c0_253, %c0_254, %c0_255, %c512], %156 {strides = array<i32>} : memref<2x4x9x576xf32, #tpu.memory_space<vmem>>, vector<2x4x9x64xf32>,
    %c0_256 = arith.constant 0 : index
    %c0_257 = arith.constant 0 : index
    %c0_258 = arith.constant 0 : index
    %c0_259 = arith.constant 0 : index
    %158 = vector.load %arg10[%c0_256, %c0_257, %c0_258, %c0_259] : memref<2x4x9x576xf32, #tpu.memory_space<vmem>>, vector<1x1x9x576xf32>
    %159 = vector.shape_cast %158 : vector<1x1x9x576xf32> to vector<9x576xf32>
    %c0_260 = arith.constant 0 : index
    %c0_261 = arith.constant 0 : index
    %160 = vector.load %arg4[%c0_260, %c0_261] : memref<576x64xf32, #tpu.memory_space<vmem>>, vector<576x64xf32>
    %cst_262 = arith.constant dense<0.000000e+00> : vector<9x64xf32>
    %161 = tpu.matmul %159, %160, %cst_262 {dimension_numbers = #tpu.dot_dimension_numbers<[1], [0], [0], [1], [0, 0, 1, 1], [], []>} : vector<9x576xf32>, vector<576x64xf32>, vector<9x64xf32> -> vector<9x64xf32>
    %c0_263 = arith.constant 0 : index
    %c0_264 = arith.constant 0 : index
    %162 = vector.load %arg5[%c0_263, %c0_264] : memref<1x64xf32, #tpu.memory_space<vmem>>, vector<1x64xf32>
    %163 = vector.broadcast %162 : vector<1x64xf32> to vector<9x64xf32>
    %164 = arith.mulf %161, %163 : vector<9x64xf32>
    %c0_265 = arith.constant 0 : index
    %c0_266 = arith.constant 0 : index
    %165 = vector.load %arg6[%c0_265, %c0_266] : memref<1x64xf32, #tpu.memory_space<vmem>>, vector<1x64xf32>
    %166 = vector.broadcast %165 : vector<1x64xf32> to vector<9x64xf32>
    %167 = arith.addf %164, %166 : vector<9x64xf32>
    %cst_267 = arith.constant 0.000000e+00 : f32
    %168 = vector.broadcast %cst_267 : f32 to vector<9x64xf32>
    %169 = arith.maximumf %167, %168 : vector<9x64xf32>
    %c0_268 = arith.constant 0 : index
    %c0_269 = arith.constant 0 : index
    %c0_270 = arith.constant 0 : index
    %c0_271 = arith.constant 0 : index
    %170 = vector.load %arg7[%c0_268, %c0_269, %c0_270, %c0_271] : memref<2x4x9x64xf32, #tpu.memory_space<vmem>>, vector<1x1x9x64xf32>
    %171 = vector.shape_cast %170 : vector<1x1x9x64xf32> to vector<9x64xf32>
    %172 = vector.shape_cast %169 : vector<9x64xf32> to vector<1x1x9x64xf32>
    tpu.vector_store %arg7[%c0_268, %c0_269, %c0_270, %c0_271], %172 {strides = array<i32>} : memref<2x4x9x64xf32, #tpu.memory_space<vmem>>, vector<1x1x9x64xf32>,
    %c0_272 = arith.constant 0 : index
    %c1_273 = arith.constant 1 : index
    %c0_274 = arith.constant 0 : index
    %c0_275 = arith.constant 0 : index
    %173 = vector.load %arg10[%c0_272, %c1_273, %c0_274, %c0_275] : memref<2x4x9x576xf32, #tpu.memory_space<vmem>>, vector<1x1x9x576xf32>
    %174 = vector.shape_cast %173 : vector<1x1x9x576xf32> to vector<9x576xf32>
    %c0_276 = arith.constant 0 : index
    %c0_277 = arith.constant 0 : index
    %175 = vector.load %arg4[%c0_276, %c0_277] : memref<576x64xf32, #tpu.memory_space<vmem>>, vector<576x64xf32>
    %cst_278 = arith.constant dense<0.000000e+00> : vector<9x64xf32>
    %176 = tpu.matmul %174, %175, %cst_278 {dimension_numbers = #tpu.dot_dimension_numbers<[1], [0], [0], [1], [0, 0, 1, 1], [], []>} : vector<9x576xf32>, vector<576x64xf32>, vector<9x64xf32> -> vector<9x64xf32>
    %c0_279 = arith.constant 0 : index
    %c0_280 = arith.constant 0 : index
    %177 = vector.load %arg5[%c0_279, %c0_280] : memref<1x64xf32, #tpu.memory_space<vmem>>, vector<1x64xf32>
    %178 = vector.broadcast %177 : vector<1x64xf32> to vector<9x64xf32>
    %179 = arith.mulf %176, %178 : vector<9x64xf32>
    %c0_281 = arith.constant 0 : index
    %c0_282 = arith.constant 0 : index
    %180 = vector.load %arg6[%c0_281, %c0_282] : memref<1x64xf32, #tpu.memory_space<vmem>>, vector<1x64xf32>
    %181 = vector.broadcast %180 : vector<1x64xf32> to vector<9x64xf32>
    %182 = arith.addf %179, %181 : vector<9x64xf32>
    %cst_283 = arith.constant 0.000000e+00 : f32
    %183 = vector.broadcast %cst_283 : f32 to vector<9x64xf32>
    %184 = arith.maximumf %182, %183 : vector<9x64xf32>
    %c0_284 = arith.constant 0 : index
    %c1_285 = arith.constant 1 : index
    %c0_286 = arith.constant 0 : index
    %c0_287 = arith.constant 0 : index
    %185 = vector.load %arg7[%c0_284, %c1_285, %c0_286, %c0_287] : memref<2x4x9x64xf32, #tpu.memory_space<vmem>>, vector<1x1x9x64xf32>
    %186 = vector.shape_cast %185 : vector<1x1x9x64xf32> to vector<9x64xf32>
    %187 = vector.shape_cast %184 : vector<9x64xf32> to vector<1x1x9x64xf32>
    tpu.vector_store %arg7[%c0_284, %c1_285, %c0_286, %c0_287], %187 {strides = array<i32>} : memref<2x4x9x64xf32, #tpu.memory_space<vmem>>, vector<1x1x9x64xf32>,
    %c0_288 = arith.constant 0 : index
    %c2_289 = arith.constant 2 : index
    %c0_290 = arith.constant 0 : index
    %c0_291 = arith.constant 0 : index
    %188 = vector.load %arg10[%c0_288, %c2_289, %c0_290, %c0_291] : memref<2x4x9x576xf32, #tpu.memory_space<vmem>>, vector<1x1x9x576xf32>
    %189 = vector.shape_cast %188 : vector<1x1x9x576xf32> to vector<9x576xf32>
    %c0_292 = arith.constant 0 : index
    %c0_293 = arith.constant 0 : index
    %190 = vector.load %arg4[%c0_292, %c0_293] : memref<576x64xf32, #tpu.memory_space<vmem>>, vector<576x64xf32>
    %cst_294 = arith.constant dense<0.000000e+00> : vector<9x64xf32>
    %191 = tpu.matmul %189, %190, %cst_294 {dimension_numbers = #tpu.dot_dimension_numbers<[1], [0], [0], [1], [0, 0, 1, 1], [], []>} : vector<9x576xf32>, vector<576x64xf32>, vector<9x64xf32> -> vector<9x64xf32>
    %c0_295 = arith.constant 0 : index
    %c0_296 = arith.constant 0 : index
    %192 = vector.load %arg5[%c0_295, %c0_296] : memref<1x64xf32, #tpu.memory_space<vmem>>, vector<1x64xf32>
    %193 = vector.broadcast %192 : vector<1x64xf32> to vector<9x64xf32>
    %194 = arith.mulf %191, %193 : vector<9x64xf32>
    %c0_297 = arith.constant 0 : index
    %c0_298 = arith.constant 0 : index
    %195 = vector.load %arg6[%c0_297, %c0_298] : memref<1x64xf32, #tpu.memory_space<vmem>>, vector<1x64xf32>
    %196 = vector.broadcast %195 : vector<1x64xf32> to vector<9x64xf32>
    %197 = arith.addf %194, %196 : vector<9x64xf32>
    %cst_299 = arith.constant 0.000000e+00 : f32
    %198 = vector.broadcast %cst_299 : f32 to vector<9x64xf32>
    %199 = arith.maximumf %197, %198 : vector<9x64xf32>
    %c0_300 = arith.constant 0 : index
    %c2_301 = arith.constant 2 : index
    %c0_302 = arith.constant 0 : index
    %c0_303 = arith.constant 0 : index
    %200 = vector.load %arg7[%c0_300, %c2_301, %c0_302, %c0_303] : memref<2x4x9x64xf32, #tpu.memory_space<vmem>>, vector<1x1x9x64xf32>
    %201 = vector.shape_cast %200 : vector<1x1x9x64xf32> to vector<9x64xf32>
    %202 = vector.shape_cast %199 : vector<9x64xf32> to vector<1x1x9x64xf32>
    tpu.vector_store %arg7[%c0_300, %c2_301, %c0_302, %c0_303], %202 {strides = array<i32>} : memref<2x4x9x64xf32, #tpu.memory_space<vmem>>, vector<1x1x9x64xf32>,
    %c0_304 = arith.constant 0 : index
    %c3_305 = arith.constant 3 : index
    %c0_306 = arith.constant 0 : index
    %c0_307 = arith.constant 0 : index
    %203 = vector.load %arg10[%c0_304, %c3_305, %c0_306, %c0_307] : memref<2x4x9x576xf32, #tpu.memory_space<vmem>>, vector<1x1x9x576xf32>
    %204 = vector.shape_cast %203 : vector<1x1x9x576xf32> to vector<9x576xf32>
    %c0_308 = arith.constant 0 : index
    %c0_309 = arith.constant 0 : index
    %205 = vector.load %arg4[%c0_308, %c0_309] : memref<576x64xf32, #tpu.memory_space<vmem>>, vector<576x64xf32>
    %cst_310 = arith.constant dense<0.000000e+00> : vector<9x64xf32>
    %206 = tpu.matmul %204, %205, %cst_310 {dimension_numbers = #tpu.dot_dimension_numbers<[1], [0], [0], [1], [0, 0, 1, 1], [], []>} : vector<9x576xf32>, vector<576x64xf32>, vector<9x64xf32> -> vector<9x64xf32>
    %c0_311 = arith.constant 0 : index
    %c0_312 = arith.constant 0 : index
    %207 = vector.load %arg5[%c0_311, %c0_312] : memref<1x64xf32, #tpu.memory_space<vmem>>, vector<1x64xf32>
    %208 = vector.broadcast %207 : vector<1x64xf32> to vector<9x64xf32>
    %209 = arith.mulf %206, %208 : vector<9x64xf32>
    %c0_313 = arith.constant 0 : index
    %c0_314 = arith.constant 0 : index
    %210 = vector.load %arg6[%c0_313, %c0_314] : memref<1x64xf32, #tpu.memory_space<vmem>>, vector<1x64xf32>
    %211 = vector.broadcast %210 : vector<1x64xf32> to vector<9x64xf32>
    %212 = arith.addf %209, %211 : vector<9x64xf32>
    %cst_315 = arith.constant 0.000000e+00 : f32
    %213 = vector.broadcast %cst_315 : f32 to vector<9x64xf32>
    %214 = arith.maximumf %212, %213 : vector<9x64xf32>
    %c0_316 = arith.constant 0 : index
    %c3_317 = arith.constant 3 : index
    %c0_318 = arith.constant 0 : index
    %c0_319 = arith.constant 0 : index
    %215 = vector.load %arg7[%c0_316, %c3_317, %c0_318, %c0_319] : memref<2x4x9x64xf32, #tpu.memory_space<vmem>>, vector<1x1x9x64xf32>
    %216 = vector.shape_cast %215 : vector<1x1x9x64xf32> to vector<9x64xf32>
    %217 = vector.shape_cast %214 : vector<9x64xf32> to vector<1x1x9x64xf32>
    tpu.vector_store %arg7[%c0_316, %c3_317, %c0_318, %c0_319], %217 {strides = array<i32>} : memref<2x4x9x64xf32, #tpu.memory_space<vmem>>, vector<1x1x9x64xf32>,
    %c1_320 = arith.constant 1 : index
    %c0_321 = arith.constant 0 : index
    %c0_322 = arith.constant 0 : index
    %c0_323 = arith.constant 0 : index
    %218 = vector.load %arg10[%c1_320, %c0_321, %c0_322, %c0_323] : memref<2x4x9x576xf32, #tpu.memory_space<vmem>>, vector<1x1x9x576xf32>
    %219 = vector.shape_cast %218 : vector<1x1x9x576xf32> to vector<9x576xf32>
    %c0_324 = arith.constant 0 : index
    %c0_325 = arith.constant 0 : index
    %220 = vector.load %arg4[%c0_324, %c0_325] : memref<576x64xf32, #tpu.memory_space<vmem>>, vector<576x64xf32>
    %cst_326 = arith.constant dense<0.000000e+00> : vector<9x64xf32>
    %221 = tpu.matmul %219, %220, %cst_326 {dimension_numbers = #tpu.dot_dimension_numbers<[1], [0], [0], [1], [0, 0, 1, 1], [], []>} : vector<9x576xf32>, vector<576x64xf32>, vector<9x64xf32> -> vector<9x64xf32>
    %c0_327 = arith.constant 0 : index
    %c0_328 = arith.constant 0 : index
    %222 = vector.load %arg5[%c0_327, %c0_328] : memref<1x64xf32, #tpu.memory_space<vmem>>, vector<1x64xf32>
    %223 = vector.broadcast %222 : vector<1x64xf32> to vector<9x64xf32>
    %224 = arith.mulf %221, %223 : vector<9x64xf32>
    %c0_329 = arith.constant 0 : index
    %c0_330 = arith.constant 0 : index
    %225 = vector.load %arg6[%c0_329, %c0_330] : memref<1x64xf32, #tpu.memory_space<vmem>>, vector<1x64xf32>
    %226 = vector.broadcast %225 : vector<1x64xf32> to vector<9x64xf32>
    %227 = arith.addf %224, %226 : vector<9x64xf32>
    %cst_331 = arith.constant 0.000000e+00 : f32
    %228 = vector.broadcast %cst_331 : f32 to vector<9x64xf32>
    %229 = arith.maximumf %227, %228 : vector<9x64xf32>
    %c1_332 = arith.constant 1 : index
    %c0_333 = arith.constant 0 : index
    %c0_334 = arith.constant 0 : index
    %c0_335 = arith.constant 0 : index
    %230 = vector.load %arg7[%c1_332, %c0_333, %c0_334, %c0_335] : memref<2x4x9x64xf32, #tpu.memory_space<vmem>>, vector<1x1x9x64xf32>
    %231 = vector.shape_cast %230 : vector<1x1x9x64xf32> to vector<9x64xf32>
    %232 = vector.shape_cast %229 : vector<9x64xf32> to vector<1x1x9x64xf32>
    tpu.vector_store %arg7[%c1_332, %c0_333, %c0_334, %c0_335], %232 {strides = array<i32>} : memref<2x4x9x64xf32, #tpu.memory_space<vmem>>, vector<1x1x9x64xf32>,
    %c1_336 = arith.constant 1 : index
    %c1_337 = arith.constant 1 : index
    %c0_338 = arith.constant 0 : index
    %c0_339 = arith.constant 0 : index
    %233 = vector.load %arg10[%c1_336, %c1_337, %c0_338, %c0_339] : memref<2x4x9x576xf32, #tpu.memory_space<vmem>>, vector<1x1x9x576xf32>
    %234 = vector.shape_cast %233 : vector<1x1x9x576xf32> to vector<9x576xf32>
    %c0_340 = arith.constant 0 : index
    %c0_341 = arith.constant 0 : index
    %235 = vector.load %arg4[%c0_340, %c0_341] : memref<576x64xf32, #tpu.memory_space<vmem>>, vector<576x64xf32>
    %cst_342 = arith.constant dense<0.000000e+00> : vector<9x64xf32>
    %236 = tpu.matmul %234, %235, %cst_342 {dimension_numbers = #tpu.dot_dimension_numbers<[1], [0], [0], [1], [0, 0, 1, 1], [], []>} : vector<9x576xf32>, vector<576x64xf32>, vector<9x64xf32> -> vector<9x64xf32>
    %c0_343 = arith.constant 0 : index
    %c0_344 = arith.constant 0 : index
    %237 = vector.load %arg5[%c0_343, %c0_344] : memref<1x64xf32, #tpu.memory_space<vmem>>, vector<1x64xf32>
    %238 = vector.broadcast %237 : vector<1x64xf32> to vector<9x64xf32>
    %239 = arith.mulf %236, %238 : vector<9x64xf32>
    %c0_345 = arith.constant 0 : index
    %c0_346 = arith.constant 0 : index
    %240 = vector.load %arg6[%c0_345, %c0_346] : memref<1x64xf32, #tpu.memory_space<vmem>>, vector<1x64xf32>
    %241 = vector.broadcast %240 : vector<1x64xf32> to vector<9x64xf32>
    %242 = arith.addf %239, %241 : vector<9x64xf32>
    %cst_347 = arith.constant 0.000000e+00 : f32
    %243 = vector.broadcast %cst_347 : f32 to vector<9x64xf32>
    %244 = arith.maximumf %242, %243 : vector<9x64xf32>
    %c1_348 = arith.constant 1 : index
    %c1_349 = arith.constant 1 : index
    %c0_350 = arith.constant 0 : index
    %c0_351 = arith.constant 0 : index
    %245 = vector.load %arg7[%c1_348, %c1_349, %c0_350, %c0_351] : memref<2x4x9x64xf32, #tpu.memory_space<vmem>>, vector<1x1x9x64xf32>
    %246 = vector.shape_cast %245 : vector<1x1x9x64xf32> to vector<9x64xf32>
    %247 = vector.shape_cast %244 : vector<9x64xf32> to vector<1x1x9x64xf32>
    tpu.vector_store %arg7[%c1_348, %c1_349, %c0_350, %c0_351], %247 {strides = array<i32>} : memref<2x4x9x64xf32, #tpu.memory_space<vmem>>, vector<1x1x9x64xf32>,
    %c1_352 = arith.constant 1 : index
    %c2_353 = arith.constant 2 : index
    %c0_354 = arith.constant 0 : index
    %c0_355 = arith.constant 0 : index
    %248 = vector.load %arg10[%c1_352, %c2_353, %c0_354, %c0_355] : memref<2x4x9x576xf32, #tpu.memory_space<vmem>>, vector<1x1x9x576xf32>
    %249 = vector.shape_cast %248 : vector<1x1x9x576xf32> to vector<9x576xf32>
    %c0_356 = arith.constant 0 : index
    %c0_357 = arith.constant 0 : index
    %250 = vector.load %arg4[%c0_356, %c0_357] : memref<576x64xf32, #tpu.memory_space<vmem>>, vector<576x64xf32>
    %cst_358 = arith.constant dense<0.000000e+00> : vector<9x64xf32>
    %251 = tpu.matmul %249, %250, %cst_358 {dimension_numbers = #tpu.dot_dimension_numbers<[1], [0], [0], [1], [0, 0, 1, 1], [], []>} : vector<9x576xf32>, vector<576x64xf32>, vector<9x64xf32> -> vector<9x64xf32>
    %c0_359 = arith.constant 0 : index
    %c0_360 = arith.constant 0 : index
    %252 = vector.load %arg5[%c0_359, %c0_360] : memref<1x64xf32, #tpu.memory_space<vmem>>, vector<1x64xf32>
    %253 = vector.broadcast %252 : vector<1x64xf32> to vector<9x64xf32>
    %254 = arith.mulf %251, %253 : vector<9x64xf32>
    %c0_361 = arith.constant 0 : index
    %c0_362 = arith.constant 0 : index
    %255 = vector.load %arg6[%c0_361, %c0_362] : memref<1x64xf32, #tpu.memory_space<vmem>>, vector<1x64xf32>
    %256 = vector.broadcast %255 : vector<1x64xf32> to vector<9x64xf32>
    %257 = arith.addf %254, %256 : vector<9x64xf32>
    %cst_363 = arith.constant 0.000000e+00 : f32
    %258 = vector.broadcast %cst_363 : f32 to vector<9x64xf32>
    %259 = arith.maximumf %257, %258 : vector<9x64xf32>
    %c1_364 = arith.constant 1 : index
    %c2_365 = arith.constant 2 : index
    %c0_366 = arith.constant 0 : index
    %c0_367 = arith.constant 0 : index
    %260 = vector.load %arg7[%c1_364, %c2_365, %c0_366, %c0_367] : memref<2x4x9x64xf32, #tpu.memory_space<vmem>>, vector<1x1x9x64xf32>
    %261 = vector.shape_cast %260 : vector<1x1x9x64xf32> to vector<9x64xf32>
    %262 = vector.shape_cast %259 : vector<9x64xf32> to vector<1x1x9x64xf32>
    tpu.vector_store %arg7[%c1_364, %c2_365, %c0_366, %c0_367], %262 {strides = array<i32>} : memref<2x4x9x64xf32, #tpu.memory_space<vmem>>, vector<1x1x9x64xf32>,
    %c1_368 = arith.constant 1 : index
    %c3_369 = arith.constant 3 : index
    %c0_370 = arith.constant 0 : index
    %c0_371 = arith.constant 0 : index
    %263 = vector.load %arg10[%c1_368, %c3_369, %c0_370, %c0_371] : memref<2x4x9x576xf32, #tpu.memory_space<vmem>>, vector<1x1x9x576xf32>
    %264 = vector.shape_cast %263 : vector<1x1x9x576xf32> to vector<9x576xf32>
    %c0_372 = arith.constant 0 : index
    %c0_373 = arith.constant 0 : index
    %265 = vector.load %arg4[%c0_372, %c0_373] : memref<576x64xf32, #tpu.memory_space<vmem>>, vector<576x64xf32>
    %cst_374 = arith.constant dense<0.000000e+00> : vector<9x64xf32>
    %266 = tpu.matmul %264, %265, %cst_374 {dimension_numbers = #tpu.dot_dimension_numbers<[1], [0], [0], [1], [0, 0, 1, 1], [], []>} : vector<9x576xf32>, vector<576x64xf32>, vector<9x64xf32> -> vector<9x64xf32>
    %c0_375 = arith.constant 0 : index
    %c0_376 = arith.constant 0 : index
    %267 = vector.load %arg5[%c0_375, %c0_376] : memref<1x64xf32, #tpu.memory_space<vmem>>, vector<1x64xf32>
    %268 = vector.broadcast %267 : vector<1x64xf32> to vector<9x64xf32>
    %269 = arith.mulf %266, %268 : vector<9x64xf32>
    %c0_377 = arith.constant 0 : index
    %c0_378 = arith.constant 0 : index
    %270 = vector.load %arg6[%c0_377, %c0_378] : memref<1x64xf32, #tpu.memory_space<vmem>>, vector<1x64xf32>
    %271 = vector.broadcast %270 : vector<1x64xf32> to vector<9x64xf32>
    %272 = arith.addf %269, %271 : vector<9x64xf32>
    %cst_379 = arith.constant 0.000000e+00 : f32
    %273 = vector.broadcast %cst_379 : f32 to vector<9x64xf32>
    %274 = arith.maximumf %272, %273 : vector<9x64xf32>
    %c1_380 = arith.constant 1 : index
    %c3_381 = arith.constant 3 : index
    %c0_382 = arith.constant 0 : index
    %c0_383 = arith.constant 0 : index
    %275 = vector.load %arg7[%c1_380, %c3_381, %c0_382, %c0_383] : memref<2x4x9x64xf32, #tpu.memory_space<vmem>>, vector<1x1x9x64xf32>
    %276 = vector.shape_cast %275 : vector<1x1x9x64xf32> to vector<9x64xf32>
    %277 = vector.shape_cast %274 : vector<9x64xf32> to vector<1x1x9x64xf32>
    tpu.vector_store %arg7[%c1_380, %c3_381, %c0_382, %c0_383], %277 {strides = array<i32>} : memref<2x4x9x64xf32, #tpu.memory_space<vmem>>, vector<1x1x9x64xf32>,
    return
  }
}

module attributes {stable_mosaic.version = 11 : i64} {
  func.func @_phasenet_tail_kernel(%arg0: memref<2x2304xf32, #tpu.memory_space<vmem>>, %arg1: memref<2304x32xf32, #tpu.memory_space<vmem>>, %arg2: memref<1x32xf32, #tpu.memory_space<vmem>>, %arg3: memref<1x32xf32, #tpu.memory_space<vmem>>, %arg4: memref<32x8xf32, #tpu.memory_space<vmem>>, %arg5: memref<32x8xf32, #tpu.memory_space<vmem>>, %arg6: memref<1x8xf32, #tpu.memory_space<vmem>>, %arg7: memref<1x8xf32, #tpu.memory_space<vmem>>, %arg8: memref<2x8x32xf32, #tpu.memory_space<vmem>>, %arg9: memref<2x8x32xf32, #tpu.memory_space<vmem>>, %arg10: memref<32x100xf32, #tpu.memory_space<vmem>>, %arg11: memref<1x100xf32, #tpu.memory_space<vmem>>, %arg12: memref<1x100xf32, #tpu.memory_space<vmem>>, %arg13: memref<100x100xf32, #tpu.memory_space<vmem>>, %arg14: memref<1x100xf32, #tpu.memory_space<vmem>>, %arg15: memref<1x100xf32, #tpu.memory_space<vmem>>, %arg16: memref<100x32xf32, #tpu.memory_space<vmem>>, %arg17: memref<1x32xf32, #tpu.memory_space<vmem>>, %arg18: memref<2x8xf32, #tpu.memory_space<vmem>>, %arg19: memref<2x8xf32, #tpu.memory_space<vmem>>, %arg20: memref<2x32xf32, #tpu.memory_space<vmem>>, %arg21: memref<2x32xf32, #tpu.memory_space<vmem>>) attributes {dimension_semantics = [], scalar_prefetch = 0 : i64, scratch_operands = 1 : i64, tpu.core_type = #tpu.core_type<tc>} {
    %c0 = arith.constant 0 : index
    %c0_0 = arith.constant 0 : index
    %0 = vector.load %arg0[%c0, %c0_0] : memref<2x2304xf32, #tpu.memory_space<vmem>>, vector<2x2304xf32>
    %c0_1 = arith.constant 0 : index
    %c0_2 = arith.constant 0 : index
    %1 = vector.load %arg1[%c0_1, %c0_2] : memref<2304x32xf32, #tpu.memory_space<vmem>>, vector<2304x32xf32>
    %cst = arith.constant dense<0.000000e+00> : vector<2x32xf32>
    %2 = tpu.matmul %0, %1, %cst {dimension_numbers = #tpu.dot_dimension_numbers<[1], [0], [0], [1], [0, 0, 1, 1], [], []>} : vector<2x2304xf32>, vector<2304x32xf32>, vector<2x32xf32> -> vector<2x32xf32>
    %c0_3 = arith.constant 0 : index
    %c0_4 = arith.constant 0 : index
    %3 = vector.load %arg2[%c0_3, %c0_4] : memref<1x32xf32, #tpu.memory_space<vmem>>, vector<1x32xf32>
    %4 = vector.broadcast %3 : vector<1x32xf32> to vector<2x32xf32>
    %5 = arith.mulf %2, %4 : vector<2x32xf32>
    %c0_5 = arith.constant 0 : index
    %c0_6 = arith.constant 0 : index
    %6 = vector.load %arg3[%c0_5, %c0_6] : memref<1x32xf32, #tpu.memory_space<vmem>>, vector<1x32xf32>
    %7 = vector.broadcast %6 : vector<1x32xf32> to vector<2x32xf32>
    %8 = arith.addf %5, %7 : vector<2x32xf32>
    %cst_7 = arith.constant 0.000000e+00 : f32
    %9 = vector.broadcast %cst_7 : f32 to vector<2x32xf32>
    %10 = arith.maximumf %8, %9 : vector<2x32xf32>
    %c0_8 = arith.constant 0 : index
    %c0_9 = arith.constant 0 : index
    %11 = vector.load %arg4[%c0_8, %c0_9] : memref<32x8xf32, #tpu.memory_space<vmem>>, vector<32x8xf32>
    %cst_10 = arith.constant dense<0.000000e+00> : vector<2x8xf32>
    %12 = tpu.matmul %10, %11, %cst_10 {dimension_numbers = #tpu.dot_dimension_numbers<[1], [0], [0], [1], [0, 0, 1, 1], [], []>} : vector<2x32xf32>, vector<32x8xf32>, vector<2x8xf32> -> vector<2x8xf32>
    %c0_11 = arith.constant 0 : index
    %c0_12 = arith.constant 0 : index
    %13 = vector.load %arg6[%c0_11, %c0_12] : memref<1x8xf32, #tpu.memory_space<vmem>>, vector<1x8xf32>
    %14 = vector.broadcast %13 : vector<1x8xf32> to vector<2x8xf32>
    %15 = arith.addf %12, %14 : vector<2x8xf32>
    %c0_13 = arith.constant 0 : index
    %c0_14 = arith.constant 0 : index
    %16 = vector.load %arg5[%c0_13, %c0_14] : memref<32x8xf32, #tpu.memory_space<vmem>>, vector<32x8xf32>
    %cst_15 = arith.constant dense<0.000000e+00> : vector<2x8xf32>
    %17 = tpu.matmul %10, %16, %cst_15 {dimension_numbers = #tpu.dot_dimension_numbers<[1], [0], [0], [1], [0, 0, 1, 1], [], []>} : vector<2x32xf32>, vector<32x8xf32>, vector<2x8xf32> -> vector<2x8xf32>
    %c0_16 = arith.constant 0 : index
    %c0_17 = arith.constant 0 : index
    %18 = vector.load %arg7[%c0_16, %c0_17] : memref<1x8xf32, #tpu.memory_space<vmem>>, vector<1x8xf32>
    %19 = vector.broadcast %18 : vector<1x8xf32> to vector<2x8xf32>
    %20 = arith.addf %17, %19 : vector<2x8xf32>
    %21 = arith.mulf %15, %15 : vector<2x8xf32>
    %22 = arith.mulf %20, %20 : vector<2x8xf32>
    %23 = arith.addf %21, %22 : vector<2x8xf32>
    %cst_18 = arith.constant 1.000000e-24 : f32
    %24 = vector.broadcast %cst_18 : f32 to vector<2x8xf32>
    %25 = arith.maximumf %23, %24 : vector<2x8xf32>
    %26 = math.rsqrt %25 : vector<2x8xf32>
    %27 = arith.mulf %15, %26 : vector<2x8xf32>
    %c0_19 = arith.constant 0 : index
    %c0_20 = arith.constant 0 : index
    %28 = vector.load %arg18[%c0_19, %c0_20] : memref<2x8xf32, #tpu.memory_space<vmem>>, vector<2x8xf32>
    tpu.vector_store %arg18[%c0_19, %c0_20], %27 {strides = array<i32>} : memref<2x8xf32, #tpu.memory_space<vmem>>, vector<2x8xf32>,
    %29 = arith.mulf %20, %26 : vector<2x8xf32>
    %c0_21 = arith.constant 0 : index
    %c0_22 = arith.constant 0 : index
    %30 = vector.load %arg19[%c0_21, %c0_22] : memref<2x8xf32, #tpu.memory_space<vmem>>, vector<2x8xf32>
    tpu.vector_store %arg19[%c0_21, %c0_22], %29 {strides = array<i32>} : memref<2x8xf32, #tpu.memory_space<vmem>>, vector<2x8xf32>,
    %c0_23 = arith.constant 0 : index
    %c0_24 = arith.constant 0 : index
    %31 = vector.load %arg18[%c0_23, %c0_24] : memref<2x8xf32, #tpu.memory_space<vmem>>, vector<1x8xf32>
    %c0_25 = arith.constant 0 : index
    %c0_26 = arith.constant 0 : index
    %c0_27 = arith.constant 0 : index
    %32 = vector.load %arg8[%c0_25, %c0_26, %c0_27] : memref<2x8x32xf32, #tpu.memory_space<vmem>>, vector<1x8x32xf32>
    %33 = vector.shape_cast %32 : vector<1x8x32xf32> to vector<8x32xf32>
    %cst_28 = arith.constant dense<0.000000e+00> : vector<1x32xf32>
    %34 = tpu.matmul %31, %33, %cst_28 {dimension_numbers = #tpu.dot_dimension_numbers<[1], [0], [0], [1], [0, 0, 1, 1], [], []>} : vector<1x8xf32>, vector<8x32xf32>, vector<1x32xf32> -> vector<1x32xf32>
    %c0_29 = arith.constant 0 : index
    %c0_30 = arith.constant 0 : index
    %35 = vector.load %arg19[%c0_29, %c0_30] : memref<2x8xf32, #tpu.memory_space<vmem>>, vector<1x8xf32>
    %c0_31 = arith.constant 0 : index
    %c0_32 = arith.constant 0 : index
    %c0_33 = arith.constant 0 : index
    %36 = vector.load %arg9[%c0_31, %c0_32, %c0_33] : memref<2x8x32xf32, #tpu.memory_space<vmem>>, vector<1x8x32xf32>
    %37 = vector.shape_cast %36 : vector<1x8x32xf32> to vector<8x32xf32>
    %cst_34 = arith.constant dense<0.000000e+00> : vector<1x32xf32>
    %38 = tpu.matmul %35, %37, %cst_34 {dimension_numbers = #tpu.dot_dimension_numbers<[1], [0], [0], [1], [0, 0, 1, 1], [], []>} : vector<1x8xf32>, vector<8x32xf32>, vector<1x32xf32> -> vector<1x32xf32>
    %39 = arith.addf %34, %38 : vector<1x32xf32>
    %c0_35 = arith.constant 0 : index
    %c0_36 = arith.constant 0 : index
    %40 = vector.load %arg21[%c0_35, %c0_36] : memref<2x32xf32, #tpu.memory_space<vmem>>, vector<1x32xf32>
    tpu.vector_store %arg21[%c0_35, %c0_36], %39 {strides = array<i32>} : memref<2x32xf32, #tpu.memory_space<vmem>>, vector<1x32xf32>,
    %c1 = arith.constant 1 : index
    %c0_37 = arith.constant 0 : index
    %41 = vector.load %arg18[%c1, %c0_37] : memref<2x8xf32, #tpu.memory_space<vmem>>, vector<1x8xf32>
    %c1_38 = arith.constant 1 : index
    %c0_39 = arith.constant 0 : index
    %c0_40 = arith.constant 0 : index
    %42 = vector.load %arg8[%c1_38, %c0_39, %c0_40] : memref<2x8x32xf32, #tpu.memory_space<vmem>>, vector<1x8x32xf32>
    %43 = vector.shape_cast %42 : vector<1x8x32xf32> to vector<8x32xf32>
    %cst_41 = arith.constant dense<0.000000e+00> : vector<1x32xf32>
    %44 = tpu.matmul %41, %43, %cst_41 {dimension_numbers = #tpu.dot_dimension_numbers<[1], [0], [0], [1], [0, 0, 1, 1], [], []>} : vector<1x8xf32>, vector<8x32xf32>, vector<1x32xf32> -> vector<1x32xf32>
    %c1_42 = arith.constant 1 : index
    %c0_43 = arith.constant 0 : index
    %45 = vector.load %arg19[%c1_42, %c0_43] : memref<2x8xf32, #tpu.memory_space<vmem>>, vector<1x8xf32>
    %c1_44 = arith.constant 1 : index
    %c0_45 = arith.constant 0 : index
    %c0_46 = arith.constant 0 : index
    %46 = vector.load %arg9[%c1_44, %c0_45, %c0_46] : memref<2x8x32xf32, #tpu.memory_space<vmem>>, vector<1x8x32xf32>
    %47 = vector.shape_cast %46 : vector<1x8x32xf32> to vector<8x32xf32>
    %cst_47 = arith.constant dense<0.000000e+00> : vector<1x32xf32>
    %48 = tpu.matmul %45, %47, %cst_47 {dimension_numbers = #tpu.dot_dimension_numbers<[1], [0], [0], [1], [0, 0, 1, 1], [], []>} : vector<1x8xf32>, vector<8x32xf32>, vector<1x32xf32> -> vector<1x32xf32>
    %49 = arith.addf %44, %48 : vector<1x32xf32>
    %c1_48 = arith.constant 1 : index
    %c0_49 = arith.constant 0 : index
    %50 = vector.load %arg21[%c1_48, %c0_49] : memref<2x32xf32, #tpu.memory_space<vmem>>, vector<1x32xf32>
    tpu.vector_store %arg21[%c1_48, %c0_49], %49 {strides = array<i32>} : memref<2x32xf32, #tpu.memory_space<vmem>>, vector<1x32xf32>,
    %c0_50 = arith.constant 0 : index
    %c0_51 = arith.constant 0 : index
    %51 = vector.load %arg21[%c0_50, %c0_51] : memref<2x32xf32, #tpu.memory_space<vmem>>, vector<2x32xf32>
    %c0_52 = arith.constant 0 : index
    %c0_53 = arith.constant 0 : index
    %52 = vector.load %arg10[%c0_52, %c0_53] : memref<32x100xf32, #tpu.memory_space<vmem>>, vector<32x100xf32>
    %cst_54 = arith.constant dense<0.000000e+00> : vector<2x100xf32>
    %53 = tpu.matmul %51, %52, %cst_54 {dimension_numbers = #tpu.dot_dimension_numbers<[1], [0], [0], [1], [0, 0, 1, 1], [], []>} : vector<2x32xf32>, vector<32x100xf32>, vector<2x100xf32> -> vector<2x100xf32>
    %c0_55 = arith.constant 0 : index
    %c0_56 = arith.constant 0 : index
    %54 = vector.load %arg11[%c0_55, %c0_56] : memref<1x100xf32, #tpu.memory_space<vmem>>, vector<1x100xf32>
    %55 = vector.broadcast %54 : vector<1x100xf32> to vector<2x100xf32>
    %56 = arith.mulf %53, %55 : vector<2x100xf32>
    %c0_57 = arith.constant 0 : index
    %c0_58 = arith.constant 0 : index
    %57 = vector.load %arg12[%c0_57, %c0_58] : memref<1x100xf32, #tpu.memory_space<vmem>>, vector<1x100xf32>
    %58 = vector.broadcast %57 : vector<1x100xf32> to vector<2x100xf32>
    %59 = arith.addf %56, %58 : vector<2x100xf32>
    %cst_59 = arith.constant 0.000000e+00 : f32
    %60 = vector.broadcast %cst_59 : f32 to vector<2x100xf32>
    %61 = arith.maximumf %59, %60 : vector<2x100xf32>
    %c0_60 = arith.constant 0 : index
    %c0_61 = arith.constant 0 : index
    %62 = vector.load %arg13[%c0_60, %c0_61] : memref<100x100xf32, #tpu.memory_space<vmem>>, vector<100x100xf32>
    %cst_62 = arith.constant dense<0.000000e+00> : vector<2x100xf32>
    %63 = tpu.matmul %61, %62, %cst_62 {dimension_numbers = #tpu.dot_dimension_numbers<[1], [0], [0], [1], [0, 0, 1, 1], [], []>} : vector<2x100xf32>, vector<100x100xf32>, vector<2x100xf32> -> vector<2x100xf32>
    %c0_63 = arith.constant 0 : index
    %c0_64 = arith.constant 0 : index
    %64 = vector.load %arg14[%c0_63, %c0_64] : memref<1x100xf32, #tpu.memory_space<vmem>>, vector<1x100xf32>
    %65 = vector.broadcast %64 : vector<1x100xf32> to vector<2x100xf32>
    %66 = arith.mulf %63, %65 : vector<2x100xf32>
    %c0_65 = arith.constant 0 : index
    %c0_66 = arith.constant 0 : index
    %67 = vector.load %arg15[%c0_65, %c0_66] : memref<1x100xf32, #tpu.memory_space<vmem>>, vector<1x100xf32>
    %68 = vector.broadcast %67 : vector<1x100xf32> to vector<2x100xf32>
    %69 = arith.addf %66, %68 : vector<2x100xf32>
    %cst_67 = arith.constant 0.000000e+00 : f32
    %70 = vector.broadcast %cst_67 : f32 to vector<2x100xf32>
    %71 = arith.maximumf %69, %70 : vector<2x100xf32>
    %c0_68 = arith.constant 0 : index
    %c0_69 = arith.constant 0 : index
    %72 = vector.load %arg16[%c0_68, %c0_69] : memref<100x32xf32, #tpu.memory_space<vmem>>, vector<100x32xf32>
    %cst_70 = arith.constant dense<0.000000e+00> : vector<2x32xf32>
    %73 = tpu.matmul %71, %72, %cst_70 {dimension_numbers = #tpu.dot_dimension_numbers<[1], [0], [0], [1], [0, 0, 1, 1], [], []>} : vector<2x100xf32>, vector<100x32xf32>, vector<2x32xf32> -> vector<2x32xf32>
    %c0_71 = arith.constant 0 : index
    %c0_72 = arith.constant 0 : index
    %74 = vector.load %arg17[%c0_71, %c0_72] : memref<1x32xf32, #tpu.memory_space<vmem>>, vector<1x32xf32>
    %75 = vector.broadcast %74 : vector<1x32xf32> to vector<2x32xf32>
    %76 = arith.addf %73, %75 : vector<2x32xf32>
    %77 = tpu.iota {dimensions = array<i32: 0>} : vector<32x8xi32>
    %78 = tpu.iota {dimensions = array<i32: 1>} : vector<32x8xi32>
    %c4_i32 = arith.constant 4 : i32
    %79 = vector.broadcast %c4_i32 : i32 to vector<32x8xi32>
    %80 = arith.muli %78, %79 : vector<32x8xi32>
    %81 = arith.cmpi sge, %77, %80 : vector<32x8xi32>
    %c1_i32 = arith.constant 1 : i32
    %82 = vector.broadcast %c1_i32 : i32 to vector<32x8xi32>
    %83 = arith.addi %78, %82 : vector<32x8xi32>
    %c4_i32_73 = arith.constant 4 : i32
    %84 = vector.broadcast %c4_i32_73 : i32 to vector<32x8xi32>
    %85 = arith.muli %83, %84 : vector<32x8xi32>
    %86 = arith.cmpi slt, %77, %85 : vector<32x8xi32>
    %87 = arith.andi %81, %86 : vector<32x8xi1>
    %cst_74 = arith.constant 1.000000e+00 : f32
    %cst_75 = arith.constant 0.000000e+00 : f32
    %88 = vector.broadcast %cst_74 : f32 to vector<32x8xf32>
    %89 = vector.broadcast %cst_75 : f32 to vector<32x8xf32>
    %90 = arith.select %87, %88, %89 : vector<32x8xi1>, vector<32x8xf32>
    %91 = tpu.iota {dimensions = array<i32: 0>} : vector<8x32xi32>
    %92 = tpu.iota {dimensions = array<i32: 1>} : vector<8x32xi32>
    %c4_i32_76 = arith.constant 4 : i32
    %93 = vector.broadcast %c4_i32_76 : i32 to vector<8x32xi32>
    %94 = arith.muli %91, %93 : vector<8x32xi32>
    %95 = arith.cmpi sge, %92, %94 : vector<8x32xi32>
    %c1_i32_77 = arith.constant 1 : i32
    %96 = vector.broadcast %c1_i32_77 : i32 to vector<8x32xi32>
    %97 = arith.addi %91, %96 : vector<8x32xi32>
    %c4_i32_78 = arith.constant 4 : i32
    %98 = vector.broadcast %c4_i32_78 : i32 to vector<8x32xi32>
    %99 = arith.muli %97, %98 : vector<8x32xi32>
    %100 = arith.cmpi slt, %92, %99 : vector<8x32xi32>
    %101 = arith.andi %95, %100 : vector<8x32xi1>
    %cst_79 = arith.constant 1.000000e+00 : f32
    %cst_80 = arith.constant 0.000000e+00 : f32
    %102 = vector.broadcast %cst_79 : f32 to vector<8x32xf32>
    %103 = vector.broadcast %cst_80 : f32 to vector<8x32xf32>
    %104 = arith.select %101, %102, %103 : vector<8x32xi1>, vector<8x32xf32>
    %105 = arith.mulf %76, %76 : vector<2x32xf32>
    %cst_81 = arith.constant dense<0.000000e+00> : vector<2x8xf32>
    %106 = tpu.matmul %105, %90, %cst_81 {dimension_numbers = #tpu.dot_dimension_numbers<[1], [0], [0], [1], [0, 0, 1, 1], [], []>} : vector<2x32xf32>, vector<32x8xf32>, vector<2x8xf32> -> vector<2x8xf32>
    %cst_82 = arith.constant 1.000000e-24 : f32
    %107 = vector.broadcast %cst_82 : f32 to vector<2x8xf32>
    %108 = arith.maximumf %106, %107 : vector<2x8xf32>
    %109 = math.rsqrt %108 : vector<2x8xf32>
    %cst_83 = arith.constant dense<0.000000e+00> : vector<2x32xf32>
    %110 = tpu.matmul %109, %104, %cst_83 {dimension_numbers = #tpu.dot_dimension_numbers<[1], [0], [0], [1], [0, 0, 1, 1], [], []>} : vector<2x8xf32>, vector<8x32xf32>, vector<2x32xf32> -> vector<2x32xf32>
    %111 = arith.mulf %76, %110 : vector<2x32xf32>
    %cst_84 = arith.constant 5.000000e-01 : f32
    %112 = vector.broadcast %cst_84 : f32 to vector<2x32xf32>
    %113 = arith.mulf %111, %112 : vector<2x32xf32>
    %c0_85 = arith.constant 0 : index
    %c0_86 = arith.constant 0 : index
    %114 = vector.load %arg20[%c0_85, %c0_86] : memref<2x32xf32, #tpu.memory_space<vmem>>, vector<2x32xf32>
    tpu.vector_store %arg20[%c0_85, %c0_86], %113 {strides = array<i32>} : memref<2x32xf32, #tpu.memory_space<vmem>>, vector<2x32xf32>,
    return
  }
}

</mosaic_0001>

<bundles_post_ra>
// kernel: custom-call
= control target key start
LH: loop header
LB: loop body
LE: loop exit
PB: predicated region body
PF: predicated region fallthrough
CT: control target
= control target key end

     0   :  { %2 = vsyncpa [#allocation0], 0  ;;  %s61_s0 = inlined_call_operand.hbm [shape: c64[2,4,4], index: 0, kind: input, shape index: {}]   ;;  %s62_s1 = inlined_call_operand.vmem [shape: f32[2,4,4], index: 1, kind: output, shape index: {}]  }
   0x1   :  { %s3_s8 = sshll.u32 %s62_s1, 4  ;;  %s9_s11 = scalar_lea.hbm %s61_s0, 128  ;;  %s4_s8 = int_to_ptr.vmem [resolvable:$true] %s3_s8 }
   0x2   :  { %p10_p0 = scmp.ne.s32.totalorder %s61_s0, %s9_s11  ;;  %s11_s16 = scalar_lea.hbm %s61_s0, 256 }
   0x3   :  { %p12_p1 = scmp.lt.u32.totalorder %s11_s16, %s9_s11  ;;  %p13_p2 = scmp.lt.u32.totalorder %s9_s11, %s61_s0 }
   0x5   :  { %p14_p3 = por %p13_p2, %p12_p1 }
   0x7   :  { %p15_p4 = pnand %p14_p3, %p10_p0 }
   0x9   :  { %18 = shalt.err (!%p15_p4)  }
   0xa   :  { %s19_s1 = scalar_lea.vmem %s4_s8, 128  ;;  %p24_p6 = scmp.lt.s32.totalorder %s4_s8, %s4_s8 }
   0xb   :  { %p20_p5 = scmp.ne.s32.totalorder %s4_s8, %s19_s1  ;;  %p25_p7 = scmp.lt.s32.totalorder %s19_s1, %s19_s1 }
   0xd   :  { %p26_p8 = por %p25_p7, %p24_p6 }
   0xf   :  { %p27_p9 = pnand %p26_p8, %p20_p5 }
  0x11   :  { %30 = shalt.err (!%p27_p9)  }
  0x12   :  { %6 = dma.hbm_to_vmem [thread:$0]  %s61_s0, 128, %s4_s8, [#allocation0] }
  0x13   :  { %31 = dma.done.wait [#allocation0], 128  }
  0x14   :  { %32 = vsyncadd [#allocation0], 4294967168 }
  0x15   :  { %8 = vsyncpa [#allocation0], 1 }

// kernel: custom-call.1
= control target key start
LH: loop header
LB: loop body
LE: loop exit
PB: predicated region body
PF: predicated region fallthrough
CT: control target
= control target key end

     0   :  { %s59_s0 = inlined_call_operand.hbm [shape: c64[2,4,4], index: 0, kind: input, shape index: {}]   ;;  %s60_s1 = inlined_call_operand.vmem [shape: f32[2,4,4], index: 1, kind: output, shape index: {}]  }
   0x1   :  { %s2_s8 = scalar_lea.hbm %s59_s0, 128 }
   0x2   :  { %3 = vsyncpa [#allocation0], 0  ;;  %s4_s11 = sshll.u32 %s60_s1, 4  ;;  %s34_s14 = scalar_lea.hbm %s59_s0, 256  ;;  %s5_s11 = int_to_ptr.vmem [resolvable:$true] %s4_s11 }
   0x3   :  { %p11_p0 = scmp.ne.s32.totalorder %s2_s8, %s34_s14  ;;  %p13_p1 = scmp.lt.u32.totalorder %s2_s8, %s59_s0 }
   0x4   :  { %p14_p2 = scmp.lt.u32.totalorder %s34_s14, %s34_s14  ;;  %p16_p4 = scmp.lt.u32.totalorder %s34_s14, %s2_s8 }
   0x6   :  { %p15_p3 = por %p14_p2, %p13_p1 }
   0x8   :  { %p17_p5 = por %p16_p4, %p15_p3 }
   0xa   :  { %p18_p6 = pnand %p17_p5, %p11_p0 }
   0xc   :  { %21 = shalt.err (!%p18_p6)  }
   0xd   :  { %s22_s17 = scalar_lea.vmem %s5_s11, 128  ;;  %p27_p8 = scmp.lt.s32.totalorder %s5_s11, %s5_s11 }
   0xe   :  { %p23_p7 = scmp.ne.s32.totalorder %s5_s11, %s22_s17  ;;  %p28_p9 = scmp.lt.s32.totalorder %s22_s17, %s22_s17 }
  0x10   :  { %p29_p10 = por %p28_p9, %p27_p8 }
  0x12   :  { %p30_p11 = pnand %p29_p10, %p23_p7 }
  0x14   :  { %33 = shalt.err (!%p30_p11)  }
  0x15   :  { %7 = dma.hbm_to_vmem [thread:$0]  %s2_s8, 128, %s5_s11, [#allocation0] }
  0x16   :  { %35 = dma.done.wait [#allocation0], 128  }
  0x17   :  { %36 = vsyncadd [#allocation0], 4294967168 }
  0x18   :  { %9 = vsyncpa [#allocation0], 1 }

// kernel: custom-call.3
= control target key start
LH: loop header
LB: loop body
LE: loop exit
PB: predicated region body
PF: predicated region fallthrough
CT: control target
= control target key end

     0   :  { %s59_s0 = inlined_call_operand.hbm [shape: c64[2,4,8,4], index: 0, kind: input, shape index: {}]   ;;  %s60_s1 = inlined_call_operand.vmem [shape: f32[2,4,8,4], index: 1, kind: output, shape index: {}]  }
   0x1   :  { %s2_s8 = scalar_lea.hbm %s59_s0, 512 }
   0x2   :  { %3 = vsyncpa [#allocation0], 0  ;;  %s4_s11 = sshll.u32 %s60_s1, 4  ;;  %s34_s14 = scalar_lea.hbm %s59_s0, 1024  ;;  %s5_s11 = int_to_ptr.vmem [resolvable:$true] %s4_s11 }
   0x3   :  { %p11_p0 = scmp.ne.s32.totalorder %s2_s8, %s34_s14  ;;  %p13_p1 = scmp.lt.u32.totalorder %s2_s8, %s59_s0 }
   0x4   :  { %p14_p2 = scmp.lt.u32.totalorder %s34_s14, %s34_s14  ;;  %p16_p4 = scmp.lt.u32.totalorder %s34_s14, %s2_s8 }
   0x6   :  { %p15_p3 = por %p14_p2, %p13_p1 }
   0x8   :  { %p17_p5 = por %p16_p4, %p15_p3 }
   0xa   :  { %p18_p6 = pnand %p17_p5, %p11_p0 }
   0xc   :  { %21 = shalt.err (!%p18_p6)  }
   0xd   :  { %s22_s17 = scalar_lea.vmem %s5_s11, 512  ;;  %p27_p8 = scmp.lt.s32.totalorder %s5_s11, %s5_s11 }
   0xe   :  { %p23_p7 = scmp.ne.s32.totalorder %s5_s11, %s22_s17  ;;  %p28_p9 = scmp.lt.s32.totalorder %s22_s17, %s22_s17 }
  0x10   :  { %p29_p10 = por %p28_p9, %p27_p8 }
  0x12   :  { %p30_p11 = pnand %p29_p10, %p23_p7 }
  0x14   :  { %33 = shalt.err (!%p30_p11)  }
  0x15   :  { %7 = dma.hbm_to_vmem [thread:$0]  %s2_s8, 512, %s5_s11, [#allocation0] }
  0x16   :  { %35 = dma.done.wait [#allocation0], 512  }
  0x17   :  { %36 = vsyncadd [#allocation0], 4294966784 }
  0x18   :  { %9 = vsyncpa [#allocation0], 1 }

// kernel: custom-call.2
= control target key start
LH: loop header
LB: loop body
LE: loop exit
PB: predicated region body
PF: predicated region fallthrough
CT: control target
= control target key end

     0   :  { %2 = vsyncpa [#allocation0], 0  ;;  %s61_s0 = inlined_call_operand.hbm [shape: c64[2,4,8,4], index: 0, kind: input, shape index: {}]   ;;  %s62_s1 = inlined_call_operand.vmem [shape: f32[2,4,8,4], index: 1, kind: output, shape index: {}]  }
   0x1   :  { %s3_s8 = sshll.u32 %s62_s1, 4  ;;  %s9_s11 = scalar_lea.hbm %s61_s0, 512  ;;  %s4_s8 = int_to_ptr.vmem [resolvable:$true] %s3_s8 }
   0x2   :  { %p10_p0 = scmp.ne.s32.totalorder %s61_s0, %s9_s11  ;;  %s11_s16 = scalar_lea.hbm %s61_s0, 1024 }
   0x3   :  { %p12_p1 = scmp.lt.u32.totalorder %s11_s16, %s9_s11  ;;  %p13_p2 = scmp.lt.u32.totalorder %s9_s11, %s61_s0 }
   0x5   :  { %p14_p3 = por %p13_p2, %p12_p1 }
   0x7   :  { %p15_p4 = pnand %p14_p3, %p10_p0 }
   0x9   :  { %18 = shalt.err (!%p15_p4)  }
   0xa   :  { %s19_s1 = scalar_lea.vmem %s4_s8, 512  ;;  %p24_p6 = scmp.lt.s32.totalorder %s4_s8, %s4_s8 }
   0xb   :  { %p20_p5 = scmp.ne.s32.totalorder %s4_s8, %s19_s1  ;;  %p25_p7 = scmp.lt.s32.totalorder %s19_s1, %s19_s1 }
   0xd   :  { %p26_p8 = por %p25_p7, %p24_p6 }
   0xf   :  { %p27_p9 = pnand %p26_p8, %p20_p5 }
  0x11   :  { %30 = shalt.err (!%p27_p9)  }
  0x12   :  { %6 = dma.hbm_to_vmem [thread:$0]  %s61_s0, 512, %s4_s8, [#allocation0] }
  0x13   :  { %31 = dma.done.wait [#allocation0], 512  }
  0x14   :  { %32 = vsyncadd [#allocation0], 4294966784 }
  0x15   :  { %8 = vsyncpa [#allocation0], 1 }

// kernel: dnn_forward.3
= control target key start
LH: loop header
LB: loop body
LE: loop exit
PB: predicated region body
PF: predicated region fallthrough
CT: control target
= control target key end

     0   :  { %v2976_v47 = vmov 1983009808   ;;  %v364_v49 = vlaneseq  ;;  %vm2978_vm0 = vmmov 0   ;;  %vm1112_vm1 = vcmask 261120   ;;  %s4259_s1 = inlined_call_operand.vmem [shape: f32[2304,32], index: 1, kind: input, shape index: {}]   ;;  %s4260_s0 = inlined_call_operand.vmem [shape: f32[2,2304], index: 0, kind: input, shape index: {}]   ;;  %s4261_s4 = inlined_call_operand.vmem [shape: f32[32,8], index: 4, kind: input, shape index: {}]   ;;  %s4262_s2 = inlined_call_operand.vmem [shape: f32[1,32], index: 2, kind: input, shape index: {}]   ;;  %s4263_s3 = inlined_call_operand.vmem [shape: f32[1,32], index: 3, kind: input, shape index: {}]   ;;  %s4264_s5 = inlined_call_operand.vmem [shape: f32[32,8], index: 5, kind: input, shape index: {}]   ;;  %s4265_s9 = inlined_call_operand.vmem [shape: f32[2,8,32], index: 9, kind: input, shape index: {}]   ;;  %s4266_s6 = inlined_call_operand.vmem [shape: f32[1,8], index: 6, kind: input, shape index: {}]   ;;  %s4267_s7 = inlined_call_operand.vmem [shape: f32[1,8], index: 7, kind: input, shape index: {}]   ;;  %s4268_s19 = inlined_call_operand.vmem [shape: f32[2,8], index: 19, kind: output, shape index: {1}]   ;;  %s4269_s18 = inlined_call_operand.vmem [shape: f32[2,8], index: 18, kind: output, shape index: {0}]   ;;  %s4270_s8 = inlined_call_operand.vmem [shape: f32[2,8,32], index: 8, kind: input, shape index: {}]   ;;  %s4271_s10 = inlined_call_operand.vmem [shape: f32[32,100], index: 10, kind: input, shape index: {}]   ;;  %s4272_s13 = inlined_call_operand.vmem [shape: f32[100,100], index: 13, kind: input, shape index: {}]   ;;  %s4273_s16 = inlined_call_operand.vmem [shape: f32[100,32], index: 16, kind: input, shape index: {}]   ;;  %s4274_s11 = inlined_call_operand.vmem [shape: f32[1,100], index: 11, kind: input, shape index: {}]   ;;  %s4275_s12 = inlined_call_operand.vmem [shape: f32[1,100], index: 12, kind: input, shape index: {}]   ;;  %s4276_s14 = inlined_call_operand.vmem [shape: f32[1,100], index: 14, kind: input, shape index: {}]   ;;  %s4277_s15 = inlined_call_operand.vmem [shape: f32[1,100], index: 15, kind: input, shape index: {}]   ;;  %s4278_s17 = inlined_call_operand.vmem [shape: f32[1,32], index: 17, kind: input, shape index: {}]   ;;  %s4279_s20 = inlined_call_operand.vmem [shape: f32[2,32], index: 20, kind: output, shape index: {2}]  }
   0x1   :  { %4283 = sst [smem:[#allocation3_spill]] %s4259_s1  ;;  %v362_v48 = vunpack.c.l.s4 %v2976_v47  ;;  %vm1273_vm2 = vcmask 58368   ;;  %vm1281_vm3 = vcmask 64512   ;;  %vm1428_vm4 = vcmask 253952  }
   0x2   :  { %4284 = sst [smem:[#allocation4_spill]] %s4260_s0  ;;  %s4288_s23 = sld [smem:[#allocation3_spill]]  ;;  %vm1695_vm5 = vcmask 1043456   ;;  %vm1691_vm6 = vcmask 818176  }
   0x3   :  { %4285 = sst [smem:[#allocation5_spill]] %s4261_s4  ;;  %v363_v63 = vunpack.c.0.s8 %v362_v48  ;;  %s4289_s0 = sld [smem:[#allocation4_spill]] }
   0x4   :  { %4286 = sst [smem:[#allocation6_spill]] %s4262_s2  ;;  %s4290_s2 = sld [smem:[#allocation5_spill]] }
   0x5   :  { %4287 = sst [smem:[#allocation7_spill]] %s4263_s3 }
   0x6   :  { %s4292_s24 = sld [smem:[#allocation7_spill]] }
   0x8   :  { %v83_v0 = vld [vmem:[%s4288_s23 + $0x80] sm:$0xff]  ;;  %v84_v1 = vld [vmem:[%s4288_s23 + $0x88] sm:$0xff]  ;;  %v85_v11 = vld [vmem:[%s4288_s23 + $0x90] sm:$0xff] }
   0x9   :  { %v115_v2 = vld [vmem:[%s4288_s23 + $0x180] sm:$0xff]  ;;  %v2610_v3 = vpack.c.bf16 %v84_v1, %v83_v0  ;;  %v116_v4 = vld [vmem:[%s4288_s23 + $0x188] sm:$0xff]  ;;  %v86_v13 = vld [vmem:[%s4288_s23 + $0x98] sm:$0xff]  ;;  %v3214_v0 = vshrl.u32 %v364_v49, 7 }
   0xa   :  { %v67_v5 = vld [vmem:[%s4288_s23] sm:$0xff]  ;;  %v68_v6 = vld [vmem:[%s4288_s23 + $0x8] sm:$0xff]  ;;  %v2642_v7 = vpack.c.bf16 %v116_v4, %v115_v2  ;;  %v117_v14 = vld [vmem:[%s4288_s23 + $0x190] sm:$0xff]  ;;  %v2614_v16 = vpack.c.bf16 %v86_v13, %v85_v11 }
   0xb   :  { %v2612_v8 = vpack.c.bf16 %v68_v6, %v67_v5  ;;  %v99_v9 = vld [vmem:[%s4288_s23 + $0x100] sm:$0xff]  ;;  %v100_v10 = vld [vmem:[%s4288_s23 + $0x108] sm:$0xff]  ;;  %2611 = vmatprep.subr.bf16.mxu0 %v2610_v3  ;;  %v118_v15 = vld [vmem:[%s4288_s23 + $0x198] sm:$0xff]  ;;  %v3241_v13 = vsub.s32 %v363_v63, %v3214_v0 }
   0xc   :  { %v2644_v12 = vpack.c.bf16 %v100_v10, %v99_v9  ;;  %2643 = vmatprep.subr.bf16.mxu1 %v2642_v7  ;;  %v2646_v17 = vpack.c.bf16 %v118_v15, %v117_v14  ;;  %v69_v18 = vld [vmem:[%s4288_s23 + $0x10] sm:$0xff]  ;;  %v70_v19 = vld [vmem:[%s4288_s23 + $0x18] sm:$0xff]  ;;  %v87_v23 = vld [vmem:[%s4288_s23 + $0xa0] sm:$0xff] }
   0xd   :  { %2613 = vmatpush3.bf16.msra.mxu0 %v2612_v8  ;;  %v101_v20 = vld [vmem:[%s4288_s23 + $0x110] sm:$0xff]  ;;  %v2616_v21 = vpack.c.bf16 %v70_v19, %v69_v18  ;;  %v102_v22 = vld [vmem:[%s4288_s23 + $0x118] sm:$0xff]  ;;  %v88_v24 = vld [vmem:[%s4288_s23 + $0xa8] sm:$0xff] }
   0xe   :  { %2645 = vmatpush3.bf16.msra.mxu1 %v2644_v12  ;;  %2615 = vmatprep.subr.bf16.mxu0 %v2614_v16  ;;  %v2648_v25 = vpack.c.bf16 %v102_v22, %v101_v20  ;;  %v2618_v26 = vpack.c.bf16 %v88_v24, %v87_v23  ;;  %v119_v27 = vld [vmem:[%s4288_s23 + $0x1a0] sm:$0xff]  ;;  %v120_v28 = vld [vmem:[%s4288_s23 + $0x1a8] sm:$0xff]  ;;  %v89_v35 = vld [vmem:[%s4288_s23 + $0xb0] sm:$0xff] }
   0xf   :  { %2647 = vmatprep.subr.bf16.mxu1 %v2646_v17  ;;  %v71_v29 = vld [vmem:[%s4288_s23 + $0x20] sm:$0xff]  ;;  %v2650_v30 = vpack.c.bf16 %v120_v28, %v119_v27  ;;  %v72_v31 = vld [vmem:[%s4288_s23 + $0x28] sm:$0xff]  ;;  %v90_v36 = vld [vmem:[%s4288_s23 + $0xb8] sm:$0xff] }
  0x10   :  { %v103_v32 = vld [vmem:[%s4288_s23 + $0x120] sm:$0xff]  ;;  %v104_v33 = vld [vmem:[%s4288_s23 + $0x128] sm:$0xff]  ;;  %v2620_v34 = vpack.c.bf16 %v72_v31, %v71_v29  ;;  %v121_v37 = vld [vmem:[%s4288_s23 + $0x1b0] sm:$0xff]  ;;  %v2622_v39 = vpack.c.bf16 %v90_v36, %v89_v35 }
  0x11   :  { %2617 = vmatpush3.bf16.msra.mxu0 %v2616_v21  ;;  %v2652_v38 = vpack.c.bf16 %v104_v33, %v103_v32  ;;  %v122_v40 = vld [vmem:[%s4288_s23 + $0x1b8] sm:$0xff]  ;;  %v73_v41 = vld [vmem:[%s4288_s23 + $0x30] sm:$0xff]  ;;  %v91_v46 = vld [vmem:[%s4288_s23 + $0xc0] sm:$0xff] }
  0x12   :  { %2649 = vmatpush3.bf16.msra.mxu1 %v2648_v25  ;;  %2619 = vmatprep.subr.bf16.mxu0 %v2618_v26  ;;  %v74_v42 = vld [vmem:[%s4288_s23 + $0x38] sm:$0xff]  ;;  %v2654_v43 = vpack.c.bf16 %v122_v40, %v121_v37  ;;  %v105_v44 = vld [vmem:[%s4288_s23 + $0x130] sm:$0xff]  ;;  %v92_v50 = vld [vmem:[%s4288_s23 + $0xc8] sm:$0xff] }
  0x13   :  { %2651 = vmatprep.subr.bf16.mxu1 %v2650_v30  ;;  %v106_v45 = vld [vmem:[%s4288_s23 + $0x138] sm:$0xff]  ;;  %v123_v51 = vld [vmem:[%s4288_s23 + $0x1c0] sm:$0xff]  ;;  %v124_v52 = vld [vmem:[%s4288_s23 + $0x1c8] sm:$0xff]  ;;  %v2624_v53 = vpack.c.bf16 %v74_v42, %v73_v41  ;;  %v2626_v55 = vpack.c.bf16 %v92_v50, %v91_v46 }
  0x14   :  { %v2656_v54 = vpack.c.bf16 %v106_v45, %v105_v44  ;;  %v75_v56 = vld [vmem:[%s4288_s23 + $0x40] sm:$0xff]  ;;  %v76_v57 = vld [vmem:[%s4288_s23 + $0x48] sm:$0xff]  ;;  %v2658_v59 = vpack.c.bf16 %v124_v52, %v123_v51  ;;  %v93_v61 = vld [vmem:[%s4288_s23 + $0xd0] sm:$0xff] }
  0x15   :  { %2621 = vmatpush3.bf16.msra.mxu0 %v2620_v34  ;;  %v107_v58 = vld [vmem:[%s4288_s23 + $0x140] sm:$0xff]  ;;  %v108_v60 = vld [vmem:[%s4288_s23 + $0x148] sm:$0xff]  ;;  %v94_v62 = vld [vmem:[%s4288_s23 + $0xd8] sm:$0xff]  ;;  %v2628_v3 = vpack.c.bf16 %v76_v57, %v75_v56 }
  0x16   :  { %2653 = vmatpush3.bf16.msra.mxu1 %v2652_v38  ;;  %2623 = vmatprep.subr.bf16.mxu0 %v2622_v39  ;;  %v125_v1 = vld [vmem:[%s4288_s23 + $0x1d0] sm:$0xff]  ;;  %v126_v2 = vld [vmem:[%s4288_s23 + $0x1d8] sm:$0xff]  ;;  %v2660_v4 = vpack.c.bf16 %v108_v60, %v107_v58  ;;  %v2630_v5 = vpack.c.bf16 %v94_v62, %v93_v61  ;;  %v95_v11 = vld [vmem:[%s4288_s23 + $0xe0] sm:$0xff] }
  0x17   :  { %2655 = vmatprep.subr.bf16.mxu1 %v2654_v43  ;;  %v77_v6 = vld [vmem:[%s4288_s23 + $0x50] sm:$0xff]  ;;  %v78_v7 = vld [vmem:[%s4288_s23 + $0x58] sm:$0xff]  ;;  %v2662_v9 = vpack.c.bf16 %v126_v2, %v125_v1  ;;  %v96_v12 = vld [vmem:[%s4288_s23 + $0xe8] sm:$0xff] }
  0x18   :  { %v109_v8 = vld [vmem:[%s4288_s23 + $0x150] sm:$0xff]  ;;  %v110_v10 = vld [vmem:[%s4288_s23 + $0x158] sm:$0xff]  ;;  %v127_v14 = vld [vmem:[%s4288_s23 + $0x1e0] sm:$0xff]  ;;  %v2632_v16 = vpack.c.bf16 %v78_v7, %v77_v6  ;;  %v2634_v19 = vpack.c.bf16 %v96_v12, %v95_v11 }
  0x19   :  { %2625 = vmatpush3.bf16.msra.mxu0 %v2624_v53  ;;  %v128_v15 = vld [vmem:[%s4288_s23 + $0x1e8] sm:$0xff]  ;;  %v79_v17 = vld [vmem:[%s4288_s23 + $0x60] sm:$0xff]  ;;  %v2664_v18 = vpack.c.bf16 %v110_v10, %v109_v8  ;;  %v97_v25 = vld [vmem:[%s4288_s23 + $0xf0] sm:$0xff] }
  0x1a   :  { %2657 = vmatpush3.bf16.msra.mxu1 %v2656_v54  ;;  %2627 = vmatprep.subr.bf16.mxu0 %v2626_v55  ;;  %v80_v20 = vld [vmem:[%s4288_s23 + $0x68] sm:$0xff]  ;;  %v111_v21 = vld [vmem:[%s4288_s23 + $0x160] sm:$0xff]  ;;  %v2666_v23 = vpack.c.bf16 %v128_v15, %v127_v14  ;;  %v98_v26 = vld [vmem:[%s4288_s23 + $0xf8] sm:$0xff] }
  0x1b   :  { %2659 = vmatprep.subr.bf16.mxu1 %v2658_v59  ;;  %v62_v22 = vld [vmem:[%s4289_s0] sm:$0xff]  ;;  %v112_v24 = vld [vmem:[%s4288_s23 + $0x168] sm:$0xff]  ;;  %v129_v29 = vld [vmem:[%s4288_s23 + $0x1f0] sm:$0xff]  ;;  %v2636_v31 = vpack.c.bf16 %v80_v20, %v79_v17  ;;  %v2638_v35 = vpack.c.bf16 %v98_v26, %v97_v25 }
  0x1c   :  { %v367_v27 = vrot.slane %v62_v22, %v3241_v13  ;;  %v360_v28 = vcombine.high %v62_v22, %v62_v22  ;;  %v130_v30 = vld [vmem:[%s4288_s23 + $0x1f8] sm:$0xff]  ;;  %v2668_v34 = vpack.c.bf16 %v112_v24, %v111_v21  ;;  %v81_v36 = vld [vmem:[%s4288_s23 + $0x70] sm:$0xff]  ;;  %v147_v42 = vld [vmem:[%s4288_s23 + $0x280] sm:$0xff] }
  0x1d   :  { %2629 = vmatpush3.bf16.msra.mxu0 %v2628_v3  ;;  %v82_v37 = vld [vmem:[%s4288_s23 + $0x78] sm:$0xff]  ;;  %v113_v38 = vld [vmem:[%s4288_s23 + $0x170] sm:$0xff]  ;;  %v2670_v39 = vpack.c.bf16 %v130_v30, %v129_v29  ;;  %v148_v43 = vld [vmem:[%s4288_s23 + $0x288] sm:$0xff] }
  0x1e   :  { %2661 = vmatpush3.bf16.msra.mxu1 %v2660_v4  ;;  %2631 = vmatprep.subr.bf16.mxu0 %v2630_v5  ;;  %v375_v32 = vcombine.high %v367_v27, %v367_v27  ;;  %v374_v33 = vrot.slane %v360_v28, %v3241_v13  ;;  %v114_v40 = vld [vmem:[%s4288_s23 + $0x178] sm:$0xff]  ;;  %v179_v44 = vld [vmem:[%s4288_s23 + $0x380] sm:$0xff]  ;;  %v180_v45 = vld [vmem:[%s4288_s23 + $0x388] sm:$0xff]  ;;  %v2640_v46 = vpack.c.bf16 %v82_v37, %v81_v36 }
  0x1f   :  { %2663 = vmatprep.subr.bf16.mxu1 %v2662_v9  ;;  %v2672_v47 = vpack.c.bf16 %v114_v40, %v113_v38  ;;  %v2674_v48 = vpack.c.bf16 %v148_v43, %v147_v42  ;;  %v131_v50 = vld [vmem:[%s4288_s23 + $0x200] sm:$0xff]  ;;  %v132_v51 = vld [vmem:[%s4288_s23 + $0x208] sm:$0xff]  ;;  %v2706_v53 = vpack.c.bf16 %v180_v45, %v179_v44  ;;  %v149_v55 = vld [vmem:[%s4288_s23 + $0x290] sm:$0xff] }
  0x20   :  { %518 = vmatprep.mubr.f32.mxu0 %v375_v32  ;;  %v376_v41 = vcombine.high %v374_v33, %v374_v33  ;;  %v163_v52 = vld [vmem:[%s4288_s23 + $0x300] sm:$0xff]  ;;  %v164_v54 = vld [vmem:[%s4288_s23 + $0x308] sm:$0xff]  ;;  %v150_v56 = vld [vmem:[%s4288_s23 + $0x298] sm:$0xff]  ;;  %v2676_v59 = vpack.c.bf16 %v132_v51, %v131_v50 }
  0x21   :  { %2633 = vmatpush3.bf16.msra.mxu0 %v2632_v16  ;;  %v181_v57 = vld [vmem:[%s4288_s23 + $0x390] sm:$0xff]  ;;  %v182_v58 = vld [vmem:[%s4288_s23 + $0x398] sm:$0xff]  ;;  %v2708_v60 = vpack.c.bf16 %v164_v54, %v163_v52  ;;  %v2678_v61 = vpack.c.bf16 %v150_v56, %v149_v55  ;;  %v151_v4 = vld [vmem:[%s4288_s23 + $0x2a0] sm:$0xff] }
  0x22   :  { %2665 = vmatpush3.bf16.msra.mxu1 %v2664_v18  ;;  %2635 = vmatprep.subr.bf16.mxu0 %v2634_v19  ;;  %v133_v62 = vld [vmem:[%s4288_s23 + $0x210] sm:$0xff]  ;;  %v134_v63 = vld [vmem:[%s4288_s23 + $0x218] sm:$0xff]  ;;  %v2710_v2 = vpack.c.bf16 %v182_v58, %v181_v57  ;;  %v152_v5 = vld [vmem:[%s4288_s23 + $0x2a8] sm:$0xff] }
  0x23   :  { %2667 = vmatprep.subr.bf16.mxu1 %v2666_v23  ;;  %588 = vmatprep.mubr.f32.mxu1 %v376_v41  ;;  %v165_v1 = vld [vmem:[%s4288_s23 + $0x310] sm:$0xff]  ;;  %v166_v3 = vld [vmem:[%s4288_s23 + $0x318] sm:$0xff]  ;;  %v183_v6 = vld [vmem:[%s4288_s23 + $0x3a0] sm:$0xff]  ;;  %v2680_v8 = vpack.c.bf16 %v134_v63, %v133_v62  ;;  %v2682_v10 = vpack.c.bf16 %v152_v5, %v151_v4 }
  0x24   :  { %v184_v7 = vld [vmem:[%s4288_s23 + $0x3a8] sm:$0xff]  ;;  %v2712_v9 = vpack.c.bf16 %v166_v3, %v165_v1  ;;  %v135_v11 = vld [vmem:[%s4288_s23 + $0x220] sm:$0xff]  ;;  %v153_v17 = vld [vmem:[%s4288_s23 + $0x2b0] sm:$0xff] }
  0x25   :  { %2637 = vmatpush3.bf16.msra.mxu0 %v2636_v31  ;;  %v136_v12 = vld [vmem:[%s4288_s23 + $0x228] sm:$0xff]  ;;  %v167_v14 = vld [vmem:[%s4288_s23 + $0x320] sm:$0xff]  ;;  %v2714_v15 = vpack.c.bf16 %v184_v7, %v183_v6  ;;  %v154_v18 = vld [vmem:[%s4288_s23 + $0x2b8] sm:$0xff] }
  0x26   :  { %2669 = vmatpush3.bf16.msra.mxu1 %v2668_v34  ;;  %2639 = vmatprep.subr.bf16.mxu0 %v2638_v35  ;;  %v168_v16 = vld [vmem:[%s4288_s23 + $0x328] sm:$0xff]  ;;  %v185_v19 = vld [vmem:[%s4288_s23 + $0x3b0] sm:$0xff]  ;;  %v186_v20 = vld [vmem:[%s4288_s23 + $0x3b8] sm:$0xff]  ;;  %v2684_v21 = vpack.c.bf16 %v136_v12, %v135_v11  ;;  %v2686_v24 = vpack.c.bf16 %v154_v18, %v153_v17 }
  0x27   :  { %2671 = vmatprep.subr.bf16.mxu1 %v2670_v39  ;;  %v137_v22 = vld [vmem:[%s4288_s23 + $0x230] sm:$0xff]  ;;  %v2716_v23 = vpack.c.bf16 %v168_v16, %v167_v14  ;;  %v138_v25 = vld [vmem:[%s4288_s23 + $0x238] sm:$0xff]  ;;  %v2718_v28 = vpack.c.bf16 %v186_v20, %v185_v19  ;;  %v155_v29 = vld [vmem:[%s4288_s23 + $0x2c0] sm:$0xff] }
  0x28   :  { %v169_v26 = vld [vmem:[%s4288_s23 + $0x330] sm:$0xff]  ;;  %v156_v30 = vld [vmem:[%s4288_s23 + $0x2c8] sm:$0xff]  ;;  %v187_v32 = vld [vmem:[%s4288_s23 + $0x3c0] sm:$0xff]  ;;  %v2688_v36 = vpack.c.bf16 %v138_v25, %v137_v22 }
  0x29   :  { %2641 = vmatpush3.bf16.msra.mxu0 %v2640_v46  ;;  %v63_v31 = vld [vmem:[%s4289_s0 + $0x8] sm:$0xff]  ;;  %v2690_v38 = vpack.c.bf16 %v156_v30, %v155_v29  ;;  %v139_v39 = vld [vmem:[%s4288_s23 + $0x240] sm:$0xff]  ;;  %v157_v46 = vld [vmem:[%s4288_s23 + $0x2d0] sm:$0xff] }
  0x2a   :  { %2673 = vmatpush3.bf16.msra.mxu1 %v2672_v47  ;;  %2675 = vmatprep.subr.bf16.mxu0 %v2674_v48  ;;  %v3402_v34 = vrot.slane %v63_v31, %v3241_v13  ;;  %v377_v35 = vcombine.high %v63_v31, %v63_v31  ;;  %v140_v40 = vld [vmem:[%s4288_s23 + $0x248] sm:$0xff]  ;;  %v171_v41 = vld [vmem:[%s4288_s23 + $0x340] sm:$0xff]  ;;  %v158_v47 = vld [vmem:[%s4288_s23 + $0x2d8] sm:$0xff] }
  0x2b   :  { %2707 = vmatprep.subr.bf16.mxu1 %v2706_v53  ;;  %v172_v45 = vld [vmem:[%s4288_s23 + $0x348] sm:$0xff]  ;;  %v189_v48 = vld [vmem:[%s4288_s23 + $0x3d0] sm:$0xff]  ;;  %v190_v50 = vld [vmem:[%s4288_s23 + $0x3d8] sm:$0xff]  ;;  %v2692_v52 = vpack.c.bf16 %v140_v40, %v139_v39  ;;  %v2694_v54 = vpack.c.bf16 %v158_v47, %v157_v46 }
  0x2c   :  { %519 = vmatmul.mubr.f32.vlgmr.msra.gmra.mrb[0].mxu0 %v367_v27  ;;  %v170_v27 = vld [vmem:[%s4288_s23 + $0x338] sm:$0xff]  ;;  %v392_v42 = vcombine.high %v3402_v34, %v3402_v34  ;;  %v3416_v43 = vrot.slane %v377_v35, %v3241_v13  ;;  %v2724_v53 = vpack.c.bf16 %v172_v45, %v171_v41  ;;  %v141_v55 = vld [vmem:[%s4288_s23 + $0x250] sm:$0xff]  ;;  %v2726_v58 = vpack.c.bf16 %v190_v50, %v189_v48  ;;  %v191_v62 = vld [vmem:[%s4288_s23 + $0x3e0] sm:$0xff] }
  0x2d   :  { %589 = vmatmul.mubr.f32.vlgmr.msra.gmra.mrb[0].mxu1 %v374_v33  ;;  %2677 = vmatpush3.bf16.msra.mxu0 %v2676_v59  ;;  %v188_v33 = vld [vmem:[%s4288_s23 + $0x3c8] sm:$0xff]  ;;  %v2720_v37 = vpack.c.bf16 %v170_v27, %v169_v26  ;;  %v142_v56 = vld [vmem:[%s4288_s23 + $0x258] sm:$0xff]  ;;  %v173_v57 = vld [vmem:[%s4288_s23 + $0x350] sm:$0xff] }
  0x2e   :  { %2709 = vmatpush3.bf16.msra.mxu1 %v2708_v60  ;;  %2679 = vmatprep.subr.bf16.mxu0 %v2678_v61  ;;  %v2722_v44 = vpack.c.bf16 %v188_v33, %v187_v32  ;;  %v393_v51 = vcombine.high %v3416_v43, %v3416_v43  ;;  %v174_v59 = vld [vmem:[%s4288_s23 + $0x358] sm:$0xff]  ;;  %v159_v60 = vld [vmem:[%s4288_s23 + $0x2e0] sm:$0xff]  ;;  %v160_v61 = vld [vmem:[%s4288_s23 + $0x2e8] sm:$0xff]  ;;  %v2696_v1 = vpack.c.bf16 %v142_v56, %v141_v55 }
  0x2f   :  { %2711 = vmatprep.subr.bf16.mxu1 %v2710_v2  ;;  %658 = vmatprep.mubr.f32.mxu0 %v392_v42  ;;  %v192_v63 = vld [vmem:[%s4288_s23 + $0x3e8] sm:$0xff]  ;;  %v2728_v2 = vpack.c.bf16 %v174_v59, %v173_v57  ;;  %v2698_v3 = vpack.c.bf16 %v160_v61, %v159_v60  ;;  %v143_v4 = vld [vmem:[%s4288_s23 + $0x260] sm:$0xff]  ;;  %v193_v11 = vld [vmem:[%s4288_s23 + $0x3f0] sm:$0xff] }
  0x30   :  { %728 = vmatprep.mubr.f32.mxu1 %v393_v51  ;;  %v144_v5 = vld [vmem:[%s4288_s23 + $0x268] sm:$0xff]  ;;  %v175_v6 = vld [vmem:[%s4288_s23 + $0x360] sm:$0xff]  ;;  %v2730_v7 = vpack.c.bf16 %v192_v63, %v191_v62  ;;  %v194_v12 = vld [vmem:[%s4288_s23 + $0x3f8] sm:$0xff] }
  0x31   :  { %2681 = vmatpush3.bf16.msra.mxu0 %v2680_v8  ;;  %v176_v8 = vld [vmem:[%s4288_s23 + $0x368] sm:$0xff]  ;;  %v2700_v14 = vpack.c.bf16 %v144_v5, %v143_v4  ;;  %v145_v17 = vld [vmem:[%s4288_s23 + $0x270] sm:$0xff]  ;;  %v146_v18 = vld [vmem:[%s4288_s23 + $0x278] sm:$0xff]  ;;  %v2734_v20 = vpack.c.bf16 %v194_v12, %v193_v11 }
  0x32   :  { %2713 = vmatpush3.bf16.msra.mxu1 %v2712_v9  ;;  %2683 = vmatprep.subr.bf16.mxu0 %v2682_v10  ;;  %v161_v9 = vld [vmem:[%s4288_s23 + $0x2f0] sm:$0xff]  ;;  %v162_v10 = vld [vmem:[%s4288_s23 + $0x2f8] sm:$0xff]  ;;  %v211_v22 = vld [vmem:[%s4288_s23 + $0x480] sm:$0xff]  ;;  %v2704_v26 = vpack.c.bf16 %v146_v18, %v145_v17 }
  0x33   :  { %2715 = vmatprep.subr.bf16.mxu1 %v2714_v15  ;;  %v2732_v15 = vpack.c.bf16 %v176_v8, %v175_v6  ;;  %v2702_v16 = vpack.c.bf16 %v162_v10, %v161_v9  ;;  %v177_v19 = vld [vmem:[%s4288_s23 + $0x370] sm:$0xff]  ;;  %v244_v25 = vld [vmem:[%s4288_s23 + $0x588] sm:$0xff]  ;;  %v195_v27 = vld [vmem:[%s4288_s23 + $0x400] sm:$0xff] }
  0x34   :  { %v196_v30 = vld [vmem:[%s4288_s23 + $0x408] sm:$0xff]  ;;  %v227_v31 = vld [vmem:[%s4288_s23 + $0x500] sm:$0xff]  ;;  %v213_v35 = vld [vmem:[%s4288_s23 + $0x490] sm:$0xff] }
  0x35   :  { %2685 = vmatpush3.bf16.msra.mxu0 %v2684_v21  ;;  %v178_v21 = vld [vmem:[%s4288_s23 + $0x378] sm:$0xff]  ;;  %v228_v32 = vld [vmem:[%s4288_s23 + $0x508] sm:$0xff]  ;;  %v2740_v39 = vpack.c.bf16 %v196_v30, %v195_v27  ;;  %v64_v41 = vld [vmem:[%s4289_s0 + $0x10] sm:$0xff] }
  0x36   :  { %2717 = vmatpush3.bf16.msra.mxu1 %v2716_v23  ;;  %2687 = vmatprep.subr.bf16.mxu0 %v2686_v24  ;;  %v212_v23 = vld [vmem:[%s4288_s23 + $0x488] sm:$0xff]  ;;  %v243_v24 = vld [vmem:[%s4288_s23 + $0x580] sm:$0xff]  ;;  %v2772_v40 = vpack.c.bf16 %v228_v32, %v227_v31  ;;  %v198_v45 = vld [vmem:[%s4288_s23 + $0x418] sm:$0xff]  ;;  %v3544_v47 = vrot.slane %v64_v41, %v3241_v13  ;;  %v394_v48 = vcombine.high %v64_v41, %v64_v41 }
  0x37   :  { %2719 = vmatprep.subr.bf16.mxu1 %v2718_v28  ;;  %v2736_v28 = vpack.c.bf16 %v178_v21, %v177_v19  ;;  %v2738_v29 = vpack.c.bf16 %v212_v23, %v211_v22  ;;  %v2770_v33 = vpack.c.bf16 %v244_v25, %v243_v24  ;;  %v229_v46 = vld [vmem:[%s4288_s23 + $0x510] sm:$0xff]  ;;  %v230_v51 = vld [vmem:[%s4288_s23 + $0x518] sm:$0xff]  ;;  %v248_v55 = vld [vmem:[%s4288_s23 + $0x5a8] sm:$0xff] }
  0x38   :  { %v409_v56 = vcombine.high %v3544_v47, %v3544_v47  ;;  %v3565_v57 = vrot.slane %v394_v48, %v3241_v13  ;;  %v199_v60 = vld [vmem:[%s4288_s23 + $0x420] sm:$0xff]  ;;  %v200_v61 = vld [vmem:[%s4288_s23 + $0x428] sm:$0xff]  ;;  %v249_v4 = vld [vmem:[%s4288_s23 + $0x5b0] sm:$0xff] }
  0x39   :  { %2689 = vmatpush3.bf16.msra.mxu0 %v2688_v36  ;;  %v214_v36 = vld [vmem:[%s4288_s23 + $0x498] sm:$0xff]  ;;  %v231_v62 = vld [vmem:[%s4288_s23 + $0x520] sm:$0xff]  ;;  %v2748_v6 = vpack.c.bf16 %v200_v61, %v199_v60  ;;  %v201_v9 = vld [vmem:[%s4288_s23 + $0x430] sm:$0xff] }
  0x3a   :  { %2721 = vmatpush3.bf16.msra.mxu1 %v2720_v37  ;;  %2691 = vmatprep.subr.bf16.mxu0 %v2690_v38  ;;  %v245_v37 = vld [vmem:[%s4288_s23 + $0x590] sm:$0xff]  ;;  %v246_v38 = vld [vmem:[%s4288_s23 + $0x598] sm:$0xff]  ;;  %v2742_v42 = vpack.c.bf16 %v214_v36, %v213_v35  ;;  %v251_v17 = vld [vmem:[%s4288_s23 + $0x5c0] sm:$0xff] }
  0x3b   :  { %2723 = vmatprep.subr.bf16.mxu1 %v2722_v44  ;;  %v197_v44 = vld [vmem:[%s4288_s23 + $0x410] sm:$0xff]  ;;  %v2774_v50 = vpack.c.bf16 %v246_v38, %v245_v37  ;;  %v250_v5 = vld [vmem:[%s4288_s23 + $0x5b8] sm:$0xff]  ;;  %v252_v18 = vld [vmem:[%s4288_s23 + $0x5c8] sm:$0xff] }
  0x3c   :  { %v202_v10 = vld [vmem:[%s4288_s23 + $0x438] sm:$0xff]  ;;  %v233_v11 = vld [vmem:[%s4288_s23 + $0x530] sm:$0xff]  ;;  %v2782_v12 = vpack.c.bf16 %v250_v5, %v249_v4  ;;  %v203_v22 = vld [vmem:[%s4288_s23 + $0x440] sm:$0xff]  ;;  %v2786_v25 = vpack.c.bf16 %v252_v18, %v251_v17 }
  0x3d   :  { %2693 = vmatpush3.bf16.msra.mxu0 %v2692_v52  ;;  %v215_v52 = vld [vmem:[%s4288_s23 + $0x4a0] sm:$0xff]  ;;  %v2752_v19 = vpack.c.bf16 %v202_v10, %v201_v9  ;;  %v204_v23 = vld [vmem:[%s4288_s23 + $0x448] sm:$0xff]  ;;  %v221_v27 = vld [vmem:[%s4288_s23 + $0x4d0] sm:$0xff] }
  0x3e   :  { %2725 = vmatpush3.bf16.msra.mxu1 %v2724_v53  ;;  %2695 = vmatprep.subr.bf16.mxu0 %v2694_v54  ;;  %v216_v53 = vld [vmem:[%s4288_s23 + $0x4a8] sm:$0xff]  ;;  %v247_v54 = vld [vmem:[%s4288_s23 + $0x5a0] sm:$0xff]  ;;  %v254_v30 = vld [vmem:[%s4288_s23 + $0x5d8] sm:$0xff]  ;;  %v2756_v31 = vpack.c.bf16 %v204_v23, %v203_v22 }
  0x3f   :  { %2727 = vmatprep.subr.bf16.mxu1 %v2726_v58  ;;  %v2744_v58 = vpack.c.bf16 %v198_v45, %v197_v44  ;;  %v2746_v59 = vpack.c.bf16 %v216_v53, %v215_v52  ;;  %v2778_v63 = vpack.c.bf16 %v248_v55, %v247_v54  ;;  %v235_v24 = vld [vmem:[%s4288_s23 + $0x540] sm:$0xff]  ;;  %v205_v35 = vld [vmem:[%s4288_s23 + $0x450] sm:$0xff]  ;;  %v206_v36 = vld [vmem:[%s4288_s23 + $0x458] sm:$0xff] }
  0x40   :  { %v237_v37 = vld [vmem:[%s4288_s23 + $0x550] sm:$0xff]  ;;  %v224_v41 = vld [vmem:[%s4288_s23 + $0x4e8] sm:$0xff]  ;;  %v2760_v45 = vpack.c.bf16 %v206_v36, %v205_v35  ;;  %v239_v52 = vld [vmem:[%s4288_s23 + $0x560] sm:$0xff] }
  0x41   :  { %2697 = vmatpush3.bf16.msra.mxu0 %v2696_v1  ;;  %v232_v1 = vld [vmem:[%s4288_s23 + $0x528] sm:$0xff]  ;;  %v225_v55 = vld [vmem:[%s4288_s23 + $0x4f0] sm:$0xff]  ;;  %v65_v60 = vld [vmem:[%s4289_s0 + $0x18] sm:$0xff] }
  0x42   :  { %2729 = vmatpush3.bf16.msra.mxu1 %v2728_v2  ;;  %2699 = vmatprep.subr.bf16.mxu0 %v2698_v3  ;;  %v217_v2 = vld [vmem:[%s4288_s23 + $0x4b0] sm:$0xff]  ;;  %v218_v3 = vld [vmem:[%s4288_s23 + $0x4b8] sm:$0xff]  ;;  %v256_v44 = vld [vmem:[%s4288_s23 + $0x5e8] sm:$0xff] }
  0x43   :  { %2731 = vmatprep.subr.bf16.mxu1 %v2730_v7  ;;  %v2780_v7 = vpack.c.bf16 %v232_v1, %v231_v62  ;;  %v2750_v8 = vpack.c.bf16 %v218_v3, %v217_v2  ;;  %v240_v54 = vld [vmem:[%s4288_s23 + $0x568] sm:$0xff]  ;;  %v241_v1 = vld [vmem:[%s4288_s23 + $0x570] sm:$0xff]  ;;  %v242_v3 = vld [vmem:[%s4288_s23 + $0x578] sm:$0xff] }
  0x44   :  { %v2796_v61 = vpack.c.bf16 %v240_v54, %v239_v52  ;;  %v275_v4 = vld [vmem:[%s4288_s23 + $0x680] sm:$0xff]  ;;  %v276_v5 = vld [vmem:[%s4288_s23 + $0x688] sm:$0xff]  ;;  %v2800_v10 = vpack.c.bf16 %v242_v3, %v241_v1  ;;  %v277_v18 = vld [vmem:[%s4288_s23 + $0x690] sm:$0xff] }
  0x45   :  { %2701 = vmatpush3.bf16.msra.mxu0 %v2700_v14  ;;  %v234_v14 = vld [vmem:[%s4288_s23 + $0x538] sm:$0xff]  ;;  %v292_v17 = vld [vmem:[%s4288_s23 + $0x708] sm:$0xff]  ;;  %v311_v35 = vld [vmem:[%s4288_s23 + $0x7a0] sm:$0xff] }
  0x46   :  { %2733 = vmatpush3.bf16.msra.mxu1 %v2732_v15  ;;  %2703 = vmatprep.subr.bf16.mxu0 %v2702_v16  ;;  %v219_v15 = vld [vmem:[%s4288_s23 + $0x4c0] sm:$0xff]  ;;  %v220_v16 = vld [vmem:[%s4288_s23 + $0x4c8] sm:$0xff]  ;;  %v310_v22 = vld [vmem:[%s4288_s23 + $0x798] sm:$0xff] }
  0x47   :  { %2735 = vmatprep.subr.bf16.mxu1 %v2734_v20  ;;  %v2784_v20 = vpack.c.bf16 %v234_v14, %v233_v11  ;;  %v2754_v21 = vpack.c.bf16 %v220_v16, %v219_v15  ;;  %v2802_v11 = vpack.c.bf16 %v276_v5, %v275_v4  ;;  %v260_v14 = vld [vmem:[%s4288_s23 + $0x608] sm:$0xff]  ;;  %v291_v15 = vld [vmem:[%s4288_s23 + $0x700] sm:$0xff]  ;;  %v265_v54 = vld [vmem:[%s4288_s23 + $0x630] sm:$0xff] }
  0x48   :  { %v312_v36 = vld [vmem:[%s4288_s23 + $0x7a8] sm:$0xff]  ;;  %v299_v4 = vld [vmem:[%s4288_s23 + $0x740] sm:$0xff] }
  0x49   :  { %2705 = vmatpush3.bf16.msra.mxu0 %v2704_v26  ;;  %v236_v26 = vld [vmem:[%s4288_s23 + $0x548] sm:$0xff] }
  0x4a   :  { %2737 = vmatpush3.bf16.msra.mxu1 %v2736_v28  ;;  %2739 = vmatprep.subr.bf16.mxu0 %v2738_v29  ;;  %v222_v28 = vld [vmem:[%s4288_s23 + $0x4d8] sm:$0xff]  ;;  %v253_v29 = vld [vmem:[%s4288_s23 + $0x5d0] sm:$0xff]  ;;  %v2788_v32 = vpack.c.bf16 %v236_v26, %v235_v24  ;;  %v268_v3 = vld [vmem:[%s4288_s23 + $0x648] sm:$0xff] }
  0x4b   :  { %2771 = vmatprep.subr.bf16.mxu1 %v2770_v33  ;;  %v2758_v33 = vpack.c.bf16 %v222_v28, %v221_v27  ;;  %v2790_v38 = vpack.c.bf16 %v254_v30, %v253_v29  ;;  %v261_v27 = vld [vmem:[%s4288_s23 + $0x610] sm:$0xff]  ;;  %v262_v28 = vld [vmem:[%s4288_s23 + $0x618] sm:$0xff] }
  0x4c   :  { %659 = vmatmul.mubr.f32.vlgmr.msra.gmra.mrb[2].mxu0 %v3402_v34  ;;  %v2776_v34 = vpack.c.bf16 %v230_v51, %v229_v46  ;;  %v208_v51 = vld [vmem:[%s4288_s23 + $0x468] sm:$0xff]  ;;  %v293_v29 = vld [vmem:[%s4288_s23 + $0x710] sm:$0xff]  ;;  %v294_v30 = vld [vmem:[%s4288_s23 + $0x718] sm:$0xff] }
  0x4d   :  { %2741 = vmatpush3.bf16.msra.mxu0 %v2740_v39  ;;  %729 = vmatmul.mubr.f32.vlgmr.msra.gmra.mrb[2].mxu1 %v3416_v43  ;;  %v410_v43 = vcombine.high %v3565_v57, %v3565_v57  ;;  %v238_v39 = vld [vmem:[%s4288_s23 + $0x558] sm:$0xff] }
  0x4e   :  { %2773 = vmatpush3.bf16.msra.mxu1 %v2772_v40  ;;  %2743 = vmatprep.subr.bf16.mxu0 %v2742_v42  ;;  %v223_v40 = vld [vmem:[%s4288_s23 + $0x4e0] sm:$0xff]  ;;  %v2792_v46 = vpack.c.bf16 %v238_v39, %v237_v37  ;;  %v2840_v39 = vpack.c.bf16 %v294_v30, %v293_v29 }
  0x4f   :  { %2775 = vmatprep.subr.bf16.mxu1 %v2774_v50  ;;  %798 = vmatprep.mubr.f32.mxu0 %v409_v56  ;;  %v255_v42 = vld [vmem:[%s4288_s23 + $0x5e0] sm:$0xff]  ;;  %v2762_v48 = vpack.c.bf16 %v224_v41, %v223_v40  ;;  %v226_v56 = vld [vmem:[%s4288_s23 + $0x4f8] sm:$0xff]  ;;  %v264_v41 = vld [vmem:[%s4288_s23 + $0x628] sm:$0xff] }
  0x50   :  { %868 = vmatprep.mubr.f32.mxu1 %v410_v43  ;;  %v207_v50 = vld [vmem:[%s4288_s23 + $0x460] sm:$0xff]  ;;  %v2794_v53 = vpack.c.bf16 %v256_v44, %v255_v42  ;;  %v2766_v62 = vpack.c.bf16 %v226_v56, %v225_v55  ;;  %v209_v43 = vld [vmem:[%s4288_s23 + $0x470] sm:$0xff]  ;;  %v2842_v44 = vpack.c.bf16 %v312_v36, %v311_v35  ;;  %v266_v55 = vld [vmem:[%s4288_s23 + $0x638] sm:$0xff] }
  0x51   :  { %2745 = vmatpush3.bf16.msra.mxu0 %v2744_v58  ;;  %v257_v58 = vld [vmem:[%s4288_s23 + $0x5f0] sm:$0xff]  ;;  %v295_v42 = vld [vmem:[%s4288_s23 + $0x720] sm:$0xff]  ;;  %v290_v35 = vld [vmem:[%s4288_s23 + $0x6f8] sm:$0xff] }
  0x52   :  { %2777 = vmatpush3.bf16.msra.mxu1 %v2776_v34  ;;  %2747 = vmatprep.subr.bf16.mxu0 %v2746_v59  ;;  %v258_v34 = vld [vmem:[%s4288_s23 + $0x5f8] sm:$0xff]  ;;  %v2764_v59 = vpack.c.bf16 %v208_v51, %v207_v50  ;;  %v297_v56 = vld [vmem:[%s4288_s23 + $0x730] sm:$0xff]  ;;  %v271_v29 = vld [vmem:[%s4288_s23 + $0x660] sm:$0xff] }
  0x53   :  { %2779 = vmatprep.subr.bf16.mxu1 %v2778_v63  ;;  %v210_v63 = vld [vmem:[%s4288_s23 + $0x478] sm:$0xff]  ;;  %v2798_v2 = vpack.c.bf16 %v258_v34, %v257_v58  ;;  %v303_v30 = vld [vmem:[%s4288_s23 + $0x760] sm:$0xff]  ;;  %v321_v36 = vld [vmem:[%s4288_s23 + $0x7f0] sm:$0xff] }
  0x54   :  { %v2768_v9 = vpack.c.bf16 %v210_v63, %v209_v43  ;;  %v314_v50 = vld [vmem:[%s4288_s23 + $0x7b8] sm:$0xff]  ;;  %v2816_v43 = vpack.c.bf16 %v266_v55, %v265_v54  ;;  %v341_v54 = vld [vmem:[%s4288_s23 + $0x890] sm:$0xff] }
  0x55   :  { %2749 = vmatpush3.bf16.msra.mxu0 %v2748_v6  ;;  %v307_v6 = vld [vmem:[%s4288_s23 + $0x780] sm:$0xff]  ;;  %v298_v34 = vld [vmem:[%s4288_s23 + $0x738] sm:$0xff] }
  0x56   :  { %2781 = vmatpush3.bf16.msra.mxu1 %v2780_v7  ;;  %2751 = vmatprep.subr.bf16.mxu0 %v2750_v8  ;;  %v308_v7 = vld [vmem:[%s4288_s23 + $0x788] sm:$0xff]  ;;  %v411_v8 = vcombine.high %v65_v60, %v65_v60  ;;  %v2848_v63 = vpack.c.bf16 %v298_v34, %v297_v56  ;;  %v342_v55 = vld [vmem:[%s4288_s23 + $0x898] sm:$0xff]  ;;  %v3930_v56 = vld.sshfl [vmem:[%s4289_s0 + $0x20] sm:$0x33 pattern:$0x76325410] }
  0x57   :  { %2783 = vmatprep.subr.bf16.mxu1 %v2782_v12  ;;  %v259_v12 = vld [vmem:[%s4288_s23 + $0x600] sm:$0xff]  ;;  %v2834_v16 = vpack.c.bf16 %v308_v7, %v307_v6  ;;  %v300_v6 = vld [vmem:[%s4288_s23 + $0x748] sm:$0xff]  ;;  %v285_v7 = vld [vmem:[%s4288_s23 + $0x6d0] sm:$0xff]  ;;  %v2870_v34 = vpack.c.bf16 %v342_v55, %v341_v54  ;;  %s4291_s0 = sld [smem:[#allocation6_spill]] }
  0x58   :  { %v3745_v23 = vrot.slane %v411_v8, %v3241_v13  ;;  %v2804_v24 = vpack.c.bf16 %v260_v14, %v259_v12  ;;  %v286_v8 = vld [vmem:[%s4288_s23 + $0x6d8] sm:$0xff]  ;;  %v2852_v12 = vpack.c.bf16 %v300_v6, %v299_v4  ;;  %v345_v4 = vld [vmem:[%s4288_s23 + $0x8b0] sm:$0xff] }
  0x59   :  { %2753 = vmatpush3.bf16.msra.mxu0 %v2752_v19  ;;  %v278_v19 = vld [vmem:[%s4288_s23 + $0x698] sm:$0xff]  ;;  %v2822_v14 = vpack.c.bf16 %v286_v8, %v285_v7  ;;  %v329_v6 = vld [vmem:[%s4288_s23 + $0x830] sm:$0xff]  ;;  %v347_v8 = vld [vmem:[%s4288_s23 + $0x8c0] sm:$0xff] }
  0x5a   :  { %2785 = vmatpush3.bf16.msra.mxu1 %v2784_v20  ;;  %2755 = vmatprep.subr.bf16.mxu0 %v2754_v21  ;;  %v3736_v20 = vrot.slane %v65_v60, %v3241_v13  ;;  %v309_v21 = vld [vmem:[%s4288_s23 + $0x790] sm:$0xff]  ;;  %v2806_v26 = vpack.c.bf16 %v278_v19, %v277_v18  ;;  %v427_v37 = vcombine.high %v3745_v23, %v3745_v23  ;;  %v284_v60 = vld [vmem:[%s4288_s23 + $0x6c8] sm:$0xff]  ;;  %v302_v19 = vld [vmem:[%s4288_s23 + $0x758] sm:$0xff] }
  0x5b   :  { %2787 = vmatprep.subr.bf16.mxu1 %v2786_v25  ;;  %v2836_v25 = vpack.c.bf16 %v292_v17, %v291_v15  ;;  %v2838_v13 = vpack.c.bf16 %v310_v22, %v309_v21  ;;  %v269_v15 = vld [vmem:[%s4288_s23 + $0x650] sm:$0xff]  ;;  %v287_v21 = vld [vmem:[%s4288_s23 + $0x6e0] sm:$0xff]  ;;  %v288_v22 = vld [vmem:[%s4288_s23 + $0x6e8] sm:$0xff] }
  0x5c   :  { %v301_v17 = vld [vmem:[%s4288_s23 + $0x750] sm:$0xff]  ;;  %v330_v7 = vld [vmem:[%s4288_s23 + $0x838] sm:$0xff] }
  0x5d   :  { %2757 = vmatpush3.bf16.msra.mxu0 %v2756_v31  ;;  %v279_v31 = vld [vmem:[%s4288_s23 + $0x6a0] sm:$0xff] }
  0x5e   :  { %2789 = vmatpush3.bf16.msra.mxu1 %v2788_v32  ;;  %2759 = vmatprep.subr.bf16.mxu0 %v2758_v33  ;;  %v280_v32 = vld [vmem:[%s4288_s23 + $0x6a8] sm:$0xff]  ;;  %v426_v33 = vcombine.high %v3736_v20, %v3736_v20 }
  0x5f   :  { %2791 = vmatprep.subr.bf16.mxu1 %v2790_v38  ;;  %v2808_v38 = vpack.c.bf16 %v262_v28, %v261_v27  ;;  %v2810_v40 = vpack.c.bf16 %v280_v32, %v279_v31  ;;  %v2856_v27 = vpack.c.bf16 %v302_v19, %v301_v17  ;;  %v2826_v28 = vpack.c.bf16 %v288_v22, %v287_v21  ;;  %v304_v32 = vld [vmem:[%s4288_s23 + $0x768] sm:$0xff]  ;;  %v333_v19 = vld [vmem:[%s4288_s23 + $0x850] sm:$0xff]  ;;  %v334_v21 = vld [vmem:[%s4288_s23 + $0x858] sm:$0xff] }
  0x60   :  { %v351_v22 = vld [vmem:[%s4288_s23 + $0x8e0] sm:$0xff] }
  0x61   :  { %2761 = vmatpush3.bf16.msra.mxu0 %v2760_v45  ;;  %v281_v45 = vld [vmem:[%s4288_s23 + $0x6b0] sm:$0xff] }
  0x62   :  { %2793 = vmatpush3.bf16.msra.mxu1 %v2792_v46  ;;  %2763 = vmatprep.subr.bf16.mxu0 %v2762_v48  ;;  %v282_v46 = vld [vmem:[%s4288_s23 + $0x6b8] sm:$0xff]  ;;  %v313_v48 = vld [vmem:[%s4288_s23 + $0x7b0] sm:$0xff] }
  0x63   :  { %2795 = vmatprep.subr.bf16.mxu1 %v2794_v53  ;;  %v2814_v53 = vpack.c.bf16 %v282_v46, %v281_v45  ;;  %v2846_v58 = vpack.c.bf16 %v314_v50, %v313_v48  ;;  %v339_v45 = vld [vmem:[%s4288_s23 + $0x880] sm:$0xff]  ;;  %v340_v46 = vld [vmem:[%s4288_s23 + $0x888] sm:$0xff] }
  0x65   :  { %2765 = vmatpush3.bf16.msra.mxu0 %v2764_v59  ;;  %v283_v59 = vld [vmem:[%s4288_s23 + $0x6c0] sm:$0xff] }
  0x66   :  { %2797 = vmatpush3.bf16.msra.mxu1 %v2796_v61  ;;  %2767 = vmatprep.subr.bf16.mxu0 %v2766_v62  ;;  %v315_v61 = vld [vmem:[%s4288_s23 + $0x7c0] sm:$0xff]  ;;  %v316_v62 = vld [vmem:[%s4288_s23 + $0x7c8] sm:$0xff]  ;;  %v2818_v1 = vpack.c.bf16 %v284_v60, %v283_v59  ;;  %v325_v59 = vld [vmem:[%s4288_s23 + $0x810] sm:$0xff] }
  0x67   :  { %2799 = vmatprep.subr.bf16.mxu1 %v2798_v2  ;;  %v267_v2 = vld [vmem:[%s4288_s23 + $0x640] sm:$0xff]  ;;  %v2850_v5 = vpack.c.bf16 %v316_v62, %v315_v61  ;;  %v326_v60 = vld [vmem:[%s4288_s23 + $0x818] sm:$0xff]  ;;  %v435_v61 = vcombine.high %v3930_v56, %v3930_v56 }
  0x68   :  { %v343_v62 = vld [vmem:[%s4288_s23 + $0x8a0] sm:$0xff] }
  0x69   :  { %2769 = vmatpush3.bf16.msra.mxu0 %v2768_v9  ;;  %v317_v9 = vld [vmem:[%s4288_s23 + $0x7d0] sm:$0xff] }
  0x6a   :  { %2801 = vmatpush3.bf16.msra.mxu1 %v2800_v10  ;;  %2803 = vmatprep.subr.bf16.mxu0 %v2802_v11  ;;  %v318_v10 = vld [vmem:[%s4288_s23 + $0x7d8] sm:$0xff]  ;;  %v2820_v11 = vpack.c.bf16 %v268_v3, %v267_v2  ;;  %v327_v2 = vld [vmem:[%s4288_s23 + $0x820] sm:$0xff]  ;;  %v328_v3 = vld [vmem:[%s4288_s23 + $0x828] sm:$0xff] }
  0x6b   :  { %2835 = vmatprep.subr.bf16.mxu1 %v2834_v16  ;;  %v270_v16 = vld [vmem:[%s4288_s23 + $0x658] sm:$0xff]  ;;  %v2854_v18 = vpack.c.bf16 %v318_v10, %v317_v9  ;;  %v348_v9 = vld [vmem:[%s4288_s23 + $0x8c8] sm:$0xff]  ;;  %v2880_v10 = vpack.c.bf16 %v330_v7, %v329_v6 }
  0x6c   :  { %799 = vmatmul.mubr.f32.vlgmr.msra.gmra.mrb[4].mxu0 %v3544_v47  ;;  %v263_v47 = vld [vmem:[%s4288_s23 + $0x620] sm:$0xff] }
  0x6d   :  { %2805 = vmatpush3.bf16.msra.mxu0 %v2804_v24  ;;  %869 = vmatmul.mubr.f32.vlgmr.msra.gmra.mrb[4].mxu1 %v3565_v57  ;;  %v296_v57 = vld [vmem:[%s4288_s23 + $0x728] sm:$0xff]  ;;  %v2812_v51 = vpack.c.bf16 %v264_v41, %v263_v47  ;;  %v319_v24 = vld [vmem:[%s4288_s23 + $0x7e0] sm:$0xff]  ;;  %v273_v47 = vld [vmem:[%s4288_s23 + $0x670] sm:$0xff] }
  0x6e   :  { %2837 = vmatpush3.bf16.msra.mxu1 %v2836_v25  ;;  %2807 = vmatprep.subr.bf16.mxu0 %v2806_v26  ;;  %v2844_v52 = vpack.c.bf16 %v296_v57, %v295_v42  ;;  %v320_v25 = vld [vmem:[%s4288_s23 + $0x7e8] sm:$0xff]  ;;  %v2824_v26 = vpack.c.bf16 %v270_v16, %v269_v15  ;;  %v274_v41 = vld [vmem:[%s4288_s23 + $0x678] sm:$0xff]  ;;  %v305_v42 = vld [vmem:[%s4288_s23 + $0x770] sm:$0xff] }
  0x6f   :  { %2839 = vmatprep.subr.bf16.mxu1 %v2838_v13  ;;  %938 = vmatprep.mubr.f32.mxu0 %v426_v33  ;;  %v272_v13 = vld [vmem:[%s4288_s23 + $0x668] sm:$0xff]  ;;  %v2858_v31 = vpack.c.bf16 %v320_v25, %v319_v24  ;;  %v289_v33 = vld [vmem:[%s4288_s23 + $0x6f0] sm:$0xff]  ;;  %v306_v57 = vld [vmem:[%s4288_s23 + $0x778] sm:$0xff]  ;;  %v2832_v48 = vpack.c.bf16 %v274_v41, %v273_v47  ;;  %v2888_v25 = vpack.c.bf16 %v334_v21, %v333_v19 }
  0x70   :  { %1008 = vmatprep.mubr.f32.mxu1 %v427_v37  ;;  %v322_v37 = vld [vmem:[%s4288_s23 + $0x7f8] sm:$0xff]  ;;  %v2864_v50 = vpack.c.bf16 %v306_v57, %v305_v42  ;;  %v349_v15 = vld [vmem:[%s4288_s23 + $0x8d0] sm:$0xff]  ;;  %v352_v24 = vld [vmem:[%s4288_s23 + $0x8e8] sm:$0xff]  ;;  %v2977_v57 = vmov 0.0|0.0  }
  0x71   :  { %2809 = vmatpush3.bf16.msra.mxu0 %v2808_v38  ;;  %v2828_v38 = vpack.c.bf16 %v272_v13, %v271_v29  ;;  %v350_v16 = vld [vmem:[%s4288_s23 + $0x8d8] sm:$0xff]  ;;  %v353_v29 = vld [vmem:[%s4288_s23 + $0x8f0] sm:$0xff]  ;;  %v1101_v47 = vld [vmem:[%s4290_s2] sm:$0xff] }
  0x72   :  { %2841 = vmatpush3.bf16.msra.mxu1 %v2840_v39  ;;  %2811 = vmatprep.subr.bf16.mxu0 %v2810_v40  ;;  %v2860_v39 = vpack.c.bf16 %v304_v32, %v303_v30  ;;  %v2830_v40 = vpack.c.bf16 %v290_v35, %v289_v33  ;;  %v354_v13 = vld [vmem:[%s4288_s23 + $0x8f8] sm:$0xff]  ;;  %v337_v32 = vld [vmem:[%s4288_s23 + $0x870] sm:$0xff]  ;;  %v1102_v41 = vld [vmem:[%s4290_s2 + $0x8] sm:$0xff] }
  0x73   :  { %2843 = vmatprep.subr.bf16.mxu1 %v2842_v44  ;;  %v2862_v44 = vpack.c.bf16 %v322_v37, %v321_v36  ;;  %v338_v33 = vld [vmem:[%s4288_s23 + $0x878] sm:$0xff]  ;;  %v1187_v19 = vld [vmem:[%s4264_s5 + $0x8] sm:$0xff] }
  0x74   :  { %v2896_v35 = vpack.c.bf16 %v338_v33, %v337_v32 }
  0x75   :  { %2813 = vmatpush3.bf16.msra.mxu0 %v2812_v51  ;;  %v2866_v51 = vpack.c.bf16 %v340_v46, %v339_v45  ;;  %v1103_v46 = vld [vmem:[%s4290_s2 + $0x10] sm:$0xff] }
  0x76   :  { %2845 = vmatpush3.bf16.msra.mxu1 %v2844_v52  ;;  %2815 = vmatprep.subr.bf16.mxu0 %v2814_v53  ;;  %v323_v52 = vld [vmem:[%s4288_s23 + $0x800] sm:$0xff]  ;;  %v324_v53 = vld [vmem:[%s4288_s23 + $0x808] sm:$0xff] }
  0x77   :  { %2847 = vmatprep.subr.bf16.mxu1 %v2846_v58  ;;  %v2868_v58 = vpack.c.bf16 %v324_v53, %v323_v52 }
  0x79   :  { %2817 = vmatpush3.bf16.msra.mxu0 %v2816_v43  ;;  %v344_v43 = vld [vmem:[%s4288_s23 + $0x8a8] sm:$0xff] }
  0x7a   :  { %2849 = vmatpush3.bf16.msra.mxu1 %v2848_v63  ;;  %2819 = vmatprep.subr.bf16.mxu0 %v2818_v1  ;;  %v2872_v63 = vpack.c.bf16 %v326_v60, %v325_v59  ;;  %v2874_v1 = vpack.c.bf16 %v344_v43, %v343_v62 }
  0x7b   :  { %2851 = vmatprep.subr.bf16.mxu1 %v2850_v5 }
  0x7d   :  { %2821 = vmatpush3.bf16.msra.mxu0 %v2820_v11  ;;  %v2882_v11 = vpack.c.bf16 %v348_v9, %v347_v8 }
  0x7e   :  { %2853 = vmatpush3.bf16.msra.mxu1 %v2852_v12  ;;  %2823 = vmatprep.subr.bf16.mxu0 %v2822_v14  ;;  %v331_v12 = vld [vmem:[%s4288_s23 + $0x840] sm:$0xff]  ;;  %v332_v14 = vld [vmem:[%s4288_s23 + $0x848] sm:$0xff] }
  0x7f   :  { %2855 = vmatprep.subr.bf16.mxu1 %v2854_v18  ;;  %v2884_v17 = vpack.c.bf16 %v332_v14, %v331_v12  ;;  %v2886_v18 = vpack.c.bf16 %v350_v16, %v349_v15  ;;  %v2081_v14 = vld [vmem:[%s4291_s0] ss:$0 sm:$0xff] }
  0x80   :  { %v2082_v16 = vld [vmem:[%s4292_s24] ss:$0 sm:$0xff] }
  0x81   :  { %2825 = vmatpush3.bf16.msra.mxu0 %v2824_v26  ;;  %v2890_v26 = vpack.c.bf16 %v352_v24, %v351_v22 }
  0x82   :  { %2857 = vmatpush3.bf16.msra.mxu1 %v2856_v27  ;;  %2827 = vmatprep.subr.bf16.mxu0 %v2826_v28  ;;  %v335_v27 = vld [vmem:[%s4288_s23 + $0x860] sm:$0xff]  ;;  %v336_v28 = vld [vmem:[%s4288_s23 + $0x868] sm:$0xff] }
  0x83   :  { %2859 = vmatprep.subr.bf16.mxu1 %v2858_v31  ;;  %v2892_v30 = vpack.c.bf16 %v336_v28, %v335_v27  ;;  %v2894_v31 = vpack.c.bf16 %v354_v13, %v353_v29  ;;  %v1280_v28 = vld [vmem:[%s4265_s9] sm:$0xff] }
  0x85   :  { %2829 = vmatpush3.bf16.msra.mxu0 %v2828_v38 }
  0x86   :  { %2861 = vmatpush3.bf16.msra.mxu1 %v2860_v39  ;;  %2831 = vmatprep.subr.bf16.mxu0 %v2830_v40 }
  0x87   :  { %2863 = vmatprep.subr.bf16.mxu1 %v2862_v44  ;;  %v2899_v44 = vpack.c.bf16 %v1102_v41, %v1101_v47 }
  0x89   :  { %2833 = vmatpush3.bf16.msra.mxu0 %v2832_v48  ;;  %v1104_v48 = vld [vmem:[%s4290_s2 + $0x18] sm:$0xff] }
  0x8a   :  { %2865 = vmatpush3.bf16.msra.mxu1 %v2864_v50  ;;  %2867 = vmatprep.subr.bf16.mxu0 %v2866_v51  ;;  %v2902_v50 = vpack.c.bf16 %v1104_v48, %v1103_v46  ;;  %v2979_v51 = vmov 0.0   ;;  %v2090_v46 = vld [vmem:[%s4265_s9 + $0x8] sm:$0xff] }
  0x8b   :  { %2898 = vmatprep.subr.bf16.mxu1 %v2977_v57 }
  0x8c   :  { %939 = vmatmul.mubr.f32.vlgmr.msra.gmra.mrb[6].mxu0 %v3736_v20  ;;  %v346_v20 = vld [vmem:[%s4288_s23 + $0x8b8] sm:$0xff] }
  0x8d   :  { %2869 = vmatpush3.bf16.msra.mxu0 %v2868_v58  ;;  %1009 = vmatmul.mubr.f32.vlgmr.msra.gmra.mrb[6].mxu1 %v3745_v23  ;;  %v2876_v23 = vpack.c.bf16 %v328_v3, %v327_v2  ;;  %v2878_v5 = vpack.c.bf16 %v346_v20, %v345_v4 }
  0x8e   :  { %2871 = vmatprep.subr.bf16.mxu0 %v2870_v34  ;;  %1078 = vmatprep.mubr.f32.mxu0 %v435_v61 }
  0x8f   :  { %2900 = vmatpush3.bf16.msra.mxu1 %v2899_v44  ;;  %2491 = vmatprep.mubr.msk.f32.mxu1 %vm2978_vm0, %v2979_v51  ;;  %v1278_v44 = vld [vmem:[%s4270_s8] sm:$0xff] }
  0x90   :  { %2901 = vmatprep.subr.bf16.mxu1 %v2977_v57 }
  0x91   :  { %2873 = vmatpush3.bf16.msra.mxu0 %v2872_v63 }
  0x92   :  { %2875 = vmatprep.subr.bf16.mxu0 %v2874_v1 }
  0x93   :  { %2903 = vmatpush3.bf16.msra.mxu1 %v2902_v50  ;;  %v2089_v50 = vld [vmem:[%s4270_s8 + $0x8] sm:$0xff] }
  0x94   :  { %2904 = vmatprep.subr.bf16.mxu1 %v2977_v57 }
  0x95   :  { %2877 = vmatpush3.bf16.msra.mxu0 %v2876_v23 }
  0x96   :  { %2879 = vmatprep.subr.bf16.mxu0 %v2878_v5 }
  0x99   :  { %2881 = vmatpush3.bf16.msra.mxu0 %v2880_v10 }
  0x9a   :  { %2883 = vmatprep.subr.bf16.mxu0 %v2882_v11 }
  0x9d   :  { %2885 = vmatpush3.bf16.msra.mxu0 %v2884_v17 }
  0x9e   :  { %2887 = vmatprep.subr.bf16.mxu0 %v2886_v18  ;;  %v1186_v18 = vld [vmem:[%s4264_s5] sm:$0xff] }
  0x9f   :  { %v2905_v22 = vpack.c.bf16 %v1187_v19, %v1186_v18  ;;  %v1690_v18 = vld [vmem:[%s4272_s13 + $0x60] sm:$0xf] }
  0xa0   :  { %v1786_v19 = vld [vmem:[%s4273_s16] sm:$0xff] }
  0xa1   :  { %2889 = vmatpush3.bf16.msra.mxu0 %v2888_v25  ;;  %v1188_v25 = vld [vmem:[%s4264_s5 + $0x10] sm:$0xff] }
  0xa2   :  { %2891 = vmatprep.subr.bf16.mxu0 %v2890_v26  ;;  %v1189_v26 = vld [vmem:[%s4264_s5 + $0x18] sm:$0xff] }
  0xa3   :  { %v2908_v27 = vpack.c.bf16 %v1189_v26, %v1188_v25  ;;  %v1789_v25 = vld [vmem:[%s4273_s16 + $0x18] sm:$0xff] }
  0xa5   :  { %2893 = vmatpush3.bf16.msra.mxu0 %v2892_v30  ;;  %v2083_v30 = vld [vmem:[%s4266_s6] ss:$0 sm:$0xff] }
  0xa6   :  { %2895 = vmatprep.subr.bf16.mxu0 %v2894_v31  ;;  %v2085_v31 = vld [vmem:[%s4267_s7] ss:$0 sm:$0xff] }
  0xa9   :  { %2897 = vmatpush3.bf16.msra.mxu0 %v2896_v35 }
  0xaa   :  { %2910 = vmatprep.subr.bf16.mxu0 %v2977_v57 }
  0xac   :  { %1079 = vmatmul.mubr.f32.vlgmr.msra.gmra.mrb[8].mxu0 %v3930_v56 }
  0xad   :  { %2533 = vmatprep.mubr.msk.f32.mxu0 %vm2978_vm0, %v2979_v51 }
  0xff   :  { %v2142_v36 = vpop.f32.mrb[0].mxu0 }
 0x100   :  { %v2177_v37 = vpop.f32.mrb[0].mxu1  ;;  %v2143_v38 = vpop.f32.mrb[1].mxu0 }
 0x101   :  { %v2144_v39 = vadd.f32 %v2143_v38, %v2142_v36  ;;  %v2178_v40 = vpop.f32.mrb[1].mxu1 }
 0x102   :  { %v2179_v42 = vadd.f32 %v2178_v40, %v2177_v37 }
 0x104   :  { %v591_v45 = vadd.f32 %v2179_v42, %v2144_v39 }
 0x11f   :  { %v2212_v52 = vpop.f32.mrb[2].mxu0 }
 0x120   :  { %v2213_v53 = vpop.f32.mrb[3].mxu0  ;;  %v2247_v54 = vpop.f32.mrb[2].mxu1 }
 0x121   :  { %v2214_v55 = vadd.f32 %v2213_v53, %v2212_v52  ;;  %v2248_v56 = vpop.f32.mrb[3].mxu1 }
 0x122   :  { %v2249_v58 = vadd.f32 %v2248_v56, %v2247_v54  ;;  %v1584_v54 = vld [vmem:[%s4271_s10] sm:$0xff] }
 0x123   :  { %v661_v34 = vadd.f32 %v2214_v55, %v591_v45  ;;  %v1585_v55 = vld [vmem:[%s4271_s10 + $0x8] sm:$0xff] }
 0x124   :  { %v2911_v56 = vpack.c.bf16 %v1585_v55, %v1584_v54  ;;  %v2980_v55 = vmov 1.0|1.0  }
 0x125   :  { %v731_v59 = vadd.f32 %v2249_v58, %v661_v34  ;;  %v1586_v58 = vld [vmem:[%s4271_s10 + $0x10] sm:$0xff]  ;;  %v1587_v34 = vld [vmem:[%s4271_s10 + $0x18] sm:$0xff] }
 0x126   :  { %2912 = vmatpush3.bf16.msra.mxu0 %v2911_v56 }
 0x127   :  { %2913 = vmatprep.subr.bf16.mxu0 %v2977_v57 }
 0x13f   :  { %v2282_v60 = vpop.f32.mrb[4].mxu0 }
 0x140   :  { %v2283_v61 = vpop.f32.mrb[5].mxu0  ;;  %v2317_v62 = vpop.f32.mrb[4].mxu1 }
 0x141   :  { %v2284_v43 = vadd.f32 %v2283_v61, %v2282_v60  ;;  %v2318_v63 = vpop.f32.mrb[5].mxu1  ;;  %v1678_v60 = vld [vmem:[%s4272_s13] sm:$0xff]  ;;  %v1679_v61 = vld [vmem:[%s4272_s13 + $0x8] sm:$0xff] }
 0x142   :  { %v2319_v1 = vadd.f32 %v2318_v63, %v2317_v62  ;;  %v1680_v62 = vld [vmem:[%s4272_s13 + $0x10] sm:$0xff]  ;;  %v1681_v63 = vld [vmem:[%s4272_s13 + $0x18] sm:$0xff] }
 0x143   :  { %v801_v2 = vadd.f32 %v2284_v43, %v731_v59  ;;  %v2914_v59 = vpack.c.bf16 %v1587_v34, %v1586_v58  ;;  %v2917_v43 = vpack.c.bf16 %v1679_v61, %v1678_v60  ;;  %v2099_v58 = vld [vmem:[%s4277_s15] ss:$0 sm:$0xff] }
 0x145   :  { %v871_v3 = vadd.f32 %v2319_v1, %v801_v2  ;;  %2915 = vmatpush3.bf16.msra.mxu0 %v2914_v59  ;;  %v2920_v1 = vpack.c.bf16 %v1681_v63, %v1680_v62  ;;  %v1682_v2 = vld [vmem:[%s4272_s13 + $0x20] sm:$0xff]  ;;  %v1886_v62 = vadd.s32 24, %v3214_v0 }
 0x146   :  { %2934 = vmatprep.subr.bf16.mxu0 %v2977_v57 }
 0x15f   :  { %v2352_v4 = vpop.f32.mrb[6].mxu0 }
 0x160   :  { %v2353_v20 = vpop.f32.mrb[7].mxu0  ;;  %v2387_v23 = vpop.f32.mrb[6].mxu1 }
 0x161   :  { %v2354_v5 = vadd.f32 %v2353_v20, %v2352_v4  ;;  %v2388_v6 = vpop.f32.mrb[7].mxu1  ;;  %v1684_v20 = vld [vmem:[%s4272_s13 + $0x30] sm:$0xff] }
 0x162   :  { %v2389_v7 = vadd.f32 %v2388_v6, %v2387_v23  ;;  %v1685_v23 = vld [vmem:[%s4272_s13 + $0x38] sm:$0xff]  ;;  %v1686_v6 = vld [vmem:[%s4272_s13 + $0x40] sm:$0xff] }
 0x163   :  { %v941_v8 = vadd.f32 %v2354_v5, %v871_v3  ;;  %v1683_v3 = vld [vmem:[%s4272_s13 + $0x28] sm:$0xff]  ;;  %v2926_v5 = vpack.c.bf16 %v1685_v23, %v1684_v20  ;;  %v2981_v23 = vmov 1.0  }
 0x164   :  { %v2923_v4 = vpack.c.bf16 %v1683_v3, %v1682_v2  ;;  %v1908_v3 = vmul.u32 4, %v3214_v0 }
 0x165   :  { %v1011_v9 = vadd.f32 %v2389_v7, %v941_v8  ;;  %v1687_v7 = vld [vmem:[%s4272_s13 + $0x48] sm:$0xff] }
 0x166   :  { %v2929_v8 = vpack.c.bf16 %v1687_v7, %v1686_v6 }
 0x17f   :  { %v2422_v10 = vpop.f32.mrb[8].mxu0 }
 0x180   :  { %v2423_v11 = vpop.f32.mrb[9].mxu0 }
 0x181   :  { %v2424_v12 = vadd.f32 %v2423_v11, %v2422_v10 }
 0x183   :  { %v1081_v15 = vadd.f32 %v2424_v12, %v1011_v9 }
 0x185   :  { %v1091_v17 = vmul.f32 %v2081_v14, %v1081_v15  ;;  %v1688_v15 = vld [vmem:[%s4272_s13 + $0x50] sm:$0xff] }
 0x187   :  { %v1099_v21 = vadd.f32 %v2082_v16, %v1091_v17  ;;  %v1689_v16 = vld [vmem:[%s4272_s13 + $0x58] sm:$0xff] }
 0x188   :  { %v2932_v17 = vpack.c.bf16 %v1689_v16, %v1688_v15 }
 0x189   :  { %v1100_v24 = vmax.f32 %v1099_v21, 0.0  ;;  %v1787_v21 = vld [vmem:[%s4273_s16 + $0x8] sm:$0xff] }
 0x18b   :  { %2492 = vmatmul.mubr.msk.f32.vlgmr.msra.gmra.mrb[8].mxu1 %vm1112_vm1, %v1100_v24 }
 0x18c   :  { %2906 = vmatpush3.bf16.msra.mxu1 %v2905_v22  ;;  %2502 = vmatprep.mubr.msk.f32.mxu1 %vm2978_vm0, %v2979_v51  ;;  %v1788_v22 = vld [vmem:[%s4273_s16 + $0x10] sm:$0xff] }
 0x18d   :  { %2907 = vmatprep.subr.bf16.mxu1 %v2977_v57  ;;  %v2938_v26 = vpack.c.bf16 %v1789_v25, %v1788_v22 }
 0x190   :  { %2909 = vmatpush3.bf16.msra.mxu1 %v2908_v27  ;;  %v1790_v27 = vld [vmem:[%s4273_s16 + $0x20] sm:$0xff] }
 0x191   :  { %2505 = vmatprep.subr.mxu1 %v2979_v51 }
 0x193   :  { %2503 = vmatmul.mubr.msk.f32.vlgmr.msra.gmra.mrb[10].mxu1 %vm1112_vm1, %v1100_v24  ;;  %v2935_v24 = vpack.c.bf16 %v1787_v21, %v1786_v19 }
 0x194   :  { %2507 = vmatprep.mubr.msk.f32.mxu1 %vm2978_vm0, %v2979_v51  ;;  %2506 = vmatpush3.msra.mxu1 %v1280_v28  ;;  %v1791_v28 = vld [vmem:[%s4273_s16 + $0x28] sm:$0xff] }
 0x195   :  { %2510 = vmatprep.subr.mxu1 %v2979_v51 }
 0x25e   :  { %v1182_v29 = vpop.f32.mrb[8].mxu1 }
 0x25f   :  { %v2493_v13 = vpop.f32.mrb[9].mxu1  ;;  %v1183_v32 = vadd.f32 %v2083_v30, %v1182_v29  ;;  %v2941_v29 = vpack.c.bf16 %v1791_v28, %v1790_v27  ;;  %v1793_v30 = vld [vmem:[%s4273_s16 + $0x38] sm:$0xff] }
 0x260   :  { %v1792_v13 = vld [vmem:[%s4273_s16 + $0x30] sm:$0xff] }
 0x261   :  { %v1267_v37 = vmul.f32 %v1183_v32, %v1183_v32 }
 0x266   :  { %v1263_v33 = vpop.f32.mrb[10].mxu1 }
 0x267   :  { %v1264_v35 = vadd.f32 %v2085_v31, %v1263_v33  ;;  %v2504_v36 = vpop.f32.mrb[11].mxu1  ;;  %v2944_v31 = vpack.c.bf16 %v1793_v30, %v1792_v13  ;;  %v1795_v33 = vld [vmem:[%s4273_s16 + $0x48] sm:$0xff] }
 0x268   :  { %v2094_v36 = vld [vmem:[%s4274_s11] ss:$0 sm:$0xff] }
 0x269   :  { %v1268_v38 = vmul.f32 %v1264_v35, %v1264_v35 }
 0x26b   :  { %v1269_v39 = vadd.f32 %v1268_v38, %v1267_v37  ;;  %v2095_v38 = vld [vmem:[%s4275_s12] ss:$0 sm:$0xff] }
 0x26d   :  { %v1270_v40 = vmax.f32 %v1269_v39, 1e-24 }
 0x26f   :  { %2972 = vrsqrt.f32 %v1270_v40 }
 0x279   :  { %v2973_v47 = vpop.eup %2972 }
 0x27a   :  { %v1275_v41 = vmul.f32 %v2973_v47, %v1264_v35  ;;  %v1272_v42 = vmul.f32 %v2973_v47, %v1183_v32  ;;  %v1794_v32 = vld [vmem:[%s4273_s16 + $0x40] sm:$0xff] }
 0x27b   :  { %v2947_v35 = vpack.c.bf16 %v1795_v33, %v1794_v32 }
 0x27c   :  { %1276 = vst.msk [vmem:[%s4268_s19] sm:$0x3] %vm1273_vm2, %v1275_v41  ;;  %1274 = vst.msk [vmem:[%s4269_s18] sm:$0x3] %vm1273_vm2, %v1272_v42  ;;  %v1796_v42 = vld [vmem:[%s4273_s16 + $0x50] sm:$0xff] }
 0x283   :  { %v1279_v45 = vld [vmem:[%s4268_s19] sm:$0x1]  ;;  %v1433_v52 = vld [vmem:[%s4268_s19 + $0x1] sm:$0x1] }
 0x284   :  { %2508 = vmatmul.mubr.msk.f32.vlgmr.msra.gmra.mrb[12].mxu1 %vm1281_vm3, %v1279_v45  ;;  %v1277_v48 = vld [vmem:[%s4269_s18] sm:$0x1]  ;;  %v1430_v53 = vld [vmem:[%s4269_s18 + $0x1] sm:$0x1] }
 0x285   :  { %2511 = vmatpush3.msra.mxu1 %v1278_v44  ;;  %2512 = vmatprep.mubr.msk.f32.mxu1 %vm2978_vm0, %v2979_v51  ;;  %v1797_v44 = vld [vmem:[%s4273_s16 + $0x58] sm:$0xff] }
 0x286   :  { %2515 = vmatprep.subr.mxu1 %v2979_v51  ;;  %v2950_v45 = vpack.c.bf16 %v1797_v44, %v1796_v42 }
 0x28c   :  { %2513 = vmatmul.mubr.msk.f32.vlgmr.msra.gmra.mrb[12].mxu1 %vm1281_vm3, %v1277_v48  ;;  %v1888_v48 = vand.u32 127, %v364_v49  ;;  %v2098_v49 = vld [vmem:[%s4276_s14] ss:$0 sm:$0xff] }
 0x28d   :  { %2516 = vmatpush3.msra.mxu1 %v2090_v46  ;;  %2517 = vmatprep.mubr.msk.f32.mxu1 %vm2978_vm0, %v2979_v51  ;;  %v1798_v46 = vld [vmem:[%s4273_s16 + $0x60] sm:$0xf] }
 0x28e   :  { %2520 = vmatprep.subr.mxu1 %v2979_v51 }
 0x290   :  { %2518 = vmatmul.mubr.msk.f32.vlgmr.msra.gmra.mrb[14].mxu1 %vm1281_vm3, %v1433_v52  ;;  %v1889_v52 = vmul.u32 4, %v1888_v48 }
 0x291   :  { %2521 = vmatpush3.msra.mxu1 %v2089_v50  ;;  %2522 = vmatprep.mubr.msk.f32.mxu1 %vm2978_vm0, %v2979_v51  ;;  %v1884_v50 = vadd.s32 8, %v3214_v0 }
 0x292   :  { %2916 = vmatprep.subr.bf16.mxu1 %v2977_v57  ;;  %vm1890_vm7 = vcmp.ge.s32.totalorder %v3214_v0, %v1889_v52  ;;  %vm1893_vm15 = vcmp.ge.s32.totalorder %v1886_v62, %v1889_v52 }
 0x293   :  { %vm1891_vm8 = vcmp.ge.s32.totalorder %v1884_v50, %v1889_v52 }
 0x298   :  { %2523 = vmatmul.mubr.msk.f32.vlgmr.msra.gmra.mrb[14].mxu1 %vm1281_vm3, %v1430_v53  ;;  %v1894_v53 = vadd.s32 1, %v1888_v48 }
 0x299   :  { %2562 = vmatprep.mubr.msk.f32.mxu1 %vm2978_vm0, %v2979_v51  ;;  %2918 = vmatpush3.bf16.msra.mxu1 %v2917_v43  ;;  %v2100_v43 = vld [vmem:[%s4278_s17] ss:$0 sm:$0xff] }
 0x29a   :  { %2919 = vmatprep.subr.bf16.mxu1 %v2977_v57  ;;  %v1895_v54 = vmul.u32 4, %v1894_v53 }
 0x29c   :  { %vm1896_vm9 = vcmp.lt.s32.totalorder %v3214_v0, %v1895_v54  ;;  %vm1897_vm10 = vcmp.lt.s32.totalorder %v1884_v50, %v1895_v54 }
 0x29d   :  { %2921 = vmatpush3.bf16.msra.mxu1 %v2920_v1  ;;  %vm1900_vm11 = vmand %vm1890_vm7, %vm1896_vm9 }
 0x29e   :  { %2922 = vmatprep.subr.bf16.mxu1 %v2977_v57  ;;  %vm1901_vm12 = vmand %vm1891_vm8, %vm1897_vm10 }
 0x29f   :  { %vm2953_vm13 = vmpackc.low %vm1901_vm12, %vm1900_vm11 }
 0x2a1   :  { %2924 = vmatpush3.bf16.msra.mxu1 %v2923_v4  ;;  %v1910_v4 = vadd.s32 1, %v3214_v0 }
 0x2a2   :  { %2925 = vmatprep.subr.bf16.mxu1 %v2977_v57 }
 0x2a3   :  { %v1911_v20 = vmul.u32 4, %v1910_v4 }
 0x2a5   :  { %2927 = vmatpush3.bf16.msra.mxu1 %v2926_v5 }
 0x2a6   :  { %2928 = vmatprep.subr.bf16.mxu1 %v2977_v57 }
 0x2a9   :  { %2930 = vmatpush3.bf16.msra.mxu1 %v2929_v8 }
 0x2aa   :  { %2931 = vmatprep.subr.bf16.mxu1 %v2977_v57 }
 0x2ad   :  { %2933 = vmatpush3.bf16.msra.mxu1 %v2932_v17 }
 0x2ae   :  { %2560 = vmatprep.subr.mxu1 %v2979_v51 }
 0x2b1   :  { %2561 = vmatpush3.msk.msra.mxu1 %vm1695_vm5, %v1690_v18 }
 0x2b2   :  { %2952 = vmatprep.subr.bf16.mxu1 %v2977_v57 }
 0x35f   :  { %v1424_v9 = vpop.f32.mrb[12].mxu1 }
 0x360   :  { %1429 = vst.msk [vmem:[#allocation2] sm:$0x1] %vm1428_vm4, %v1424_v9  ;;  %v2514_v10 = vpop.f32.mrb[13].mxu1 }
 0x36b   :  { %v1578_v11 = vpop.f32.mrb[14].mxu1 }
 0x36c   :  { %1582 = vst.msk [vmem:[#allocation2 + $0x1] sm:$0x1] %vm1428_vm4, %v1578_v11  ;;  %v2524_v12 = vpop.f32.mrb[15].mxu1  ;;  %vm1899_vm4 = vcmp.lt.s32.totalorder %v1886_v62, %v1895_v54 }
 0x36d   :  { %vm1903_vm7 = vmand %vm1893_vm15, %vm1899_vm4 }
 0x373   :  { %v1583_v14 = vld [vmem:[#allocation2] sm:$0x3] }
 0x374   :  { %2534 = vmatmul.mubr.msk.f32.vlgmr.msra.gmra.mrb[10].mxu0 %vm1112_vm1, %v1583_v14 }
 0x375   :  { %2591 = vmatprep.mubr.msk.f32.mxu0 %vm2978_vm0, %v2979_v51  ;;  %2936 = vmatpush3.bf16.msra.mxu0 %v2935_v24 }
 0x376   :  { %2937 = vmatprep.subr.bf16.mxu0 %v2977_v57 }
 0x379   :  { %2939 = vmatpush3.bf16.msra.mxu0 %v2938_v26 }
 0x37a   :  { %2940 = vmatprep.subr.bf16.mxu0 %v2977_v57 }
 0x37d   :  { %2942 = vmatpush3.bf16.msra.mxu0 %v2941_v29 }
 0x37e   :  { %2943 = vmatprep.subr.bf16.mxu0 %v2977_v57 }
 0x381   :  { %2945 = vmatpush3.bf16.msra.mxu0 %v2944_v31 }
 0x382   :  { %2946 = vmatprep.subr.bf16.mxu0 %v2977_v57 }
 0x385   :  { %2948 = vmatpush3.bf16.msra.mxu0 %v2947_v35 }
 0x386   :  { %2949 = vmatprep.subr.bf16.mxu0 %v2977_v57 }
 0x389   :  { %2951 = vmatpush3.bf16.msra.mxu0 %v2950_v45 }
 0x38a   :  { %2589 = vmatprep.subr.mxu0 %v2979_v51 }
 0x38d   :  { %2590 = vmatpush3.msk.msra.mxu0 %vm1695_vm5, %v1798_v46 }
 0x38e   :  { %2605 = vmatprep.subr.mxu0 %v2979_v51 }
 0x447   :  { %v1657_v37 = vpop.f32.mrb[10].mxu0 }
 0x448   :  { %v1668_v39 = vmul.f32 %v2094_v36, %v1657_v37  ;;  %v2535_v40 = vpop.f32.mrb[11].mxu0 }
 0x44a   :  { %v1676_v47 = vadd.f32 %v2095_v38, %v1668_v39 }
 0x44c   :  { %v1677_v41 = vmax.f32 %v1676_v47, 0.0 }
 0x44e   :  { %2563 = vmatmul.mubr.msk.f32.vlgmr.msra.gmra.mrb[16].mxu1 %vm1691_vm6, %v1677_v41 }
 0x44f   :  { %2602 = vmatprep.mubr.msk.f32.mxu1 %vm2978_vm0, %v2979_v51  ;;  %2954 = vmatpush3.bf16.msk.msra.mxu1 %vm2953_vm13, %v2980_v55 }
 0x450   :  { %2955 = vmatprep.subr.bf16.mxu1 %v2977_v57  ;;  %v1885_v57 = vadd.s32 16, %v3214_v0 }
 0x452   :  { %vm1892_vm14 = vcmp.ge.s32.totalorder %v1885_v57, %v1889_v52  ;;  %vm1898_vm2 = vcmp.lt.s32.totalorder %v1885_v57, %v1895_v54 }
 0x453   :  { %vm1902_vm5 = vmand %vm1892_vm14, %vm1898_vm2 }
 0x454   :  { %vm2956_vm8 = vmpackc.low %vm1903_vm7, %vm1902_vm5 }
 0x455   :  { %2957 = vmatpush3.bf16.msk.msra.mxu1 %vm2956_vm8, %v2980_v55 }
 0x521   :  { %v1765_v56 = vpop.f32.mrb[16].mxu1 }
 0x522   :  { %v1776_v34 = vmul.f32 %v2098_v49, %v1765_v56  ;;  %v2564_v59 = vpop.f32.mrb[17].mxu1 }
 0x524   :  { %v1784_v60 = vadd.f32 %v2099_v58, %v1776_v34 }
 0x526   :  { %v1785_v61 = vmax.f32 %v1784_v60, 0.0 }
 0x528   :  { %2592 = vmatmul.mubr.msk.f32.vlgmr.msra.gmra.mrb[12].mxu0 %vm1691_vm6, %v1785_v61  ;;  %vm1912_vm6 = vcmp.lt.s32.totalorder %v1888_v48, %v1911_v20 }
 0x529   :  { %2607 = vmatprep.mubr.msk.f32.mxu0 %vm2978_vm0, %v2979_v51  ;;  %vm1909_vm0 = vcmp.ge.s32.totalorder %v1888_v48, %v1908_v3 }
 0x52a   :  { %vm1913_vm9 = vmand %vm1909_vm0, %vm1912_vm6 }
 0x52b   :  { %2606 = vmatpush3.msk.msra.mxu0 %vm1913_vm9, %v2981_v23 }
 0x5fb   :  { %v1878_v63 = vpop.f32.mrb[12].mxu0 }
 0x5fc   :  { %v1879_v1 = vadd.f32 %v2100_v43, %v1878_v63  ;;  %v2593_v2 = vpop.f32.mrb[13].mxu0 }
 0x5fe   :  { %v1915_v51 = vmul.f32 %v1879_v1, %v1879_v1 }
 0x600   :  { %2603 = vmatmul.mubr.msk.f32.vlgmr.msra.gmra.mrb[18].mxu1 %vm1112_vm1, %v1915_v51  ;;  %vm2066_vm1 = vcmask 254976  }
 0x6d3   :  { %v1985_v5 = vpop.f32.mrb[18].mxu1 }
 0x6d4   :  { %v1989_v6 = vmax.f32 %v1985_v5, 1e-24  ;;  %v2604_v7 = vpop.f32.mrb[19].mxu1 }
 0x6d6   :  { %2974 = vrsqrt.f32 %v1989_v6 }
 0x6e0   :  { %v2975_v8 = vpop.eup %2974 }
 0x6e1   :  { %2608 = vmatmul.mubr.msk.f32.vlgmr.msra.gmra.mrb[14].mxu0 %vm1281_vm3, %v2975_v8 }
 0x7b4   :  { %v2060_v9 = vpop.f32.mrb[14].mxu0 }
 0x7b5   :  { %v2064_v10 = vmul.f32 %v2060_v9, %v1879_v1  ;;  %v2609_v11 = vpop.f32.mrb[15].mxu0 }
 0x7b7   :  { %v2065_v12 = vmul.f32 0.5, %v2064_v10 }
 0x7b9   :  { %2067 = vst.msk [vmem:[%s4279_s20] sm:$0x3] %vm2066_vm1, %v2065_v12 }

// kernel: dnn_forward.2
= control target key start
LH: loop header
LB: loop body
LE: loop exit
PB: predicated region body
PF: predicated region fallthrough
CT: control target
= control target key end

     0   :  { %s7093_s28 = smov 8   ;;  %s7094_s29 = smov 16   ;;  %vm42_vm0 = vcmask 64512   ;;  %vm44_vm1 = vcmask 57344   ;;  %vm9549_vm2 = vcmask 130112   ;;  %vm238_vm3 = vcmask 195712   ;;  %s9540_s0 = inlined_call_operand.vmem [shape: f32[2,6,11,8], index: 0, kind: input, shape index: {}]   ;;  %s9541_s1 = inlined_call_operand.vmem [shape: f32[72,64], index: 1, kind: input, shape index: {}]   ;;  %s9542_s2 = inlined_call_operand.vmem [shape: f32[1,64], index: 2, kind: input, shape index: {}]   ;;  %s9543_s3 = inlined_call_operand.vmem [shape: f32[1,64], index: 3, kind: input, shape index: {}]   ;;  %s9544_s4 = inlined_call_operand.vmem [shape: f32[576,64], index: 4, kind: input, shape index: {}]   ;;  %s9545_s5 = inlined_call_operand.vmem [shape: f32[1,64], index: 5, kind: input, shape index: {}]   ;;  %s9546_s6 = inlined_call_operand.vmem [shape: f32[1,64], index: 6, kind: input, shape index: {}]   ;;  %s9547_s7 = inlined_call_operand.vmem [shape: f32[2,4,9,64], index: 7, kind: output, shape index: {}]  }
   0x1   :  { %v60_v0 = vld [vmem:[%s9540_s0 + $0x1] sm:$0xff]  ;;  %v5045_v2 = vld [vmem:[%s9540_s0 + $0x10] sm:$0xff]  ;;  %v61_v3 = vld [vmem:[%s9540_s0 + $0x9] sm:$0x1]  ;;  %s7095_s19 = smov 24   ;;  %s7096_s24 = smov 32  }
   0x2   :  { %v158_v1 = vld [vmem:[%s9540_s0 + $0x2] sm:$0xff]  ;;  %92 = vrot.lane.b32.xlu0 %v60_v0, %s7093_s28  ;;  %v159_v4 = vld [vmem:[%s9540_s0 + $0xa] sm:$0x1]  ;;  %46 = vst.msk [vmem:[#allocation2 + $0x10] sm:$0xff] %vm42_vm0, %v5045_v2  ;;  %v5046_v6 = vld [vmem:[%s9540_s0 + $0x18] sm:$0x1] }
   0x3   :  { %190 = vrot.lane.b32.xlu1 %v158_v1, %s7094_s29  ;;  %v7163_v5 = vld [vmem:[%s9540_s0 + $0x20] sm:$0xff]  ;;  %v7175_v7 = vld [vmem:[%s9540_s0 + $0x30] sm:$0xff]  ;;  %v5062_v9 = vld [vmem:[%s9540_s0 + $0x19] sm:$0x1]  ;;  %s7097_s12 = smov 40   ;;  %s7098_s22 = smov 48  }
   0x4   :  { %48 = vst.msk [vmem:[#allocation2 + $0x20] sm:$0xff] %vm42_vm0, %v7163_v5  ;;  %50 = vst.msk [vmem:[#allocation2 + $0x30] sm:$0xff] %vm42_vm0, %v7175_v7  ;;  %v5061_v8 = vld [vmem:[%s9540_s0 + $0x11] sm:$0xff]  ;;  %v5078_v11 = vld [vmem:[%s9540_s0 + $0x1a] sm:$0x1]  ;;  %s7099_s21 = smov 56  }
   0x5   :  { %v7192_v10 = vld [vmem:[%s9540_s0 + $0x12] sm:$0xff]  ;;  %v26_v12 = vld [vmem:[%s9540_s0] sm:$0xff]  ;;  %v27_v13 = vld [vmem:[%s9540_s0 + $0x8] sm:$0x1]  ;;  %s7100_s9 = smov 64   ;;  %vm142_vm4 = vcmask 122944  }
   0x6   :  { %94 = vrot.lane.b32.xlu0 %v61_v3, %s7093_s28  ;;  %43 = vst.msk [vmem:[#allocation2] sm:$0xff] %vm42_vm0, %v26_v12  ;;  %v5094_v14 = vld [vmem:[%s9540_s0 + $0x28] sm:$0x1]  ;;  %v7214_v15 = vld [vmem:[%s9540_s0 + $0x70] sm:$0xff]  ;;  %v874_v16 = vld [vmem:[%s9541_s1] sm:$0xff]  ;;  %vm240_vm5 = vcmask 188544  }
   0x7   :  { %192 = vrot.lane.b32.xlu1 %v159_v4, %s7094_s29  ;;  %45 = vst.msk [vmem:[#allocation2 + $0x8] sm:$0x1] %vm44_vm1, %v27_v13  ;;  %v875_v17 = vld [vmem:[%s9541_s1 + $0x8] sm:$0xff]  ;;  %v876_v21 = vld [vmem:[%s9541_s1 + $0x10] sm:$0xff]  ;;  %v877_v22 = vld [vmem:[%s9541_s1 + $0x18] sm:$0xff]  ;;  %vm337_vm6 = vcmask 261312  }
   0x8   :  { %v7228_v18 = vld [vmem:[%s9540_s0 + $0x21] sm:$0xff]  ;;  %v7230_v19 = vpack.c.bf16 %v875_v17, %v874_v16  ;;  %54 = vst.msk [vmem:[#allocation2 + $0x50] sm:$0xff] %vm42_vm0, %v7214_v15  ;;  %v5110_v20 = vld [vmem:[%s9540_s0 + $0x29] sm:$0x1]  ;;  %v7244_v23 = vpack.c.bf16 %v877_v22, %v876_v21  ;;  %v29_v26 = vld [vmem:[%s9540_s0 + $0x18] sm:$0x1] }
   0x9   :  { %v878_v24 = vld [vmem:[%s9541_s1 + $0x20] sm:$0xff]  ;;  %v879_v25 = vld [vmem:[%s9541_s1 + $0x28] sm:$0xff]  ;;  %47 = vst.msk [vmem:[#allocation2 + $0x18] sm:$0x1] %vm44_vm1, %v29_v26  ;;  %v880_v30 = vld [vmem:[%s9541_s1 + $0x30] sm:$0xff]  ;;  %vm339_vm7 = vcmask 254144  }
   0xa   :  { %289 = vrot.lane.b32.xlu0 %v5045_v2, %s7095_s19  ;;  %6316 = vmatprep.subr.bf16.mxu0 %v7230_v19  ;;  %v7260_v27 = vld [vmem:[%s9540_s0 + $0x80] sm:$0xff]  ;;  %v7273_v29 = vpack.c.bf16 %v879_v25, %v878_v24  ;;  %v881_v31 = vld [vmem:[%s9541_s1 + $0x38] sm:$0xff]  ;;  %v5126_v32 = vld [vmem:[%s9540_s0 + $0x2a] sm:$0x1]  ;;  %vm435_vm8 = vcmask 326912   ;;  %vm437_vm9 = vcmask 319744  }
   0xb   :  { %291 = vrot.lane.b32.xlu1 %v5046_v6, %s7095_s19  ;;  %6332 = vmatprep.subr.bf16.mxu1 %v7230_v19  ;;  %56 = vst.msk [vmem:[#allocation2 + $0x60] sm:$0xff] %vm42_vm0, %v7260_v27  ;;  %v5125_v28 = vld [vmem:[%s9540_s0 + $0x22] sm:$0xff]  ;;  %v63_v33 = vld [vmem:[%s9540_s0 + $0x19] sm:$0x1]  ;;  %v7293_v34 = vpack.c.bf16 %v881_v31, %v880_v30  ;;  %v161_v35 = vld [vmem:[%s9540_s0 + $0x1a] sm:$0x1] }
   0xc   :  { %6318 = vmatpush3.bf16.msra.mxu0 %v7230_v19  ;;  %6334 = vmatpush3.bf16.msra.mxu1 %v7230_v19  ;;  %v7308_v36 = vld [vmem:[%s9541_s1 + $0x40] sm:$0xff]  ;;  %v5048_v37 = vld [vmem:[%s9540_s0 + $0x28] sm:$0x1]  ;;  %v5064_v38 = vld [vmem:[%s9540_s0 + $0x29] sm:$0x1]  ;;  %vm533_vm10 = vcmask 392512  }
   0xd   :  { %6320 = vmatprep.subr.bf16.mxu0 %v7244_v23  ;;  %6336 = vmatprep.subr.bf16.mxu1 %v7244_v23  ;;  %v5080_v39 = vld [vmem:[%s9540_s0 + $0x2a] sm:$0x1]  ;;  %v5096_v40 = vld [vmem:[%s9540_s0 + $0x38] sm:$0x1]  ;;  %v31_v41 = vld [vmem:[%s9540_s0 + $0x28] sm:$0x1] }
   0xe   :  { %387 = vrot.lane.b32.xlu0 %v5061_v8, %s7096_s24  ;;  %v7347_v42 = vld [vmem:[%s9540_s0 + $0x90] sm:$0xff]  ;;  %49 = vst.msk [vmem:[#allocation2 + $0x28] sm:$0x1] %vm44_vm1, %v31_v41  ;;  %v5112_v44 = vld [vmem:[%s9540_s0 + $0x39] sm:$0x1]  ;;  %v5097_v52 = vld [vmem:[%s9540_s0 + $0x40] sm:$0xff] }
   0xf   :  { %389 = vrot.lane.b32.xlu1 %v5062_v9, %s7096_s24  ;;  %58 = vst.msk [vmem:[#allocation2 + $0x70] sm:$0xff] %vm42_vm0, %v7347_v42  ;;  %v5111_v43 = vld [vmem:[%s9540_s0 + $0x31] sm:$0xff]  ;;  %v5128_v46 = vld [vmem:[%s9540_s0 + $0x3a] sm:$0x1]  ;;  %v65_v47 = vld [vmem:[%s9540_s0 + $0x29] sm:$0x1] }
  0x10   :  { %6322 = vmatpush3.bf16.msra.mxu0 %v7244_v23  ;;  %6338 = vmatpush3.bf16.msra.mxu1 %v7244_v23  ;;  %v5127_v45 = vld [vmem:[%s9540_s0 + $0x32] sm:$0xff]  ;;  %v163_v48 = vld [vmem:[%s9540_s0 + $0x2a] sm:$0x1]  ;;  %v5082_v51 = vld [vmem:[%s9540_s0 + $0x3a] sm:$0x1]  ;;  %vm9552_vm11 = vcmask 385344  }
  0x11   :  { %6324 = vmatprep.subr.bf16.mxu0 %v7273_v29  ;;  %6340 = vmatprep.subr.bf16.mxu1 %v7273_v29  ;;  %v5050_v49 = vld [vmem:[%s9540_s0 + $0x38] sm:$0x1]  ;;  %v5066_v50 = vld [vmem:[%s9540_s0 + $0x39] sm:$0x1]  ;;  %v5098_v53 = vld [vmem:[%s9540_s0 + $0x48] sm:$0x1] }
  0x12   :  { %485 = vrot.lane.b32.xlu0 %v7192_v10, %s7097_s12  ;;  %v33_v54 = vld [vmem:[%s9540_s0 + $0x38] sm:$0x1]  ;;  %v5113_v55 = vld [vmem:[%s9540_s0 + $0x41] sm:$0xff]  ;;  %v5114_v56 = vld [vmem:[%s9540_s0 + $0x49] sm:$0x1]  ;;  %vm9550_vm12 = vcmask 458112  }
  0x13   :  { %487 = vrot.lane.b32.xlu1 %v5078_v11, %s7097_s12  ;;  %51 = vst.msk [vmem:[#allocation2 + $0x38] sm:$0x1] %vm44_vm1, %v33_v54  ;;  %v5129_v57 = vld [vmem:[%s9540_s0 + $0x42] sm:$0xff]  ;;  %v5130_v58 = vld [vmem:[%s9540_s0 + $0x4a] sm:$0x1]  ;;  %v5099_v0 = vld [vmem:[%s9540_s0 + $0x50] sm:$0xff] }
  0x14   :  { %6326 = vmatpush3.bf16.msra.mxu0 %v7273_v29  ;;  %6342 = vmatpush3.bf16.msra.mxu1 %v7273_v29  ;;  %v67_v59 = vld [vmem:[%s9540_s0 + $0x39] sm:$0x1]  ;;  %v165_v60 = vld [vmem:[%s9540_s0 + $0x3a] sm:$0x1]  ;;  %v5052_v61 = vld [vmem:[%s9540_s0 + $0x48] sm:$0x1] }
  0x15   :  { %6328 = vmatprep.subr.bf16.mxu0 %v7293_v34  ;;  %6344 = vmatprep.subr.bf16.mxu1 %v7293_v34  ;;  %v5068_v62 = vld [vmem:[%s9540_s0 + $0x49] sm:$0x1]  ;;  %v5084_v63 = vld [vmem:[%s9540_s0 + $0x4a] sm:$0x1]  ;;  %v5100_v1 = vld [vmem:[%s9540_s0 + $0x58] sm:$0x1] }
  0x16   :  { %584 = vrot.lane.b32.xlu0 %v7163_v5, %s7098_s22  ;;  %v34_v4 = vld [vmem:[%s9540_s0 + $0x60] sm:$0xff]  ;;  %v5115_v6 = vld [vmem:[%s9540_s0 + $0x51] sm:$0xff]  ;;  %v5132_v11 = vld [vmem:[%s9540_s0 + $0x5a] sm:$0x1]  ;;  %vm634_vm13 = vcmask 450944   ;;  %vm730_vm14 = vcmask 523712  }
  0x17   :  { %586 = vrot.lane.b32.xlu1 %v5094_v14, %s7098_s22  ;;  %52 = vst.msk [vmem:[#allocation2 + $0x40] sm:$0xff] %vm42_vm0, %v34_v4  ;;  %v68_v14 = vld [vmem:[%s9540_s0 + $0x61] sm:$0xff]  ;;  %v69_v16 = vld [vmem:[%s9540_s0 + $0x69] sm:$0x1]  ;;  %v167_v21 = vld [vmem:[%s9540_s0 + $0x6a] sm:$0x1] }
  0x18   :  { %6330 = vmatpush3.bf16.msra.mxu0 %v7293_v34  ;;  %6346 = vmatpush3.bf16.msra.mxu1 %v7293_v34  ;;  %v5054_v25 = vld [vmem:[%s9540_s0 + $0x78] sm:$0x1]  ;;  %vm9548_vm15 = vcmask 516544   ;;  %v5070_v31 = vld [vmem:[%s9540_s0 + $0x79] sm:$0x1]  ;;  %vm828_vm0 = vcmask 589312  }
  0x19   :  { %6011 = vmatprep.subr.mxu0 %v7308_v36  ;;  %6032 = vmatprep.subr.mxu1 %v7308_v36  ;;  %v5069_v30 = vld [vmem:[%s9540_s0 + $0x71] sm:$0xff]  ;;  %v71_v54 = vld [vmem:[%s9540_s0 + $0x79] sm:$0x1] }
  0x1a   :  { %682 = vrot.lane.b32.xlu0 %v7228_v18, %s7099_s21  ;;  %v5104_v4 = vld [vmem:[%s9540_s0 + $0x98] sm:$0x1] }
  0x1b   :  { %684 = vrot.lane.b32.xlu1 %v5110_v20, %s7099_s21  ;;  %v166_v20 = vld [vmem:[%s9540_s0 + $0x62] sm:$0xff] }
  0x1c   :  { %6012 = vmatpush3.msra.mxu0 %v7308_v36  ;;  %6033 = vmatpush3.msra.mxu1 %v7308_v36 }
  0x1d   :  { %6348 = vmatprep.subr.bf16.mxu0 %v7230_v19  ;;  %6364 = vmatprep.subr.bf16.mxu1 %v7230_v19 }
  0x1e   :  { %780 = vrot.lane.b32.xlu0 %v5125_v28, %s7100_s9 }
  0x1f   :  { %96 = vrot.lane.b32.xlu1 %v5061_v8, %s7093_s28 }
  0x22   :  { %782 = vrot.lane.b32.xlu0 %v5126_v32, %s7100_s9 }
  0x23   :  { %98 = vrot.lane.b32.xlu1 %v63_v33, %s7093_s28 }
  0x26   :  { %194 = vrot.lane.b32.xlu0 %v7192_v10, %s7094_s29  ;;  %v5131_v10 = vld [vmem:[%s9540_s0 + $0x52] sm:$0xff] }
  0x27   :  { %196 = vrot.lane.b32.xlu1 %v161_v35, %s7094_s29  ;;  %v5086_v35 = vld [vmem:[%s9540_s0 + $0x7a] sm:$0x1] }
  0x2a   :  { %293 = vrot.lane.b32.xlu0 %v7163_v5, %s7095_s19  ;;  %v35_v5 = vld [vmem:[%s9540_s0 + $0x68] sm:$0x1] }
  0x2b   :  { %295 = vrot.lane.b32.xlu1 %v5048_v37, %s7095_s19  ;;  %53 = vst.msk [vmem:[#allocation2 + $0x48] sm:$0x1] %vm44_vm1, %v35_v5 }
  0x2e   :  { %391 = vrot.lane.b32.xlu0 %v7228_v18, %s7096_s24 }
  0x2f   :  { %393 = vrot.lane.b32.xlu1 %v5064_v38, %s7096_s24 }
  0x32   :  { %489 = vrot.lane.b32.xlu0 %v5125_v28, %s7097_s12 }
  0x33   :  { %491 = vrot.lane.b32.xlu1 %v5080_v39, %s7097_s12  ;;  %v5102_v39 = vld [vmem:[%s9540_s0 + $0x88] sm:$0x1] }
  0x36   :  { %588 = vrot.lane.b32.xlu0 %v7175_v7, %s7098_s22 }
  0x37   :  { %590 = vrot.lane.b32.xlu1 %v5096_v40, %s7098_s22 }
  0x3a   :  { %686 = vrot.lane.b32.xlu0 %v5111_v43, %s7099_s21 }
  0x3b   :  { %688 = vrot.lane.b32.xlu1 %v5112_v44, %s7099_s21  ;;  %v7552_v44 = vld [vmem:[%s9540_s0 + $0x81] sm:$0xff] }
  0x3e   :  { %784 = vrot.lane.b32.xlu0 %v5127_v45, %s7100_s9 }
  0x3f   :  { %786 = vrot.lane.b32.xlu1 %v5128_v46, %s7100_s9 }
  0x42   :  { %100 = vrot.lane.b32.xlu0 %v7228_v18, %s7093_s28 }
  0x43   :  { %102 = vrot.lane.b32.xlu1 %v65_v47, %s7093_s28 }
  0x46   :  { %198 = vrot.lane.b32.xlu0 %v5125_v28, %s7094_s29 }
  0x47   :  { %200 = vrot.lane.b32.xlu1 %v163_v48, %s7094_s29 }
  0x4a   :  { %297 = vrot.lane.b32.xlu0 %v7175_v7, %s7095_s19  ;;  %v5116_v7 = vld [vmem:[%s9540_s0 + $0x59] sm:$0x1] }
  0x4b   :  { %299 = vrot.lane.b32.xlu1 %v5050_v49, %s7095_s19  ;;  %v7566_v49 = vld [vmem:[%s9540_s0 + $0x82] sm:$0xff] }
  0x4e   :  { %395 = vrot.lane.b32.xlu0 %v5111_v43, %s7096_s24 }
  0x4f   :  { %397 = vrot.lane.b32.xlu1 %v5066_v50, %s7096_s24 }
  0x52   :  { %493 = vrot.lane.b32.xlu0 %v5127_v45, %s7097_s12 }
  0x53   :  { %495 = vrot.lane.b32.xlu1 %v5082_v51, %s7097_s12 }
  0x56   :  { %592 = vrot.lane.b32.xlu0 %v5097_v52, %s7098_s22 }
  0x57   :  { %594 = vrot.lane.b32.xlu1 %v5098_v53, %s7098_s22  ;;  %v5134_v53 = vld [vmem:[%s9540_s0 + $0x8a] sm:$0x1] }
  0x5a   :  { %690 = vrot.lane.b32.xlu0 %v5113_v55, %s7099_s21 }
  0x5b   :  { %692 = vrot.lane.b32.xlu1 %v5114_v56, %s7099_s21 }
  0x5e   :  { %788 = vrot.lane.b32.xlu0 %v5129_v57, %s7100_s9 }
  0x5f   :  { %790 = vrot.lane.b32.xlu1 %v5130_v58, %s7100_s9 }
  0x62   :  { %104 = vrot.lane.b32.xlu0 %v5111_v43, %s7093_s28  ;;  %v37_v43 = vld [vmem:[%s9540_s0 + $0x78] sm:$0x1] }
  0x63   :  { %106 = vrot.lane.b32.xlu1 %v67_v59, %s7093_s28  ;;  %55 = vst.msk [vmem:[#allocation2 + $0x58] sm:$0x1] %vm44_vm1, %v37_v43  ;;  %v41_v43 = vld [vmem:[%s9540_s0 + $0x98] sm:$0x1] }
  0x64   :  { %59 = vst.msk [vmem:[#allocation2 + $0x78] sm:$0x1] %vm44_vm1, %v41_v43 }
  0x66   :  { %202 = vrot.lane.b32.xlu0 %v5127_v45, %s7094_s29  ;;  %v5118_v45 = vld [vmem:[%s9540_s0 + $0x89] sm:$0x1] }
  0x67   :  { %204 = vrot.lane.b32.xlu1 %v165_v60, %s7094_s29  ;;  %v5056_v60 = vld [vmem:[%s9540_s0 + $0x88] sm:$0x1] }
  0x6a   :  { %301 = vrot.lane.b32.xlu0 %v5097_v52, %s7095_s19 }
  0x6b   :  { %303 = vrot.lane.b32.xlu1 %v5052_v61, %s7095_s19 }
  0x6e   :  { %399 = vrot.lane.b32.xlu0 %v5113_v55, %s7096_s24 }
  0x6f   :  { %401 = vrot.lane.b32.xlu1 %v5068_v62, %s7096_s24 }
  0x72   :  { %497 = vrot.lane.b32.xlu0 %v5129_v57, %s7097_s12  ;;  %v169_v57 = vld [vmem:[%s9540_s0 + $0x7a] sm:$0x1] }
  0x73   :  { %499 = vrot.lane.b32.xlu1 %v5084_v63, %s7097_s12  ;;  %v5072_v63 = vld [vmem:[%s9540_s0 + $0x89] sm:$0x1] }
  0x74   :  { %v93_v2 = vpop.permute.xlu0 %92 }
  0x75   :  { %v191_v3 = vpop.permute.xlu1 %190  ;;  %141 = vst.msk [vmem:[#allocation2] sm:$0xff] %vm9549_vm2, %v93_v2 }
  0x76   :  { %239 = vst.msk [vmem:[#allocation2] sm:$0xff] %vm238_vm3, %v191_v3  ;;  %596 = vrot.lane.b32.xlu0 %v5099_v0, %s7098_s22 }
  0x77   :  { %598 = vrot.lane.b32.xlu1 %v5100_v1, %s7098_s22 }
  0x78   :  { %v95_v8 = vpop.permute.xlu0 %94 }
  0x79   :  { %v193_v9 = vpop.permute.xlu1 %192  ;;  %143 = vst.msk [vmem:[#allocation2 + $0x8] sm:$0x1] %vm142_vm4, %v95_v8  ;;  %v7640_v8 = vld [vmem:[%s9540_s0 + $0x91] sm:$0xff] }
  0x7a   :  { %241 = vst.msk [vmem:[#allocation2 + $0x8] sm:$0x1] %vm240_vm5, %v193_v9  ;;  %694 = vrot.lane.b32.xlu0 %v5115_v6, %s7099_s21 }
  0x7b   :  { %696 = vrot.lane.b32.xlu1 %v5116_v7, %s7099_s21  ;;  %v39_v7 = vld [vmem:[%s9540_s0 + $0x88] sm:$0x1] }
  0x7c   :  { %v290_v12 = vpop.permute.xlu0 %289  ;;  %57 = vst.msk [vmem:[#allocation2 + $0x68] sm:$0x1] %vm44_vm1, %v39_v7  ;;  %vm9558_vm1 = vcmask 458112  }
  0x7d   :  { %v292_v13 = vpop.permute.xlu1 %291  ;;  %338 = vst.msk [vmem:[#allocation2] sm:$0xff] %vm337_vm6, %v290_v12 }
  0x7e   :  { %340 = vst.msk [vmem:[#allocation2 + $0x8] sm:$0x1] %vm339_vm7, %v292_v13  ;;  %792 = vrot.lane.b32.xlu0 %v5131_v10, %s7100_s9  ;;  %v5120_v13 = vld [vmem:[%s9540_s0 + $0x99] sm:$0x1] }
  0x7f   :  { %794 = vrot.lane.b32.xlu1 %v5132_v11, %s7100_s9 }
  0x80   :  { %v388_v17 = vpop.permute.xlu0 %387 }
  0x81   :  { %v390_v18 = vpop.permute.xlu1 %389  ;;  %436 = vst.msk [vmem:[#allocation2] sm:$0xff] %vm435_vm8, %v388_v17 }
  0x82   :  { %438 = vst.msk [vmem:[#allocation2 + $0x8] sm:$0x1] %vm437_vm9, %v390_v18  ;;  %108 = vrot.lane.b32.xlu0 %v68_v14, %s7093_s28  ;;  %v7655_v14 = vld [vmem:[%s9540_s0 + $0x92] sm:$0xff]  ;;  %v5136_v18 = vld [vmem:[%s9540_s0 + $0x9a] sm:$0x1] }
  0x83   :  { %110 = vrot.lane.b32.xlu1 %v69_v16, %s7093_s28 }
  0x84   :  { %v486_v22 = vpop.permute.xlu0 %485 }
  0x85   :  { %v488_v24 = vpop.permute.xlu1 %487  ;;  %534 = vst.msk [vmem:[#allocation2] sm:$0xff] %vm533_vm10, %v486_v22  ;;  %v73_v22 = vld [vmem:[%s9540_s0 + $0x89] sm:$0x1] }
  0x86   :  { %536 = vst.msk [vmem:[#allocation2 + $0x8] sm:$0x1] %vm9552_vm11, %v488_v24  ;;  %206 = vrot.lane.b32.xlu0 %v166_v20, %s7094_s29 }
  0x87   :  { %208 = vrot.lane.b32.xlu1 %v167_v21, %s7094_s29 }
  0x88   :  { %v585_v26 = vpop.permute.xlu0 %584 }
  0x89   :  { %v587_v28 = vpop.permute.xlu1 %586  ;;  %633 = vst.msk [vmem:[#allocation2] sm:$0xff] %vm9550_vm12, %v585_v26  ;;  %v171_v26 = vld [vmem:[%s9540_s0 + $0x8a] sm:$0x1] }
  0x8a   :  { %635 = vst.msk [vmem:[#allocation2 + $0x8] sm:$0x1] %vm634_vm13, %v587_v28  ;;  %305 = vrot.lane.b32.xlu0 %v7214_v15, %s7095_s19  ;;  %v5085_v15 = vld [vmem:[%s9540_s0 + $0x72] sm:$0xff] }
  0x8b   :  { %307 = vrot.lane.b32.xlu1 %v5054_v25, %s7095_s19 }
  0x8c   :  { %v683_v32 = vpop.permute.xlu0 %682 }
  0x8d   :  { %v685_v33 = vpop.permute.xlu1 %684  ;;  %731 = vst.msk [vmem:[#allocation2] sm:$0xff] %vm730_vm14, %v683_v32 }
  0x8e   :  { %733 = vst.msk [vmem:[#allocation2 + $0x8] sm:$0x1] %vm9548_vm15, %v685_v33  ;;  %403 = vrot.lane.b32.xlu0 %v5069_v30, %s7096_s24  ;;  %vm830_vm15 = vcmask 582144  }
  0x8f   :  { %405 = vrot.lane.b32.xlu1 %v5070_v31, %s7096_s24  ;;  %v5058_v31 = vld [vmem:[%s9540_s0 + $0x98] sm:$0x1] }
  0x90   :  { %v781_v37 = vpop.permute.xlu0 %780 }
  0x91   :  { %v97_v38 = vpop.permute.xlu1 %96  ;;  %829 = vst.msk [vmem:[#allocation2] sm:$0xff] %vm828_vm0, %v781_v37  ;;  %v5090_v37 = vld [vmem:[%s9540_s0 + $0x9a] sm:$0x1] }
  0x92   :  { %144 = vst.msk [vmem:[#allocation2 + $0x10] sm:$0xff] %vm9549_vm2, %v97_v38  ;;  %501 = vrot.lane.b32.xlu0 %v5085_v15, %s7097_s12  ;;  %vm883_vm2 = vcmask 588800   ;;  %v5105_v38 = vld [vmem:[%s9540_s0 + $0xa0] sm:$0xff] }
  0x93   :  { %503 = vrot.lane.b32.xlu1 %v5086_v35, %s7097_s12 }
  0x94   :  { %v783_v40 = vpop.permute.xlu0 %782 }
  0x95   :  { %v99_v41 = vpop.permute.xlu1 %98  ;;  %831 = vst.msk [vmem:[#allocation2 + $0x8] sm:$0x1] %vm830_vm15, %v783_v40 }
  0x96   :  { %145 = vst.msk [vmem:[#allocation2 + $0x18] sm:$0x1] %vm142_vm4, %v99_v41  ;;  %600 = vrot.lane.b32.xlu0 %v7260_v27, %s7098_s22  ;;  %v5106_v41 = vld [vmem:[%s9540_s0 + $0xa8] sm:$0x1] }
  0x97   :  { %602 = vrot.lane.b32.xlu1 %v5102_v39, %s7098_s22 }
  0x98   :  { %v195_v46 = vpop.permute.xlu0 %194  ;;  %v872_v48 = vld [vmem:[#allocation2] sm:$0xff] }
  0x99   :  { %v197_v47 = vpop.permute.xlu1 %196  ;;  %242 = vst.msk [vmem:[#allocation2 + $0x10] sm:$0xff] %vm238_vm3, %v195_v46  ;;  %6013 = vmatprep.mubr.msk.f32.mxu0 %vm883_vm2, %v872_v48 }
  0x9a   :  { %243 = vst.msk [vmem:[#allocation2 + $0x18] sm:$0x1] %vm240_vm5, %v197_v47  ;;  %698 = vrot.lane.b32.xlu0 %v7552_v44, %s7099_s21 }
  0x9b   :  { %700 = vrot.lane.b32.xlu1 %v5118_v45, %s7099_s21 }
  0x9c   :  { %v294_v50 = vpop.permute.xlu0 %293  ;;  %v873_v52 = vld [vmem:[#allocation2 + $0x8] sm:$0x1] }
  0x9d   :  { %v296_v51 = vpop.permute.xlu1 %295  ;;  %341 = vst.msk [vmem:[#allocation2 + $0x10] sm:$0xff] %vm337_vm6, %v294_v50  ;;  %6014 = vmatmul.mubr.msk.f32.vlgmr.msra.gmra.mrb[0].mxu0 %vm883_vm2, %v873_v52  ;;  %v5137_v50 = vld [vmem:[%s9540_s0 + $0xa2] sm:$0xff] }
  0x9e   :  { %342 = vst.msk [vmem:[#allocation2 + $0x18] sm:$0x1] %vm339_vm7, %v296_v51  ;;  %796 = vrot.lane.b32.xlu0 %v7566_v49, %s7100_s9  ;;  %6350 = vmatpush3.bf16.msra.mxu0 %v7230_v19 }
  0x9f   :  { %112 = vrot.lane.b32.xlu1 %v5069_v30, %s7093_s28  ;;  %6352 = vmatprep.subr.bf16.mxu0 %v7244_v23 }
  0xa0   :  { %v392_v55 = vpop.permute.xlu0 %391 }
  0xa1   :  { %v394_v56 = vpop.permute.xlu1 %393  ;;  %439 = vst.msk [vmem:[#allocation2 + $0x10] sm:$0xff] %vm435_vm8, %v392_v55 }
  0xa2   :  { %440 = vst.msk [vmem:[#allocation2 + $0x18] sm:$0x1] %vm437_vm9, %v394_v56  ;;  %798 = vrot.lane.b32.xlu0 %v5134_v53, %s7100_s9  ;;  %6354 = vmatpush3.bf16.msra.mxu0 %v7244_v23  ;;  %v5138_v53 = vld [vmem:[%s9540_s0 + $0xaa] sm:$0x1]  ;;  %v75_v56 = vld [vmem:[%s9540_s0 + $0x99] sm:$0x1] }
  0xa3   :  { %114 = vrot.lane.b32.xlu1 %v71_v54, %s7093_s28  ;;  %6356 = vmatprep.subr.bf16.mxu0 %v7273_v29 }
  0xa4   :  { %v490_v58 = vpop.permute.xlu0 %489 }
  0xa5   :  { %v492_v59 = vpop.permute.xlu1 %491  ;;  %537 = vst.msk [vmem:[#allocation2 + $0x10] sm:$0xff] %vm533_vm10, %v490_v58 }
  0xa6   :  { %538 = vst.msk [vmem:[#allocation2 + $0x18] sm:$0x1] %vm9552_vm11, %v492_v59  ;;  %210 = vrot.lane.b32.xlu0 %v5085_v15, %s7094_s29  ;;  %6358 = vmatpush3.bf16.msra.mxu0 %v7273_v29  ;;  %v5074_v15 = vld [vmem:[%s9540_s0 + $0x99] sm:$0x1]  ;;  %v173_v59 = vld [vmem:[%s9540_s0 + $0x9a] sm:$0x1] }
  0xa7   :  { %212 = vrot.lane.b32.xlu1 %v169_v57, %s7094_s29  ;;  %6360 = vmatprep.subr.bf16.mxu0 %v7293_v34 }
  0xa8   :  { %v589_v61 = vpop.permute.xlu0 %588 }
  0xa9   :  { %v591_v62 = vpop.permute.xlu1 %590  ;;  %636 = vst.msk [vmem:[#allocation2 + $0x10] sm:$0xff] %vm9550_vm12, %v589_v61  ;;  %vm9553_vm12 = vcmask 516544  }
  0xaa   :  { %637 = vst.msk [vmem:[#allocation2 + $0x18] sm:$0x1] %vm634_vm13, %v591_v62  ;;  %309 = vrot.lane.b32.xlu0 %v7260_v27, %s7095_s19  ;;  %6362 = vmatpush3.bf16.msra.mxu0 %v7293_v34  ;;  %v5088_v27 = vld [vmem:[%s9540_s0 + $0x8a] sm:$0x1]  ;;  %v5060_v62 = vld [vmem:[%s9540_s0 + $0xa8] sm:$0x1] }
  0xab   :  { %311 = vrot.lane.b32.xlu1 %v5056_v60, %s7095_s19  ;;  %6053 = vmatprep.subr.mxu0 %v7308_v36 }
  0xac   :  { %v687_v0 = vpop.permute.xlu0 %686 }
  0xad   :  { %v689_v1 = vpop.permute.xlu1 %688  ;;  %734 = vst.msk [vmem:[#allocation2 + $0x10] sm:$0xff] %vm730_vm14, %v687_v0 }
  0xae   :  { %735 = vst.msk [vmem:[#allocation2 + $0x18] sm:$0x1] %vm9553_vm12, %v689_v1  ;;  %407 = vrot.lane.b32.xlu0 %v7552_v44, %s7096_s24  ;;  %6054 = vmatpush3.msra.mxu0 %v7308_v36  ;;  %vm9554_vm12 = vcmask 130112   ;;  %v5076_v1 = vld [vmem:[%s9540_s0 + $0xa9] sm:$0x1] }
  0xaf   :  { %409 = vrot.lane.b32.xlu1 %v5072_v63, %s7096_s24  ;;  %6380 = vmatprep.subr.bf16.mxu0 %v7230_v19 }
  0xb0   :  { %v785_v2 = vpop.permute.xlu0 %784 }
  0xb1   :  { %v787_v3 = vpop.permute.xlu1 %786  ;;  %832 = vst.msk [vmem:[#allocation2 + $0x10] sm:$0xff] %vm828_vm0, %v785_v2 }
  0xb2   :  { %833 = vst.msk [vmem:[#allocation2 + $0x18] sm:$0x1] %vm830_vm15, %v787_v3  ;;  %505 = vrot.lane.b32.xlu0 %v7566_v49, %s7097_s12  ;;  %v5092_v3 = vld [vmem:[%s9540_s0 + $0xaa] sm:$0x1] }
  0xb3   :  { %507 = vrot.lane.b32.xlu1 %v5088_v27, %s7097_s12 }
  0xb4   :  { %v101_v5 = vpop.permute.xlu0 %100 }
  0xb5   :  { %v103_v6 = vpop.permute.xlu1 %102  ;;  %146 = vst.msk [vmem:[#allocation2 + $0x20] sm:$0xff] %vm9554_vm12, %v101_v5  ;;  %vm9555_vm12 = vcmask 458112   ;;  %v5107_v5 = vld [vmem:[%s9540_s0 + $0xb0] sm:$0xff] }
  0xb6   :  { %147 = vst.msk [vmem:[#allocation2 + $0x28] sm:$0x1] %vm142_vm4, %v103_v6  ;;  %604 = vrot.lane.b32.xlu0 %v7347_v42, %s7098_s22 }
  0xb7   :  { %606 = vrot.lane.b32.xlu1 %v5104_v4, %s7098_s22  ;;  %v7101_v4 = vmov 0.0  }
  0xb8   :  { %v199_v9 = vpop.permute.xlu0 %198  ;;  %v990_v11 = vld [vmem:[#allocation2 + $0x10] sm:$0xff] }
  0xb9   :  { %v201_v10 = vpop.permute.xlu1 %200  ;;  %v991_v12 = vld [vmem:[#allocation2 + $0x18] sm:$0x1]  ;;  %244 = vst.msk [vmem:[#allocation2 + $0x20] sm:$0xff] %vm238_vm3, %v199_v9  ;;  %6034 = vmatprep.mubr.msk.f32.mxu1 %vm883_vm2, %v990_v11 }
  0xba   :  { %245 = vst.msk [vmem:[#allocation2 + $0x28] sm:$0x1] %vm240_vm5, %v201_v10  ;;  %702 = vrot.lane.b32.xlu0 %v7640_v8, %s7099_s21  ;;  %6035 = vmatmul.mubr.msk.f32.vlgmr.msra.gmra.mrb[0].mxu1 %vm883_vm2, %v991_v12  ;;  %v5123_v9 = vld [vmem:[%s9540_s0 + $0xb1] sm:$0xff] }
  0xbb   :  { %704 = vrot.lane.b32.xlu1 %v5120_v13, %s7099_s21  ;;  %6366 = vmatpush3.bf16.msra.mxu1 %v7230_v19 }
  0xbc   :  { %v298_v16 = vpop.permute.xlu0 %297  ;;  %6368 = vmatprep.subr.bf16.mxu1 %v7244_v23 }
  0xbd   :  { %v300_v17 = vpop.permute.xlu1 %299  ;;  %343 = vst.msk [vmem:[#allocation2 + $0x20] sm:$0xff] %vm337_vm6, %v298_v16  ;;  %v5139_v16 = vld [vmem:[%s9540_s0 + $0xb2] sm:$0xff] }
  0xbe   :  { %344 = vst.msk [vmem:[#allocation2 + $0x28] sm:$0x1] %vm339_vm7, %v300_v17  ;;  %800 = vrot.lane.b32.xlu0 %v7655_v14, %s7100_s9 }
  0xbf   :  { %802 = vrot.lane.b32.xlu1 %v5136_v18, %s7100_s9  ;;  %6370 = vmatpush3.bf16.msra.mxu1 %v7244_v23 }
  0xc0   :  { %v396_v20 = vpop.permute.xlu0 %395  ;;  %6372 = vmatprep.subr.bf16.mxu1 %v7273_v29 }
  0xc1   :  { %v398_v21 = vpop.permute.xlu1 %397  ;;  %441 = vst.msk [vmem:[#allocation2 + $0x20] sm:$0xff] %vm435_vm8, %v396_v20  ;;  %v5140_v20 = vld [vmem:[%s9540_s0 + $0xba] sm:$0x1] }
  0xc2   :  { %442 = vst.msk [vmem:[#allocation2 + $0x28] sm:$0x1] %vm437_vm9, %v398_v21  ;;  %116 = vrot.lane.b32.xlu0 %v7552_v44, %s7093_s28  ;;  %v5121_v44 = vld [vmem:[%s9540_s0 + $0xa1] sm:$0xff] }
  0xc3   :  { %118 = vrot.lane.b32.xlu1 %v73_v22, %s7093_s28  ;;  %6374 = vmatpush3.bf16.msra.mxu1 %v7273_v29 }
  0xc4   :  { %v494_v24 = vpop.permute.xlu0 %493  ;;  %6376 = vmatprep.subr.bf16.mxu1 %v7293_v34 }
  0xc5   :  { %v496_v25 = vpop.permute.xlu1 %495  ;;  %539 = vst.msk [vmem:[#allocation2 + $0x20] sm:$0xff] %vm533_vm10, %v494_v24 }
  0xc6   :  { %540 = vst.msk [vmem:[#allocation2 + $0x28] sm:$0x1] %vm9552_vm11, %v496_v25  ;;  %214 = vrot.lane.b32.xlu0 %v7566_v49, %s7094_s29  ;;  %v5122_v49 = vld [vmem:[%s9540_s0 + $0xa9] sm:$0x1] }
  0xc7   :  { %216 = vrot.lane.b32.xlu1 %v171_v26, %s7094_s29  ;;  %6378 = vmatpush3.bf16.msra.mxu1 %v7293_v34 }
  0xc8   :  { %v593_v28 = vpop.permute.xlu0 %592  ;;  %6074 = vmatprep.subr.mxu1 %v7308_v36 }
  0xc9   :  { %v595_v30 = vpop.permute.xlu1 %594  ;;  %638 = vst.msk [vmem:[#allocation2 + $0x20] sm:$0xff] %vm9555_vm12, %v593_v28  ;;  %vm9556_vm12 = vcmask 516544   ;;  %v1688_v28 = vld [vmem:[%s9541_s1] sm:$0xff] }
  0xca   :  { %639 = vst.msk [vmem:[#allocation2 + $0x28] sm:$0x1] %vm634_vm13, %v595_v30  ;;  %313 = vrot.lane.b32.xlu0 %v7347_v42, %s7095_s19  ;;  %v1689_v30 = vld [vmem:[%s9541_s1 + $0x8] sm:$0xff] }
  0xcb   :  { %315 = vrot.lane.b32.xlu1 %v5058_v31, %s7095_s19  ;;  %6075 = vmatpush3.msra.mxu1 %v7308_v36 }
  0xcc   :  { %v691_v32 = vpop.permute.xlu0 %690  ;;  %6396 = vmatprep.subr.bf16.mxu1 %v7230_v19 }
  0xcd   :  { %v693_v33 = vpop.permute.xlu1 %692  ;;  %736 = vst.msk [vmem:[#allocation2 + $0x20] sm:$0xff] %vm730_vm14, %v691_v32 }
  0xce   :  { %737 = vst.msk [vmem:[#allocation2 + $0x28] sm:$0x1] %vm9556_vm12, %v693_v33  ;;  %411 = vrot.lane.b32.xlu0 %v7640_v8, %s7096_s24  ;;  %vm9557_vm12 = vcmask 130112   ;;  %v7861_v33 = vpack.c.bf16 %v1689_v30, %v1688_v28 }
  0xcf   :  { %413 = vrot.lane.b32.xlu1 %v5074_v15, %s7096_s24 }
  0xd0   :  { %v789_v42 = vpop.permute.xlu0 %788 }
  0xd1   :  { %v791_v35 = vpop.permute.xlu1 %790  ;;  %834 = vst.msk [vmem:[#allocation2 + $0x20] sm:$0xff] %vm828_vm0, %v789_v42 }
  0xd2   :  { %835 = vst.msk [vmem:[#allocation2 + $0x28] sm:$0x1] %vm830_vm15, %v791_v35  ;;  %509 = vrot.lane.b32.xlu0 %v7655_v14, %s7097_s12 }
  0xd3   :  { %511 = vrot.lane.b32.xlu1 %v5090_v37, %s7097_s12 }
  0xd4   :  { %v105_v39 = vpop.permute.xlu0 %104 }
  0xd5   :  { %v107_v40 = vpop.permute.xlu1 %106  ;;  %148 = vst.msk [vmem:[#allocation2 + $0x30] sm:$0xff] %vm9557_vm12, %v105_v39  ;;  %vm9559_vm12 = vcmask 516544  }
  0xd6   :  { %149 = vst.msk [vmem:[#allocation2 + $0x38] sm:$0x1] %vm142_vm4, %v107_v40  ;;  %608 = vrot.lane.b32.xlu0 %v5105_v38, %s7098_s22 }
  0xd7   :  { %610 = vrot.lane.b32.xlu1 %v5106_v41, %s7098_s22 }
  0xd8   :  { %v203_v45 = vpop.permute.xlu0 %202  ;;  %v1106_v47 = vld [vmem:[#allocation2 + $0x20] sm:$0xff] }
  0xd9   :  { %v205_v46 = vpop.permute.xlu1 %204  ;;  %v1107_v48 = vld [vmem:[#allocation2 + $0x28] sm:$0x1]  ;;  %246 = vst.msk [vmem:[#allocation2 + $0x30] sm:$0xff] %vm238_vm3, %v203_v45  ;;  %6055 = vmatprep.mubr.msk.f32.mxu0 %vm883_vm2, %v1106_v47 }
  0xda   :  { %247 = vst.msk [vmem:[#allocation2 + $0x38] sm:$0x1] %vm240_vm5, %v205_v46  ;;  %706 = vrot.lane.b32.xlu0 %v5121_v44, %s7099_s21  ;;  %6056 = vmatmul.mubr.msk.f32.vlgmr.msra.gmra.mrb[2].mxu0 %vm883_vm2, %v1107_v48 }
  0xdb   :  { %708 = vrot.lane.b32.xlu1 %v5122_v49, %s7099_s21  ;;  %6382 = vmatpush3.bf16.msra.mxu0 %v7230_v19 }
  0xdc   :  { %v302_v51 = vpop.permute.xlu0 %301  ;;  %6384 = vmatprep.subr.bf16.mxu0 %v7244_v23 }
  0xdd   :  { %v304_v52 = vpop.permute.xlu1 %303  ;;  %345 = vst.msk [vmem:[#allocation2 + $0x30] sm:$0xff] %vm337_vm6, %v302_v51 }
  0xde   :  { %346 = vst.msk [vmem:[#allocation2 + $0x38] sm:$0x1] %vm339_vm7, %v304_v52  ;;  %804 = vrot.lane.b32.xlu0 %v5137_v50, %s7100_s9 }
  0xdf   :  { %806 = vrot.lane.b32.xlu1 %v5138_v53, %s7100_s9  ;;  %6386 = vmatpush3.bf16.msra.mxu0 %v7244_v23 }
  0xe0   :  { %v400_v54 = vpop.permute.xlu0 %399  ;;  %6388 = vmatprep.subr.bf16.mxu0 %v7273_v29 }
  0xe1   :  { %v402_v55 = vpop.permute.xlu1 %401  ;;  %443 = vst.msk [vmem:[#allocation2 + $0x30] sm:$0xff] %vm435_vm8, %v400_v54 }
  0xe2   :  { %444 = vst.msk [vmem:[#allocation2 + $0x38] sm:$0x1] %vm437_vm9, %v402_v55  ;;  %120 = vrot.lane.b32.xlu0 %v7640_v8, %s7093_s28  ;;  %v5108_v8 = vld [vmem:[%s9540_s0 + $0xb8] sm:$0x1]  ;;  %v1690_v55 = vld [vmem:[%s9541_s1 + $0x10] sm:$0xff] }
  0xe3   :  { %122 = vrot.lane.b32.xlu1 %v75_v56, %s7093_s28  ;;  %6390 = vmatpush3.bf16.msra.mxu0 %v7273_v29  ;;  %v1691_v56 = vld [vmem:[%s9541_s1 + $0x18] sm:$0xff] }
  0xe4   :  { %v498_v57 = vpop.permute.xlu0 %497  ;;  %6392 = vmatprep.subr.bf16.mxu0 %v7293_v34 }
  0xe5   :  { %v500_v58 = vpop.permute.xlu1 %499  ;;  %541 = vst.msk [vmem:[#allocation2 + $0x30] sm:$0xff] %vm533_vm10, %v498_v57 }
  0xe6   :  { %542 = vst.msk [vmem:[#allocation2 + $0x38] sm:$0x1] %vm9552_vm11, %v500_v58  ;;  %218 = vrot.lane.b32.xlu0 %v7655_v14, %s7094_s29  ;;  %v5124_v14 = vld [vmem:[%s9540_s0 + $0xb9] sm:$0x1] }
  0xe7   :  { %220 = vrot.lane.b32.xlu1 %v173_v59, %s7094_s29  ;;  %6394 = vmatpush3.bf16.msra.mxu0 %v7293_v34  ;;  %v6431_v59 = vpack.c.bf16 %v1691_v56, %v1690_v55 }
  0xe8   :  { %v597_v60 = vpop.permute.xlu0 %596  ;;  %6095 = vmatprep.subr.mxu0 %v7308_v36 }
  0xe9   :  { %v599_v61 = vpop.permute.xlu1 %598  ;;  %640 = vst.msk [vmem:[#allocation2 + $0x30] sm:$0xff] %vm9558_vm1, %v597_v60  ;;  %vm848_vm1 = vcmask 518144  }
  0xea   :  { %641 = vst.msk [vmem:[#allocation2 + $0x38] sm:$0x1] %vm634_vm13, %v599_v61  ;;  %317 = vrot.lane.b32.xlu0 %v5105_v38, %s7095_s19 }
  0xeb   :  { %319 = vrot.lane.b32.xlu1 %v5060_v62, %s7095_s19  ;;  %6096 = vmatpush3.msra.mxu0 %v7308_v36  ;;  %851 = vst.msk [vmem:[#allocation3 + $0x18] sm:$0x7] %vm848_vm1, %v7101_v4  ;;  %849 = vst.msk [vmem:[#allocation3 + $0x8] sm:$0x7] %vm848_vm1, %v7101_v4  ;;  %v1692_v62 = vld [vmem:[%s9541_s1 + $0x20] sm:$0xff] }
  0xec   :  { %v695_v63 = vpop.permute.xlu0 %694  ;;  %6412 = vmatprep.subr.bf16.mxu0 %v7230_v19  ;;  %853 = vst.msk [vmem:[#allocation3 + $0x28] sm:$0x7] %vm848_vm1, %v7101_v4  ;;  %855 = vst.msk [vmem:[#allocation3 + $0x38] sm:$0x7] %vm848_vm1, %v7101_v4 }
  0xed   :  { %v697_v0 = vpop.permute.xlu1 %696  ;;  %738 = vst.msk [vmem:[#allocation2 + $0x30] sm:$0xff] %vm730_vm14, %v695_v63  ;;  %v1693_v63 = vld [vmem:[%s9541_s1 + $0x28] sm:$0xff] }
  0xee   :  { %739 = vst.msk [vmem:[#allocation2 + $0x38] sm:$0x1] %vm9559_vm12, %v697_v0  ;;  %415 = vrot.lane.b32.xlu0 %v5121_v44, %s7096_s24  ;;  %vm9551_vm12 = vcmask 523264  }
  0xef   :  { %417 = vrot.lane.b32.xlu1 %v5076_v1, %s7096_s24  ;;  %857 = vst.msk [vmem:[#allocation3 + $0x48] sm:$0x7] %vm848_vm1, %v7101_v4  ;;  %859 = vst.msk [vmem:[#allocation3 + $0x58] sm:$0x7] %vm848_vm1, %v7101_v4  ;;  %v6435_v1 = vpack.c.bf16 %v1693_v63, %v1692_v62  ;;  %v2378_v62 = vld [vmem:[%s9544_s4 + $0xa8] sm:$0xff]  ;;  %v2405_v63 = vld [vmem:[%s9544_s4 + $0x180] sm:$0xff] }
  0xf0   :  { %v793_v27 = vpop.permute.xlu0 %792  ;;  %861 = vst.msk [vmem:[#allocation3 + $0x68] sm:$0x7] %vm848_vm1, %v7101_v4  ;;  %863 = vst.msk [vmem:[#allocation3 + $0x78] sm:$0x7] %vm848_vm1, %v7101_v4 }
  0xf1   :  { %v795_v2 = vpop.permute.xlu1 %794  ;;  %836 = vst.msk [vmem:[#allocation2 + $0x30] sm:$0xff] %vm828_vm0, %v793_v27 }
  0xf2   :  { %837 = vst.msk [vmem:[#allocation2 + $0x38] sm:$0x1] %vm830_vm15, %v795_v2  ;;  %513 = vrot.lane.b32.xlu0 %v5137_v50, %s7097_s12  ;;  %v1694_v2 = vld [vmem:[%s9541_s1 + $0x30] sm:$0xff]  ;;  %v1802_v55 = vld [vmem:[#allocation3 + $0x8] sm:$0x1] }
  0xf3   :  { %865 = vst.msk [vmem:[#allocation3 + $0x88] sm:$0x7] %vm848_vm1, %v7101_v4  ;;  %867 = vst.msk [vmem:[#allocation3 + $0x98] sm:$0x7] %vm848_vm1, %v7101_v4  ;;  %515 = vrot.lane.b32.xlu1 %v5092_v3, %s7097_s12  ;;  %v1695_v3 = vld [vmem:[%s9541_s1 + $0x38] sm:$0xff] }
  0xf4   :  { %869 = vst.msk [vmem:[#allocation3 + $0xa8] sm:$0x7] %vm848_vm1, %v7101_v4  ;;  %871 = vst.msk [vmem:[#allocation3 + $0xb8] sm:$0x7] %vm848_vm1, %v7101_v4  ;;  %v109_v6 = vpop.permute.xlu0 %108  ;;  %vm9560_vm1 = vcmask 130112  }
  0xf5   :  { %v111_v7 = vpop.permute.xlu1 %110  ;;  %850 = vst.msk [vmem:[#allocation3 + $0x10] sm:$0xff] %vm9551_vm12, %v7101_v4  ;;  %847 = vst.msk [vmem:[#allocation3] sm:$0xff] %vm9551_vm12, %v7101_v4 }
  0xf6   :  { %852 = vst.msk [vmem:[#allocation3 + $0x20] sm:$0xff] %vm9551_vm12, %v7101_v4  ;;  %854 = vst.msk [vmem:[#allocation3 + $0x30] sm:$0xff] %vm9551_vm12, %v7101_v4  ;;  %612 = vrot.lane.b32.xlu0 %v5107_v5, %s7098_s22  ;;  %v6439_v5 = vpack.c.bf16 %v1695_v3, %v1694_v2  ;;  %v2362_v2 = vld [vmem:[%s9544_s4 + $0x28] sm:$0xff] }
  0xf7   :  { %856 = vst.msk [vmem:[#allocation3 + $0x40] sm:$0xff] %vm9551_vm12, %v7101_v4  ;;  %858 = vst.msk [vmem:[#allocation3 + $0x50] sm:$0xff] %vm9551_vm12, %v7101_v4  ;;  %614 = vrot.lane.b32.xlu1 %v5108_v8, %s7098_s22 }
  0xf8   :  { %860 = vst.msk [vmem:[#allocation3 + $0x60] sm:$0xff] %vm9551_vm12, %v7101_v4  ;;  %862 = vst.msk [vmem:[#allocation3 + $0x70] sm:$0xff] %vm9551_vm12, %v7101_v4  ;;  %v207_v10 = vpop.permute.xlu0 %206  ;;  %v1222_v12 = vld [vmem:[#allocation2 + $0x30] sm:$0xff] }
  0xf9   :  { %864 = vst.msk [vmem:[#allocation3 + $0x80] sm:$0xff] %vm9551_vm12, %v7101_v4  ;;  %866 = vst.msk [vmem:[#allocation3 + $0x90] sm:$0xff] %vm9551_vm12, %v7101_v4  ;;  %v209_v11 = vpop.permute.xlu1 %208  ;;  %v1223_v13 = vld [vmem:[#allocation2 + $0x38] sm:$0x1]  ;;  %6076 = vmatprep.mubr.msk.f32.mxu1 %vm883_vm2, %v1222_v12 }
  0xfa   :  { %868 = vst.msk [vmem:[#allocation3 + $0xa0] sm:$0xff] %vm9551_vm12, %v7101_v4  ;;  %870 = vst.msk [vmem:[#allocation3 + $0xb0] sm:$0xff] %vm9551_vm12, %v7101_v4  ;;  %710 = vrot.lane.b32.xlu0 %v5123_v9, %s7099_s21  ;;  %6077 = vmatmul.mubr.msk.f32.vlgmr.msra.gmra.mrb[2].mxu1 %vm883_vm2, %v1223_v13  ;;  %vm9562_vm12 = vcmask 516544   ;;  %v1696_v9 = vld [vmem:[%s9541_s1 + $0x40] sm:$0xff] }
  0xfb   :  { %150 = vst.msk [vmem:[#allocation2 + $0x40] sm:$0xff] %vm9560_vm1, %v109_v6  ;;  %712 = vrot.lane.b32.xlu1 %v5124_v14, %s7099_s21  ;;  %6398 = vmatpush3.bf16.msra.mxu1 %v7230_v19  ;;  %vm9561_vm1 = vcmask 458112  }
  0xfc   :  { %151 = vst.msk [vmem:[#allocation2 + $0x48] sm:$0x1] %vm142_vm4, %v111_v7  ;;  %v306_v17 = vpop.permute.xlu0 %305  ;;  %6400 = vmatprep.subr.bf16.mxu1 %v7244_v23  ;;  %v1833_v24 = vld [vmem:[#allocation3 + $0x1] sm:$0xff] }
  0xfd   :  { %248 = vst.msk [vmem:[#allocation2 + $0x40] sm:$0xff] %vm238_vm3, %v207_v10  ;;  %v308_v18 = vpop.permute.xlu1 %307 }
  0xfe   :  { %249 = vst.msk [vmem:[#allocation2 + $0x48] sm:$0x1] %vm240_vm5, %v209_v11  ;;  %808 = vrot.lane.b32.xlu0 %v5139_v16, %s7100_s9 }
  0xff   :  { %347 = vst.msk [vmem:[#allocation2 + $0x40] sm:$0xff] %vm337_vm6, %v306_v17  ;;  %810 = vrot.lane.b32.xlu1 %v5140_v20, %s7100_s9  ;;  %6402 = vmatpush3.bf16.msra.mxu1 %v7244_v23 }
 0x100   :  { %348 = vst.msk [vmem:[#allocation2 + $0x48] sm:$0x1] %vm339_vm7, %v308_v18  ;;  %v404_v21 = vpop.permute.xlu0 %403  ;;  %6404 = vmatprep.subr.bf16.mxu1 %v7273_v29 }
 0x101   :  { %v406_v22 = vpop.permute.xlu1 %405  ;;  %445 = vst.msk [vmem:[#allocation2 + $0x40] sm:$0xff] %vm435_vm8, %v404_v21 }
 0x102   :  { %446 = vst.msk [vmem:[#allocation2 + $0x48] sm:$0x1] %vm437_vm9, %v406_v22 }
 0x103   :  { %6406 = vmatpush3.bf16.msra.mxu1 %v7273_v29  ;;  %1865 = vrot.lane.b32.xlu1 %v1833_v24, %s7100_s9 }
 0x104   :  { %v502_v25 = vpop.permute.xlu0 %501  ;;  %6408 = vmatprep.subr.bf16.mxu1 %v7293_v34 }
 0x105   :  { %v504_v26 = vpop.permute.xlu1 %503  ;;  %543 = vst.msk [vmem:[#allocation2 + $0x40] sm:$0xff] %vm533_vm10, %v502_v25 }
 0x106   :  { %544 = vst.msk [vmem:[#allocation2 + $0x48] sm:$0x1] %vm9552_vm11, %v504_v26  ;;  %vm9563_vm11 = vcmask 130112  }
 0x107   :  { %6410 = vmatpush3.bf16.msra.mxu1 %v7293_v34 }
 0x108   :  { %v601_v31 = vpop.permute.xlu0 %600  ;;  %6116 = vmatprep.subr.mxu1 %v7308_v36 }
 0x109   :  { %v603_v32 = vpop.permute.xlu1 %602  ;;  %642 = vst.msk [vmem:[#allocation2 + $0x40] sm:$0xff] %vm9561_vm1, %v601_v31 }
 0x10a   :  { %643 = vst.msk [vmem:[#allocation2 + $0x48] sm:$0x1] %vm634_vm13, %v603_v32 }
 0x10b   :  { %6117 = vmatpush3.msra.mxu1 %v7308_v36 }
 0x10c   :  { %v699_v15 = vpop.permute.xlu0 %698  ;;  %6428 = vmatprep.subr.bf16.mxu1 %v7861_v33 }
 0x10d   :  { %v701_v42 = vpop.permute.xlu1 %700  ;;  %740 = vst.msk [vmem:[#allocation2 + $0x40] sm:$0xff] %vm730_vm14, %v699_v15 }
 0x10e   :  { %741 = vst.msk [vmem:[#allocation2 + $0x48] sm:$0x1] %vm9562_vm12, %v701_v42  ;;  %vm9565_vm12 = vmmov %vm9561_vm1  ;;  %vm9566_vm1 = vcmask 516544  }
 0x110   :  { %v797_v35 = vpop.permute.xlu0 %796 }
 0x111   :  { %v113_v37 = vpop.permute.xlu1 %112  ;;  %838 = vst.msk [vmem:[#allocation2 + $0x40] sm:$0xff] %vm828_vm0, %v797_v35 }
 0x112   :  { %152 = vst.msk [vmem:[#allocation2 + $0x50] sm:$0xff] %vm9563_vm11, %v113_v37  ;;  %vm9564_vm11 = vcmask 385344   ;;  %v7958_v37 = vld [vmem:[%s9542_s2] ss:$0 sm:$0xff] }
 0x114   :  { %v799_v38 = vpop.permute.xlu0 %798 }
 0x115   :  { %v115_v39 = vpop.permute.xlu1 %114  ;;  %839 = vst.msk [vmem:[#allocation2 + $0x48] sm:$0x1] %vm830_vm15, %v799_v38  ;;  %v1801_v38 = vld [vmem:[#allocation3] sm:$0xff] }
 0x116   :  { %153 = vst.msk [vmem:[#allocation2 + $0x58] sm:$0x1] %vm142_vm4, %v115_v39  ;;  %v2373_v39 = vld [vmem:[%s9544_s4 + $0x80] sm:$0xff] }
 0x118   :  { %v211_v40 = vpop.permute.xlu0 %210  ;;  %v1338_v43 = vld [vmem:[#allocation2 + $0x40] sm:$0xff] }
 0x119   :  { %v213_v41 = vpop.permute.xlu1 %212  ;;  %250 = vst.msk [vmem:[#allocation2 + $0x50] sm:$0xff] %vm238_vm3, %v211_v40  ;;  %6097 = vmatprep.mubr.msk.f32.mxu0 %vm883_vm2, %v1338_v43  ;;  %v2374_v40 = vld [vmem:[%s9544_s4 + $0x88] sm:$0xff] }
 0x11a   :  { %251 = vst.msk [vmem:[#allocation2 + $0x58] sm:$0x1] %vm240_vm5, %v213_v41  ;;  %v2357_v41 = vld [vmem:[%s9544_s4] sm:$0xff]  ;;  %v7971_v43 = vpack.c.bf16 %v2374_v40, %v2373_v39  ;;  %v2366_v39 = vld [vmem:[%s9544_s4 + $0x48] sm:$0xff] }
 0x11c   :  { %v310_v44 = vpop.permute.xlu0 %309  ;;  %v1339_v46 = vld [vmem:[#allocation2 + $0x48] sm:$0x1] }
 0x11d   :  { %v312_v45 = vpop.permute.xlu1 %311  ;;  %349 = vst.msk [vmem:[#allocation2 + $0x50] sm:$0xff] %vm337_vm6, %v310_v44  ;;  %6098 = vmatmul.mubr.msk.f32.vlgmr.msra.gmra.mrb[4].mxu0 %vm883_vm2, %v1339_v46  ;;  %v2358_v44 = vld [vmem:[%s9544_s4 + $0x8] sm:$0xff] }
 0x11e   :  { %350 = vst.msk [vmem:[#allocation2 + $0x58] sm:$0x1] %vm339_vm7, %v312_v45  ;;  %6414 = vmatpush3.bf16.msra.mxu0 %v7230_v19 }
 0x11f   :  { %6416 = vmatprep.subr.bf16.mxu0 %v7244_v23 }
 0x120   :  { %v408_v47 = vpop.permute.xlu0 %407 }
 0x121   :  { %v410_v48 = vpop.permute.xlu1 %409  ;;  %447 = vst.msk [vmem:[#allocation2 + $0x50] sm:$0xff] %vm435_vm8, %v408_v47  ;;  %v7979_v47 = vld [vmem:[%s9543_s3] ss:$0 sm:$0xff] }
 0x122   :  { %448 = vst.msk [vmem:[#allocation2 + $0x58] sm:$0x1] %vm437_vm9, %v410_v48  ;;  %6418 = vmatpush3.bf16.msra.mxu0 %v7244_v23  ;;  %v7981_v48 = vpack.c.bf16 %v2358_v44, %v2357_v41  ;;  %v2393_v44 = vld [vmem:[%s9544_s4 + $0x120] sm:$0xff] }
 0x123   :  { %6420 = vmatprep.subr.bf16.mxu0 %v7273_v29 }
 0x124   :  { %v506_v49 = vpop.permute.xlu0 %505 }
 0x125   :  { %v508_v50 = vpop.permute.xlu1 %507  ;;  %545 = vst.msk [vmem:[#allocation2 + $0x50] sm:$0xff] %vm533_vm10, %v506_v49 }
 0x126   :  { %546 = vst.msk [vmem:[#allocation2 + $0x58] sm:$0x1] %vm9564_vm11, %v508_v50  ;;  %6422 = vmatpush3.bf16.msra.mxu0 %v7273_v29  ;;  %v7092_v29 = vld [vmem:[%s9541_s1 + $0x40] sm:$0xff]  ;;  %vm9567_vm11 = vcmask 130112  }
 0x127   :  { %6424 = vmatprep.subr.bf16.mxu0 %v7293_v34 }
 0x128   :  { %v605_v19 = vpop.permute.xlu0 %604 }
 0x129   :  { %v607_v51 = vpop.permute.xlu1 %606  ;;  %644 = vst.msk [vmem:[#allocation2 + $0x50] sm:$0xff] %vm9565_vm12, %v605_v19  ;;  %vm9568_vm12 = vcmask 385344  }
 0x12a   :  { %645 = vst.msk [vmem:[#allocation2 + $0x58] sm:$0x1] %vm634_vm13, %v607_v51  ;;  %6426 = vmatpush3.bf16.msra.mxu0 %v7293_v34 }
 0x12b   :  { %6137 = vmatprep.subr.mxu0 %v7308_v36 }
 0x12c   :  { %v703_v23 = vpop.permute.xlu0 %702 }
 0x12d   :  { %742 = vst.msk [vmem:[#allocation2 + $0x50] sm:$0xff] %vm730_vm14, %v703_v23  ;;  %v705_v52 = vpop.permute.xlu1 %704  ;;  %v1931_v23 = vld [vmem:[#allocation3 + $0x2] sm:$0xff] }
 0x12e   :  { %743 = vst.msk [vmem:[#allocation2 + $0x58] sm:$0x1] %vm9566_vm1, %v705_v52  ;;  %6138 = vmatpush3.msra.mxu0 %v7092_v29  ;;  %vm9569_vm1 = vcmask 458112   ;;  %v2375_v52 = vld [vmem:[%s9544_s4 + $0x90] sm:$0xff]  ;;  %v2376_v29 = vld [vmem:[%s9544_s4 + $0x98] sm:$0xff] }
 0x12f   :  { %6444 = vmatprep.subr.bf16.mxu0 %v7971_v43 }
 0x130   :  { %v801_v53 = vpop.permute.xlu0 %800 }
 0x131   :  { %840 = vst.msk [vmem:[#allocation2 + $0x50] sm:$0xff] %vm828_vm0, %v801_v53  ;;  %v803_v54 = vpop.permute.xlu1 %802 }
 0x132   :  { %841 = vst.msk [vmem:[#allocation2 + $0x58] sm:$0x1] %vm830_vm15, %v803_v54  ;;  %v7997_v54 = vpack.c.bf16 %v2376_v29, %v2375_v52  ;;  %v2367_v29 = vld [vmem:[%s9544_s4 + $0x50] sm:$0xff] }
 0x134   :  { %v117_v34 = vpop.permute.xlu0 %116 }
 0x135   :  { %154 = vst.msk [vmem:[#allocation2 + $0x60] sm:$0xff] %vm9567_vm11, %v117_v34  ;;  %v119_v36 = vpop.permute.xlu1 %118  ;;  %vm9570_vm11 = vcmask 516544   ;;  %v2359_v34 = vld [vmem:[%s9544_s4 + $0x10] sm:$0xff] }
 0x136   :  { %155 = vst.msk [vmem:[#allocation2 + $0x68] sm:$0x1] %vm142_vm4, %v119_v36  ;;  %v2360_v36 = vld [vmem:[%s9544_s4 + $0x18] sm:$0xff] }
 0x138   :  { %v215_v57 = vpop.permute.xlu0 %214  ;;  %v1454_v58 = vld [vmem:[#allocation2 + $0x50] sm:$0xff] }
 0x139   :  { %252 = vst.msk [vmem:[#allocation2 + $0x60] sm:$0xff] %vm238_vm3, %v215_v57  ;;  %v217_v60 = vpop.permute.xlu1 %216  ;;  %6118 = vmatprep.mubr.msk.f32.mxu1 %vm883_vm2, %v1454_v58  ;;  %v1455_v61 = vld [vmem:[#allocation2 + $0x58] sm:$0x1]  ;;  %v8006_v57 = vpack.c.bf16 %v2360_v36, %v2359_v34  ;;  %v2395_v34 = vld [vmem:[%s9544_s4 + $0x130] sm:$0xff]  ;;  %v2092_v36 = vld [vmem:[#allocation3 + $0x1a] sm:$0x1] }
 0x13a   :  { %253 = vst.msk [vmem:[#allocation2 + $0x68] sm:$0x1] %vm240_vm5, %v217_v60  ;;  %6119 = vmatmul.mubr.msk.f32.vlgmr.msra.gmra.mrb[4].mxu1 %vm883_vm2, %v1455_v61  ;;  %v2377_v61 = vld [vmem:[%s9544_s4 + $0xa0] sm:$0xff] }
 0x13b   :  { %6430 = vmatpush3.bf16.msra.mxu1 %v7861_v33 }
 0x13c   :  { %v314_v0 = vpop.permute.xlu0 %313  ;;  %6432 = vmatprep.subr.bf16.mxu1 %v6431_v59 }
 0x13d   :  { %351 = vst.msk [vmem:[#allocation2 + $0x60] sm:$0xff] %vm337_vm6, %v314_v0  ;;  %v316_v27 = vpop.permute.xlu1 %315  ;;  %v8022_v0 = vpack.c.bf16 %v2378_v62, %v2377_v61  ;;  %v2413_v61 = vld [vmem:[%s9544_s4 + $0x1c0] sm:$0xff]  ;;  %v2414_v62 = vld [vmem:[%s9544_s4 + $0x1c8] sm:$0xff] }
 0x13e   :  { %352 = vst.msk [vmem:[#allocation2 + $0x68] sm:$0x1] %vm339_vm7, %v316_v27  ;;  %v2361_v27 = vld [vmem:[%s9544_s4 + $0x20] sm:$0xff] }
 0x13f   :  { %6434 = vmatpush3.bf16.msra.mxu1 %v6431_v59 }
 0x140   :  { %v412_v4 = vpop.permute.xlu0 %411  ;;  %6436 = vmatprep.subr.bf16.mxu1 %v6435_v1 }
 0x141   :  { %449 = vst.msk [vmem:[#allocation2 + $0x60] sm:$0xff] %vm435_vm8, %v412_v4  ;;  %v414_v6 = vpop.permute.xlu1 %413 }
 0x142   :  { %450 = vst.msk [vmem:[#allocation2 + $0x68] sm:$0x1] %vm437_vm9, %v414_v6  ;;  %v2389_v6 = vld [vmem:[%s9544_s4 + $0x100] sm:$0xff] }
 0x143   :  { %6438 = vmatpush3.bf16.msra.mxu1 %v6435_v1  ;;  %v2406_v1 = vld [vmem:[%s9544_s4 + $0x188] sm:$0xff] }
 0x144   :  { %v510_v7 = vpop.permute.xlu0 %509  ;;  %6440 = vmatprep.subr.bf16.mxu1 %v6439_v5  ;;  %v8034_v4 = vpack.c.bf16 %v2406_v1, %v2405_v63  ;;  %v8182_v1 = vpack.c.bf16 %v2414_v62, %v2413_v61  ;;  %v2420_v61 = vld [vmem:[%s9544_s4 + $0x1f8] sm:$0xff] }
 0x145   :  { %547 = vst.msk [vmem:[#allocation2 + $0x60] sm:$0xff] %vm533_vm10, %v510_v7  ;;  %v512_v8 = vpop.permute.xlu1 %511  ;;  %v2390_v7 = vld [vmem:[%s9544_s4 + $0x108] sm:$0xff] }
 0x146   :  { %548 = vst.msk [vmem:[#allocation2 + $0x68] sm:$0x1] %vm9568_vm12, %v512_v8  ;;  %vm9571_vm12 = vcmask 130112  }
 0x147   :  { %6442 = vmatpush3.bf16.msra.mxu1 %v6439_v5  ;;  %v8036_v5 = vpack.c.bf16 %v2362_v2, %v2361_v27  ;;  %v2369_v27 = vld [vmem:[%s9544_s4 + $0x60] sm:$0xff]  ;;  %v2370_v2 = vld [vmem:[%s9544_s4 + $0x68] sm:$0xff] }
 0x148   :  { %v609_v10 = vpop.permute.xlu0 %608  ;;  %6158 = vmatprep.subr.mxu1 %v1696_v9 }
 0x149   :  { %646 = vst.msk [vmem:[#allocation2 + $0x60] sm:$0xff] %vm9569_vm1, %v609_v10  ;;  %v611_v11 = vpop.permute.xlu1 %610  ;;  %v2379_v10 = vld [vmem:[%s9544_s4 + $0xb0] sm:$0xff] }
 0x14a   :  { %647 = vst.msk [vmem:[#allocation2 + $0x68] sm:$0x1] %vm634_vm13, %v611_v11  ;;  %v2380_v11 = vld [vmem:[%s9544_s4 + $0xb8] sm:$0xff] }
 0x14b   :  { %6159 = vmatpush3.msra.mxu1 %v1696_v9  ;;  %v8046_v9 = vpack.c.bf16 %v2390_v7, %v2389_v6  ;;  %v2398_v6 = vld [vmem:[%s9544_s4 + $0x148] sm:$0xff]  ;;  %v2387_v7 = vld [vmem:[%s9544_s4 + $0xf0] sm:$0xff] }
 0x14c   :  { %v707_v12 = vpop.permute.xlu0 %706  ;;  %6476 = vmatprep.subr.bf16.mxu1 %v8034_v4 }
 0x14d   :  { %744 = vst.msk [vmem:[#allocation2 + $0x60] sm:$0xff] %vm730_vm14, %v707_v12  ;;  %v709_v13 = vpop.permute.xlu1 %708  ;;  %v2407_v12 = vld [vmem:[%s9544_s4 + $0x190] sm:$0xff] }
 0x14e   :  { %745 = vst.msk [vmem:[#allocation2 + $0x68] sm:$0x1] %vm9570_vm11, %v709_v13  ;;  %v8061_v13 = vpack.c.bf16 %v2380_v11, %v2379_v10  ;;  %v2388_v11 = vld [vmem:[%s9544_s4 + $0xf8] sm:$0xff] }
 0x150   :  { %v805_v14 = vpop.permute.xlu0 %804 }
 0x151   :  { %842 = vst.msk [vmem:[#allocation2 + $0x60] sm:$0xff] %vm828_vm0, %v805_v14  ;;  %v807_v16 = vpop.permute.xlu1 %806  ;;  %v2408_v14 = vld [vmem:[%s9544_s4 + $0x198] sm:$0xff] }
 0x152   :  { %843 = vst.msk [vmem:[#allocation2 + $0x68] sm:$0x1] %vm830_vm15, %v807_v16  ;;  %v2363_v16 = vld [vmem:[%s9544_s4 + $0x30] sm:$0xff] }
 0x154   :  { %v121_v17 = vpop.permute.xlu0 %120 }
 0x155   :  { %156 = vst.msk [vmem:[#allocation2 + $0x70] sm:$0xff] %vm9571_vm12, %v121_v17  ;;  %v123_v18 = vpop.permute.xlu1 %122  ;;  %v2364_v17 = vld [vmem:[%s9544_s4 + $0x38] sm:$0xff] }
 0x156   :  { %157 = vst.msk [vmem:[#allocation2 + $0x78] sm:$0x1] %vm142_vm4, %v123_v18  ;;  %vm9573_vm4 = vmmov %vm9569_vm1  ;;  %v8072_v18 = vpack.c.bf16 %v2408_v14, %v2407_v12  ;;  %v2415_v12 = vld [vmem:[%s9544_s4 + $0x1d0] sm:$0xff]  ;;  %v2416_v14 = vld [vmem:[%s9544_s4 + $0x1d8] sm:$0xff] }
 0x158   :  { %v219_v20 = vpop.permute.xlu0 %218  ;;  %v1570_v21 = vld [vmem:[#allocation2 + $0x60] sm:$0xff] }
 0x159   :  { %254 = vst.msk [vmem:[#allocation2 + $0x70] sm:$0xff] %vm238_vm3, %v219_v20  ;;  %v221_v22 = vpop.permute.xlu1 %220  ;;  %6139 = vmatprep.mubr.msk.f32.mxu0 %vm883_vm2, %v1570_v21  ;;  %v1571_v24 = vld [vmem:[#allocation2 + $0x68] sm:$0x1]  ;;  %vm9572_vm3 = vcmask 385344   ;;  %v8074_v20 = vpack.c.bf16 %v2364_v17, %v2363_v16  ;;  %v2391_v21 = vld [vmem:[%s9544_s4 + $0x110] sm:$0xff]  ;;  %v8217_v16 = vpack.c.bf16 %v2388_v11, %v2387_v7  ;;  %v8219_v17 = vpack.c.bf16 %v2416_v14, %v2415_v12 }
 0x15a   :  { %255 = vst.msk [vmem:[#allocation2 + $0x78] sm:$0x1] %vm240_vm5, %v221_v22  ;;  %6140 = vmatmul.mubr.msk.f32.vlgmr.msra.gmra.mrb[6].mxu0 %vm883_vm2, %v1571_v24  ;;  %vm9574_vm5 = vmmov %vm9570_vm11  ;;  %v2392_v22 = vld [vmem:[%s9544_s4 + $0x118] sm:$0xff] }
 0x15b   :  { %6446 = vmatpush3.bf16.msra.mxu0 %v7981_v48  ;;  %v8083_v24 = vpack.c.bf16 %v2392_v22, %v2391_v21  ;;  %v2371_v22 = vld [vmem:[%s9544_s4 + $0x70] sm:$0xff] }
 0x15c   :  { %v318_v25 = vpop.permute.xlu0 %317  ;;  %6448 = vmatprep.subr.bf16.mxu0 %v7997_v54 }
 0x15d   :  { %353 = vst.msk [vmem:[#allocation2 + $0x70] sm:$0xff] %vm337_vm6, %v318_v25  ;;  %v320_v26 = vpop.permute.xlu1 %319  ;;  %vm9575_vm6 = vcmask 523264  }
 0x15e   :  { %354 = vst.msk [vmem:[#allocation2 + $0x78] sm:$0x1] %vm339_vm7, %v320_v26  ;;  %vm987_vm7 = vcmask 516096   ;;  %v2381_v26 = vld [vmem:[%s9544_s4 + $0xc0] sm:$0xff] }
 0x15f   :  { %1817 = vst.msk [vmem:[#allocation4] sm:$0xff] %vm9575_vm6, %v1801_v38  ;;  %6450 = vmatpush3.bf16.msra.mxu0 %v8006_v57  ;;  %v2365_v38 = vld [vmem:[%s9544_s4 + $0x40] sm:$0xff] }
 0x160   :  { %v416_v28 = vpop.permute.xlu0 %415  ;;  %1818 = vst.msk [vmem:[#allocation4 + $0x28] sm:$0x1] %vm987_vm7, %v1802_v55  ;;  %6452 = vmatprep.subr.bf16.mxu0 %v8022_v0  ;;  %v8119_v41 = vpack.c.bf16 %v2366_v39, %v2365_v38  ;;  %v2418_v38 = vld [vmem:[%s9544_s4 + $0x1e8] sm:$0xff]  ;;  %v2421_v39 = vld [vmem:[%s9544_s4 + $0x200] sm:$0xff] }
 0x161   :  { %451 = vst.msk [vmem:[#allocation2 + $0x70] sm:$0xff] %vm435_vm8, %v416_v28  ;;  %v418_v30 = vpop.permute.xlu1 %417  ;;  %vm9576_vm8 = vmmov %vm9575_vm6 }
 0x162   :  { %452 = vst.msk [vmem:[#allocation2 + $0x78] sm:$0x1] %vm437_vm9, %v418_v30  ;;  %vm1913_vm9 = vcmask 1048064  }
 0x163   :  { %1947 = vst.msk [vmem:[#allocation4 + $0x8] sm:$0xff] %vm9576_vm8, %v1931_v23  ;;  %6454 = vmatpush3.bf16.msra.mxu0 %v8036_v5 }
 0x164   :  { %v514_v31 = vpop.permute.xlu0 %513  ;;  %6456 = vmatprep.subr.bf16.mxu0 %v8061_v13 }
 0x165   :  { %549 = vst.msk [vmem:[#allocation2 + $0x70] sm:$0xff] %vm533_vm10, %v514_v31  ;;  %v516_v32 = vpop.permute.xlu1 %515  ;;  %vm9577_vm10 = vmmov %vm9575_vm6 }
 0x166   :  { %550 = vst.msk [vmem:[#allocation2 + $0x78] sm:$0x1] %vm9572_vm3, %v516_v32  ;;  %v1834_v32 = vld [vmem:[#allocation3 + $0x9] sm:$0x1] }
 0x167   :  { %6458 = vmatpush3.bf16.msra.mxu0 %v8074_v20 }
 0x168   :  { %v613_v33 = vpop.permute.xlu0 %612 }
 0x169   :  { %648 = vst.msk [vmem:[#allocation2 + $0x70] sm:$0xff] %vm9573_vm4, %v613_v33  ;;  %v615_v15 = vpop.permute.xlu1 %614  ;;  %v2382_v33 = vld [vmem:[%s9544_s4 + $0xc8] sm:$0xff] }
 0x16a   :  { %649 = vst.msk [vmem:[#allocation2 + $0x78] sm:$0x1] %vm634_vm13, %v615_v15  ;;  %v2409_v15 = vld [vmem:[%s9544_s4 + $0x1a0] sm:$0xff] }
 0x16c   :  { %v711_v42 = vpop.permute.xlu0 %710 }
 0x16d   :  { %746 = vst.msk [vmem:[#allocation2 + $0x70] sm:$0xff] %vm730_vm14, %v711_v42  ;;  %v713_v35 = vpop.permute.xlu1 %712  ;;  %v8106_v42 = vpack.c.bf16 %v2382_v33, %v2381_v26  ;;  %v2399_v26 = vld [vmem:[%s9544_s4 + $0x150] sm:$0xff] }
 0x16e   :  { %747 = vst.msk [vmem:[#allocation2 + $0x78] sm:$0x1] %vm9574_vm5, %v713_v35  ;;  %v2410_v35 = vld [vmem:[%s9544_s4 + $0x1a8] sm:$0xff] }
 0x16f   :  { %v8117_v40 = vpack.c.bf16 %v2410_v35, %v2409_v15  ;;  %6460 = vmatprep.subr.bf16.mxu0 %v8106_v42 }
 0x170   :  { %v809_v45 = vpop.permute.xlu0 %808  ;;  %v6015_v46 = vpop.f32.mrb[0].mxu0  ;;  %6462 = vmatpush3.bf16.msra.mxu0 %v8119_v41 }
 0x171   :  { %844 = vst.msk [vmem:[#allocation2 + $0x70] sm:$0xff] %vm828_vm0, %v809_v45  ;;  %v973_v49 = vmul.f32 %v6015_v46, %v7958_v37  ;;  %v811_v50 = vpop.permute.xlu1 %810  ;;  %v956_v19 = vpop.f32.mrb[1].mxu0  ;;  %v2394_v45 = vld [vmem:[%s9544_s4 + $0x128] sm:$0xff]  ;;  %v2383_v46 = vld [vmem:[%s9544_s4 + $0xd0] sm:$0xff] }
 0x172   :  { %845 = vst.msk [vmem:[#allocation2 + $0x78] sm:$0x1] %vm830_vm15, %v811_v50  ;;  %v972_v51 = vmul.f32 %v7958_v37, %v956_v19  ;;  %v2384_v50 = vld [vmem:[%s9544_s4 + $0xd8] sm:$0xff]  ;;  %v2411_v19 = vld [vmem:[%s9544_s4 + $0x1b0] sm:$0xff] }
 0x173   :  { %v982_v53 = vadd.f32 %v7979_v47, %v973_v49  ;;  %v8131_v49 = vpack.c.bf16 %v2394_v45, %v2393_v44  ;;  %v8144_v23 = vpack.c.bf16 %v2384_v50, %v2383_v46  ;;  %v2422_v46 = vld [vmem:[%s9544_s4 + $0x208] sm:$0xff]  ;;  %v2401_v50 = vld [vmem:[%s9544_s4 + $0x160] sm:$0xff] }
 0x174   :  { %v981_v56 = vadd.f32 %v7979_v47, %v972_v51  ;;  %v2412_v51 = vld [vmem:[%s9544_s4 + $0x1b8] sm:$0xff] }
 0x175   :  { %v984_v58 = vmax.f32 %v982_v53, 0.0  ;;  %v1866_v59 = vpop.permute.xlu1 %1865  ;;  %v8146_v52 = vpack.c.bf16 %v2412_v51, %v2411_v19  ;;  %v2368_v53 = vld [vmem:[%s9544_s4 + $0x58] sm:$0xff]  ;;  %6464 = vmatprep.subr.bf16.mxu0 %v8144_v23  ;;  %v2402_v19 = vld [vmem:[%s9544_s4 + $0x168] sm:$0xff] }
 0x176   :  { %v983_v60 = vmax.f32 %v981_v56, 0.0  ;;  %1914 = vst.msk [vmem:[#allocation4] sm:$0xff] %vm1913_vm9, %v1866_v59  ;;  %v8159_v55 = vpack.c.bf16 %v2368_v53, %v2367_v29  ;;  %v2396_v56 = vld [vmem:[%s9544_s4 + $0x138] sm:$0xff]  ;;  %v8267_v29 = vpack.c.bf16 %v2422_v46, %v2421_v39 }
 0x177   :  { %988 = vst.msk [vmem:[#allocation3 + $0x19] sm:$0x1] %vm987_vm7, %v984_v58  ;;  %v2385_v58 = vld [vmem:[%s9544_s4 + $0xe0] sm:$0xff]  ;;  %v8169_v59 = vpack.c.bf16 %v2396_v56, %v2395_v34  ;;  %v8272_v34 = vpack.c.bf16 %v2402_v19, %v2401_v50 }
 0x178   :  { %986 = vst.msk [vmem:[#allocation3 + $0x11] sm:$0xff] %vm9577_vm10, %v983_v60  ;;  %v1686_v3 = vld [vmem:[#allocation2 + $0x70] sm:$0xff]  ;;  %v2386_v60 = vld [vmem:[%s9544_s4 + $0xe8] sm:$0xff]  ;;  %6466 = vmatpush3.bf16.msra.mxu0 %v8159_v55 }
 0x179   :  { %6160 = vmatprep.mubr.msk.f32.mxu1 %vm883_vm2, %v1686_v3  ;;  %v1687_v8 = vld [vmem:[#allocation2 + $0x78] sm:$0x1]  ;;  %v8180_v63 = vpack.c.bf16 %v2386_v60, %v2385_v58  ;;  %v2397_v3 = vld [vmem:[%s9544_s4 + $0x140] sm:$0xff]  ;;  %v1932_v58 = vld [vmem:[#allocation3 + $0xa] sm:$0x1] }
 0x17a   :  { %6161 = vmatmul.mubr.msk.f32.vlgmr.msra.gmra.mrb[6].mxu1 %vm883_vm2, %v1687_v8  ;;  %vm9578_vm2 = vmmov %vm9575_vm6  ;;  %v8202_v8 = vpack.c.bf16 %v2370_v2, %v2369_v27  ;;  %v8204_v10 = vpack.c.bf16 %v2398_v6, %v2397_v3  ;;  %1948 = vst.msk [vmem:[#allocation4 + $0x30] sm:$0x1] %vm987_vm7, %v1932_v58  ;;  %v2419_v60 = vld [vmem:[%s9544_s4 + $0x1f0] sm:$0xff]  ;;  %v2404_v2 = vld [vmem:[%s9544_s4 + $0x178] sm:$0xff] }
 0x17b   :  { %6478 = vmatpush3.bf16.msra.mxu1 %v8046_v9  ;;  %vm9579_vm13 = vmmov %vm9578_vm2  ;;  %6468 = vmatprep.subr.bf16.mxu0 %v8180_v63  ;;  %v8286_v62 = vpack.c.bf16 %v2420_v61, %v2419_v60  ;;  %v2403_v27 = vld [vmem:[%s9544_s4 + $0x170] sm:$0xff] }
 0x17c   :  { %6480 = vmatprep.subr.bf16.mxu1 %v8072_v18  ;;  %vm9580_vm14 = vmmov %vm9578_vm2  ;;  %6470 = vmatpush3.bf16.msra.mxu0 %v8202_v8  ;;  %v8294_v3 = vpack.c.bf16 %v2404_v2, %v2403_v27 }
 0x17d   :  { %6472 = vmatprep.subr.bf16.mxu0 %v8217_v16  ;;  %vm9581_vm15 = vmmov %vm9578_vm2 }
 0x17e   :  { %v2060_v25 = vld [vmem:[#allocation3 + $0x19] sm:$0x1]  ;;  %vm9582_vm0 = vmmov %vm9578_vm2 }
 0x17f   :  { %v2091_v28 = vld [vmem:[#allocation3 + $0x12] sm:$0xff]  ;;  %2076 = vst.msk [vmem:[#allocation4 + $0x38] sm:$0x1] %vm987_vm7, %v2060_v25  ;;  %6482 = vmatpush3.bf16.msra.mxu1 %v8083_v24  ;;  %vm9583_vm1 = vmmov %vm9582_vm0 }
 0x180   :  { %v1963_v30 = vld [vmem:[#allocation3 + $0x10] sm:$0xff]  ;;  %2123 = vrot.lane.b32.xlu1 %v2091_v28, %s7100_s9  ;;  %1949 = vst.msk [vmem:[#allocation4 + $0x58] sm:$0xff] %vm9580_vm14, %v2091_v28  ;;  %6484 = vmatprep.subr.bf16.mxu1 %v8117_v40  ;;  %v1804_v21 = vld [vmem:[#allocation3 + $0x18] sm:$0x1]  ;;  %vm9584_vm11 = vmmov %vm9582_vm0 }
 0x181   :  { %v8089_v31 = vld [vmem:[#allocation3 + $0x11] sm:$0xff]  ;;  %1995 = vrot.lane.b32.xlu0 %v1963_v30, %s7100_s9  ;;  %1819 = vst.msk [vmem:[#allocation4 + $0x50] sm:$0xff] %vm9579_vm13, %v1963_v30  ;;  %vm9585_vm12 = vmmov %vm9582_vm0 }
 0x182   :  { %2075 = vst.msk [vmem:[#allocation4 + $0x10] sm:$0xff] %vm9578_vm2, %v8089_v31  ;;  %v2372_v25 = vld [vmem:[%s9544_s4 + $0x78] sm:$0xff]  ;;  %vm9586_vm3 = vmmov %vm9582_vm0 }
 0x183   :  { %6486 = vmatpush3.bf16.msra.mxu1 %v8131_v49  ;;  %1820 = vst.msk [vmem:[#allocation4 + $0x78] sm:$0x1] %vm987_vm7, %v1804_v21  ;;  %v2400_v28 = vld [vmem:[%s9544_s4 + $0x158] sm:$0xff]  ;;  %vm9587_vm4 = vmmov %vm9582_vm0 }
 0x184   :  { %1867 = vrot.lane.b32.xlu1 %v1834_v32, %s7100_s9  ;;  %6488 = vmatprep.subr.bf16.mxu1 %v8146_v52  ;;  %v8238_v32 = vpack.c.bf16 %v2372_v25, %v2371_v22  ;;  %v8240_v33 = vpack.c.bf16 %v2400_v28, %v2399_v26  ;;  %v1964_v25 = vld [vmem:[#allocation3 + $0x18] sm:$0x1]  ;;  %v1836_v26 = vld [vmem:[#allocation3 + $0x19] sm:$0x1]  ;;  %v2316_v28 = vld [vmem:[#allocation3 + $0x2a] sm:$0x1] }
 0x185   :  { %2332 = vst.msk [vmem:[#allocation4 + $0x48] sm:$0x1] %vm987_vm7, %v2316_v28  ;;  %vm9588_vm5 = vmmov %vm9582_vm0 }
 0x186   :  { %6474 = vmatpush3.bf16.msra.mxu0 %v8238_v32  ;;  %vm9589_vm6 = vmmov %vm9582_vm0 }
 0x187   :  { %6490 = vmatpush3.bf16.msra.mxu1 %v8169_v59  ;;  %6508 = vmatprep.subr.bf16.mxu0 %v8267_v29  ;;  %vm9590_vm8 = vmmov %vm9582_vm0 }
 0x188   :  { %2125 = vrot.lane.b32.xlu1 %v2092_v36, %s7100_s9  ;;  %6492 = vmatprep.subr.bf16.mxu1 %v8182_v1  ;;  %vm9591_vm10 = vmmov %vm9582_vm0 }
 0x189   :  { %vm9592_vm2 = vmmov %vm9582_vm0 }
 0x18a   :  { %vm9593_vm13 = vmmov %vm9582_vm0 }
 0x18b   :  { %6494 = vmatpush3.bf16.msra.mxu1 %v8204_v10  ;;  %vm9594_vm14 = vmmov %vm9582_vm0 }
 0x18c   :  { %1869 = vrot.lane.b32.xlu1 %v8089_v31, %s7100_s9  ;;  %6496 = vmatprep.subr.bf16.mxu1 %v8219_v17  ;;  %v2417_v31 = vld [vmem:[%s9544_s4 + $0x1e0] sm:$0xff] }
 0x18d   :  { %v6036_v30 = vpop.f32.mrb[0].mxu1  ;;  %v8255_v45 = vpack.c.bf16 %v2418_v38, %v2417_v31 }
 0x18e   :  { %v1090_v15 = vmul.f32 %v6036_v30, %v7958_v37  ;;  %v1073_v35 = vpop.f32.mrb[1].mxu1  ;;  %v2094_v30 = vld [vmem:[#allocation3 + $0x2a] sm:$0x1] }
 0x18f   :  { %v1089_v44 = vmul.f32 %v7958_v37, %v1073_v35  ;;  %6498 = vmatpush3.bf16.msra.mxu1 %v8240_v33 }
 0x190   :  { %v1099_v51 = vadd.f32 %v7979_v47, %v1090_v15  ;;  %6500 = vmatprep.subr.bf16.mxu1 %v8255_v45 }
 0x191   :  { %v1098_v53 = vadd.f32 %v7979_v47, %v1089_v44 }
 0x192   :  { %v1101_v36 = vmax.f32 %v1099_v51, 0.0  ;;  %v1934_v51 = vld [vmem:[#allocation3 + $0x1a] sm:$0x1] }
 0x193   :  { %v1100_v56 = vmax.f32 %v1098_v53, 0.0  ;;  %6502 = vmatpush3.bf16.msra.mxu1 %v8272_v34  ;;  %1950 = vst.msk [vmem:[#allocation4 + $0x80] sm:$0x1] %vm987_vm7, %v1934_v51 }
 0x194   :  { %1104 = vst.msk [vmem:[#allocation3 + $0x29] sm:$0x1] %vm987_vm7, %v1101_v36  ;;  %6504 = vmatprep.subr.bf16.mxu1 %v8286_v62 }
 0x195   :  { %1103 = vst.msk [vmem:[#allocation3 + $0x21] sm:$0xff] %vm9581_vm15, %v1100_v56  ;;  %vm9595_vm15 = vmmov %vm9582_vm0 }
 0x197   :  { %6506 = vmatpush3.bf16.msra.mxu1 %v8294_v3 }
 0x198   :  { %6524 = vmatprep.subr.bf16.mxu1 %v7971_v43 }
 0x19b   :  { %v2062_v6 = vld [vmem:[#allocation3 + $0x29] sm:$0x1] }
 0x19c   :  { %v2219_v7 = vld [vmem:[#allocation3 + $0x21] sm:$0xff]  ;;  %2078 = vst.msk [vmem:[#allocation4 + $0x88] sm:$0x1] %vm987_vm7, %v2062_v6  ;;  %v2220_v15 = vld [vmem:[#allocation3 + $0x29] sm:$0x1] }
 0x19d   :  { %v2093_v11 = vld [vmem:[#allocation3 + $0x22] sm:$0xff]  ;;  %2251 = vrot.lane.b32.xlu0 %v2219_v7, %s7100_s9  ;;  %2077 = vst.msk [vmem:[#allocation4 + $0x60] sm:$0xff] %vm9583_vm1, %v2219_v7  ;;  %vm9596_vm1 = vmmov %vm9582_vm0 }
 0x19e   :  { %v1965_v12 = vld [vmem:[#allocation3 + $0x20] sm:$0xff]  ;;  %2127 = vrot.lane.b32.xlu1 %v2093_v11, %s7100_s9  ;;  %v2188_v14 = vld [vmem:[#allocation3 + $0x28] sm:$0x1]  ;;  %2331 = vst.msk [vmem:[#allocation4 + $0x20] sm:$0xff] %vm9585_vm12, %v2093_v11  ;;  %v1838_v6 = vld [vmem:[#allocation3 + $0x29] sm:$0x1] }
 0x19f   :  { %2203 = vst.msk [vmem:[#allocation4 + $0x18] sm:$0xff] %vm9582_vm0, %v1965_v12  ;;  %v1806_v21 = vld [vmem:[#allocation3 + $0x28] sm:$0x1]  ;;  %v2096_v11 = vld [vmem:[#allocation3 + $0x3a] sm:$0x1]  ;;  %vm9597_vm12 = vmmov %vm9582_vm0 }
 0x1a0   :  { %1821 = vst.msk [vmem:[#allocation4 + $0xa0] sm:$0xff] %vm9584_vm11, %v1965_v12  ;;  %v1935_v22 = vld [vmem:[#allocation3 + $0x22] sm:$0xff]  ;;  %vm1915_vm11 = vcmask 1040896  }
 0x1a1   :  { %2204 = vst.msk [vmem:[#allocation4 + $0x40] sm:$0x1] %vm987_vm7, %v2188_v14  ;;  %1822 = vst.msk [vmem:[#allocation4 + $0xc8] sm:$0x1] %vm987_vm7, %v1806_v21  ;;  %1997 = vrot.lane.b32.xlu0 %v1964_v25, %s7100_s9  ;;  %v1966_v2 = vld [vmem:[#allocation3 + $0x28] sm:$0x1] }
 0x1a2   :  { %1951 = vst.msk [vmem:[#allocation4 + $0xa8] sm:$0xff] %vm9586_vm3, %v1935_v22  ;;  %1871 = vrot.lane.b32.xlu1 %v1836_v26, %s7100_s9  ;;  %vm9598_vm3 = vmmov %vm9582_vm0 }
 0x1a5   :  { %2253 = vrot.lane.b32.xlu0 %v2220_v15, %s7100_s9 }
 0x1a6   :  { %2129 = vrot.lane.b32.xlu1 %v2094_v30, %s7100_s9 }
 0x1a9   :  { %1999 = vrot.lane.b32.xlu0 %v1965_v12, %s7100_s9  ;;  %v2318_v12 = vld [vmem:[#allocation3 + $0x3a] sm:$0x1] }
 0x1aa   :  { %1873 = vrot.lane.b32.xlu1 %v2219_v7, %s7100_s9  ;;  %2334 = vst.msk [vmem:[#allocation4 + $0x98] sm:$0x1] %vm987_vm7, %v2318_v12 }
 0x1ad   :  { %v6057_v35 = vpop.f32.mrb[2].mxu0 }
 0x1ae   :  { %v1206_v31 = vmul.f32 %v6057_v35, %v7958_v37  ;;  %v1189_v38 = vpop.f32.mrb[3].mxu0  ;;  %v1936_v35 = vld [vmem:[#allocation3 + $0x2a] sm:$0x1] }
 0x1af   :  { %v1205_v39 = vmul.f32 %v7958_v37, %v1189_v38  ;;  %1952 = vst.msk [vmem:[#allocation4 + $0xd0] sm:$0x1] %vm987_vm7, %v1936_v35 }
 0x1b0   :  { %v1215_v44 = vadd.f32 %v7979_v47, %v1206_v31 }
 0x1b1   :  { %v1214_v46 = vadd.f32 %v7979_v47, %v1205_v39 }
 0x1b2   :  { %v1217_v50 = vmax.f32 %v1215_v44, 0.0 }
 0x1b3   :  { %v1216_v19 = vmax.f32 %v1214_v46, 0.0 }
 0x1b4   :  { %1220 = vst.msk [vmem:[#allocation3 + $0x39] sm:$0x1] %vm987_vm7, %v1217_v50 }
 0x1b5   :  { %1219 = vst.msk [vmem:[#allocation3 + $0x31] sm:$0xff] %vm9587_vm4, %v1216_v19  ;;  %vm9599_vm4 = vmmov %vm9582_vm0 }
 0x1bb   :  { %v2064_v53 = vld [vmem:[#allocation3 + $0x39] sm:$0x1] }
 0x1bc   :  { %v2221_v36 = vld [vmem:[#allocation3 + $0x31] sm:$0xff]  ;;  %2080 = vst.msk [vmem:[#allocation4 + $0xd8] sm:$0x1] %vm987_vm7, %v2064_v53  ;;  %v2222_v7 = vld [vmem:[#allocation3 + $0x39] sm:$0x1] }
 0x1bd   :  { %v2095_v56 = vld [vmem:[#allocation3 + $0x32] sm:$0xff]  ;;  %2255 = vrot.lane.b32.xlu0 %v2221_v36, %s7100_s9  ;;  %2079 = vst.msk [vmem:[#allocation4 + $0xb0] sm:$0xff] %vm9589_vm6, %v2221_v36  ;;  %vm9601_vm6 = vmmov %vm9582_vm0 }
 0x1be   :  { %v1967_v58 = vld [vmem:[#allocation3 + $0x30] sm:$0xff]  ;;  %2131 = vrot.lane.b32.xlu1 %v2095_v56, %s7100_s9  ;;  %v2190_v60 = vld [vmem:[#allocation3 + $0x38] sm:$0x1]  ;;  %v1840_v53 = vld [vmem:[#allocation3 + $0x39] sm:$0x1] }
 0x1bf   :  { %2205 = vst.msk [vmem:[#allocation4 + $0x68] sm:$0xff] %vm9588_vm5, %v1967_v58  ;;  %v2317_v61 = vld [vmem:[#allocation3 + $0x32] sm:$0xff]  ;;  %vm9600_vm5 = vmmov %vm9582_vm0 }
 0x1c0   :  { %1823 = vst.msk [vmem:[#allocation4 + $0xf0] sm:$0xff] %vm9590_vm8, %v1967_v58  ;;  %v1808_v27 = vld [vmem:[#allocation3 + $0x38] sm:$0x1]  ;;  %vm9602_vm8 = vmmov %vm9582_vm0 }
 0x1c1   :  { %2206 = vst.msk [vmem:[#allocation4 + $0x90] sm:$0x1] %vm987_vm7, %v2190_v60  ;;  %1824 = vst.msk [vmem:[#allocation4 + $0x118] sm:$0x1] %vm987_vm7, %v1808_v27  ;;  %2001 = vrot.lane.b32.xlu0 %v1966_v2, %s7100_s9  ;;  %v1968_v51 = vld [vmem:[#allocation3 + $0x38] sm:$0x1] }
 0x1c2   :  { %2333 = vst.msk [vmem:[#allocation4 + $0x70] sm:$0xff] %vm9591_vm10, %v2317_v61  ;;  %1875 = vrot.lane.b32.xlu1 %v1838_v6, %s7100_s9  ;;  %v1938_v60 = vld [vmem:[#allocation3 + $0x3a] sm:$0x1]  ;;  %v1841_v27 = vld [vmem:[#allocation3 + $0x61] sm:$0xff]  ;;  %v2225_v2 = vld [vmem:[#allocation3 + $0x51] sm:$0xff] }
 0x1c3   :  { %1953 = vst.msk [vmem:[#allocation4 + $0xf8] sm:$0xff] %vm9592_vm2, %v2317_v61  ;;  %vm9603_vm10 = vmmov %vm9582_vm0 }
 0x1c4   :  { %1954 = vst.msk [vmem:[#allocation4 + $0x120] sm:$0x1] %vm987_vm7, %v1938_v60  ;;  %v2427_v60 = vld [vmem:[%s9544_s4 + $0x230] sm:$0xff]  ;;  %vm9604_vm2 = vmmov %vm9582_vm0 }
 0x1c5   :  { %2257 = vrot.lane.b32.xlu0 %v2222_v7, %s7100_s9 }
 0x1c6   :  { %2133 = vrot.lane.b32.xlu1 %v2096_v11, %s7100_s9  ;;  %v2320_v11 = vld [vmem:[#allocation3 + $0x4a] sm:$0x1] }
 0x1c7   :  { %2336 = vst.msk [vmem:[#allocation4 + $0xe8] sm:$0x1] %vm987_vm7, %v2320_v11 }
 0x1c9   :  { %2003 = vrot.lane.b32.xlu0 %v1967_v58, %s7100_s9  ;;  %v2098_v58 = vld [vmem:[#allocation3 + $0x4a] sm:$0x1] }
 0x1ca   :  { %1877 = vrot.lane.b32.xlu1 %v2221_v36, %s7100_s9  ;;  %v2193_v36 = vld [vmem:[#allocation3 + $0x50] sm:$0xff] }
 0x1cb   :  { %2209 = vst.msk [vmem:[#allocation4 + $0x108] sm:$0xff] %vm9596_vm1, %v2193_v36  ;;  %v1809_v36 = vld [vmem:[#allocation3 + $0x60] sm:$0xff]  ;;  %vm9608_vm1 = vmmov %vm9582_vm0 }
 0x1cc   :  { %1825 = vst.msk [vmem:[#allocation4 + $0x140] sm:$0xff] %vm9598_vm3, %v1809_v36  ;;  %vm9610_vm3 = vmmov %vm9582_vm0 }
 0x1cd   :  { %v6078_v14 = vpop.f32.mrb[2].mxu1 }
 0x1ce   :  { %v1322_v21 = vmul.f32 %v6078_v14, %v7958_v37  ;;  %v1305_v22 = vpop.f32.mrb[3].mxu1 }
 0x1cf   :  { %v1321_v25 = vmul.f32 %v7958_v37, %v1305_v22 }
 0x1d0   :  { %v1331_v26 = vadd.f32 %v7979_v47, %v1322_v21 }
 0x1d1   :  { %v1330_v28 = vadd.f32 %v7979_v47, %v1321_v25 }
 0x1d2   :  { %v1333_v30 = vmax.f32 %v1331_v26, 0.0  ;;  %v2226_v26 = vld [vmem:[#allocation3 + $0x59] sm:$0x1] }
 0x1d3   :  { %v1332_v15 = vmax.f32 %v1330_v28, 0.0 }
 0x1d4   :  { %1336 = vst.msk [vmem:[#allocation3 + $0x49] sm:$0x1] %vm987_vm7, %v1333_v30 }
 0x1d5   :  { %1335 = vst.msk [vmem:[#allocation3 + $0x41] sm:$0xff] %vm9593_vm13, %v1332_v15  ;;  %vm9605_vm13 = vmmov %vm9582_vm0 }
 0x1db   :  { %v2066_v31 = vld [vmem:[#allocation3 + $0x49] sm:$0x1] }
 0x1dc   :  { %v2223_v38 = vld [vmem:[#allocation3 + $0x41] sm:$0xff]  ;;  %2082 = vst.msk [vmem:[#allocation4 + $0x128] sm:$0x1] %vm987_vm7, %v2066_v31  ;;  %v2224_v56 = vld [vmem:[#allocation3 + $0x49] sm:$0x1] }
 0x1dd   :  { %v2097_v39 = vld [vmem:[#allocation3 + $0x42] sm:$0xff]  ;;  %2259 = vrot.lane.b32.xlu0 %v2223_v38, %s7100_s9  ;;  %v2423_v38 = vld [vmem:[%s9544_s4 + $0x210] sm:$0xff] }
 0x1de   :  { %2135 = vrot.lane.b32.xlu1 %v2097_v39, %s7100_s9  ;;  %v2191_v44 = vld [vmem:[#allocation3 + $0x40] sm:$0xff]  ;;  %v2192_v50 = vld [vmem:[#allocation3 + $0x48] sm:$0x1]  ;;  %v2424_v39 = vld [vmem:[%s9544_s4 + $0x218] sm:$0xff] }
 0x1df   :  { %v2065_v46 = vld [vmem:[#allocation3 + $0x41] sm:$0xff]  ;;  %2207 = vst.msk [vmem:[#allocation4 + $0xb8] sm:$0xff] %vm9594_vm14, %v2191_v44  ;;  %vm9606_vm14 = vmmov %vm9582_vm0 }
 0x1e0   :  { %2081 = vst.msk [vmem:[#allocation4 + $0x100] sm:$0xff] %vm9595_vm15, %v2065_v46  ;;  %v2319_v19 = vld [vmem:[#allocation3 + $0x42] sm:$0xff]  ;;  %vm9607_vm15 = vmmov %vm9582_vm0 }
 0x1e1   :  { %2208 = vst.msk [vmem:[#allocation4 + $0xe0] sm:$0x1] %vm987_vm7, %v2192_v50  ;;  %2005 = vrot.lane.b32.xlu0 %v1968_v51, %s7100_s9  ;;  %v1969_v61 = vld [vmem:[#allocation3 + $0x40] sm:$0xff]  ;;  %v1970_v6 = vld [vmem:[#allocation3 + $0x48] sm:$0x1] }
 0x1e2   :  { %2335 = vst.msk [vmem:[#allocation4 + $0xc0] sm:$0xff] %vm9582_vm0, %v2319_v19  ;;  %1879 = vrot.lane.b32.xlu1 %v1840_v53, %s7100_s9  ;;  %v2347_v44 = vld [vmem:[#allocation4] sm:$0xff]  ;;  %v8381_v19 = vpack.c.bf16 %v2424_v39, %v2423_v38  ;;  %v2426_v53 = vld [vmem:[%s9544_s4 + $0x228] sm:$0xff] }
 0x1e3   :  { %v2425_v51 = vld [vmem:[%s9544_s4 + $0x220] sm:$0xff] }
 0x1e5   :  { %2261 = vrot.lane.b32.xlu0 %v2224_v56, %s7100_s9 }
 0x1e6   :  { %2137 = vrot.lane.b32.xlu1 %v2098_v58, %s7100_s9  ;;  %v8393_v58 = vpack.c.bf16 %v2426_v53, %v2425_v51 }
 0x1e9   :  { %2007 = vrot.lane.b32.xlu0 %v1969_v61, %s7100_s9 }
 0x1ea   :  { %1881 = vrot.lane.b32.xlu1 %v1841_v27, %s7100_s9 }
 0x1ed   :  { %2263 = vrot.lane.b32.xlu0 %v2225_v2, %s7100_s9  ;;  %v2428_v2 = vld [vmem:[%s9544_s4 + $0x238] sm:$0xff] }
 0x1ee   :  { %v8406_v11 = vpack.c.bf16 %v2428_v2, %v2427_v60 }
 0x1f0   :  { %v6099_v7 = vpop.f32.mrb[4].mxu0 }
 0x1f1   :  { %2009 = vrot.lane.b32.xlu0 %v1970_v6, %s7100_s9  ;;  %v1438_v12 = vmul.f32 %v6099_v7, %v7958_v37  ;;  %v1421_v14 = vpop.f32.mrb[5].mxu0  ;;  %v1842_v6 = vld [vmem:[#allocation3 + $0x69] sm:$0x1] }
 0x1f2   :  { %v2124_v21 = vpop.permute.xlu1 %2123  ;;  %v1437_v25 = vmul.f32 %v7958_v37, %v1421_v14  ;;  %v2100_v14 = vld [vmem:[#allocation3 + $0x7a] sm:$0x1] }
 0x1f3   :  { %v1996_v22 = vpop.permute.xlu0 %1995  ;;  %2171 = vst.msk [vmem:[#allocation4 + $0x10] sm:$0xff] %vm1913_vm9, %v2124_v21  ;;  %v1447_v28 = vadd.f32 %v7979_v47, %v1438_v12  ;;  %v1810_v12 = vld [vmem:[#allocation3 + $0x68] sm:$0x1] }
 0x1f4   :  { %2043 = vst.msk [vmem:[#allocation4 + $0x8] sm:$0xff] %vm1913_vm9, %v1996_v22  ;;  %v1446_v30 = vadd.f32 %v7979_v47, %v1437_v25  ;;  %v2194_v22 = vld [vmem:[#allocation3 + $0x58] sm:$0x1] }
 0x1f5   :  { %v1449_v15 = vmax.f32 %v1447_v28, 0.0  ;;  %2265 = vrot.lane.b32.xlu0 %v2226_v26, %s7100_s9  ;;  %1826 = vst.msk [vmem:[#allocation4 + $0x168] sm:$0x1] %vm987_vm7, %v1810_v12  ;;  %2210 = vst.msk [vmem:[#allocation4 + $0x130] sm:$0x1] %vm987_vm7, %v2194_v22  ;;  %v2321_v12 = vld [vmem:[#allocation3 + $0x52] sm:$0xff] }
 0x1f6   :  { %v1868_v35 = vpop.permute.xlu1 %1867  ;;  %v1448_v31 = vmax.f32 %v1446_v30, 0.0  ;;  %2337 = vst.msk [vmem:[#allocation4 + $0x110] sm:$0xff] %vm9604_vm2, %v2321_v12  ;;  %vm9616_vm2 = vmmov %vm9582_vm0 }
 0x1f7   :  { %1916 = vst.msk [vmem:[#allocation4 + $0x28] sm:$0x1] %vm1915_vm11, %v1868_v35 }
 0x1f8   :  { %1452 = vst.msk [vmem:[#allocation3 + $0x79] sm:$0x1] %vm987_vm7, %v1449_v15  ;;  %v1939_v15 = vld [vmem:[#allocation3 + $0x62] sm:$0xff] }
 0x1f9   :  { %1451 = vst.msk [vmem:[#allocation3 + $0x71] sm:$0xff] %vm9597_vm12, %v1448_v31  ;;  %vm9609_vm12 = vmmov %vm9582_vm0 }
 0x1fa   :  { %v2126_v46 = vpop.permute.xlu1 %2125  ;;  %1955 = vst.msk [vmem:[#allocation4 + $0x148] sm:$0xff] %vm9602_vm8, %v1939_v15  ;;  %vm9614_vm8 = vmmov %vm9582_vm0 }
 0x1fb   :  { %v2348_v50 = vld [vmem:[#allocation4 + $0x8] sm:$0xff]  ;;  %2172 = vst.msk [vmem:[#allocation4 + $0x38] sm:$0x1] %vm1915_vm11, %v2126_v46 }
 0x1fc   :  { %2499 = vmatprep.mubr.f32.mxu0 %v2348_v50 }
 0x1fd   :  { %2500 = vmatmul.mubr.f32.vlgmr.msra.gmra.mrb[8].mxu0 %v2347_v44 }
 0x1fe   :  { %6510 = vmatpush3.bf16.msra.mxu0 %v8267_v29  ;;  %v1870_v56 = vpop.permute.xlu1 %1869 }
 0x1ff   :  { %6512 = vmatprep.subr.bf16.mxu0 %v8381_v19  ;;  %1917 = vst.msk [vmem:[#allocation4 + $0x50] sm:$0xff] %vm1913_vm9, %v1870_v56  ;;  %v2068_v21 = vld [vmem:[#allocation3 + $0x79] sm:$0x1] }
 0x200   :  { %v2099_v61 = vld [vmem:[#allocation3 + $0x72] sm:$0xff]  ;;  %2084 = vst.msk [vmem:[#allocation4 + $0x178] sm:$0x1] %vm987_vm7, %v2068_v21  ;;  %v2352_v21 = vld [vmem:[#allocation4 + $0x28] sm:$0x1] }
 0x201   :  { %v1971_v27 = vld [vmem:[#allocation3 + $0x70] sm:$0xff]  ;;  %2139 = vrot.lane.b32.xlu1 %v2099_v61, %s7100_s9  ;;  %v1812_v28 = vld [vmem:[#allocation3 + $0x78] sm:$0x1]  ;;  %v1940_v61 = vld [vmem:[#allocation3 + $0x6a] sm:$0x1] }
 0x202   :  { %2011 = vrot.lane.b32.xlu0 %v1971_v27, %s7100_s9  ;;  %6514 = vmatpush3.bf16.msra.mxu0 %v8381_v19  ;;  %v2067_v7 = vld [vmem:[#allocation3 + $0x71] sm:$0xff]  ;;  %1828 = vst.msk [vmem:[#allocation4 + $0x1b8] sm:$0x1] %vm987_vm7, %v1812_v28  ;;  %1956 = vst.msk [vmem:[#allocation4 + $0x170] sm:$0x1] %vm987_vm7, %v1940_v61 }
 0x203   :  { %6516 = vmatprep.subr.bf16.mxu0 %v8393_v58  ;;  %2083 = vst.msk [vmem:[#allocation4 + $0x150] sm:$0xff] %vm9599_vm4, %v2067_v7  ;;  %v1811_v25 = vld [vmem:[#allocation3 + $0x70] sm:$0xff]  ;;  %vm9611_vm4 = vmmov %vm9582_vm0 }
 0x204   :  { %v1843_v26 = vld [vmem:[#allocation3 + $0x71] sm:$0xff]  ;;  %1827 = vst.msk [vmem:[#allocation4 + $0x190] sm:$0xff] %vm9600_vm5, %v1811_v25  ;;  %vm9612_vm5 = vmmov %vm9582_vm0 }
 0x205   :  { %1883 = vrot.lane.b32.xlu1 %v1842_v6, %s7100_s9  ;;  %v1941_v30 = vld [vmem:[#allocation3 + $0x72] sm:$0xff] }
 0x206   :  { %6518 = vmatpush3.bf16.msra.mxu0 %v8393_v58  ;;  %1957 = vst.msk [vmem:[#allocation4 + $0x198] sm:$0xff] %vm9601_vm6, %v1941_v30  ;;  %v2349_v7 = vld [vmem:[#allocation4 + $0x10] sm:$0xff]  ;;  %vm9613_vm6 = vmmov %vm9582_vm0 }
 0x207   :  { %6520 = vmatprep.subr.bf16.mxu0 %v8406_v11 }
 0x209   :  { %2141 = vrot.lane.b32.xlu1 %v2100_v14, %s7100_s9  ;;  %v2322_v14 = vld [vmem:[#allocation3 + $0x5a] sm:$0x1] }
 0x20a   :  { %6522 = vmatpush3.bf16.msra.mxu0 %v8406_v11  ;;  %2338 = vst.msk [vmem:[#allocation4 + $0x138] sm:$0x1] %vm987_vm7, %v2322_v14 }
 0x20b   :  { %6556 = vmatprep.subr.bf16.mxu0 %v8034_v4 }
 0x20d   :  { %1885 = vrot.lane.b32.xlu1 %v1843_v26, %s7100_s9  ;;  %v6120_v35 = vpop.f32.mrb[4].mxu1 }
 0x20e   :  { %v1554_v31 = vmul.f32 %v6120_v35, %v7958_v37  ;;  %v1537_v38 = vpop.f32.mrb[5].mxu1  ;;  %v2351_v35 = vld [vmem:[#allocation4 + $0x20] sm:$0xff] }
 0x20f   :  { %v1553_v39 = vmul.f32 %v7958_v37, %v1537_v38  ;;  %v2252_v44 = vpop.permute.xlu0 %2251 }
 0x210   :  { %v2128_v46 = vpop.permute.xlu1 %2127  ;;  %v1563_v50 = vadd.f32 %v7979_v47, %v1554_v31  ;;  %2299 = vst.msk [vmem:[#allocation4 + $0x18] sm:$0xff] %vm1913_vm9, %v2252_v44  ;;  %v2354_v31 = vld [vmem:[#allocation4 + $0x38] sm:$0x1] }
 0x211   :  { %2173 = vst.msk [vmem:[#allocation4 + $0x60] sm:$0xff] %vm1913_vm9, %v2128_v46  ;;  %v1562_v51 = vadd.f32 %v7979_v47, %v1553_v39 }
 0x212   :  { %v1565_v53 = vmax.f32 %v1563_v50, 0.0 }
 0x213   :  { %v1564_v36 = vmax.f32 %v1562_v51, 0.0  ;;  %v1998_v56 = vpop.permute.xlu0 %1997  ;;  %v2356_v51 = vld [vmem:[#allocation4 + $0x48] sm:$0x1] }
 0x214   :  { %v1872_v60 = vpop.permute.xlu1 %1871  ;;  %1568 = vst.msk [vmem:[#allocation3 + $0x89] sm:$0x1] %vm987_vm7, %v1565_v53 }
 0x215   :  { %2044 = vst.msk [vmem:[#allocation4 + $0x30] sm:$0x1] %vm1915_vm11, %v1998_v56  ;;  %1918 = vst.msk [vmem:[#allocation4 + $0x78] sm:$0x1] %vm1915_vm11, %v1872_v60  ;;  %v1844_v60 = vld [vmem:[#allocation3 + $0x79] sm:$0x1] }
 0x216   :  { %1567 = vst.msk [vmem:[#allocation3 + $0x81] sm:$0xff] %vm9603_vm10, %v1564_v36  ;;  %v1972_v36 = vld [vmem:[#allocation3 + $0x78] sm:$0x1]  ;;  %vm9615_vm10 = vmmov %vm9582_vm0 }
 0x217   :  { %v2254_v27 = vpop.permute.xlu0 %2253  ;;  %v2350_v6 = vld [vmem:[#allocation4 + $0x18] sm:$0xff] }
 0x218   :  { %v2130_v2 = vpop.permute.xlu1 %2129  ;;  %2300 = vst.msk [vmem:[#allocation4 + $0x40] sm:$0x1] %vm1915_vm11, %v2254_v27  ;;  %2574 = vmatprep.mubr.f32.mxu1 %v2350_v6 }
 0x219   :  { %2174 = vst.msk [vmem:[#allocation4 + $0x88] sm:$0x1] %vm1915_vm11, %v2130_v2  ;;  %2575 = vmatmul.mubr.f32.vlgmr.msra.gmra.mrb[8].mxu1 %v2349_v7  ;;  %v2102_v2 = vld [vmem:[#allocation3 + $0x8a] sm:$0x1] }
 0x21a   :  { %6526 = vmatpush3.bf16.msra.mxu1 %v7981_v48 }
 0x21b   :  { %v2000_v22 = vpop.permute.xlu0 %1999  ;;  %6528 = vmatprep.subr.bf16.mxu1 %v7997_v54  ;;  %v2070_v44 = vld [vmem:[#allocation3 + $0x89] sm:$0x1] }
 0x21c   :  { %v1874_v25 = vpop.permute.xlu1 %1873  ;;  %v2353_v26 = vld [vmem:[#allocation4 + $0x30] sm:$0x1]  ;;  %2045 = vst.msk [vmem:[#allocation4 + $0x58] sm:$0xff] %vm1913_vm9, %v2000_v22  ;;  %v2228_v61 = vld [vmem:[#allocation3 + $0x89] sm:$0x1] }
 0x21d   :  { %1919 = vst.msk [vmem:[#allocation4 + $0xa0] sm:$0xff] %vm1913_vm9, %v1874_v25  ;;  %2504 = vmatprep.mubr.f32.mxu0 %v2353_v26  ;;  %v2227_v28 = vld [vmem:[#allocation3 + $0x81] sm:$0xff] }
 0x21e   :  { %v2101_v30 = vld [vmem:[#allocation3 + $0x82] sm:$0xff]  ;;  %2267 = vrot.lane.b32.xlu0 %v2227_v28, %s7100_s9  ;;  %2505 = vmatmul.mubr.f32.gmra.mrb[10].mxu0 %v2352_v21  ;;  %2086 = vst.msk [vmem:[#allocation4 + $0x1c8] sm:$0x1] %vm987_vm7, %v2070_v44 }
 0x21f   :  { %v1973_v15 = vld [vmem:[#allocation3 + $0x80] sm:$0xff]  ;;  %6530 = vmatpush3.bf16.msra.mxu1 %v8006_v57  ;;  %2143 = vrot.lane.b32.xlu1 %v2101_v30, %s7100_s9  ;;  %v2196_v39 = vld [vmem:[#allocation3 + $0x88] sm:$0x1] }
 0x220   :  { %2211 = vst.msk [vmem:[#allocation4 + $0x158] sm:$0xff] %vm9605_vm13, %v1973_v15  ;;  %v2069_v38 = vld [vmem:[#allocation3 + $0x81] sm:$0xff]  ;;  %6179 = vmatprep.mubr.msk.f32.mxu0 %vm9607_vm15, %v2351_v35  ;;  %v2355_v50 = vld [vmem:[#allocation4 + $0x40] sm:$0x1]  ;;  %6532 = vmatprep.subr.bf16.mxu1 %v8022_v0  ;;  %v1942_v35 = vld [vmem:[#allocation3 + $0x7a] sm:$0x1] }
 0x221   :  { %2085 = vst.msk [vmem:[#allocation4 + $0x1a0] sm:$0xff] %vm9606_vm14, %v2069_v38  ;;  %v1813_v46 = vld [vmem:[#allocation3 + $0x80] sm:$0xff]  ;;  %v1814_v53 = vld [vmem:[#allocation3 + $0x88] sm:$0x1]  ;;  %2579 = vmatprep.mubr.f32.mxu1 %v2355_v50  ;;  %vm9617_vm13 = vmmov %vm9582_vm0 }
 0x222   :  { %2212 = vst.msk [vmem:[#allocation4 + $0x180] sm:$0x1] %vm987_vm7, %v2196_v39  ;;  %1830 = vst.msk [vmem:[#allocation4 + $0x208] sm:$0x1] %vm987_vm7, %v1814_v53  ;;  %v2323_v56 = vld [vmem:[#allocation3 + $0x82] sm:$0xff]  ;;  %2013 = vrot.lane.b32.xlu0 %v1972_v36, %s7100_s9  ;;  %2580 = vmatmul.mubr.f32.gmra.mrb[10].mxu1 %v2354_v31  ;;  %v2683_v39 = vld [vmem:[#allocation4 + $0x50] sm:$0xff] }
 0x223   :  { %1829 = vst.msk [vmem:[#allocation4 + $0x1e0] sm:$0xff] %vm9582_vm0, %v1813_v46  ;;  %6180 = vmatmul.mubr.msk.f32.vlgmr.msra.gmra.mrb[12].mxu0 %vm9610_vm3, %v2356_v51  ;;  %6534 = vmatpush3.bf16.msra.mxu1 %v8036_v5  ;;  %v2684_v27 = vld [vmem:[#allocation4 + $0x58] sm:$0xff]  ;;  %vm9618_vm14 = vmmov %vm9582_vm0 }
 0x224   :  { %2339 = vst.msk [vmem:[#allocation4 + $0x160] sm:$0xff] %vm9608_vm1, %v2323_v56  ;;  %6558 = vmatpush3.bf16.msra.mxu0 %v8046_v9  ;;  %1887 = vrot.lane.b32.xlu1 %v1844_v60, %s7100_s9  ;;  %vm9619_vm15 = vmmov %vm9582_vm0 }
 0x225   :  { %1959 = vst.msk [vmem:[#allocation4 + $0x1e8] sm:$0xff] %vm9609_vm12, %v2323_v56  ;;  %6536 = vmatprep.subr.bf16.mxu1 %v8061_v13  ;;  %2835 = vmatprep.mubr.f32.mxu1 %v2684_v27  ;;  %v2688_v56 = vld [vmem:[#allocation4 + $0x78] sm:$0x1]  ;;  %vm9620_vm1 = vmmov %vm9582_vm0 }
 0x226   :  { %6560 = vmatprep.subr.bf16.mxu0 %v8072_v18  ;;  %2269 = vrot.lane.b32.xlu0 %v2228_v61, %s7100_s9  ;;  %1958 = vst.msk [vmem:[#allocation4 + $0x1c0] sm:$0x1] %vm987_vm7, %v1942_v35  ;;  %vm9621_vm12 = vmmov %vm9582_vm0 }
 0x227   :  { %6538 = vmatpush3.bf16.msra.mxu1 %v8074_v20  ;;  %vm9622_vm3 = vmmov %vm9582_vm0 }
 0x228   :  { %6562 = vmatpush3.bf16.msra.mxu0 %v8083_v24  ;;  %6540 = vmatprep.subr.bf16.mxu1 %v8106_v42 }
 0x229   :  { %6564 = vmatprep.subr.bf16.mxu0 %v8117_v40  ;;  %2145 = vrot.lane.b32.xlu1 %v2102_v2, %s7100_s9 }
 0x22a   :  { %2015 = vrot.lane.b32.xlu0 %v1973_v15, %s7100_s9 }
 0x22b   :  { %6542 = vmatpush3.bf16.msra.mxu1 %v8119_v41 }
 0x22c   :  { %6566 = vmatpush3.bf16.msra.mxu0 %v8131_v49  ;;  %6544 = vmatprep.subr.bf16.mxu1 %v8144_v23 }
 0x22d   :  { %6568 = vmatprep.subr.bf16.mxu0 %v8146_v52  ;;  %1889 = vrot.lane.b32.xlu1 %v2227_v28, %s7100_s9  ;;  %v6141_v6 = vpop.f32.mrb[6].mxu0 }
 0x22e   :  { %v1670_v7 = vmul.f32 %v6141_v6, %v7958_v37  ;;  %v1653_v12 = vpop.f32.mrb[7].mxu0  ;;  %v2687_v6 = vld [vmem:[#allocation4 + $0x70] sm:$0xff] }
 0x22f   :  { %6546 = vmatpush3.bf16.msra.mxu1 %v8159_v55  ;;  %v1669_v14 = vmul.f32 %v7958_v37, %v1653_v12  ;;  %v2256_v21 = vpop.permute.xlu0 %2255 }
 0x230   :  { %6570 = vmatpush3.bf16.msra.mxu0 %v8169_v59  ;;  %v2132_v22 = vpop.permute.xlu1 %2131  ;;  %6548 = vmatprep.subr.bf16.mxu1 %v8180_v63  ;;  %v1679_v25 = vadd.f32 %v7979_v47, %v1670_v7  ;;  %2301 = vst.msk [vmem:[#allocation4 + $0x68] sm:$0xff] %vm1913_vm9, %v2256_v21  ;;  %v1974_v7 = vld [vmem:[#allocation3 + $0x88] sm:$0x1]  ;;  %v2324_v21 = vld [vmem:[#allocation3 + $0x8a] sm:$0x1] }
 0x231   :  { %2175 = vst.msk [vmem:[#allocation4 + $0xb0] sm:$0xff] %vm1913_vm9, %v2132_v22  ;;  %6572 = vmatprep.subr.bf16.mxu0 %v8182_v1  ;;  %v1678_v26 = vadd.f32 %v7979_v47, %v1669_v14 }
 0x232   :  { %v1681_v28 = vmax.f32 %v1679_v25, 0.0  ;;  %v2685_v25 = vld [vmem:[#allocation4 + $0x60] sm:$0xff]  ;;  %2340 = vst.msk [vmem:[#allocation4 + $0x188] sm:$0x1] %vm987_vm7, %v2324_v21  ;;  %v3370_v21 = vld [vmem:[%s9544_s4 + $0x18] sm:$0xff] }
 0x233   :  { %6550 = vmatpush3.bf16.msra.mxu1 %v8202_v8  ;;  %v1680_v30 = vmax.f32 %v1678_v26, 0.0  ;;  %v2002_v37 = vpop.permute.xlu0 %2001  ;;  %v1846_v26 = vld [vmem:[#allocation3 + $0x89] sm:$0x1] }
 0x234   :  { %6574 = vmatpush3.bf16.msra.mxu0 %v8204_v10  ;;  %v1876_v15 = vpop.permute.xlu1 %1875  ;;  %6552 = vmatprep.subr.bf16.mxu1 %v8217_v16  ;;  %1684 = vst.msk [vmem:[#allocation3 + $0x99] sm:$0x1] %vm987_vm7, %v1681_v28 }
 0x235   :  { %2046 = vst.msk [vmem:[#allocation4 + $0x80] sm:$0x1] %vm1915_vm11, %v2002_v37  ;;  %1920 = vst.msk [vmem:[#allocation4 + $0xc8] sm:$0x1] %vm1915_vm11, %v1876_v15  ;;  %6576 = vmatprep.subr.bf16.mxu0 %v8219_v17  ;;  %v2104_v37 = vld [vmem:[#allocation3 + $0x9a] sm:$0x1] }
 0x236   :  { %1683 = vst.msk [vmem:[#allocation3 + $0x91] sm:$0xff] %vm9611_vm4, %v1680_v30  ;;  %v2690_v30 = vld [vmem:[#allocation4 + $0x88] sm:$0x1]  ;;  %v2692_v15 = vld [vmem:[#allocation4 + $0x98] sm:$0x1]  ;;  %vm9623_vm4 = vmmov %vm9582_vm0 }
 0x237   :  { %6554 = vmatpush3.bf16.msra.mxu1 %v8238_v32  ;;  %v2258_v47 = vpop.permute.xlu0 %2257  ;;  %v2686_v38 = vld [vmem:[#allocation4 + $0x68] sm:$0xff] }
 0x238   :  { %6578 = vmatpush3.bf16.msra.mxu0 %v8240_v33  ;;  %v2134_v31 = vpop.permute.xlu1 %2133  ;;  %6588 = vmatprep.subr.bf16.mxu1 %v8267_v29  ;;  %2302 = vst.msk [vmem:[#allocation4 + $0x90] sm:$0x1] %vm1915_vm11, %v2258_v47 }
 0x239   :  { %2176 = vst.msk [vmem:[#allocation4 + $0xd8] sm:$0x1] %vm1915_vm11, %v2134_v31  ;;  %6580 = vmatprep.subr.bf16.mxu0 %v8255_v45  ;;  %2910 = vmatprep.mubr.f32.mxu0 %v2686_v38 }
 0x23a   :  { %2836 = vmatmul.mubr.f32.vlgmr.msra.gmra.mrb[12].mxu1 %v2683_v39 }
 0x23b   :  { %6590 = vmatpush3.bf16.msra.mxu1 %v8267_v29  ;;  %v2004_v44 = vpop.permute.xlu0 %2003  ;;  %v2072_v27 = vld [vmem:[#allocation3 + $0x99] sm:$0x1] }
 0x23c   :  { %6582 = vmatpush3.bf16.msra.mxu0 %v8272_v34  ;;  %v1878_v46 = vpop.permute.xlu1 %1877  ;;  %v2689_v50 = vld [vmem:[#allocation4 + $0x80] sm:$0x1]  ;;  %6592 = vmatprep.subr.bf16.mxu1 %v8381_v19  ;;  %2047 = vst.msk [vmem:[#allocation4 + $0xa8] sm:$0xff] %vm1913_vm9, %v2004_v44  ;;  %v2230_v28 = vld [vmem:[#allocation3 + $0x99] sm:$0x1] }
 0x23d   :  { %1921 = vst.msk [vmem:[#allocation4 + $0xf0] sm:$0xff] %vm1913_vm9, %v1878_v46  ;;  %2840 = vmatprep.mubr.f32.mxu1 %v2689_v50  ;;  %6584 = vmatprep.subr.bf16.mxu0 %v8286_v62  ;;  %v2229_v51 = vld [vmem:[#allocation3 + $0x91] sm:$0xff]  ;;  %v2106_v46 = vld [vmem:[#allocation3 + $0xaa] sm:$0x1]  ;;  %v3383_v50 = vld [vmem:[%s9544_s4 + $0x80] sm:$0xff] }
 0x23e   :  { %v2103_v53 = vld [vmem:[#allocation3 + $0x92] sm:$0xff]  ;;  %2271 = vrot.lane.b32.xlu0 %v2229_v51, %s7100_s9  ;;  %2841 = vmatmul.mubr.f32.gmra.mrb[14].mxu1 %v2688_v56  ;;  %2088 = vst.msk [vmem:[#allocation4 + $0x218] sm:$0x1] %vm987_vm7, %v2072_v27  ;;  %v3368_v56 = vld [vmem:[%s9544_s4 + $0x8] sm:$0xff] }
 0x23f   :  { %v1975_v36 = vld [vmem:[#allocation3 + $0x90] sm:$0xff]  ;;  %2147 = vrot.lane.b32.xlu1 %v2103_v53, %s7100_s9  ;;  %v2198_v61 = vld [vmem:[#allocation3 + $0x98] sm:$0x1]  ;;  %6594 = vmatpush3.bf16.msra.mxu1 %v8381_v19  ;;  %v3025_v27 = vld [vmem:[#allocation4 + $0xc8] sm:$0x1] }
 0x240   :  { %2213 = vst.msk [vmem:[#allocation4 + $0x1a8] sm:$0xff] %vm9612_vm5, %v1975_v36  ;;  %v2071_v60 = vld [vmem:[#allocation3 + $0x91] sm:$0xff]  ;;  %6586 = vmatpush3.bf16.msra.mxu0 %v8294_v3  ;;  %6198 = vmatprep.mubr.msk.f32.mxu1 %vm9615_vm10, %v2687_v6  ;;  %v2691_v14 = vld [vmem:[#allocation4 + $0x90] sm:$0x1]  ;;  %vm9624_vm5 = vmmov %vm9582_vm0 }
 0x241   :  { %2087 = vst.msk [vmem:[#allocation4 + $0x1f0] sm:$0xff] %vm9613_vm6, %v2071_v60  ;;  %v1815_v2 = vld [vmem:[#allocation3 + $0x90] sm:$0xff]  ;;  %6596 = vmatprep.subr.bf16.mxu1 %v8393_v58  ;;  %v1816_v22 = vld [vmem:[#allocation3 + $0x98] sm:$0x1]  ;;  %6604 = vmatprep.subr.bf16.mxu0 %v7971_v43  ;;  %vm9625_vm6 = vmmov %vm9582_vm0 }
 0x242   :  { %2214 = vst.msk [vmem:[#allocation4 + $0x1d0] sm:$0x1] %vm987_vm7, %v2198_v61  ;;  %v1945_v12 = vld [vmem:[#allocation3 + $0x92] sm:$0xff]  ;;  %2017 = vrot.lane.b32.xlu0 %v1974_v7, %s7100_s9  ;;  %1832 = vst.msk [vmem:[#allocation4 + $0x258] sm:$0x1] %vm987_vm7, %v1816_v22 }
 0x243   :  { %1831 = vst.msk [vmem:[#allocation4 + $0x230] sm:$0xff] %vm9614_vm8, %v1815_v2  ;;  %2911 = vmatmul.mubr.f32.vlgmr.msra.gmra.mrb[14].mxu0 %v2685_v25  ;;  %1891 = vrot.lane.b32.xlu1 %v1846_v26, %s7100_s9  ;;  %v3021_v43 = vld [vmem:[#allocation4 + $0xa8] sm:$0xff]  ;;  %v3386_v60 = vld [vmem:[%s9544_s4 + $0x98] sm:$0xff]  ;;  %v3022_v22 = vld [vmem:[#allocation4 + $0xb0] sm:$0xff] }
 0x244   :  { %1961 = vst.msk [vmem:[#allocation4 + $0x238] sm:$0xff] %vm9616_vm2, %v1945_v12  ;;  %2915 = vmatprep.mubr.f32.mxu0 %v2691_v14  ;;  %6598 = vmatpush3.bf16.msra.mxu1 %v8393_v58  ;;  %v1946_v61 = vld [vmem:[#allocation3 + $0x9a] sm:$0x1]  ;;  %v3369_v14 = vld [vmem:[%s9544_s4 + $0x10] sm:$0xff]  ;;  %vm9626_vm8 = vmmov %vm9582_vm0 }
 0x245   :  { %2341 = vst.msk [vmem:[#allocation4 + $0x1b0] sm:$0xff] %vm9617_vm13, %v1945_v12  ;;  %6606 = vmatpush3.bf16.msra.mxu0 %v7981_v48  ;;  %6600 = vmatprep.subr.bf16.mxu1 %v8406_v11  ;;  %v2234_v48 = vld [vmem:[#allocation3 + $0xb9] sm:$0x1]  ;;  %v2326_v25 = vld [vmem:[#allocation3 + $0x9a] sm:$0x1]  ;;  %vm9627_vm10 = vmmov %vm9582_vm0 }
 0x246   :  { %6608 = vmatprep.subr.bf16.mxu0 %v7997_v54  ;;  %2273 = vrot.lane.b32.xlu0 %v2230_v28, %s7100_s9  ;;  %v5171_v54 = vld [vmem:[%s9542_s2] ss:$0 sm:$0xff]  ;;  %1962 = vst.msk [vmem:[#allocation4 + $0x260] sm:$0x1] %vm987_vm7, %v1946_v61  ;;  %2342 = vst.msk [vmem:[#allocation4 + $0x1d8] sm:$0x1] %vm987_vm7, %v2326_v25 }
 0x247   :  { %2916 = vmatmul.mubr.f32.gmra.mrb[16].mxu0 %v2690_v30  ;;  %2149 = vrot.lane.b32.xlu1 %v2104_v37, %s7100_s9  ;;  %v3415_v28 = vld [vmem:[%s9544_s4 + $0x180] sm:$0xff]  ;;  %v3416_v30 = vld [vmem:[%s9544_s4 + $0x188] sm:$0xff]  ;;  %v3027_v37 = vld [vmem:[#allocation4 + $0xd8] sm:$0x1] }
 0x248   :  { %6602 = vmatpush3.bf16.msra.mxu1 %v8406_v11  ;;  %3172 = vmatprep.mubr.f32.mxu0 %v3021_v43  ;;  %v2233_v43 = vld [vmem:[#allocation3 + $0xb1] sm:$0xff]  ;;  %vm9628_vm2 = vmmov %vm9582_vm0 }
 0x249   :  { %6610 = vmatpush3.bf16.msra.mxu0 %v8006_v57  ;;  %6636 = vmatprep.subr.bf16.mxu1 %v8034_v4  ;;  %v5172_v4 = vld [vmem:[%s9543_s3] ss:$0 sm:$0xff]  ;;  %vm9629_vm13 = vmmov %vm9582_vm0 }
 0x24a   :  { %6612 = vmatprep.subr.bf16.mxu0 %v8022_v0  ;;  %2019 = vrot.lane.b32.xlu0 %v1975_v36, %s7100_s9  ;;  %v3367_v36 = vld [vmem:[%s9544_s4] sm:$0xff] }
 0x24b   :  { %6199 = vmatmul.mubr.msk.f32.vlgmr.msra.gmra.mrb[16].mxu1 %vm9618_vm14, %v2692_v15  ;;  %1893 = vrot.lane.b32.xlu1 %v2229_v51, %s7100_s9  ;;  %v8617_v6 = vpack.c.bf16 %v3368_v56, %v3367_v36  ;;  %v8647_v15 = vpack.c.bf16 %v3370_v21, %v3369_v14  ;;  %v3422_v36 = vld [vmem:[%s9544_s4 + $0x1b8] sm:$0xff]  ;;  %v3395_v21 = vld [vmem:[%s9544_s4 + $0xe0] sm:$0xff]  ;;  %vm9630_vm14 = vmmov %vm9582_vm0 }
 0x24c   :  { %6638 = vmatpush3.bf16.msra.mxu1 %v8046_v9  ;;  %v3406_v14 = vld [vmem:[%s9544_s4 + $0x138] sm:$0xff] }
 0x24d   :  { %6614 = vmatpush3.bf16.msra.mxu0 %v8036_v5  ;;  %6640 = vmatprep.subr.bf16.mxu1 %v8072_v18  ;;  %v6162_v57 = vpop.f32.mrb[6].mxu1 }
 0x24e   :  { %6616 = vmatprep.subr.bf16.mxu0 %v8061_v13  ;;  %v1786_v0 = vmul.f32 %v6162_v57, %v5171_v54  ;;  %v1769_v35 = vpop.f32.mrb[7].mxu1  ;;  %v3372_v57 = vld [vmem:[%s9544_s4 + $0x28] sm:$0xff] }
 0x24f   :  { %2281 = vrot.lane.b32.xlu1 %v2234_v48, %s7100_s9  ;;  %v1785_v5 = vmul.f32 %v5171_v54, %v1769_v35  ;;  %v2260_v9 = vpop.permute.xlu0 %2259  ;;  %v3371_v54 = vld [vmem:[%s9544_s4 + $0x20] sm:$0xff]  ;;  %v3389_v35 = vld [vmem:[%s9544_s4 + $0xb0] sm:$0xff] }
 0x250   :  { %6642 = vmatpush3.bf16.msra.mxu1 %v8083_v24  ;;  %v2136_v18 = vpop.permute.xlu1 %2135  ;;  %v1795_v47 = vadd.f32 %v5172_v4, %v1786_v0  ;;  %2303 = vst.msk [vmem:[#allocation4 + $0xb8] sm:$0xff] %vm1913_vm9, %v2260_v9  ;;  %v3399_v0 = vld [vmem:[%s9544_s4 + $0x100] sm:$0xff] }
 0x251   :  { %6618 = vmatpush3.bf16.msra.mxu0 %v8074_v20  ;;  %2177 = vst.msk [vmem:[#allocation4 + $0x100] sm:$0xff] %vm1913_vm9, %v2136_v18  ;;  %6644 = vmatprep.subr.bf16.mxu1 %v8117_v40  ;;  %v1794_v13 = vadd.f32 %v5172_v4, %v1785_v5  ;;  %v1944_v20 = vld [vmem:[#allocation3 + $0x8a] sm:$0x1]  ;;  %v8663_v4 = vpack.c.bf16 %v3416_v30, %v3415_v28  ;;  %v3390_v5 = vld [vmem:[%s9544_s4 + $0xb8] sm:$0xff]  ;;  %v3417_v18 = vld [vmem:[%s9544_s4 + $0x190] sm:$0xff] }
 0x252   :  { %6620 = vmatprep.subr.bf16.mxu0 %v8106_v42  ;;  %v1797_v31 = vmax.f32 %v1795_v47, 0.0  ;;  %1960 = vst.msk [vmem:[#allocation4 + $0x210] sm:$0x1] %vm987_vm7, %v1944_v20  ;;  %v3418_v47 = vld [vmem:[%s9544_s4 + $0x198] sm:$0xff]  ;;  %v8691_v20 = vpack.c.bf16 %v3390_v5, %v3389_v35  ;;  %v3425_v5 = vld [vmem:[%s9544_s4 + $0x1d0] sm:$0xff] }
 0x253   :  { %v1796_v38 = vmax.f32 %v1794_v13, 0.0  ;;  %v2006_v24 = vpop.permute.xlu0 %2005  ;;  %v3398_v35 = vld [vmem:[%s9544_s4 + $0xf8] sm:$0xff] }
 0x254   :  { %6646 = vmatpush3.bf16.msra.mxu1 %v8131_v49  ;;  %v1880_v39 = vpop.permute.xlu1 %1879  ;;  %1800 = vst.msk [vmem:[#allocation3 + $0xa9] sm:$0x1] %vm987_vm7, %v1797_v31  ;;  %v8682_v31 = vpack.c.bf16 %v3372_v57, %v3371_v54  ;;  %v3407_v54 = vld [vmem:[%s9544_s4 + $0x140] sm:$0xff] }
 0x255   :  { %6622 = vmatpush3.bf16.msra.mxu0 %v8119_v41  ;;  %2048 = vst.msk [vmem:[#allocation4 + $0xd0] sm:$0x1] %vm1915_vm11, %v2006_v24  ;;  %1922 = vst.msk [vmem:[#allocation4 + $0x118] sm:$0x1] %vm1915_vm11, %v1880_v39  ;;  %6648 = vmatprep.subr.bf16.mxu1 %v8146_v52  ;;  %v3029_v24 = vld [vmem:[#allocation4 + $0xe8] sm:$0x1] }
 0x256   :  { %1799 = vst.msk [vmem:[#allocation3 + $0xa1] sm:$0xff] %vm9619_vm15, %v1796_v38  ;;  %6624 = vmatprep.subr.bf16.mxu0 %v8144_v23  ;;  %v3373_v38 = vld [vmem:[%s9544_s4 + $0x30] sm:$0xff]  ;;  %vm9633_vm15 = vmmov %vm9582_vm0 }
 0x257   :  { %v2262_v42 = vpop.permute.xlu0 %2261  ;;  %v3023_v40 = vld [vmem:[#allocation4 + $0xb8] sm:$0xff] }
 0x258   :  { %6650 = vmatpush3.bf16.msra.mxu1 %v8169_v59  ;;  %v2138_v49 = vpop.permute.xlu1 %2137  ;;  %2304 = vst.msk [vmem:[#allocation4 + $0xe0] sm:$0x1] %vm1915_vm11, %v2262_v42  ;;  %3247 = vmatprep.mubr.f32.mxu1 %v3023_v40  ;;  %v3374_v42 = vld [vmem:[%s9544_s4 + $0x38] sm:$0xff]  ;;  %v3401_v40 = vld [vmem:[%s9544_s4 + $0x110] sm:$0xff] }
 0x259   :  { %6626 = vmatpush3.bf16.msra.mxu0 %v8159_v55  ;;  %6652 = vmatprep.subr.bf16.mxu1 %v8182_v1  ;;  %2178 = vst.msk [vmem:[#allocation4 + $0x128] sm:$0x1] %vm1915_vm11, %v2138_v49  ;;  %v1976_v55 = vld [vmem:[#allocation3 + $0x98] sm:$0x1]  ;;  %v8700_v49 = vpack.c.bf16 %v3418_v47, %v3417_v18 }
 0x25a   :  { %6628 = vmatprep.subr.bf16.mxu0 %v8180_v63 }
 0x25b   :  { %v2008_v41 = vpop.permute.xlu0 %2007  ;;  %v2232_v53 = vld [vmem:[#allocation3 + $0xa9] sm:$0x1] }
 0x25c   :  { %6654 = vmatpush3.bf16.msra.mxu1 %v8204_v10  ;;  %v1882_v23 = vpop.permute.xlu1 %1881  ;;  %2049 = vst.msk [vmem:[#allocation4 + $0xf8] sm:$0xff] %vm1913_vm9, %v2008_v41  ;;  %v3391_v41 = vld [vmem:[%s9544_s4 + $0xc0] sm:$0xff] }
 0x25d   :  { %6630 = vmatpush3.bf16.msra.mxu0 %v8202_v8  ;;  %6656 = vmatprep.subr.bf16.mxu1 %v8219_v17  ;;  %v2231_v52 = vld [vmem:[#allocation3 + $0xa1] sm:$0xff]  ;;  %1923 = vst.msk [vmem:[#allocation4 + $0x140] sm:$0xff] %vm1913_vm9, %v1882_v23  ;;  %v2074_v17 = vld [vmem:[#allocation3 + $0xa9] sm:$0x1] }
 0x25e   :  { %6632 = vmatprep.subr.bf16.mxu0 %v8217_v16  ;;  %2275 = vrot.lane.b32.xlu0 %v2231_v52, %s7100_s9  ;;  %v2105_v59 = vld [vmem:[#allocation3 + $0xa2] sm:$0xff]  ;;  %2090 = vst.msk [vmem:[#allocation4 + $0x268] sm:$0x1] %vm987_vm7, %v2074_v17  ;;  %v2201_v16 = vld [vmem:[#allocation3 + $0xb0] sm:$0xff] }
 0x25f   :  { %v2199_v63 = vld [vmem:[#allocation3 + $0xa0] sm:$0xff]  ;;  %v2200_v1 = vld [vmem:[#allocation3 + $0xa8] sm:$0x1]  ;;  %2151 = vrot.lane.b32.xlu1 %v2105_v59, %s7100_s9  ;;  %v2264_v44 = vpop.permute.xlu0 %2263  ;;  %2217 = vst.msk [vmem:[#allocation4 + $0x248] sm:$0xff] %vm9622_vm3, %v2201_v16  ;;  %vm9636_vm3 = vmmov %vm9582_vm0 }
 0x260   :  { %2215 = vst.msk [vmem:[#allocation4 + $0x1f8] sm:$0xff] %vm9582_vm0, %v2199_v63  ;;  %v2073_v8 = vld [vmem:[#allocation3 + $0xa1] sm:$0xff]  ;;  %6658 = vmatpush3.bf16.msra.mxu1 %v8240_v33  ;;  %v3028_v26 = vld [vmem:[#allocation4 + $0xe0] sm:$0x1] }
 0x261   :  { %2216 = vst.msk [vmem:[#allocation4 + $0x220] sm:$0x1] %vm987_vm7, %v2200_v1  ;;  %v2327_v10 = vld [vmem:[#allocation3 + $0xa2] sm:$0xff]  ;;  %6634 = vmatpush3.bf16.msra.mxu0 %v8238_v32  ;;  %6660 = vmatprep.subr.bf16.mxu1 %v8255_v45  ;;  %v3026_v45 = vld [vmem:[#allocation4 + $0xd0] sm:$0x1] }
 0x262   :  { %2089 = vst.msk [vmem:[#allocation4 + $0x240] sm:$0xff] %vm9620_vm1, %v2073_v8  ;;  %6668 = vmatprep.subr.bf16.mxu0 %v8267_v29  ;;  %2021 = vrot.lane.b32.xlu0 %v1976_v55, %s7100_s9  ;;  %v3020_v33 = vld [vmem:[#allocation4 + $0xa0] sm:$0xff]  ;;  %v3384_v32 = vld [vmem:[%s9544_s4 + $0x88] sm:$0xff]  ;;  %v8720_v8 = vpack.c.bf16 %v3374_v42, %v3373_v38  ;;  %v3382_v42 = vld [vmem:[%s9544_s4 + $0x78] sm:$0xff] }
 0x263   :  { %2343 = vst.msk [vmem:[#allocation4 + $0x200] sm:$0xff] %vm9621_vm12, %v2327_v10  ;;  %2153 = vrot.lane.b32.xlu1 %v2106_v46, %s7100_s9  ;;  %v2010_v51 = vpop.permute.xlu0 %2009  ;;  %v1977_v2 = vld [vmem:[#allocation3 + $0xa0] sm:$0xff]  ;;  %v3358_v9 = vld [vmem:[#allocation4 + $0xf8] sm:$0xff]  ;;  %v1978_v13 = vld [vmem:[#allocation3 + $0xa8] sm:$0x1] }
 0x264   :  { %2305 = vst.msk [vmem:[#allocation4 + $0x108] sm:$0xff] %vm1913_vm9, %v2264_v44  ;;  %3173 = vmatmul.mubr.f32.vlgmr.msra.gmra.mrb[18].mxu0 %v3020_v33  ;;  %6662 = vmatpush3.bf16.msra.mxu1 %v8272_v34  ;;  %v8606_v34 = vpack.c.bf16 %v3384_v32, %v3383_v50  ;;  %v3392_v23 = vld [vmem:[%s9544_s4 + $0xc8] sm:$0xff]  ;;  %v3419_v52 = vld [vmem:[%s9544_s4 + $0x1a0] sm:$0xff]  ;;  %v1848_v50 = vld [vmem:[#allocation3 + $0x99] sm:$0x1] }
 0x265   :  { %3177 = vmatprep.mubr.f32.mxu0 %v3026_v45  ;;  %6670 = vmatpush3.bf16.msra.mxu0 %v8267_v29  ;;  %2050 = vst.msk [vmem:[#allocation4 + $0x120] sm:$0x1] %vm1915_vm11, %v2010_v51  ;;  %v3385_v29 = vld [vmem:[%s9544_s4 + $0x90] sm:$0xff]  ;;  %v3420_v55 = vld [vmem:[%s9544_s4 + $0x1a8] sm:$0xff]  ;;  %v3375_v10 = vld [vmem:[%s9544_s4 + $0x40] sm:$0xff]  ;;  %v8731_v44 = vpack.c.bf16 %v3392_v23, %v3391_v41 }
 0x266   :  { %6664 = vmatprep.subr.bf16.mxu1 %v8286_v62  ;;  %6672 = vmatprep.subr.bf16.mxu0 %v8381_v19  ;;  %v3024_v62 = vld [vmem:[#allocation4 + $0xc0] sm:$0xff]  ;;  %v8621_v12 = vpack.c.bf16 %v3386_v60, %v3385_v29  ;;  %v3376_v46 = vld [vmem:[%s9544_s4 + $0x48] sm:$0xff]  ;;  %v8743_v32 = vpack.c.bf16 %v3420_v55, %v3419_v52  ;;  %v3393_v45 = vld [vmem:[%s9544_s4 + $0xd0] sm:$0xff] }
 0x267   :  { %2277 = vrot.lane.b32.xlu0 %v2232_v53, %s7100_s9  ;;  %v2266_v7 = vpop.permute.xlu0 %2265  ;;  %v3403_v16 = vld [vmem:[%s9544_s4 + $0x120] sm:$0xff]  ;;  %v3404_v33 = vld [vmem:[%s9544_s4 + $0x128] sm:$0xff]  ;;  %v3394_v51 = vld [vmem:[%s9544_s4 + $0xd8] sm:$0xff]  ;;  %v8759_v29 = vpack.c.bf16 %v3376_v46, %v3375_v10 }
 0x268   :  { %3178 = vmatmul.mubr.f32.gmra.mrb[20].mxu0 %v3025_v27  ;;  %6666 = vmatpush3.bf16.msra.mxu1 %v8294_v3  ;;  %v3387_v3 = vld [vmem:[%s9544_s4 + $0xa0] sm:$0xff]  ;;  %2306 = vst.msk [vmem:[#allocation4 + $0x130] sm:$0x1] %vm1915_vm11, %v2266_v7  ;;  %v3421_v53 = vld [vmem:[%s9544_s4 + $0x1b0] sm:$0xff]  ;;  %v8764_v60 = vpack.c.bf16 %v3404_v33, %v3403_v16  ;;  %v8766_v61 = vpack.c.bf16 %v3394_v51, %v3393_v45  ;;  %v3410_v41 = vld [vmem:[%s9544_s4 + $0x158] sm:$0xff] }
 0x269   :  { %6674 = vmatpush3.bf16.msra.mxu0 %v8381_v19  ;;  %6217 = vmatprep.mubr.msk.f32.mxu0 %vm9623_vm4, %v3024_v62  ;;  %v3388_v19 = vld [vmem:[%s9544_s4 + $0xa8] sm:$0xff]  ;;  %v3377_v27 = vld [vmem:[%s9544_s4 + $0x50] sm:$0xff]  ;;  %v3378_v62 = vld [vmem:[%s9544_s4 + $0x58] sm:$0xff]  ;;  %v8778_v7 = vpack.c.bf16 %v3422_v36, %v3421_v53 }
 0x26a   :  { %6676 = vmatprep.subr.bf16.mxu0 %v8393_v58  ;;  %6684 = vmatprep.subr.bf16.mxu1 %v8606_v34  ;;  %v8651_v48 = vpack.c.bf16 %v3388_v19, %v3387_v3  ;;  %v3396_v3 = vld [vmem:[%s9544_s4 + $0xe8] sm:$0xff]  ;;  %v3431_v23 = vld [vmem:[%s9544_s4 + $0x200] sm:$0xff]  ;;  %v3433_v45 = vld [vmem:[%s9544_s4 + $0x210] sm:$0xff] }
 0x26b   :  { %3248 = vmatmul.mubr.f32.vlgmr.msra.gmra.mrb[18].mxu1 %v3022_v22  ;;  %2023 = vrot.lane.b32.xlu0 %v1977_v2, %s7100_s9  ;;  %v3360_v1 = vld [vmem:[#allocation4 + $0x108] sm:$0xff]  ;;  %v3405_v2 = vld [vmem:[%s9544_s4 + $0x130] sm:$0xff]  ;;  %v3423_v22 = vld [vmem:[%s9544_s4 + $0x1c0] sm:$0xff]  ;;  %v8803_v30 = vpack.c.bf16 %v3396_v3, %v3395_v21 }
 0x26c   :  { %3252 = vmatprep.mubr.f32.mxu1 %v3028_v26  ;;  %6686 = vmatpush3.bf16.msra.mxu1 %v8617_v6  ;;  %v3424_v19 = vld [vmem:[%s9544_s4 + $0x1c8] sm:$0xff]  ;;  %v8796_v26 = vpack.c.bf16 %v3378_v62, %v3377_v27  ;;  %v8801_v28 = vpack.c.bf16 %v3406_v14, %v3405_v2  ;;  %v3427_v55 = vld [vmem:[%s9544_s4 + $0x1e0] sm:$0xff]  ;;  %v3434_v51 = vld [vmem:[%s9544_s4 + $0x218] sm:$0xff] }
 0x26d   :  { %6678 = vmatpush3.bf16.msra.mxu0 %v8393_v58  ;;  %6688 = vmatprep.subr.bf16.mxu1 %v8621_v12  ;;  %v3400_v58 = vld [vmem:[%s9544_s4 + $0x108] sm:$0xff]  ;;  %v8815_v57 = vpack.c.bf16 %v3424_v19, %v3423_v22  ;;  %v3411_v16 = vld [vmem:[%s9544_s4 + $0x160] sm:$0xff]  ;;  %v3429_v53 = vld [vmem:[%s9544_s4 + $0x1f0] sm:$0xff]  ;;  %v8905_v27 = vpack.c.bf16 %v3434_v51, %v3433_v45 }
 0x26e   :  { %6680 = vmatprep.subr.bf16.mxu0 %v8406_v11  ;;  %v8689_v39 = vpack.c.bf16 %v3400_v58, %v3399_v0  ;;  %v3408_v0 = vld [vmem:[%s9544_s4 + $0x148] sm:$0xff]  ;;  %v3397_v58 = vld [vmem:[%s9544_s4 + $0xf0] sm:$0xff]  ;;  %v3430_v36 = vld [vmem:[%s9544_s4 + $0x1f8] sm:$0xff] }
 0x26f   :  { %3253 = vmatmul.mubr.f32.gmra.mrb[20].mxu1 %v3027_v37  ;;  %2279 = vrot.lane.b32.xlu0 %v2233_v43, %s7100_s9  ;;  %v3379_v37 = vld [vmem:[%s9544_s4 + $0x60] sm:$0xff]  ;;  %v3380_v43 = vld [vmem:[%s9544_s4 + $0x68] sm:$0xff]  ;;  %v8840_v38 = vpack.c.bf16 %v3398_v35, %v3397_v58  ;;  %v3413_v62 = vld [vmem:[%s9544_s4 + $0x170] sm:$0xff]  ;;  %v8914_v21 = vpack.c.bf16 %v3430_v36, %v3429_v53 }
 0x270   :  { %6690 = vmatpush3.bf16.msra.mxu1 %v8647_v15  ;;  %3509 = vmatprep.mubr.f32.mxu1 %v3358_v9  ;;  %v3426_v9 = vld [vmem:[%s9544_s4 + $0x1d8] sm:$0xff]  ;;  %v8833_v47 = vpack.c.bf16 %v3380_v43, %v3379_v37  ;;  %v3432_v52 = vld [vmem:[%s9544_s4 + $0x208] sm:$0xff]  ;;  %v3357_v14 = vld [vmem:[#allocation4 + $0xf0] sm:$0xff] }
 0x271   :  { %6682 = vmatpush3.bf16.msra.mxu0 %v8406_v11  ;;  %6692 = vmatprep.subr.bf16.mxu1 %v8651_v48  ;;  %v3402_v11 = vld [vmem:[%s9544_s4 + $0x118] sm:$0xff]  ;;  %v8876_v46 = vpack.c.bf16 %v3432_v52, %v3431_v23  ;;  %v3435_v3 = vld [vmem:[%s9544_s4 + $0x220] sm:$0xff]  ;;  %v3436_v22 = vld [vmem:[%s9544_s4 + $0x228] sm:$0xff] }
 0x272   :  { %6716 = vmatprep.subr.bf16.mxu0 %v8663_v4  ;;  %v8729_v17 = vpack.c.bf16 %v3402_v11, %v3401_v40  ;;  %v3409_v40 = vld [vmem:[%s9544_s4 + $0x150] sm:$0xff]  ;;  %v8852_v11 = vpack.c.bf16 %v3426_v9, %v3425_v5  ;;  %v3414_v2 = vld [vmem:[%s9544_s4 + $0x178] sm:$0xff]  ;;  %v3363_v19 = vld [vmem:[#allocation4 + $0x120] sm:$0x1]  ;;  %v8927_v37 = vpack.c.bf16 %v3436_v22, %v3435_v3 }
 0x273   :  { %2025 = vrot.lane.b32.xlu0 %v1978_v13, %s7100_s9  ;;  %v2140_v59 = vpop.permute.xlu1 %2139  ;;  %v8838_v13 = vpack.c.bf16 %v3408_v0, %v3407_v54  ;;  %v8874_v10 = vpack.c.bf16 %v3410_v41, %v3409_v40  ;;  %v3361_v43 = vld [vmem:[#allocation4 + $0x110] sm:$0xff]  ;;  %v3362_v54 = vld [vmem:[#allocation4 + $0x118] sm:$0x1]  ;;  %v3364_v41 = vld [vmem:[#allocation4 + $0x128] sm:$0x1] }
 0x274   :  { %v2012_v63 = vpop.permute.xlu0 %2011  ;;  %6218 = vmatmul.mubr.msk.f32.vlgmr.msra.gmra.mrb[22].mxu0 %vm9624_vm5, %v3029_v24  ;;  %6694 = vmatpush3.bf16.msra.mxu1 %v8682_v31  ;;  %2179 = vst.msk [vmem:[#allocation4 + $0x150] sm:$0xff] %vm1913_vm9, %v2140_v59  ;;  %v3381_v24 = vld [vmem:[%s9544_s4 + $0x70] sm:$0xff]  ;;  %v3428_v59 = vld [vmem:[%s9544_s4 + $0x1e8] sm:$0xff]  ;;  %v3438_v58 = vld [vmem:[%s9544_s4 + $0x238] sm:$0xff] }
 0x275   :  { %2051 = vst.msk [vmem:[#allocation4 + $0x148] sm:$0xff] %vm1913_vm9, %v2012_v63  ;;  %6718 = vmatpush3.bf16.msra.mxu0 %v8689_v39  ;;  %6696 = vmatprep.subr.bf16.mxu1 %v8691_v20  ;;  %v8870_v63 = vpack.c.bf16 %v3382_v42, %v3381_v24  ;;  %v8883_v33 = vpack.c.bf16 %v3428_v59, %v3427_v55  ;;  %v3437_v0 = vld [vmem:[%s9544_s4 + $0x230] sm:$0xff]  ;;  %v2328_v24 = vld [vmem:[#allocation3 + $0xaa] sm:$0x1]  ;;  %v3359_v42 = vld [vmem:[#allocation4 + $0x100] sm:$0xff] }
 0x276   :  { %6720 = vmatprep.subr.bf16.mxu0 %v8700_v49  ;;  %3584 = vmatprep.mubr.f32.mxu0 %v3360_v1  ;;  %v2202_v1 = vld [vmem:[#allocation3 + $0xb8] sm:$0x1]  ;;  %v3365_v9 = vld [vmem:[#allocation4 + $0x130] sm:$0x1]  ;;  %2344 = vst.msk [vmem:[#allocation4 + $0x228] sm:$0x1] %vm987_vm7, %v2328_v24  ;;  %vm9634_vm1 = vmmov %vm9582_vm0 }
 0x277   :  { %1895 = vrot.lane.b32.xlu0 %v1848_v50, %s7100_s9  ;;  %v1884_v56 = vpop.permute.xlu1 %1883  ;;  %2218 = vst.msk [vmem:[#allocation4 + $0x270] sm:$0x1] %vm987_vm7, %v2202_v1  ;;  %v3412_v50 = vld [vmem:[%s9544_s4 + $0x168] sm:$0xff]  ;;  %v3366_v55 = vld [vmem:[#allocation4 + $0x138] sm:$0x1]  ;;  %v3694_v36 = vld [vmem:[#allocation4 + $0x140] sm:$0xff] }
 0x278   :  { %6698 = vmatpush3.bf16.msra.mxu1 %v8720_v8  ;;  %1924 = vst.msk [vmem:[#allocation4 + $0x168] sm:$0x1] %vm1915_vm11, %v1884_v56  ;;  %v8903_v56 = vpack.c.bf16 %v3412_v50, %v3411_v16  ;;  %v3698_v22 = vld [vmem:[#allocation4 + $0x160] sm:$0xff]  ;;  %vm9635_vm12 = vmmov %vm9582_vm0 }
 0x279   :  { %6722 = vmatpush3.bf16.msra.mxu0 %v8729_v17  ;;  %6700 = vmatprep.subr.bf16.mxu1 %v8731_v44  ;;  %vm9637_vm4 = vmmov %vm9582_vm0 }
 0x27a   :  { %6724 = vmatprep.subr.bf16.mxu0 %v8743_v32  ;;  %vm9638_vm5 = vmmov %vm9582_vm0 }
 0x27b   :  { %v2142_v25 = vpop.permute.xlu1 %2141 }
 0x27c   :  { %6702 = vmatpush3.bf16.msra.mxu1 %v8759_v29  ;;  %2180 = vst.msk [vmem:[#allocation4 + $0x178] sm:$0x1] %vm1915_vm11, %v2142_v25  ;;  %v8925_v25 = vpack.c.bf16 %v3414_v2, %v3413_v62  ;;  %v3695_v52 = vld [vmem:[#allocation4 + $0x148] sm:$0xff] }
 0x27d   :  { %6726 = vmatpush3.bf16.msra.mxu0 %v8764_v60  ;;  %6704 = vmatprep.subr.bf16.mxu1 %v8766_v61 }
 0x27e   :  { %6728 = vmatprep.subr.bf16.mxu0 %v8778_v7 }
 0x27f   :  { %v1886_v18 = vpop.permute.xlu1 %1885  ;;  %v3699_v3 = vld [vmem:[#allocation4 + $0x168] sm:$0x1] }
 0x280   :  { %6706 = vmatpush3.bf16.msra.mxu1 %v8796_v26  ;;  %1925 = vst.msk [vmem:[#allocation4 + $0x190] sm:$0xff] %vm1913_vm9, %v1886_v18  ;;  %v8943_v18 = vpack.c.bf16 %v3438_v58, %v3437_v0  ;;  %v2329_v0 = vld [vmem:[#allocation3 + $0xb2] sm:$0xff] }
 0x281   :  { %6730 = vmatpush3.bf16.msra.mxu0 %v8801_v28  ;;  %6708 = vmatprep.subr.bf16.mxu1 %v8803_v30  ;;  %2345 = vst.msk [vmem:[#allocation4 + $0x250] sm:$0xff] %vm9628_vm2, %v2329_v0  ;;  %vm9642_vm2 = vmmov %vm9582_vm0 }
 0x282   :  { %6732 = vmatprep.subr.bf16.mxu0 %v8815_v57 }
 0x284   :  { %6710 = vmatpush3.bf16.msra.mxu1 %v8833_v47 }
 0x285   :  { %6734 = vmatpush3.bf16.msra.mxu0 %v8838_v13  ;;  %6712 = vmatprep.subr.bf16.mxu1 %v8840_v38 }
 0x286   :  { %6736 = vmatprep.subr.bf16.mxu0 %v8852_v11 }
 0x288   :  { %6714 = vmatpush3.bf16.msra.mxu1 %v8870_v63 }
 0x289   :  { %6738 = vmatpush3.bf16.msra.mxu0 %v8874_v10  ;;  %6748 = vmatprep.subr.bf16.mxu1 %v8876_v46 }
 0x28a   :  { %6740 = vmatprep.subr.bf16.mxu0 %v8883_v33 }
 0x28b   :  { %3510 = vmatmul.mubr.f32.vlgmr.msra.gmra.mrb[22].mxu1 %v3357_v14 }
 0x28c   :  { %3514 = vmatprep.mubr.f32.mxu1 %v3363_v19  ;;  %6750 = vmatpush3.bf16.msra.mxu1 %v8876_v46 }
 0x28d   :  { %6742 = vmatpush3.bf16.msra.mxu0 %v8903_v56  ;;  %6752 = vmatprep.subr.bf16.mxu1 %v8905_v27 }
 0x28e   :  { %6744 = vmatprep.subr.bf16.mxu0 %v8914_v21 }
 0x28f   :  { %3515 = vmatmul.mubr.f32.gmra.mrb[24].mxu1 %v3362_v54  ;;  %v3696_v54 = vld [vmem:[#allocation4 + $0x150] sm:$0xff] }
 0x290   :  { %6754 = vmatpush3.bf16.msra.mxu1 %v8905_v27  ;;  %v2268_v35 = vpop.permute.xlu0 %2267  ;;  %6236 = vmatprep.mubr.msk.f32.mxu1 %vm9625_vm6, %v3361_v43  ;;  %vm9639_vm6 = vmmov %vm9582_vm0 }
 0x291   :  { %6746 = vmatpush3.bf16.msra.mxu0 %v8925_v25  ;;  %2307 = vst.msk [vmem:[#allocation4 + $0x158] sm:$0xff] %vm1913_vm9, %v2268_v35  ;;  %v2144_v5 = vpop.permute.xlu1 %2143  ;;  %6756 = vmatprep.subr.bf16.mxu1 %v8927_v37  ;;  %v2330_v35 = vld [vmem:[#allocation3 + $0xba] sm:$0x1] }
 0x292   :  { %2181 = vst.msk [vmem:[#allocation4 + $0x1a0] sm:$0xff] %vm1913_vm9, %v2144_v5  ;;  %6764 = vmatprep.subr.bf16.mxu0 %v8606_v34  ;;  %v3701_v5 = vld [vmem:[#allocation4 + $0x178] sm:$0x1] }
 0x293   :  { %2346 = vst.msk [vmem:[#allocation4 + $0x278] sm:$0x1] %vm987_vm7, %v2330_v35  ;;  %v4430_v35 = vld [vmem:[%s9544_s4 + $0x1a0] sm:$0xff] }
 0x294   :  { %3585 = vmatmul.mubr.f32.vlgmr.msra.gmra.mrb[24].mxu0 %v3359_v42  ;;  %6758 = vmatpush3.bf16.msra.mxu1 %v8927_v37  ;;  %v2014_v40 = vpop.permute.xlu0 %2013 }
 0x295   :  { %6766 = vmatpush3.bf16.msra.mxu0 %v8617_v6  ;;  %2052 = vst.msk [vmem:[#allocation4 + $0x170] sm:$0x1] %vm1915_vm11, %v2014_v40  ;;  %3589 = vmatprep.mubr.f32.mxu0 %v3365_v9  ;;  %v4382_v40 = vld [vmem:[%s9544_s4 + $0x20] sm:$0xff] }
 0x296   :  { %v1888_v23 = vpop.permute.xlu1 %1887  ;;  %6760 = vmatprep.subr.bf16.mxu1 %v8943_v18  ;;  %6768 = vmatprep.subr.bf16.mxu0 %v8621_v12 }
 0x297   :  { %1926 = vst.msk [vmem:[#allocation4 + $0x1b8] sm:$0x1] %vm1915_vm11, %v1888_v23 }
 0x298   :  { %3590 = vmatmul.mubr.f32.gmra.mrb[26].mxu0 %v3364_v41  ;;  %6762 = vmatpush3.bf16.msra.mxu1 %v8943_v18  ;;  %v2270_v59 = vpop.permute.xlu0 %2269  ;;  %v3697_v1 = vld [vmem:[#allocation4 + $0x158] sm:$0xff] }
 0x299   :  { %6770 = vmatpush3.bf16.msra.mxu0 %v8647_v15  ;;  %6796 = vmatprep.subr.bf16.mxu1 %v8663_v4  ;;  %2308 = vst.msk [vmem:[#allocation4 + $0x180] sm:$0x1] %vm1915_vm11, %v2270_v59  ;;  %v4411_v59 = vld [vmem:[%s9544_s4 + $0x108] sm:$0xff] }
 0x29a   :  { %6772 = vmatprep.subr.bf16.mxu0 %v8651_v48  ;;  %3846 = vmatprep.mubr.f32.mxu0 %v3695_v52 }
 0x29b   :  { %6237 = vmatmul.mubr.msk.f32.vlgmr.msra.gmra.mrb[26].mxu1 %vm9626_vm8, %v3366_v55  ;;  %v2146_v16 = vpop.permute.xlu1 %2145  ;;  %v4410_v55 = vld [vmem:[%s9544_s4 + $0x100] sm:$0xff]  ;;  %vm9640_vm8 = vmmov %vm9582_vm0 }
 0x29c   :  { %6798 = vmatpush3.bf16.msra.mxu1 %v8689_v39  ;;  %2182 = vst.msk [vmem:[#allocation4 + $0x1c8] sm:$0x1] %vm1915_vm11, %v2146_v16  ;;  %v2016_v50 = vpop.permute.xlu0 %2015  ;;  %3921 = vmatprep.mubr.f32.mxu1 %v3697_v1  ;;  %v3700_v62 = vld [vmem:[#allocation4 + $0x170] sm:$0x1]  ;;  %v4383_v16 = vld [vmem:[%s9544_s4 + $0x28] sm:$0xff] }
 0x29d   :  { %6774 = vmatpush3.bf16.msra.mxu0 %v8682_v31  ;;  %6800 = vmatprep.subr.bf16.mxu1 %v8700_v49  ;;  %2053 = vst.msk [vmem:[#allocation4 + $0x198] sm:$0xff] %vm1913_vm9, %v2016_v50  ;;  %v4428_v50 = vld [vmem:[%s9544_s4 + $0x190] sm:$0xff] }
 0x29e   :  { %6776 = vmatprep.subr.bf16.mxu0 %v8691_v20 }
 0x29f   :  { %v1890_v45 = vpop.permute.xlu1 %1889 }
 0x2a0   :  { %6802 = vmatpush3.bf16.msra.mxu1 %v8729_v17  ;;  %1927 = vst.msk [vmem:[#allocation4 + $0x1e0] sm:$0xff] %vm1913_vm9, %v1890_v45  ;;  %v3702_v58 = vld [vmem:[#allocation4 + $0x180] sm:$0x1]  ;;  %v4429_v45 = vld [vmem:[%s9544_s4 + $0x198] sm:$0xff] }
 0x2a1   :  { %6778 = vmatpush3.bf16.msra.mxu0 %v8720_v8  ;;  %6804 = vmatprep.subr.bf16.mxu1 %v8743_v32 }
 0x2a2   :  { %6780 = vmatprep.subr.bf16.mxu0 %v8731_v44 }
 0x2a3   :  { %v4038_v23 = vld [vmem:[#allocation4 + $0x1c8] sm:$0x1] }
 0x2a4   :  { %6806 = vmatpush3.bf16.msra.mxu1 %v8764_v60  ;;  %v4032_v24 = vld [vmem:[#allocation4 + $0x198] sm:$0xff] }
 0x2a5   :  { %6782 = vmatpush3.bf16.msra.mxu0 %v8759_v29  ;;  %6808 = vmatprep.subr.bf16.mxu1 %v8778_v7 }
 0x2a6   :  { %6784 = vmatprep.subr.bf16.mxu0 %v8766_v61 }
 0x2a8   :  { %6810 = vmatpush3.bf16.msra.mxu1 %v8801_v28 }
 0x2a9   :  { %6786 = vmatpush3.bf16.msra.mxu0 %v8796_v26  ;;  %6812 = vmatprep.subr.bf16.mxu1 %v8815_v57 }
 0x2aa   :  { %6788 = vmatprep.subr.bf16.mxu0 %v8803_v30 }
 0x2ac   :  { %6814 = vmatpush3.bf16.msra.mxu1 %v8838_v13 }
 0x2ad   :  { %6790 = vmatpush3.bf16.msra.mxu0 %v8833_v47  ;;  %6816 = vmatprep.subr.bf16.mxu1 %v8852_v11 }
 0x2ae   :  { %6792 = vmatprep.subr.bf16.mxu0 %v8840_v38 }
 0x2b0   :  { %6818 = vmatpush3.bf16.msra.mxu1 %v8874_v10  ;;  %v2272_v51 = vpop.permute.xlu0 %2271 }
 0x2b1   :  { %v2148_v53 = vpop.permute.xlu1 %2147  ;;  %6794 = vmatpush3.bf16.msra.mxu0 %v8870_v63  ;;  %2309 = vst.msk [vmem:[#allocation4 + $0x1a8] sm:$0xff] %vm1913_vm9, %v2272_v51  ;;  %6820 = vmatprep.subr.bf16.mxu1 %v8883_v33  ;;  %v4400_v51 = vld [vmem:[%s9544_s4 + $0xb0] sm:$0xff] }
 0x2b2   :  { %2183 = vst.msk [vmem:[#allocation4 + $0x1f0] sm:$0xff] %vm1913_vm9, %v2148_v53  ;;  %6828 = vmatprep.subr.bf16.mxu0 %v8876_v46  ;;  %v4401_v53 = vld [vmem:[%s9544_s4 + $0xb8] sm:$0xff] }
 0x2b3   :  { %v9153_v0 = vpack.c.bf16 %v4401_v53, %v4400_v51  ;;  %v4391_v53 = vld [vmem:[%s9544_s4 + $0x68] sm:$0xff] }
 0x2b4   :  { %3847 = vmatmul.mubr.f32.vlgmr.msra.gmra.mrb[28].mxu0 %v3694_v36  ;;  %6822 = vmatpush3.bf16.msra.mxu1 %v8903_v56  ;;  %v2018_v2 = vpop.permute.xlu0 %2017 }
 0x2b5   :  { %3851 = vmatprep.mubr.f32.mxu0 %v3700_v62  ;;  %6830 = vmatpush3.bf16.msra.mxu0 %v8876_v46  ;;  %2054 = vst.msk [vmem:[#allocation4 + $0x1c0] sm:$0x1] %vm1915_vm11, %v2018_v2  ;;  %v1892_v14 = vpop.permute.xlu1 %1891  ;;  %v4040_v62 = vld [vmem:[#allocation4 + $0x1d8] sm:$0x1]  ;;  %v9134_v2 = vpack.c.bf16 %v4411_v59, %v4410_v55  ;;  %v4390_v55 = vld [vmem:[%s9544_s4 + $0x60] sm:$0xff] }
 0x2b6   :  { %1928 = vst.msk [vmem:[#allocation4 + $0x208] sm:$0x1] %vm1915_vm11, %v1892_v14  ;;  %6824 = vmatprep.subr.bf16.mxu1 %v8914_v21  ;;  %6832 = vmatprep.subr.bf16.mxu0 %v8905_v27  ;;  %v4384_v14 = vld [vmem:[%s9544_s4 + $0x30] sm:$0xff]  ;;  %v4418_v59 = vld [vmem:[%s9544_s4 + $0x140] sm:$0xff] }
 0x2b8   :  { %3852 = vmatmul.mubr.f32.gmra.mrb[30].mxu0 %v3699_v3  ;;  %6826 = vmatpush3.bf16.msra.mxu1 %v8925_v25  ;;  %v2274_v19 = vpop.permute.xlu0 %2273 }
 0x2b9   :  { %6834 = vmatpush3.bf16.msra.mxu0 %v8905_v27  ;;  %6255 = vmatprep.mubr.msk.f32.mxu0 %vm9627_vm10, %v3698_v22  ;;  %2310 = vst.msk [vmem:[#allocation4 + $0x1d0] sm:$0x1] %vm1915_vm11, %v2274_v19  ;;  %v2150_v43 = vpop.permute.xlu1 %2149  ;;  %v9140_v22 = vpack.c.bf16 %v4383_v16, %v4382_v40  ;;  %v9142_v19 = vpack.c.bf16 %v4429_v45, %v4428_v50  ;;  %v4419_v16 = vld [vmem:[%s9544_s4 + $0x148] sm:$0xff]  ;;  %vm9641_vm10 = vmmov %vm9582_vm0 }
 0x2ba   :  { %6836 = vmatprep.subr.bf16.mxu0 %v8927_v37  ;;  %6844 = vmatprep.subr.bf16.mxu1 %v8606_v34  ;;  %2184 = vst.msk [vmem:[#allocation4 + $0x218] sm:$0x1] %vm1915_vm11, %v2150_v43  ;;  %v4413_v43 = vld [vmem:[%s9544_s4 + $0x118] sm:$0xff] }
 0x2bb   :  { %3922 = vmatmul.mubr.f32.vlgmr.msra.gmra.mrb[28].mxu1 %v3696_v54 }
 0x2bc   :  { %3926 = vmatprep.mubr.f32.mxu1 %v3702_v58  ;;  %6846 = vmatpush3.bf16.msra.mxu1 %v8617_v6  ;;  %v2020_v9 = vpop.permute.xlu0 %2019  ;;  %v3703_v6 = vld [vmem:[#allocation4 + $0x188] sm:$0x1]  ;;  %v4385_v58 = vld [vmem:[%s9544_s4 + $0x38] sm:$0xff] }
 0x2bd   :  { %6838 = vmatpush3.bf16.msra.mxu0 %v8927_v37  ;;  %6848 = vmatprep.subr.bf16.mxu1 %v8621_v12  ;;  %2055 = vst.msk [vmem:[#allocation4 + $0x1e8] sm:$0xff] %vm1913_vm9, %v2020_v9  ;;  %v1894_v34 = vpop.permute.xlu1 %1893  ;;  %v4034_v12 = vld [vmem:[#allocation4 + $0x1a8] sm:$0xff]  ;;  %v4402_v9 = vld [vmem:[%s9544_s4 + $0xc0] sm:$0xff] }
 0x2be   :  { %6840 = vmatprep.subr.bf16.mxu0 %v8943_v18  ;;  %1929 = vst.msk [vmem:[#allocation4 + $0x230] sm:$0xff] %vm1913_vm9, %v1894_v34  ;;  %v4403_v34 = vld [vmem:[%s9544_s4 + $0xc8] sm:$0xff] }
 0x2bf   :  { %3927 = vmatmul.mubr.f32.gmra.mrb[30].mxu1 %v3701_v5  ;;  %v4431_v5 = vld [vmem:[%s9544_s4 + $0x1a8] sm:$0xff] }
 0x2c0   :  { %6850 = vmatpush3.bf16.msra.mxu1 %v8647_v15  ;;  %4183 = vmatprep.mubr.f32.mxu1 %v4032_v24 }
 0x2c1   :  { %6842 = vmatpush3.bf16.msra.mxu0 %v8943_v18  ;;  %6852 = vmatprep.subr.bf16.mxu1 %v8651_v48  ;;  %v2282_v42 = vpop.permute.xlu1 %2281 }
 0x2c2   :  { %6876 = vmatprep.subr.bf16.mxu0 %v8663_v4  ;;  %2314 = vst.msk [vmem:[#allocation4 + $0x270] sm:$0x1] %vm1915_vm11, %v2282_v42  ;;  %v9176_v42 = vpack.c.bf16 %v4385_v58, %v4384_v14 }
 0x2c4   :  { %6256 = vmatmul.mubr.msk.f32.vlgmr.msra.gmra.mrb[32].mxu0 %vm9629_vm13, %v3703_v6  ;;  %6854 = vmatpush3.bf16.msra.mxu1 %v8682_v31  ;;  %v4369_v36 = vld [vmem:[#allocation4 + $0x1e8] sm:$0xff] }
 0x2c5   :  { %6878 = vmatpush3.bf16.msra.mxu0 %v8689_v39  ;;  %6856 = vmatprep.subr.bf16.mxu1 %v8691_v20 }
 0x2c6   :  { %6880 = vmatprep.subr.bf16.mxu0 %v8700_v49  ;;  %4258 = vmatprep.mubr.f32.mxu0 %v4034_v12  ;;  %v9178_v12 = vpack.c.bf16 %v4431_v5, %v4430_v35  ;;  %v9288_v35 = vld [vmem:[%s9546_s6] ss:$0 sm:$0xff]  ;;  %v9291_v5 = vpack.c.bf16 %v4419_v16, %v4418_v59  ;;  %v4445_v59 = vld [vmem:[%s9544_s4 + $0x218] sm:$0xff] }
 0x2c8   :  { %6858 = vmatpush3.bf16.msra.mxu1 %v8720_v8 }
 0x2c9   :  { %6882 = vmatpush3.bf16.msra.mxu0 %v8729_v17  ;;  %6860 = vmatprep.subr.bf16.mxu1 %v8731_v44  ;;  %v4031_v17 = vld [vmem:[#allocation4 + $0x190] sm:$0xff]  ;;  %v4037_v44 = vld [vmem:[#allocation4 + $0x1c0] sm:$0x1] }
 0x2ca   :  { %6884 = vmatprep.subr.bf16.mxu0 %v8743_v32  ;;  %v4394_v32 = vld [vmem:[%s9544_s4 + $0x80] sm:$0xff] }
 0x2cc   :  { %6862 = vmatpush3.bf16.msra.mxu1 %v8759_v29  ;;  %v4395_v29 = vld [vmem:[%s9544_s4 + $0x88] sm:$0xff] }
 0x2cd   :  { %6886 = vmatpush3.bf16.msra.mxu0 %v8764_v60  ;;  %6864 = vmatprep.subr.bf16.mxu1 %v8766_v61  ;;  %v4036_v61 = vld [vmem:[#allocation4 + $0x1b8] sm:$0x1] }
 0x2ce   :  { %6888 = vmatprep.subr.bf16.mxu0 %v8778_v7  ;;  %v9056_v7 = vpack.c.bf16 %v4395_v29, %v4394_v32  ;;  %v4404_v32 = vld [vmem:[%s9544_s4 + $0xd0] sm:$0xff]  ;;  %v4405_v29 = vld [vmem:[%s9544_s4 + $0xd8] sm:$0xff] }
 0x2d0   :  { %6866 = vmatpush3.bf16.msra.mxu1 %v8796_v26  ;;  %v2276_v15 = vpop.permute.xlu0 %2275  ;;  %v5339_v48 = vpop.f32.mrb[8].mxu0  ;;  %v4378_v26 = vld [vmem:[%s9544_s4] sm:$0xff] }
 0x2d1   :  { %6890 = vmatpush3.bf16.msra.mxu0 %v8801_v28  ;;  %2311 = vst.msk [vmem:[#allocation4 + $0x1f8] sm:$0xff] %vm1913_vm9, %v2276_v15  ;;  %6868 = vmatprep.subr.bf16.mxu1 %v8803_v30  ;;  %v5340_v4 = vpop.f32.mrb[9].mxu0  ;;  %v2152_v31 = vpop.permute.xlu1 %2151  ;;  %v4379_v28 = vld [vmem:[%s9544_s4 + $0x8] sm:$0xff]  ;;  %v4035_v30 = vld [vmem:[#allocation4 + $0x1b0] sm:$0xff]  ;;  %v4386_v15 = vld [vmem:[%s9544_s4 + $0x40] sm:$0xff] }
 0x2d2   :  { %6892 = vmatprep.subr.bf16.mxu0 %v8815_v57  ;;  %v9031_v39 = vadd.f32 %v5340_v4, %v5339_v48  ;;  %2185 = vst.msk [vmem:[#allocation4 + $0x240] sm:$0xff] %vm1913_vm9, %v2152_v31  ;;  %v4396_v57 = vld [vmem:[%s9544_s4 + $0x90] sm:$0xff]  ;;  %v4414_v48 = vld [vmem:[%s9544_s4 + $0x120] sm:$0xff]  ;;  %v4415_v4 = vld [vmem:[%s9544_s4 + $0x128] sm:$0xff] }
 0x2d4   :  { %6870 = vmatpush3.bf16.msra.mxu1 %v8833_v47  ;;  %v2022_v20 = vpop.permute.xlu0 %2021  ;;  %v4397_v47 = vld [vmem:[%s9544_s4 + $0x98] sm:$0xff] }
 0x2d5   :  { %6894 = vmatpush3.bf16.msra.mxu0 %v8838_v13  ;;  %2056 = vst.msk [vmem:[#allocation4 + $0x210] sm:$0x1] %vm1915_vm11, %v2022_v20  ;;  %6872 = vmatprep.subr.bf16.mxu1 %v8840_v38  ;;  %v2154_v49 = vpop.permute.xlu1 %2153  ;;  %v9074_v38 = vpack.c.bf16 %v4379_v28, %v4378_v26  ;;  %v9190_v20 = vpack.c.bf16 %v4403_v34, %v4402_v9 }
 0x2d6   :  { %6896 = vmatprep.subr.bf16.mxu0 %v8852_v11  ;;  %2186 = vst.msk [vmem:[#allocation4 + $0x268] sm:$0x1] %vm1915_vm11, %v2154_v49  ;;  %v4380_v11 = vld [vmem:[%s9544_s4 + $0x10] sm:$0xff]  ;;  %v4387_v49 = vld [vmem:[%s9544_s4 + $0x48] sm:$0xff]  ;;  %v9295_v34 = vpack.c.bf16 %v4391_v53, %v4390_v55  ;;  %v4425_v53 = vld [vmem:[%s9544_s4 + $0x178] sm:$0xff] }
 0x2d7   :  { %v9212_v26 = vpack.c.bf16 %v4387_v49, %v4386_v15  ;;  %v4392_v15 = vld [vmem:[%s9544_s4 + $0x70] sm:$0xff] }
 0x2d8   :  { %6874 = vmatpush3.bf16.msra.mxu1 %v8870_v63  ;;  %v9081_v63 = vpack.c.bf16 %v4397_v47, %v4396_v57  ;;  %v4371_v54 = vld [vmem:[#allocation4 + $0x1f8] sm:$0xff]  ;;  %v4388_v57 = vld [vmem:[%s9544_s4 + $0x50] sm:$0xff] }
 0x2d9   :  { %6898 = vmatpush3.bf16.msra.mxu0 %v8874_v10  ;;  %v2278_v8 = vpop.permute.xlu0 %2277  ;;  %6908 = vmatprep.subr.bf16.mxu1 %v8876_v46  ;;  %v4381_v10 = vld [vmem:[%s9544_s4 + $0x18] sm:$0xff]  ;;  %v4416_v47 = vld [vmem:[%s9544_s4 + $0x130] sm:$0xff] }
 0x2da   :  { %2312 = vst.msk [vmem:[#allocation4 + $0x220] sm:$0x1] %vm1915_vm11, %v2278_v8  ;;  %6900 = vmatprep.subr.bf16.mxu0 %v8883_v33  ;;  %v4399_v33 = vld [vmem:[%s9544_s4 + $0xa8] sm:$0xff]  ;;  %v9103_v52 = vpack.c.bf16 %v4381_v10, %v4380_v11  ;;  %v4432_v8 = vld [vmem:[%s9544_s4 + $0x1b0] sm:$0xff]  ;;  %v9227_v10 = vpack.c.bf16 %v4405_v29, %v4404_v32  ;;  %v4442_v29 = vld [vmem:[%s9544_s4 + $0x200] sm:$0xff] }
 0x2db   :  { %4184 = vmatmul.mubr.f32.vlgmr.msra.gmra.mrb[32].mxu1 %v4031_v17  ;;  %v4433_v17 = vld [vmem:[%s9544_s4 + $0x1b8] sm:$0xff]  ;;  %v4444_v55 = vld [vmem:[%s9544_s4 + $0x210] sm:$0xff] }
 0x2dc   :  { %4188 = vmatprep.mubr.f32.mxu1 %v4037_v44  ;;  %6910 = vmatpush3.bf16.msra.mxu1 %v8876_v46  ;;  %v4398_v46 = vld [vmem:[%s9544_s4 + $0xa0] sm:$0xff]  ;;  %v9214_v28 = vpack.c.bf16 %v4433_v17, %v4432_v8  ;;  %v4393_v8 = vld [vmem:[%s9544_s4 + $0x78] sm:$0xff] }
 0x2dd   :  { %6902 = vmatpush3.bf16.msra.mxu0 %v8903_v56  ;;  %v2024_v60 = vpop.permute.xlu0 %2023  ;;  %6912 = vmatprep.subr.bf16.mxu1 %v8905_v27  ;;  %v4033_v56 = vld [vmem:[#allocation4 + $0x1a0] sm:$0xff] }
 0x2de   :  { %2057 = vst.msk [vmem:[#allocation4 + $0x238] sm:$0xff] %vm1913_vm9, %v2024_v60  ;;  %6904 = vmatprep.subr.bf16.mxu0 %v8914_v21  ;;  %v4427_v21 = vld [vmem:[%s9544_s4 + $0x188] sm:$0xff]  ;;  %v9208_v60 = vpack.c.bf16 %v4415_v4, %v4414_v48  ;;  %v4420_v48 = vld [vmem:[%s9544_s4 + $0x150] sm:$0xff]  ;;  %v4421_v4 = vld [vmem:[%s9544_s4 + $0x158] sm:$0xff] }
 0x2df   :  { %4189 = vmatmul.mubr.f32.gmra.mrb[34].mxu1 %v4036_v61  ;;  %v4438_v17 = vld [vmem:[%s9544_s4 + $0x1e0] sm:$0xff] }
 0x2e0   :  { %6914 = vmatpush3.bf16.msra.mxu1 %v8905_v27  ;;  %6274 = vmatprep.mubr.msk.f32.mxu1 %vm9630_vm14, %v4035_v30  ;;  %v4426_v27 = vld [vmem:[%s9544_s4 + $0x180] sm:$0xff] }
 0x2e1   :  { %6906 = vmatpush3.bf16.msra.mxu0 %v8925_v25  ;;  %v2280_v13 = vpop.permute.xlu0 %2279  ;;  %6916 = vmatprep.subr.bf16.mxu1 %v8927_v37  ;;  %v4039_v25 = vld [vmem:[#allocation4 + $0x1d0] sm:$0x1]  ;;  %v9116_v1 = vpack.c.bf16 %v4427_v21, %v4426_v27  ;;  %v4406_v27 = vld [vmem:[%s9544_s4 + $0xe0] sm:$0xff]  ;;  %v4407_v21 = vld [vmem:[%s9544_s4 + $0xe8] sm:$0xff] }
 0x2e2   :  { %2313 = vst.msk [vmem:[#allocation4 + $0x248] sm:$0xff] %vm1913_vm9, %v2280_v13  ;;  %6924 = vmatprep.subr.bf16.mxu0 %v9056_v7  ;;  %vm9631_vm9 = vmmov %vm9582_vm0  ;;  %v4417_v13 = vld [vmem:[%s9544_s4 + $0x138] sm:$0xff]  ;;  %v9263_v51 = vpack.c.bf16 %v4407_v21, %v4406_v27  ;;  %v4440_v27 = vld [vmem:[%s9544_s4 + $0x1f0] sm:$0xff] }
 0x2e4   :  { %4259 = vmatmul.mubr.f32.vlgmr.msra.gmra.mrb[34].mxu0 %v4033_v56  ;;  %6918 = vmatpush3.bf16.msra.mxu1 %v8927_v37  ;;  %v9114_v37 = vpack.c.bf16 %v4399_v33, %v4398_v46  ;;  %v4434_v46 = vld [vmem:[%s9544_s4 + $0x1c0] sm:$0xff]  ;;  %v4435_v33 = vld [vmem:[%s9544_s4 + $0x1c8] sm:$0xff] }
 0x2e5   :  { %4263 = vmatprep.mubr.f32.mxu0 %v4039_v25  ;;  %6926 = vmatpush3.bf16.msra.mxu0 %v9074_v38  ;;  %v2026_v41 = vpop.permute.xlu0 %2025  ;;  %v9245_v25 = vpack.c.bf16 %v4417_v13, %v4416_v47  ;;  %v9334_v13 = vpack.c.bf16 %v4393_v8, %v4392_v15  ;;  %v4373_v15 = vld [vmem:[#allocation4 + $0x208] sm:$0x1]  ;;  %v4370_v8 = vld [vmem:[#allocation4 + $0x1f0] sm:$0xff] }
 0x2e6   :  { %2058 = vst.msk [vmem:[#allocation4 + $0x260] sm:$0x1] %vm1915_vm11, %v2026_v41  ;;  %6920 = vmatprep.subr.bf16.mxu1 %v8943_v18  ;;  %6928 = vmatprep.subr.bf16.mxu0 %v9081_v63 }
 0x2e8   :  { %4264 = vmatmul.mubr.f32.gmra.mrb[36].mxu0 %v4038_v23  ;;  %6922 = vmatpush3.bf16.msra.mxu1 %v8943_v18  ;;  %v4412_v18 = vld [vmem:[%s9544_s4 + $0x110] sm:$0xff]  ;;  %v9251_v23 = vpack.c.bf16 %v4435_v33, %v4434_v46  ;;  %v4423_v46 = vld [vmem:[%s9544_s4 + $0x168] sm:$0xff] }
 0x2e9   :  { %6930 = vmatpush3.bf16.msra.mxu0 %v9103_v52  ;;  %4520 = vmatprep.mubr.f32.mxu0 %v4369_v36  ;;  %v1896_v3 = vpop.permute.xlu0 %1895  ;;  %v9172_v24 = vpack.c.bf16 %v4413_v43, %v4412_v18  ;;  %v4436_v36 = vld [vmem:[%s9544_s4 + $0x1d0] sm:$0xff]  ;;  %v9277_v18 = vld [vmem:[%s9545_s5] ss:$0 sm:$0xff] }
 0x2ea   :  { %1930 = vst.msk [vmem:[#allocation4 + $0x258] sm:$0x1] %vm1915_vm11, %v1896_v3  ;;  %6932 = vmatprep.subr.bf16.mxu0 %v9114_v37  ;;  %6956 = vmatprep.subr.bf16.mxu1 %v9116_v1  ;;  %v4408_v43 = vld [vmem:[%s9544_s4 + $0xf0] sm:$0xff]  ;;  %vm9632_vm11 = vmmov %vm9582_vm0 }
 0x2eb   :  { %6275 = vmatmul.mubr.msk.f32.vlgmr.msra.gmra.mrb[36].mxu1 %vm9631_vm9, %v4040_v62  ;;  %v4437_v62 = vld [vmem:[%s9544_s4 + $0x1d8] sm:$0xff] }
 0x2ec   :  { %6958 = vmatpush3.bf16.msra.mxu1 %v9134_v2  ;;  %4595 = vmatprep.mubr.f32.mxu1 %v4371_v54  ;;  %v5377_v6 = vpop.f32.mrb[8].mxu1  ;;  %v4409_v54 = vld [vmem:[%s9544_s4 + $0xf8] sm:$0xff] }
 0x2ed   :  { %6934 = vmatpush3.bf16.msra.mxu0 %v9140_v22  ;;  %6960 = vmatprep.subr.bf16.mxu1 %v9142_v19  ;;  %v5378_v31 = vpop.f32.mrb[9].mxu1  ;;  %v9310_v49 = vpack.c.bf16 %v4409_v54, %v4408_v43  ;;  %v4447_v43 = vld [vmem:[%s9544_s4 + $0x228] sm:$0xff]  ;;  %v4374_v54 = vld [vmem:[#allocation4 + $0x210] sm:$0x1] }
 0x2ee   :  { %6936 = vmatprep.subr.bf16.mxu0 %v9153_v0  ;;  %v5379_v44 = vadd.f32 %v5378_v31, %v5377_v6  ;;  %v9297_v6 = vpack.c.bf16 %v4437_v62, %v4436_v36  ;;  %v9378_v62 = vpack.c.bf16 %v4445_v59, %v4444_v55 }
 0x2f0   :  { %6962 = vmatpush3.bf16.msra.mxu1 %v9172_v24  ;;  %v2577_v30 = vadd.f32 %v5379_v44, %v9031_v39  ;;  %v4389_v39 = vld [vmem:[%s9544_s4 + $0x58] sm:$0xff]  ;;  %v4439_v44 = vld [vmem:[%s9544_s4 + $0x1e8] sm:$0xff] }
 0x2f1   :  { %6938 = vmatpush3.bf16.msra.mxu0 %v9176_v42  ;;  %v5342_v61 = vpop.f32.mrb[10].mxu0  ;;  %6964 = vmatprep.subr.bf16.mxu1 %v9178_v12  ;;  %v9249_v41 = vpack.c.bf16 %v4389_v39, %v4388_v57  ;;  %v9329_v57 = vpack.c.bf16 %v4421_v4, %v4420_v48  ;;  %v4422_v39 = vld [vmem:[%s9544_s4 + $0x160] sm:$0xff]  ;;  %v4448_v48 = vld [vmem:[%s9544_s4 + $0x230] sm:$0xff]  ;;  %v4449_v4 = vld [vmem:[%s9544_s4 + $0x238] sm:$0xff] }
 0x2f2   :  { %6940 = vmatprep.subr.bf16.mxu0 %v9190_v20  ;;  %v5343_v11 = vpop.f32.mrb[11].mxu0  ;;  %v9365_v16 = vpack.c.bf16 %v4423_v46, %v4422_v39  ;;  %v4708_v46 = vld [vmem:[#allocation4 + $0x248] sm:$0xff] }
 0x2f3   :  { %v5344_v56 = vadd.f32 %v5343_v11, %v5342_v61  ;;  %v4443_v61 = vld [vmem:[%s9544_s4 + $0x208] sm:$0xff]  ;;  %v9336_v11 = vpack.c.bf16 %v4439_v44, %v4438_v17  ;;  %v9409_v17 = vpack.c.bf16 %v4449_v4, %v4448_v48  ;;  %v4376_v44 = vld [vmem:[#allocation4 + $0x220] sm:$0x1] }
 0x2f4   :  { %6966 = vmatpush3.bf16.msra.mxu1 %v9208_v60 }
 0x2f5   :  { %6942 = vmatpush3.bf16.msra.mxu0 %v9212_v26  ;;  %v5380_v40 = vpop.f32.mrb[10].mxu1  ;;  %6968 = vmatprep.subr.bf16.mxu1 %v9214_v28 }
 0x2f6   :  { %v6181_v50 = vpop.f32.mrb[12].mxu0  ;;  %6944 = vmatprep.subr.bf16.mxu0 %v9227_v10  ;;  %v5381_v45 = vpop.f32.mrb[11].mxu1 }
 0x2f7   :  { %v5382_v14 = vadd.f32 %v5381_v45, %v5380_v40  ;;  %v2651_v3 = vpop.f32.mrb[13].mxu0  ;;  %v4441_v40 = vld [vmem:[%s9544_s4 + $0x1f8] sm:$0xff]  ;;  %v4424_v45 = vld [vmem:[%s9544_s4 + $0x170] sm:$0xff] }
 0x2f8   :  { %v2652_v58 = vadd.f32 %v2651_v3, %v2577_v30  ;;  %6970 = vmatpush3.bf16.msra.mxu1 %v9245_v25  ;;  %v9376_v36 = vpack.c.bf16 %v4441_v40, %v4440_v27  ;;  %v4446_v3 = vld [vmem:[%s9544_s4 + $0x220] sm:$0xff] }
 0x2f9   :  { %v2582_v9 = vadd.f32 %v5382_v14, %v5344_v56  ;;  %6946 = vmatpush3.bf16.msra.mxu0 %v9249_v41  ;;  %6972 = vmatprep.subr.bf16.mxu1 %v9251_v23  ;;  %v9345_v56 = vpack.c.bf16 %v4443_v61, %v4442_v29  ;;  %v4368_v14 = vld [vmem:[#allocation4 + $0x1e0] sm:$0xff] }
 0x2fa   :  { %v2667_v31 = vmul.f32 %v9277_v18, %v2652_v58  ;;  %6948 = vmatprep.subr.bf16.mxu0 %v9263_v51  ;;  %v9391_v58 = vpack.c.bf16 %v4425_v53, %v4424_v45 }
 0x2fb   :  { %v2657_v32 = vadd.f32 %v6181_v50, %v2582_v9  ;;  %v9396_v9 = vpack.c.bf16 %v4447_v43, %v4446_v3 }
 0x2fc   :  { %v2676_v30 = vadd.f32 %v9288_v35, %v2667_v31  ;;  %6974 = vmatpush3.bf16.msra.mxu1 %v9291_v5  ;;  %v4372_v31 = vld [vmem:[#allocation4 + $0x200] sm:$0xff] }
 0x2fd   :  { %v2668_v47 = vmul.f32 %v9277_v18, %v2657_v32  ;;  %6950 = vmatpush3.bf16.msra.mxu0 %v9295_v34  ;;  %6976 = vmatprep.subr.bf16.mxu1 %v9297_v6  ;;  %v4375_v32 = vld [vmem:[#allocation4 + $0x218] sm:$0x1] }
 0x2fe   :  { %v2678_v33 = vmax.f32 %v2676_v30, 0.0  ;;  %6952 = vmatprep.subr.bf16.mxu0 %v9310_v49 }
 0x2ff   :  { %v2677_v21 = vadd.f32 %v9288_v35, %v2668_v47  ;;  %v4706_v47 = vld [vmem:[#allocation4 + $0x238] sm:$0xff] }
 0x300   :  { %2680 = vst.msk [vmem:[%s9547_s7] sm:$0xff] %vm9632_vm11, %v2678_v33  ;;  %6978 = vmatpush3.bf16.msra.mxu1 %v9329_v57 }
 0x301   :  { %v2679_v50 = vmax.f32 %v2677_v21, 0.0  ;;  %6954 = vmatpush3.bf16.msra.mxu0 %v9334_v13  ;;  %6980 = vmatprep.subr.bf16.mxu1 %v9336_v11 }
 0x302   :  { %6988 = vmatprep.subr.bf16.mxu0 %v9345_v56 }
 0x303   :  { %2681 = vst.msk [vmem:[%s9547_s7 + $0x8] sm:$0x1] %vm987_vm7, %v2679_v50 }
 0x304   :  { %4521 = vmatmul.mubr.f32.vlgmr.msra.gmra.mrb[38].mxu0 %v4368_v14  ;;  %6982 = vmatpush3.bf16.msra.mxu1 %v9365_v16 }
 0x305   :  { %4525 = vmatprep.mubr.f32.mxu0 %v4374_v54  ;;  %6990 = vmatpush3.bf16.msra.mxu0 %v9345_v56 }
 0x306   :  { %6984 = vmatprep.subr.bf16.mxu1 %v9376_v36  ;;  %6992 = vmatprep.subr.bf16.mxu0 %v9378_v62 }
 0x308   :  { %4526 = vmatmul.mubr.f32.gmra.mrb[40].mxu0 %v4373_v15  ;;  %6986 = vmatpush3.bf16.msra.mxu1 %v9391_v58 }
 0x309   :  { %6994 = vmatpush3.bf16.msra.mxu0 %v9378_v62  ;;  %6293 = vmatprep.mubr.msk.f32.mxu0 %vm9633_vm15, %v4372_v31 }
 0x30a   :  { %6996 = vmatprep.subr.bf16.mxu0 %v9396_v9  ;;  %7004 = vmatprep.subr.bf16.mxu1 %v9056_v7  ;;  %v4377_v7 = vld [vmem:[#allocation4 + $0x228] sm:$0x1] }
 0x30b   :  { %4596 = vmatmul.mubr.f32.vlgmr.msra.gmra.mrb[38].mxu1 %v4370_v8 }
 0x30c   :  { %4600 = vmatprep.mubr.f32.mxu1 %v4376_v44  ;;  %7006 = vmatpush3.bf16.msra.mxu1 %v9074_v38 }
 0x30d   :  { %6998 = vmatpush3.bf16.msra.mxu0 %v9396_v9  ;;  %v5425_v29 = vpop.f32.mrb[12].mxu1  ;;  %7008 = vmatprep.subr.bf16.mxu1 %v9081_v63 }
 0x30e   :  { %v5426_v61 = vpop.f32.mrb[13].mxu1  ;;  %7000 = vmatprep.subr.bf16.mxu0 %v9409_v17 }
 0x30f   :  { %v5427_v30 = vadd.f32 %v5426_v61, %v5425_v29  ;;  %4601 = vmatmul.mubr.f32.gmra.mrb[40].mxu1 %v4375_v32 }
 0x310   :  { %7010 = vmatpush3.bf16.msra.mxu1 %v9103_v52  ;;  %4857 = vmatprep.mubr.f32.mxu1 %v4706_v47 }
 0x311   :  { %7002 = vmatpush3.bf16.msra.mxu0 %v9409_v17  ;;  %7012 = vmatprep.subr.bf16.mxu1 %v9114_v37  ;;  %v5428_v38 = vpop.f32.mrb[14].mxu1 }
 0x312   :  { %7036 = vmatprep.subr.bf16.mxu0 %v9116_v1  ;;  %v5429_v39 = vpop.f32.mrb[15].mxu1 }
 0x313   :  { %v5430_v63 = vadd.f32 %v5429_v39, %v5428_v38 }
 0x314   :  { %6294 = vmatmul.mubr.msk.f32.vlgmr.msra.gmra.mrb[42].mxu0 %vm9582_vm0, %v4377_v7  ;;  %7014 = vmatpush3.bf16.msra.mxu1 %v9140_v22 }
 0x315   :  { %7038 = vmatpush3.bf16.msra.mxu0 %v9134_v2  ;;  %7016 = vmatprep.subr.bf16.mxu1 %v9153_v0 }
 0x316   :  { %v5463_v52 = vpop.f32.mrb[14].mxu0  ;;  %7040 = vmatprep.subr.bf16.mxu0 %v9142_v19  ;;  %4932 = vmatprep.mubr.f32.mxu0 %v4708_v46 }
 0x317   :  { %v5464_v33 = vpop.f32.mrb[15].mxu0 }
 0x318   :  { %v5465_v37 = vadd.f32 %v5464_v33, %v5463_v52  ;;  %7018 = vmatpush3.bf16.msra.mxu1 %v9176_v42 }
 0x319   :  { %7042 = vmatpush3.bf16.msra.mxu0 %v9172_v24  ;;  %7020 = vmatprep.subr.bf16.mxu1 %v9190_v20 }
 0x31a   :  { %v5466_v1 = vpop.f32.mrb[16].mxu0  ;;  %7044 = vmatprep.subr.bf16.mxu0 %v9178_v12  ;;  %v2913_v22 = vadd.f32 %v5465_v37, %v5427_v30 }
 0x31b   :  { %v5467_v27 = vpop.f32.mrb[17].mxu0 }
 0x31c   :  { %v5468_v2 = vadd.f32 %v5467_v27, %v5466_v1  ;;  %7022 = vmatpush3.bf16.msra.mxu1 %v9212_v26 }
 0x31d   :  { %7046 = vmatpush3.bf16.msra.mxu0 %v9208_v60  ;;  %7024 = vmatprep.subr.bf16.mxu1 %v9227_v10 }
 0x31e   :  { %v2918_v19 = vadd.f32 %v5468_v2, %v5430_v63  ;;  %v6200_v0 = vpop.f32.mrb[16].mxu1  ;;  %7048 = vmatprep.subr.bf16.mxu0 %v9214_v28 }
 0x31f   :  { %v2987_v42 = vpop.f32.mrb[17].mxu1 }
 0x320   :  { %v2993_v24 = vadd.f32 %v6200_v0, %v2918_v19  ;;  %v2988_v21 = vadd.f32 %v2987_v42, %v2913_v22  ;;  %7026 = vmatpush3.bf16.msra.mxu1 %v9249_v41  ;;  %v4711_v41 = vld [vmem:[#allocation4 + $0x260] sm:$0x1] }
 0x321   :  { %7050 = vmatpush3.bf16.msra.mxu0 %v9245_v25  ;;  %7028 = vmatprep.subr.bf16.mxu1 %v9263_v51  ;;  %v4705_v25 = vld [vmem:[#allocation4 + $0x230] sm:$0xff]  ;;  %v4710_v51 = vld [vmem:[#allocation4 + $0x258] sm:$0x1] }
 0x322   :  { %v3004_v12 = vmul.f32 %v9277_v18, %v2993_v24  ;;  %v3003_v20 = vmul.f32 %v9277_v18, %v2988_v21  ;;  %7052 = vmatprep.subr.bf16.mxu0 %v9251_v23  ;;  %v4709_v23 = vld [vmem:[#allocation4 + $0x250] sm:$0xff] }
 0x324   :  { %v3013_v60 = vadd.f32 %v9288_v35, %v3004_v12  ;;  %v3012_v26 = vadd.f32 %v9288_v35, %v3003_v20  ;;  %7030 = vmatpush3.bf16.msra.mxu1 %v9295_v34  ;;  %v4713_v34 = vld [vmem:[#allocation4 + $0x270] sm:$0x1] }
 0x325   :  { %7054 = vmatpush3.bf16.msra.mxu0 %v9291_v5  ;;  %7032 = vmatprep.subr.bf16.mxu1 %v9310_v49  ;;  %v4707_v5 = vld [vmem:[#allocation4 + $0x240] sm:$0xff] }
 0x326   :  { %v3015_v28 = vmax.f32 %v3013_v60, 0.0  ;;  %v3014_v10 = vmax.f32 %v3012_v26, 0.0  ;;  %7056 = vmatprep.subr.bf16.mxu0 %v9297_v6  ;;  %v4712_v6 = vld [vmem:[#allocation4 + $0x268] sm:$0x1] }
 0x328   :  { %5182 = vst.msk [vmem:[%s9547_s7 + $0x18] sm:$0x1] %vm987_vm7, %v3015_v28  ;;  %7034 = vmatpush3.bf16.msra.mxu1 %v9334_v13  ;;  %v4714_v13 = vld [vmem:[#allocation4 + $0x278] sm:$0x1] }
 0x329   :  { %5181 = vst.msk [vmem:[%s9547_s7 + $0x10] sm:$0xff] %vm9634_vm1, %v3014_v10  ;;  %7058 = vmatpush3.bf16.msra.mxu0 %v9329_v57  ;;  %7068 = vmatprep.subr.bf16.mxu1 %v9345_v56 }
 0x32a   :  { %7060 = vmatprep.subr.bf16.mxu0 %v9336_v11 }
 0x32b   :  { %4858 = vmatmul.mubr.f32.vlgmr.msra.gmra.mrb[42].mxu1 %v4705_v25 }
 0x32c   :  { %4862 = vmatprep.mubr.f32.mxu1 %v4711_v41  ;;  %7070 = vmatpush3.bf16.msra.mxu1 %v9345_v56 }
 0x32d   :  { %7062 = vmatpush3.bf16.msra.mxu0 %v9365_v16  ;;  %7072 = vmatprep.subr.bf16.mxu1 %v9378_v62 }
 0x32e   :  { %7064 = vmatprep.subr.bf16.mxu0 %v9376_v36 }
 0x32f   :  { %4863 = vmatmul.mubr.f32.gmra.mrb[44].mxu1 %v4710_v51 }
 0x330   :  { %7074 = vmatpush3.bf16.msra.mxu1 %v9378_v62  ;;  %6312 = vmatprep.mubr.msk.f32.mxu1 %vm9635_vm12, %v4709_v23 }
 0x331   :  { %7066 = vmatpush3.bf16.msra.mxu0 %v9391_v58  ;;  %7076 = vmatprep.subr.bf16.mxu1 %v9396_v9 }
 0x334   :  { %4933 = vmatmul.mubr.f32.vlgmr.msra.gmra.mrb[44].mxu0 %v4707_v5  ;;  %7078 = vmatpush3.bf16.msra.mxu1 %v9396_v9 }
 0x335   :  { %4937 = vmatprep.mubr.f32.mxu0 %v4713_v34  ;;  %7080 = vmatprep.subr.bf16.mxu1 %v9409_v17 }
 0x337   :  { %v5511_v49 = vpop.f32.mrb[18].mxu0 }
 0x338   :  { %v5512_v57 = vpop.f32.mrb[19].mxu0  ;;  %4938 = vmatmul.mubr.f32.gmra.mrb[46].mxu0 %v4712_v6  ;;  %7082 = vmatpush3.bf16.msra.mxu1 %v9409_v17 }
 0x339   :  { %v5513_v11 = vadd.f32 %v5512_v57, %v5511_v49 }
 0x33b   :  { %v5514_v56 = vpop.f32.mrb[20].mxu0  ;;  %6313 = vmatmul.mubr.msk.f32.vlgmr.msra.gmra.mrb[46].mxu1 %vm9636_vm3, %v4714_v13 }
 0x33c   :  { %v5515_v40 = vpop.f32.mrb[21].mxu0 }
 0x33d   :  { %v5516_v55 = vadd.f32 %v5515_v40, %v5514_v56 }
 0x33e   :  { %v5549_v59 = vpop.f32.mrb[18].mxu1 }
 0x33f   :  { %v5550_v16 = vpop.f32.mrb[19].mxu1 }
 0x340   :  { %v5551_v50 = vadd.f32 %v5550_v16, %v5549_v59 }
 0x342   :  { %v5552_v45 = vpop.f32.mrb[20].mxu1  ;;  %v3250_v53 = vadd.f32 %v5551_v50, %v5513_v11 }
 0x343   :  { %v5553_v36 = vpop.f32.mrb[21].mxu1 }
 0x344   :  { %v5554_v62 = vadd.f32 %v5553_v36, %v5552_v45 }
 0x346   :  { %v3255_v14 = vadd.f32 %v5554_v62, %v5516_v55 }
 0x347   :  { %v6219_v3 = vpop.f32.mrb[22].mxu0 }
 0x348   :  { %v3330_v43 = vadd.f32 %v6219_v3, %v3255_v14  ;;  %v3324_v54 = vpop.f32.mrb[23].mxu0 }
 0x349   :  { %v3325_v58 = vadd.f32 %v3324_v54, %v3250_v53 }
 0x34a   :  { %v3341_v9 = vmul.f32 %v9277_v18, %v3330_v43 }
 0x34b   :  { %v3340_v15 = vmul.f32 %v9277_v18, %v3325_v58 }
 0x34c   :  { %v3350_v48 = vadd.f32 %v9288_v35, %v3341_v9 }
 0x34d   :  { %v3349_v4 = vadd.f32 %v9288_v35, %v3340_v15 }
 0x34e   :  { %v3352_v31 = vmax.f32 %v3350_v48, 0.0 }
 0x34f   :  { %v3351_v8 = vmax.f32 %v3349_v4, 0.0 }
 0x350   :  { %5188 = vst.msk [vmem:[%s9547_s7 + $0x28] sm:$0x1] %vm987_vm7, %v3352_v31 }
 0x351   :  { %5187 = vst.msk [vmem:[%s9547_s7 + $0x20] sm:$0xff] %vm9637_vm4, %v3351_v8 }
 0x35e   :  { %v5597_v17 = vpop.f32.mrb[22].mxu1 }
 0x35f   :  { %v5598_v44 = vpop.f32.mrb[23].mxu1 }
 0x360   :  { %v5599_v32 = vadd.f32 %v5598_v44, %v5597_v17 }
 0x362   :  { %v5600_v29 = vpop.f32.mrb[24].mxu1 }
 0x363   :  { %v5601_v61 = vpop.f32.mrb[25].mxu1 }
 0x364   :  { %v5602_v30 = vadd.f32 %v5601_v61, %v5600_v29 }
 0x367   :  { %v5635_v47 = vpop.f32.mrb[24].mxu0 }
 0x368   :  { %v5636_v7 = vpop.f32.mrb[25].mxu0 }
 0x369   :  { %v5637_v38 = vadd.f32 %v5636_v7, %v5635_v47 }
 0x36b   :  { %v5638_v39 = vpop.f32.mrb[26].mxu0  ;;  %v3587_v46 = vadd.f32 %v5637_v38, %v5599_v32 }
 0x36c   :  { %v5639_v63 = vpop.f32.mrb[27].mxu0 }
 0x36d   :  { %v5640_v52 = vadd.f32 %v5639_v63, %v5638_v39 }
 0x36e   :  { %v6238_v33 = vpop.f32.mrb[26].mxu1 }
 0x36f   :  { %v3592_v37 = vadd.f32 %v5640_v52, %v5602_v30  ;;  %v3661_v1 = vpop.f32.mrb[27].mxu1 }
 0x370   :  { %v3662_v22 = vadd.f32 %v3661_v1, %v3587_v46 }
 0x371   :  { %v3667_v27 = vadd.f32 %v6238_v33, %v3592_v37 }
 0x372   :  { %v3677_v2 = vmul.f32 %v9277_v18, %v3662_v22 }
 0x373   :  { %v3678_v19 = vmul.f32 %v9277_v18, %v3667_v27 }
 0x374   :  { %v3686_v0 = vadd.f32 %v9288_v35, %v3677_v2 }
 0x375   :  { %v3687_v42 = vadd.f32 %v9288_v35, %v3678_v19 }
 0x376   :  { %v3688_v24 = vmax.f32 %v3686_v0, 0.0 }
 0x377   :  { %v3689_v21 = vmax.f32 %v3687_v42, 0.0 }
 0x378   :  { %5193 = vst.msk [vmem:[%s9547_s7 + $0x30] sm:$0xff] %vm9638_vm5, %v3688_v24 }
 0x379   :  { %5194 = vst.msk [vmem:[%s9547_s7 + $0x38] sm:$0x1] %vm987_vm7, %v3689_v21 }
 0x387   :  { %v5683_v12 = vpop.f32.mrb[28].mxu0 }
 0x388   :  { %v5684_v20 = vpop.f32.mrb[29].mxu0 }
 0x389   :  { %v5685_v60 = vadd.f32 %v5684_v20, %v5683_v12 }
 0x38b   :  { %v5686_v26 = vpop.f32.mrb[30].mxu0 }
 0x38c   :  { %v5687_v28 = vpop.f32.mrb[31].mxu0 }
 0x38d   :  { %v5688_v10 = vadd.f32 %v5687_v28, %v5686_v26 }
 0x38e   :  { %v5721_v25 = vpop.f32.mrb[28].mxu1 }
 0x38f   :  { %v5722_v41 = vpop.f32.mrb[29].mxu1 }
 0x390   :  { %v5723_v23 = vadd.f32 %v5722_v41, %v5721_v25 }
 0x392   :  { %v5724_v51 = vpop.f32.mrb[30].mxu1  ;;  %v3924_v5 = vadd.f32 %v5723_v23, %v5685_v60 }
 0x393   :  { %v5725_v34 = vpop.f32.mrb[31].mxu1 }
 0x394   :  { %v5726_v6 = vadd.f32 %v5725_v34, %v5724_v51 }
 0x396   :  { %v3929_v49 = vadd.f32 %v5726_v6, %v5688_v10 }
 0x397   :  { %v6257_v57 = vpop.f32.mrb[32].mxu0 }
 0x398   :  { %v4004_v13 = vadd.f32 %v6257_v57, %v3929_v49  ;;  %v3998_v11 = vpop.f32.mrb[33].mxu0 }
 0x399   :  { %v3999_v56 = vadd.f32 %v3998_v11, %v3924_v5 }
 0x39a   :  { %v4015_v40 = vmul.f32 %v9277_v18, %v4004_v13 }
 0x39b   :  { %v4014_v55 = vmul.f32 %v9277_v18, %v3999_v56 }
 0x39c   :  { %v4024_v59 = vadd.f32 %v9288_v35, %v4015_v40 }
 0x39d   :  { %v4023_v16 = vadd.f32 %v9288_v35, %v4014_v55 }
 0x39e   :  { %v4026_v50 = vmax.f32 %v4024_v59, 0.0 }
 0x39f   :  { %v4025_v45 = vmax.f32 %v4023_v16, 0.0 }
 0x3a0   :  { %5200 = vst.msk [vmem:[%s9547_s7 + $0x48] sm:$0x1] %vm987_vm7, %v4026_v50 }
 0x3a1   :  { %5199 = vst.msk [vmem:[%s9547_s7 + $0x40] sm:$0xff] %vm9639_vm6, %v4025_v45 }
 0x3ae   :  { %v5769_v53 = vpop.f32.mrb[32].mxu1 }
 0x3af   :  { %v5770_v36 = vpop.f32.mrb[33].mxu1 }
 0x3b0   :  { %v5771_v62 = vadd.f32 %v5770_v36, %v5769_v53 }
 0x3b2   :  { %v5772_v14 = vpop.f32.mrb[34].mxu1 }
 0x3b3   :  { %v5773_v3 = vpop.f32.mrb[35].mxu1 }
 0x3b4   :  { %v5774_v43 = vadd.f32 %v5773_v3, %v5772_v14 }
 0x3b7   :  { %v5807_v54 = vpop.f32.mrb[34].mxu0 }
 0x3b8   :  { %v5808_v58 = vpop.f32.mrb[35].mxu0 }
 0x3b9   :  { %v5809_v9 = vadd.f32 %v5808_v58, %v5807_v54 }
 0x3bb   :  { %v5810_v15 = vpop.f32.mrb[36].mxu0  ;;  %v4261_v48 = vadd.f32 %v5809_v9, %v5771_v62 }
 0x3bc   :  { %v5811_v4 = vpop.f32.mrb[37].mxu0 }
 0x3bd   :  { %v5812_v31 = vadd.f32 %v5811_v4, %v5810_v15 }
 0x3be   :  { %v6276_v8 = vpop.f32.mrb[36].mxu1 }
 0x3bf   :  { %v4266_v17 = vadd.f32 %v5812_v31, %v5774_v43  ;;  %v4335_v44 = vpop.f32.mrb[37].mxu1 }
 0x3c0   :  { %v4336_v32 = vadd.f32 %v4335_v44, %v4261_v48 }
 0x3c1   :  { %v4341_v29 = vadd.f32 %v6276_v8, %v4266_v17 }
 0x3c2   :  { %v4351_v61 = vmul.f32 %v9277_v18, %v4336_v32 }
 0x3c3   :  { %v4352_v30 = vmul.f32 %v9277_v18, %v4341_v29 }
 0x3c4   :  { %v4360_v47 = vadd.f32 %v9288_v35, %v4351_v61 }
 0x3c5   :  { %v4361_v7 = vadd.f32 %v9288_v35, %v4352_v30 }
 0x3c6   :  { %v4362_v38 = vmax.f32 %v4360_v47, 0.0 }
 0x3c7   :  { %v4363_v39 = vmax.f32 %v4361_v7, 0.0 }
 0x3c8   :  { %5205 = vst.msk [vmem:[%s9547_s7 + $0x50] sm:$0xff] %vm9640_vm8, %v4362_v38 }
 0x3c9   :  { %5206 = vst.msk [vmem:[%s9547_s7 + $0x58] sm:$0x1] %vm987_vm7, %v4363_v39 }
 0x3d7   :  { %v5855_v46 = vpop.f32.mrb[38].mxu0 }
 0x3d8   :  { %v5856_v63 = vpop.f32.mrb[39].mxu0 }
 0x3d9   :  { %v5857_v52 = vadd.f32 %v5856_v63, %v5855_v46 }
 0x3db   :  { %v5858_v33 = vpop.f32.mrb[40].mxu0 }
 0x3dc   :  { %v5859_v37 = vpop.f32.mrb[41].mxu0 }
 0x3dd   :  { %v5860_v1 = vadd.f32 %v5859_v37, %v5858_v33 }
 0x3de   :  { %v5893_v22 = vpop.f32.mrb[38].mxu1 }
 0x3df   :  { %v5894_v27 = vpop.f32.mrb[39].mxu1 }
 0x3e0   :  { %v5895_v2 = vadd.f32 %v5894_v27, %v5893_v22 }
 0x3e2   :  { %v5896_v19 = vpop.f32.mrb[40].mxu1  ;;  %v4598_v0 = vadd.f32 %v5895_v2, %v5857_v52 }
 0x3e3   :  { %v5897_v42 = vpop.f32.mrb[41].mxu1 }
 0x3e4   :  { %v5898_v24 = vadd.f32 %v5897_v42, %v5896_v19 }
 0x3e6   :  { %v4603_v21 = vadd.f32 %v5898_v24, %v5860_v1 }
 0x3e7   :  { %v6295_v12 = vpop.f32.mrb[42].mxu0 }
 0x3e8   :  { %v4678_v20 = vadd.f32 %v6295_v12, %v4603_v21  ;;  %v4672_v60 = vpop.f32.mrb[43].mxu0 }
 0x3e9   :  { %v4673_v26 = vadd.f32 %v4672_v60, %v4598_v0 }
 0x3ea   :  { %v4689_v28 = vmul.f32 %v9277_v18, %v4678_v20 }
 0x3eb   :  { %v4688_v10 = vmul.f32 %v9277_v18, %v4673_v26 }
 0x3ec   :  { %v4698_v25 = vadd.f32 %v9288_v35, %v4689_v28 }
 0x3ed   :  { %v4697_v41 = vadd.f32 %v9288_v35, %v4688_v10 }
 0x3ee   :  { %v4700_v23 = vmax.f32 %v4698_v25, 0.0 }
 0x3ef   :  { %v4699_v51 = vmax.f32 %v4697_v41, 0.0 }
 0x3f0   :  { %5212 = vst.msk [vmem:[%s9547_s7 + $0x68] sm:$0x1] %vm987_vm7, %v4700_v23 }
 0x3f1   :  { %5211 = vst.msk [vmem:[%s9547_s7 + $0x60] sm:$0xff] %vm9641_vm10, %v4699_v51 }
 0x3fe   :  { %v5941_v5 = vpop.f32.mrb[42].mxu1 }
 0x3ff   :  { %v5942_v34 = vpop.f32.mrb[43].mxu1 }
 0x400   :  { %v5943_v6 = vadd.f32 %v5942_v34, %v5941_v5 }
 0x402   :  { %v5944_v49 = vpop.f32.mrb[44].mxu1 }
 0x403   :  { %v5945_v57 = vpop.f32.mrb[45].mxu1 }
 0x404   :  { %v5946_v13 = vadd.f32 %v5945_v57, %v5944_v49 }
 0x407   :  { %v5979_v11 = vpop.f32.mrb[44].mxu0 }
 0x408   :  { %v5980_v56 = vpop.f32.mrb[45].mxu0 }
 0x409   :  { %v5981_v40 = vadd.f32 %v5980_v56, %v5979_v11 }
 0x40b   :  { %v5982_v55 = vpop.f32.mrb[46].mxu0  ;;  %v4935_v59 = vadd.f32 %v5981_v40, %v5943_v6 }
 0x40c   :  { %v5983_v16 = vpop.f32.mrb[47].mxu0 }
 0x40d   :  { %v5984_v50 = vadd.f32 %v5983_v16, %v5982_v55 }
 0x40e   :  { %v6314_v45 = vpop.f32.mrb[46].mxu1 }
 0x40f   :  { %v4940_v53 = vadd.f32 %v5984_v50, %v5946_v13  ;;  %v5009_v36 = vpop.f32.mrb[47].mxu1 }
 0x410   :  { %v5010_v62 = vadd.f32 %v5009_v36, %v4935_v59 }
 0x411   :  { %v5015_v14 = vadd.f32 %v6314_v45, %v4940_v53 }
 0x412   :  { %v5025_v3 = vmul.f32 %v9277_v18, %v5010_v62 }
 0x413   :  { %v5026_v43 = vmul.f32 %v9277_v18, %v5015_v14 }
 0x414   :  { %v5034_v54 = vadd.f32 %v9288_v35, %v5025_v3 }
 0x415   :  { %v5035_v58 = vadd.f32 %v9288_v35, %v5026_v43 }
 0x416   :  { %v5036_v9 = vmax.f32 %v5034_v54, 0.0 }
 0x417   :  { %v5037_v15 = vmax.f32 %v5035_v58, 0.0 }
 0x418   :  { %5217 = vst.msk [vmem:[%s9547_s7 + $0x70] sm:$0xff] %vm9642_vm2, %v5036_v9 }
 0x419   :  { %5218 = vst.msk [vmem:[%s9547_s7 + $0x78] sm:$0x1] %vm987_vm7, %v5037_v15 }

</bundles_post_ra>
